<compile_context>
chip_gen: v7x
topology: tpu7x:2x2x1
jax: 0.10.0
libtpu: 0.0.40
codegen_flags: <defaults>
</compile_context>

<pallas_src>
import functools
import numpy as np

import jax
import jax.numpy as jnp
from jax import lax
from jax.experimental import pallas as pl
from jax.experimental.pallas import tpu as pltpu


# ----------------------------------------------------------------------------
# Fused matmul kernel:  out = act( BN(A @ W + bias) [+ res] )
#   grid = (nn "parallel", nk "arbitrary"); acc scratch is (Mp, tn) f32.
# ----------------------------------------------------------------------------
def _fused_matmul_kernel(*refs, act, norm, has_bias, has_res,
                         res_after_act, m_valid):
    i = 0
    a_ref = refs[i]; i += 1
    b_ref = refs[i]; i += 1
    cbias_ref = None
    res_ref = None
    if has_bias:
        cbias_ref = refs[i]; i += 1
    if has_res:
        res_ref = refs[i]; i += 1
    o_ref = refs[i]; i += 1
    acc_ref = refs[i]

    k = pl.program_id(1)

    @pl.when(k == 0)
    def _():
        acc_ref[...] = jnp.zeros_like(acc_ref)

    acc_ref[...] += jnp.dot(a_ref[...], b_ref[...],
                            preferred_element_type=jnp.float32)

    @pl.when(k == pl.num_programs(1) - 1)
    def _():
        y = acc_ref[...]
        if has_bias:
            y = y + cbias_ref[...]
        if norm == "batch":
            # train-mode BatchNorm2d: stats over the B*H*W rows, per channel.
            if m_valid == y.shape[0]:
                mu = jnp.mean(y, axis=0, keepdims=True)
                var = jnp.mean(jnp.square(y - mu), axis=0, keepdims=True)
            else:
                # padded rows are excluded from the statistics.
                mask = (lax.broadcasted_iota(jnp.int32, y.shape, 0)
                        < m_valid).astype(jnp.float32)
                inv = 1.0 / float(m_valid)
                mu = jnp.sum(y * mask, axis=0, keepdims=True) * inv
                var = jnp.sum(jnp.square(y - mu) * mask,
                              axis=0, keepdims=True) * inv
            y = (y - mu) * lax.rsqrt(var + 1e-5)
        if has_res and not res_after_act:
            y = y + res_ref[...].astype(jnp.float32)   # torchvision Bottleneck
        if act == "relu":
            y = jnp.maximum(y, 0.0)
        if has_res and res_after_act:
            y = y + res_ref[...].astype(jnp.float32)   # MyBottleneck
        o_ref[...] = y.astype(o_ref.dtype)


def _pick_tn(N):
    if N <= 512:
        return N
    for t in (512, 256, 128):
        if N % t == 0:
            return t
    return N


def _pick_kt(Mp, K, tn, out_bytes, budget=18 * 1024 * 1024):
    """Largest divisor-of-K multiple of 128 whose double-buffered tiles fit."""
    if K <= 128 or K % 128 != 0:
        return K
    fixed = Mp * tn * 4 + 3 * Mp * tn * out_bytes      # acc + out/res buffers
    best, kt = 128, 128
    while kt <= K:
        if K % kt == 0:
            need = fixed + 2 * (Mp * kt * 2 + kt * tn * 2)   # bf16 A + W, dbl buf
            if need <= budget:
                best = kt
            else:
                break
        kt += 128
    return best


def _matmul_pallas(A, Wm, cbias, res, *, act, norm, res_after_act,
                   m_valid, out_dtype):
    Mp, K = A.shape
    _, N = Wm.shape
    tn = _pick_tn(N)
    kt = _pick_kt(Mp, K, tn, jnp.dtype(out_dtype).itemsize)
    nk = K // kt
    nn = N // tn
    has_bias = cbias is not None
    has_res = res is not None

    kernel = functools.partial(_fused_matmul_kernel, act=act, norm=norm,
                               has_bias=has_bias, has_res=has_res,
                               res_after_act=res_after_act, m_valid=m_valid)

    in_specs = [pl.BlockSpec((Mp, kt), lambda n, k: (0, k)),
                pl.BlockSpec((kt, tn), lambda n, k: (k, n))]
    inputs = [A, Wm]
    if has_bias:
        in_specs.append(pl.BlockSpec((1, tn), lambda n, k: (0, n)))
        inputs.append(cbias)
    if has_res:
        in_specs.append(pl.BlockSpec((Mp, tn), lambda n, k: (0, n)))
        inputs.append(res)

    return pl.pallas_call(
        kernel,
        out_shape=jax.ShapeDtypeStruct((Mp, N), out_dtype),
        grid_spec=pltpu.PrefetchScalarGridSpec(
            num_scalar_prefetch=0,
            grid=(nn, nk),
            in_specs=in_specs,
            out_specs=pl.BlockSpec((Mp, tn), lambda n, k: (0, n)),
            scratch_shapes=[pltpu.VMEM((Mp, tn), jnp.float32)]),
        compiler_params=pltpu.CompilerParams(
            dimension_semantics=("parallel", "arbitrary"),
            vmem_limit_bytes=40 * 1024 * 1024),
    )(*inputs)


# ----------------------------------------------------------------------------
# Conv2d (im2col glue in XLA, hot path = fused Pallas matmul, bf16 operands)
# ----------------------------------------------------------------------------
@functools.partial(jax.jit, static_argnames=("stride", "dilation", "padding",
                                             "act", "norm", "res_after_act",
                                             "out_dtype"))
def conv2d_nhwc(x, w4, bias, res, *, stride=1, dilation=1, padding=0,
                act="none", norm="none", res_after_act=False,
                out_dtype=jnp.bfloat16):
    B, H, W, C = x.shape
    kh, kw, cin, N = w4.shape
    Ho = (H + 2 * padding - dilation * (kh - 1) - 1) // stride + 1
    Wo = (W + 2 * padding - dilation * (kw - 1) - 1) // stride + 1

    xb = x.astype(jnp.bfloat16)
    if padding:
        xb = jnp.pad(xb, ((0, 0), (padding, padding), (padding, padding), (0, 0)))

    if kh == 1 and kw == 1:
        xs = xb[:, ::stride, ::stride, :] if stride != 1 else xb
        A = xs.reshape(B * Ho * Wo, C)
    else:
        cols = []
        for i in range(kh):
            for j in range(kw):
                h0, w0 = i * dilation, j * dilation
                sl = lax.slice(xb, (0, h0, w0, 0),
                               (B, h0 + stride * (Ho - 1) + 1,
                                w0 + stride * (Wo - 1) + 1, C),
                               (1, stride, stride, 1))
                cols.append(sl)
        A = jnp.stack(cols, axis=3).reshape(B * Ho * Wo, kh * kw * C)

    wmat = w4.reshape(kh * kw * cin, N).astype(jnp.bfloat16)
    M = B * Ho * Wo
    Mp = -(-M // 8) * 8
    if Mp != M:
        A = jnp.pad(A, ((0, Mp - M), (0, 0)))
    if res is not None and res.shape[0] != Mp:
        res = jnp.pad(res, ((0, Mp - res.shape[0]), (0, 0)))

    cbias = None if bias is None else bias.reshape(1, N).astype(jnp.float32)
    out = _matmul_pallas(A, wmat, cbias, res, act=act, norm=norm,
                         res_after_act=res_after_act, m_valid=M,
                         out_dtype=out_dtype)
    return out[:M].reshape(B, Ho, Wo, N)


def conv_op(x, cp, *, stride=1, dilation=1, padding=0, act="none", norm="none",
            res=None, res_after_act=False, out_dtype=jnp.bfloat16):
    res_flat = None if res is None else res.reshape(-1, res.shape[-1])
    return conv2d_nhwc(x, cp["w"], cp["b"], res_flat, stride=stride,
                       dilation=dilation, padding=padding, act=act, norm=norm,
                       res_after_act=res_after_act, out_dtype=out_dtype)


@functools.partial(jax.jit, static_argnames=("act", "out_dtype"))
def dense(x, wmat, bias, *, act="none", out_dtype=jnp.float32):
    M, K = x.shape
    _, N = wmat.shape
    Mp = -(-M // 8) * 8
    A = x.astype(jnp.bfloat16)
    if Mp != M:
        A = jnp.pad(A, ((0, Mp - M), (0, 0)))
    cbias = None if bias is None else bias.reshape(1, N).astype(jnp.float32)
    out = _matmul_pallas(A, wmat.astype(jnp.bfloat16), cbias, None, act=act,
                         norm="none", res_after_act=False, m_valid=M,
                         out_dtype=out_dtype)
    return out[:M]


# ----------------------------------------------------------------------------
# MaxPool 3x3 / s2 / p1 : Pallas reduction tiled over rows
# ----------------------------------------------------------------------------
def _max_reduce_kernel(p_ref, o_ref):
    m = p_ref[0]
    for t in range(1, 9):
        m = jnp.maximum(m, p_ref[t])
    o_ref[...] = m


@jax.jit
def maxpool2d_3x3_s2_p1(x):
    B, H, W, C = x.shape
    Ho = (H + 2 - 3) // 2 + 1
    Wo = (W + 2 - 3) // 2 + 1
    xp = jnp.pad(x, ((0, 0), (1, 1), (1, 1), (0, 0)),
                 constant_values=-jnp.inf)
    cols = []
    for i in range(3):
        for j in range(3):
            sl = lax.slice(xp, (0, i, j, 0),
                           (B, i + 2 * (Ho - 1) + 1, j + 2 * (Wo - 1) + 1, C),
                           (1, 2, 2, 1))
            cols.append(sl)
    M = B * Ho * Wo
    P = jnp.stack(cols, 0).reshape(9, M, C)
    tm = 512 if M >= 512 else -(-M // 8) * 8
    Mp = -(-M // tm) * tm
    if Mp != M:
        P = jnp.pad(P, ((0, 0), (0, Mp - M), (0, 0)),
                    constant_values=-jnp.inf)
    out = pl.pallas_call(
        _max_reduce_kernel,
        out_shape=jax.ShapeDtypeStruct((Mp, C), x.dtype),
        grid_spec=pltpu.PrefetchScalarGridSpec(
            num_scalar_prefetch=0, grid=(Mp // tm,),
            in_specs=[pl.BlockSpec((9, tm, C), lambda i: (0, i, 0))],
            out_specs=pl.BlockSpec((tm, C), lambda i: (i, 0))),
        compiler_params=pltpu.CompilerParams(
            dimension_semantics=("parallel",)),
    )(P)
    return out[:M].reshape(B, Ho, Wo, C)


# ----------------------------------------------------------------------------
# Global average pool (AdaptiveAvgPool2d((1,1)))  -> (B, C) f32
# ----------------------------------------------------------------------------
def _avgpool_kernel(x_ref, o_ref):
    o_ref[...] = jnp.mean(x_ref[...].astype(jnp.float32), axis=1)


@jax.jit
def global_avgpool(x):
    B, H, W, C = x.shape
    xr = x.reshape(B, H * W, C)
    return pl.pallas_call(
        _avgpool_kernel,
        out_shape=jax.ShapeDtypeStruct((B, C), jnp.float32),
        grid_spec=pltpu.PrefetchScalarGridSpec(
            num_scalar_prefetch=0, grid=(1,),
            in_specs=[pl.BlockSpec((B, H * W, C), lambda i: (0, 0, 0))],
            out_specs=pl.BlockSpec((B, C), lambda i: (0, 0))),
    )(xr)


# ----------------------------------------------------------------------------
# Bilinear x2 upsample (align_corners=False): one lane-dense Pallas matmul with
# a (host-cached) block-diagonal interpolation matrix (no transposes).
# ----------------------------------------------------------------------------
def _bilinear_matrix(n_in, n_out):
    m = np.zeros((n_in, n_out), np.float32)
    for o in range(n_out):
        src = max((o + 0.5) * n_in / n_out - 0.5, 0.0)
        i0 = int(np.floor(src))
        frac = src - i0
        m[min(i0, n_in - 1), o] += 1.0 - frac
        m[min(i0 + 1, n_in - 1), o] += frac
    return m


@functools.lru_cache(maxsize=None)
def _upsample_matrix(B, H, W):
    Mh = _bilinear_matrix(H, 2 * H)              # (H, 2H)
    Mw = _bilinear_matrix(W, 2 * W)              # (W, 2W)
    U = np.einsum("io,jp->opij", Mh, Mw).reshape(4 * H * W, H * W)
    return np.kron(np.eye(B, dtype=np.float32), U)   # (B*4HW, B*HW) block-diag


def upsample_bilinear_2x(x):
    B, H, W, C = x.shape
    Ubd = _upsample_matrix(B, H, W)
    out = dense(jnp.asarray(Ubd), x.reshape(B * H * W, C), None,
                out_dtype=jnp.bfloat16)
    return out.reshape(B, 2 * H, 2 * W, C)


# ----------------------------------------------------------------------------
# Deterministic parameter construction (weights stored as bf16, biases f32)
# ----------------------------------------------------------------------------
class KeyGen:
    def __init__(self, seed):
        self.key = jax.random.PRNGKey(seed)
        self.i = 0

    def __call__(self):
        self.i += 1
        return jax.random.fold_in(self.key, self.i)


def make_conv_p(kg, cin, cout, k, bias=False):
    w = jax.random.normal(kg(), (k, k, cin, cout), jnp.float32)
    w = w * (1.0 / (cin * k * k)) ** 0.5
    b = (0.01 * jax.random.normal(kg(), (cout,), jnp.float32)) if bias else None
    return {"w": w.astype(jnp.bfloat16), "b": b}


def make_dense_p(kg, cin, cout):
    w = jax.random.normal(kg(), (cin, cout), jnp.float32) * (1.0 / cin) ** 0.5
    b = 0.01 * jax.random.normal(kg(), (cout,), jnp.float32)
    return {"w": w.astype(jnp.bfloat16), "b": b}


def make_bottleneck_p(kg, inplanes, planes, downsample):
    return {"conv1": make_conv_p(kg, inplanes, planes, 1),
            "conv2": make_conv_p(kg, planes, planes, 3),
            "conv3": make_conv_p(kg, planes, planes * 4, 1),
            "downsample": (make_conv_p(kg, inplanes, planes * 4, 1)
                           if downsample else None)}


RESNET_LAYERS = ((64, 3, 1), (128, 4, 2), (256, 23, 2), (512, 3, 2))
ENC_DILATIONS = (2, 4, 6)


def make_resnet101_p(kg):
    p = {"conv1": make_conv_p(kg, 3, 64, 7)}
    inplanes = 64
    layers = []
    for planes, blocks, stride in RESNET_LAYERS:
        ds = (stride != 1) or (inplanes != planes * 4)
        layer = [make_bottleneck_p(kg, inplanes, planes, ds)]
        inplanes = planes * 4
        for _ in range(1, blocks):
            layer.append(make_bottleneck_p(kg, inplanes, planes, False))
        layers.append(layer)
    p["layers"] = layers
    return p


def make_mybottleneck_p(kg, in_c, mid_c):
    return {"c1": make_conv_p(kg, in_c, mid_c, 1, bias=True),
            "c2": make_conv_p(kg, mid_c, mid_c, 3, bias=True),
            "c3": make_conv_p(kg, mid_c, in_c, 1, bias=True)}


def make_dilated_encoder_p(kg, in_channels, enc_c=512, mid_c=128):
    return {"lateral": make_conv_p(kg, in_channels, enc_c, 1, bias=True),
            "fpn": make_conv_p(kg, enc_c, enc_c, 3, bias=True),
            "blocks": [make_mybottleneck_p(kg, enc_c, mid_c)
                       for _ in ENC_DILATIONS]}


def make_model_params(seed=0):
    kg = KeyGen(seed)
    p = {"rgb": make_resnet101_p(kg),
         "depth": make_resnet101_p(kg),
         "enc_l3_rgb": make_dilated_encoder_p(kg, 2048),
         "enc_l4_rgb": make_dilated_encoder_p(kg, 4096),
         "con2d": make_conv_p(kg, 1024, 512, 3, bias=True),
         "con2d_t": make_conv_p(kg, 1024, 512, 3, bias=True),
         "fc_t": make_dense_p(kg, 512, 512),
         "fc1": make_dense_p(kg, 512, 256)}
    for head in ("calorie", "mass", "fat", "carb", "protein"):
        p[head] = [make_dense_p(kg, 256, 256), make_dense_p(kg, 256, 1)]
    return p


# ----------------------------------------------------------------------------
# Forward pass (block-level jits; all hyper-parameters are static Python)
# ----------------------------------------------------------------------------
@functools.partial(jax.jit, static_argnames=("stride",))
def bottleneck_fwd(p, x, *, stride=1):
    identity = x
    out = conv_op(x, p["conv1"], act="relu", norm="batch")
    out = conv_op(out, p["conv2"], stride=stride, padding=1,
                  act="relu", norm="batch")
    if p["downsample"] is not None:
        identity = conv_op(x, p["downsample"], stride=stride,
                           act="none", norm="batch")
    return conv_op(out, p["conv3"], act="relu", norm="batch",
                   res=identity, res_after_act=False)


def resnet_to_l3(p, x):
    x = conv_op(x, p["conv1"], stride=2, padding=3, act="relu", norm="batch")
    x = maxpool2d_3x3_s2_p1(x)
    for li in range(3):
        _, blocks, stride = RESNET_LAYERS[li]
        for bi in range(blocks):
            x = bottleneck_fwd(p["layers"][li][bi], x,
                               stride=(stride if bi == 0 else 1))
    return x


def resnet_layer4(p, x):
    _, blocks, stride = RESNET_LAYERS[3]
    for bi in range(blocks):
        x = bottleneck_fwd(p["layers"][3][bi], x,
                           stride=(stride if bi == 0 else 1))
    return x


@functools.partial(jax.jit, static_argnames=("dilation",))
def mybottleneck_fwd(p, x, *, dilation):
    identity = x
    out = conv_op(x, p["c1"], act="relu", norm="batch")
    out = conv_op(out, p["c2"], dilation=dilation, padding=dilation,
                  act="relu", norm="batch")
    return conv_op(out, p["c3"], act="relu", norm="batch",
                   res=identity, res_after_act=True)


def dilated_encoder_fwd(p, x):
    out = conv_op(x, p["lateral"], act="none", norm="batch")
    out = conv_op(out, p["fpn"], padding=1, act="none", norm="batch")
    for blk, d in zip(p["blocks"], ENC_DILATIONS):
        out = mybottleneck_fwd(blk, out, dilation=d)
    return out


@jax.jit
def fused_tail(con2d_p, con2d_t_p, fea_cat):
    """con2d and con2d_t share the same input & 3x3 geometry -> one matmul,
    one global-avgpool kernel (shared im2col A, channel-concatenated weights)."""
    w = jnp.concatenate([con2d_p["w"], con2d_t_p["w"]], axis=-1)   # (3,3,1024,1024)
    b = jnp.concatenate([con2d_p["b"], con2d_t_p["b"]], axis=0)    # (1024,)
    y = conv2d_nhwc(fea_cat, w, b, None, stride=1, dilation=1, padding=1,
                    act="relu", norm="none", out_dtype=jnp.bfloat16)
    pooled = global_avgpool(y)                                     # (B,1024) f32
    C = con2d_p["w"].shape[-1]
    return pooled[:, :C], pooled[:, C:]


_HEADS = ("calorie", "mass", "fat", "carb", "protein")


@jax.jit
def head_section(hp, rgb_fea, rgb_fea_t_in):
    rgb_fea_t = dense(rgb_fea_t_in, hp["fc_t"]["w"], hp["fc_t"]["b"])
    embedding = dense(rgb_fea, hp["fc1"]["w"], hp["fc1"]["b"], act="relu")
    # fuse the 5 (Linear 256->256, Linear 256->1) heads into two matmuls.
    w1 = jnp.concatenate([hp[h][0]["w"] for h in _HEADS], axis=1)     # (256,1280)
    b1 = jnp.concatenate([hp[h][0]["b"] for h in _HEADS], axis=0)     # (1280,)
    w2_stack = jnp.stack([hp[h][1]["w"][:, 0] for h in _HEADS], axis=0)  # (5,256)
    eye5 = jnp.eye(5, dtype=w2_stack.dtype)
    w2_bd = (w2_stack[:, :, None] * eye5[:, None, :]).reshape(5 * 256, 5)
    b2 = jnp.concatenate([hp[h][1]["b"] for h in _HEADS], axis=0)     # (5,)
    h1 = dense(embedding, w1, b1)                                     # (B,1280)
    out5 = dense(h1, w2_bd, b2)                                       # (B,5)
    return out5, rgb_fea_t


def my_resnet_rgbd_forward(params, x_rgb_nchw, x_depth_nchw):
    xr = jnp.transpose(x_rgb_nchw, (0, 2, 3, 1)).astype(jnp.float32)
    xd = jnp.transpose(x_depth_nchw, (0, 2, 3, 1)).astype(jnp.float32)

    l3_rgb_src = resnet_to_l3(params["rgb"], xr)
    l3_depth = resnet_to_l3(params["depth"], xd)
    l3_cat = jnp.concatenate([l3_depth, l3_rgb_src], axis=-1)      # 2048 ch

    l4_depth = resnet_layer4(params["depth"], l3_depth)
    l4_rgb = resnet_layer4(params["rgb"], l3_rgb_src)
    l4_cat = jnp.concatenate([l4_rgb, l4_depth], axis=-1)          # 4096 ch

    l3_dil = dilated_encoder_fwd(params["enc_l3_rgb"], l3_cat)     # 512 ch
    l4_dil = dilated_encoder_fwd(params["enc_l4_rgb"], l4_cat)     # 512 ch
    l4_up = upsample_bilinear_2x(l4_dil)
    fea_cat = jnp.concatenate([l3_dil, l4_up], axis=-1)            # 1024 ch

    rgb_fea, rgb_fea_t = fused_tail(params["con2d"], params["con2d_t"], fea_cat)

    hp = {k: params[k] for k in (("fc_t", "fc1") + _HEADS)}
    out5, rgb_fea_t = head_section(hp, rgb_fea, rgb_fea_t)

    results = [jnp.squeeze(out5[:, i]) for i in range(5)]          # 5 x (B,)
    return results, rgb_fea_t


# ----------------------------------------------------------------------------
if __name__ == "__main__":
    B = 2
    key = jax.random.PRNGKey(0)
    k1, k2 = jax.random.split(key)
    # 64x64 keeps layer3 at 4x4 and layer4 at 2x2 while channel widths
    # (1024/2048/4096/512/256) match the module exactly.
    x_rgb = jax.random.normal(k1, (B, 3, 64, 64), jnp.float32)
    x_depth = jax.random.normal(k2, (B, 3, 64, 64), jnp.float32)

    params = make_model_params(seed=0)
    results, rgb_fea_t = my_resnet_rgbd_forward(params, x_rgb, x_depth)
    jax.block_until_ready(results)
    jax.block_until_ready(rgb_fea_t)

    assert rgb_fea_t.shape == (B, 512)
    assert all(r.shape == (B,) for r in results) and len(results) == 5
    assert bool(jnp.all(jnp.isfinite(rgb_fea_t)))
    assert all(bool(jnp.all(jnp.isfinite(r))) for r in results)
    print("KERNEL_OK")
</pallas_src>

<mosaic_0001>
module attributes {stable_mosaic.version = 11 : i64} {
  func.func @_fused_matmul_kernel(%arg0: i32, %arg1: i32, %arg2: memref<2048x147xbf16, #tpu.memory_space<vmem>>, %arg3: memref<147x64xbf16, #tpu.memory_space<vmem>>, %arg4: memref<2048x64xbf16, #tpu.memory_space<vmem>>, %arg5: memref<2048x64xf32, #tpu.memory_space<vmem>>) attributes {dimension_semantics = [#tpu.dimension_semantics<parallel>, #tpu.dimension_semantics<arbitrary>], iteration_bounds = array<i64: 1, 1>, scalar_prefetch = 0 : i64, scratch_operands = 1 : i64, tpu.core_type = #tpu.core_type<tc>, window_params = [{transform_indices = @transform_0, window_bounds = array<i64: 2048, 147>}, {transform_indices = @transform_1, window_bounds = array<i64: 147, 64>}, {transform_indices = @transform_2, window_bounds = array<i64: 2048, 64>}]} {
    %c0_i32 = arith.constant 0 : i32
    %0 = arith.cmpi eq, %arg1, %c0_i32 : i32
    %1 = arith.extui %0 : i1 to i32
    %c0_i32_0 = arith.constant 0 : i32
    %2 = arith.cmpi ne, %1, %c0_i32_0 : i32
    scf.if %2 {
      %cst_10 = arith.constant 0.000000e+00 : f32
      %12 = vector.broadcast %cst_10 : f32 to vector<2048x64xf32>
      %c0_11 = arith.constant 0 : index
      %c0_12 = arith.constant 0 : index
      %13 = vector.load %arg5[%c0_11, %c0_12] : memref<2048x64xf32, #tpu.memory_space<vmem>>, vector<2048x64xf32>
      tpu.vector_store %arg5[%c0_11, %c0_12], %12 {strides = array<i32>} : memref<2048x64xf32, #tpu.memory_space<vmem>>, vector<2048x64xf32>,
    } else {
    }
    %c0 = arith.constant 0 : index
    %c0_1 = arith.constant 0 : index
    %3 = vector.load %arg5[%c0, %c0_1] : memref<2048x64xf32, #tpu.memory_space<vmem>>, vector<2048x64xf32>
    %c0_2 = arith.constant 0 : index
    %c0_3 = arith.constant 0 : index
    %4 = vector.load %arg2[%c0_2, %c0_3] : memref<2048x147xbf16, #tpu.memory_space<vmem>>, vector<2048x147xbf16>
    %c0_4 = arith.constant 0 : index
    %c0_5 = arith.constant 0 : index
    %5 = vector.load %arg3[%c0_4, %c0_5] : memref<147x64xbf16, #tpu.memory_space<vmem>>, vector<147x64xbf16>
    %cst = arith.constant dense<0.000000e+00> : vector<2048x64xf32>
    %6 = tpu.matmul %4, %5, %cst {dimension_numbers = #tpu.dot_dimension_numbers<[1], [0], [0], [1], [0, 0, 1, 1], [], []>} : vector<2048x147xbf16>, vector<147x64xbf16>, vector<2048x64xf32> -> vector<2048x64xf32>
    %7 = arith.addf %3, %6 : vector<2048x64xf32>
    %c0_6 = arith.constant 0 : index
    %c0_7 = arith.constant 0 : index
    %8 = vector.load %arg5[%c0_6, %c0_7] : memref<2048x64xf32, #tpu.memory_space<vmem>>, vector<2048x64xf32>
    tpu.vector_store %arg5[%c0_6, %c0_7], %7 {strides = array<i32>} : memref<2048x64xf32, #tpu.memory_space<vmem>>, vector<2048x64xf32>,
    %c0_i32_8 = arith.constant 0 : i32
    %9 = arith.cmpi eq, %arg1, %c0_i32_8 : i32
    %10 = arith.extui %9 : i1 to i32
    %c0_i32_9 = arith.constant 0 : i32
    %11 = arith.cmpi ne, %10, %c0_i32_9 : i32
    scf.if %11 {
      %c0_10 = arith.constant 0 : index
      %c0_11 = arith.constant 0 : index
      %12 = vector.load %arg5[%c0_10, %c0_11] : memref<2048x64xf32, #tpu.memory_space<vmem>>, vector<2048x64xf32>
      %cst_12 = arith.constant dense<0.000000e+00> : vector<64xf32>
      %13 = vector.multi_reduction <add>, %12, %cst_12 [0] : vector<2048x64xf32> to vector<64xf32>
      %14 = vector.shape_cast %13 : vector<64xf32> to vector<1x64xf32>
      %cst_13 = arith.constant 2.048000e+03 : f32
      %15 = vector.broadcast %cst_13 : f32 to vector<1x64xf32>
      %16 = arith.divf %14, %15 : vector<1x64xf32>
      %17 = vector.broadcast %16 : vector<1x64xf32> to vector<2048x64xf32>
      %18 = arith.subf %12, %17 : vector<2048x64xf32>
      %19 = arith.mulf %18, %18 : vector<2048x64xf32>
      %cst_14 = arith.constant dense<0.000000e+00> : vector<64xf32>
      %20 = vector.multi_reduction <add>, %19, %cst_14 [0] : vector<2048x64xf32> to vector<64xf32>
      %21 = vector.shape_cast %20 : vector<64xf32> to vector<1x64xf32>
      %cst_15 = arith.constant 2.048000e+03 : f32
      %22 = vector.broadcast %cst_15 : f32 to vector<1x64xf32>
      %23 = arith.divf %21, %22 : vector<1x64xf32>
      %24 = vector.broadcast %16 : vector<1x64xf32> to vector<2048x64xf32>
      %25 = arith.subf %12, %24 : vector<2048x64xf32>
      %cst_16 = arith.constant 9.99999974E-6 : f32
      %26 = vector.broadcast %cst_16 : f32 to vector<1x64xf32>
      %27 = arith.addf %23, %26 : vector<1x64xf32>
      %28 = math.rsqrt %27 : vector<1x64xf32>
      %29 = vector.broadcast %28 : vector<1x64xf32> to vector<2048x64xf32>
      %30 = arith.mulf %25, %29 : vector<2048x64xf32>
      %cst_17 = arith.constant 0.000000e+00 : f32
      %31 = vector.broadcast %cst_17 : f32 to vector<2048x64xf32>
      %32 = arith.maximumf %30, %31 : vector<2048x64xf32>
      %33 = arith.truncf %32 : vector<2048x64xf32> to vector<2048x64xbf16>
      %c0_18 = arith.constant 0 : index
      %c0_19 = arith.constant 0 : index
      %34 = vector.load %arg4[%c0_18, %c0_19] : memref<2048x64xbf16, #tpu.memory_space<vmem>>, vector<2048x64xbf16>
      tpu.vector_store %arg4[%c0_18, %c0_19], %33 {strides = array<i32>} : memref<2048x64xbf16, #tpu.memory_space<vmem>>, vector<2048x64xbf16>,
    } else {
    }
    return
  }
  func.func @transform_0(%arg0: i32, %arg1: i32) -> (i32, i32) {
    %c0_i32 = arith.constant 0 : i32
    %c0_i32_0 = arith.constant 0 : i32
    return %c0_i32, %arg1 : i32, i32
  }
  func.func @transform_1(%arg0: i32, %arg1: i32) -> (i32, i32) {
    %c0_i32 = arith.constant 0 : i32
    return %arg1, %arg0 : i32, i32
  }
  func.func @transform_2(%arg0: i32, %arg1: i32) -> (i32, i32) {
    %c0_i32 = arith.constant 0 : i32
    %c0_i32_0 = arith.constant 0 : i32
    return %c0_i32, %arg0 : i32, i32
  }
}

</mosaic_0001>

<bundles_post_ra>
// kernel: conv2d_nhwc.1
= control target key start
LH: loop header
LB: loop body
LE: loop exit
PB: predicated region body
PF: predicated region fallthrough
CT: control target
= control target key end

     0   :  { %v9145_v1 = vmov 0   ;;  %vm2014_vm0 = vcmask 154624   ;;  %vm2399_vm1 = vcmask 1040384   ;;  %vm2400_vm2 = vcmask 1041408   ;;  %s15145_s0 = inlined_call_operand.vmem [shape: bf16[2048,147], index: 0, kind: input, shape index: {}]   ;;  %s15146_s1 = inlined_call_operand.vmem [shape: bf16[147,64], index: 1, kind: input, shape index: {}]   ;;  %s15147_s2 = inlined_call_operand.hbm [shape: bf16[2048,64], index: 2, kind: output, shape index: {}]  }
   0x1   :  { %v8527_v0 = vld [vmem:[%s15146_s1] sm:$0xff]   ;;  %2406 = vmatprep.subr.bf16.mxu0 %v9145_v1  ;;  %8501 = vmatprep.subr.bf16.mxu1 %v9145_v1  ;;  %v8528_v2 = vld [vmem:[%s15146_s1 + $0x8] sm:$0xff]   ;;  %v8529_v3 = vld [vmem:[%s15146_s1 + $0x10] sm:$0xff]   ;;  %v9146_v10 = vmov 65535  }
   0x2   :  { %2407 = vmatpush1.bf16.msra.mxu0 %v8527_v0  ;;  %8511 = vmatpush1.bf16.msra.mxu1 %v8527_v0  ;;  %v8530_v4 = vld [vmem:[%s15146_s1 + $0x18] sm:$0xff]   ;;  %v8539_v5 = vld [vmem:[%s15145_s0 + $0x4] ss:$8 sps:$4 sm:$0xff]   ;;  %v8533_v8 = vld [vmem:[%s15146_s1 + $0x30] sm:$0xff]   ;;  %v2401_v11 = vsel %vm2399_vm1, 4294967295, %v9146_v10 }
   0x3   :  { %2408 = vmatprep.subr.bf16.mxu0 %v9145_v1  ;;  %8502 = vmatprep.subr.bf16.mxu1 %v9145_v1  ;;  %v8531_v6 = vld [vmem:[%s15146_s1 + $0x20] sm:$0xff]   ;;  %v8532_v7 = vld [vmem:[%s15146_s1 + $0x28] sm:$0xff]   ;;  %v8534_v9 = vld [vmem:[%s15146_s1 + $0x38] sm:$0xff]   ;;  %v2402_v14 = vsel %vm2400_vm2, %v2401_v11, 0 }
   0x4   :  { %7861 = vmatprep.mubr.msk.bf16.mxu0 %vm2014_vm0, %v8539_v5  ;;  %v8535_v12 = vld [vmem:[%s15146_s1 + $0x40] sm:$0xff]   ;;  %v8536_v13 = vld [vmem:[%s15146_s1 + $0x48] ss:$0 sps:$4 sm:$0x33]   ;;  %v8540_v17 = vld [vmem:[%s15145_s0 + $0x14] ss:$8 sps:$4 sm:$0xff]  }
   0x5   :  { %v2404_v15 = vand.u32 %v8536_v13, %v2402_v14  ;;  %v8537_v16 = vld [vmem:[%s15145_s0] ss:$8 sps:$4 sm:$0xff]   ;;  %v8542_v18 = vld [vmem:[%s15145_s0 + $0x10] ss:$8 sps:$4 sm:$0xff]   ;;  %v8543_v19 = vld [vmem:[%s15145_s0 + $0x24] ss:$8 sps:$4 sm:$0xff]  }
   0x6   :  { %2409 = vmatpush1.bf16.msra.mxu0 %v8528_v2  ;;  %8512 = vmatpush1.bf16.msra.mxu1 %v8528_v2  ;;  %v8545_v20 = vld [vmem:[%s15145_s0 + $0x20] ss:$8 sps:$4 sm:$0xff]   ;;  %v8546_v21 = vld [vmem:[%s15145_s0 + $0x34] ss:$8 sps:$4 sm:$0xff]   ;;  %v8548_v22 = vld [vmem:[%s15145_s0 + $0x30] ss:$8 sps:$4 sm:$0xff]  }
   0x7   :  { %2410 = vmatprep.subr.bf16.mxu0 %v9145_v1  ;;  %8503 = vmatprep.subr.bf16.mxu1 %v9145_v1  ;;  %v8549_v23 = vld [vmem:[%s15145_s0 + $0x44] ss:$8 sps:$4 sm:$0xff]   ;;  %v8551_v24 = vld [vmem:[%s15145_s0 + $0x40] ss:$8 sps:$4 sm:$0xff]   ;;  %v8552_v25 = vld [vmem:[%s15145_s0 + $0x54] ss:$8 sps:$4 sm:$0xff]  }
   0xa   :  { %2411 = vmatpush1.bf16.msra.mxu0 %v8529_v3  ;;  %8513 = vmatpush1.bf16.msra.mxu1 %v8529_v3 }
   0xb   :  { %2412 = vmatprep.subr.bf16.mxu0 %v9145_v1  ;;  %8504 = vmatprep.subr.bf16.mxu1 %v9145_v1 }
   0xe   :  { %2413 = vmatpush1.bf16.msra.mxu0 %v8530_v4  ;;  %8514 = vmatpush1.bf16.msra.mxu1 %v8530_v4 }
   0xf   :  { %2414 = vmatprep.subr.bf16.mxu0 %v9145_v1  ;;  %8505 = vmatprep.subr.bf16.mxu1 %v9145_v1 }
  0x12   :  { %2415 = vmatpush1.bf16.msra.mxu0 %v8531_v6  ;;  %8515 = vmatpush1.bf16.msra.mxu1 %v8531_v6 }
  0x13   :  { %2416 = vmatprep.subr.bf16.mxu0 %v9145_v1  ;;  %8506 = vmatprep.subr.bf16.mxu1 %v9145_v1 }
  0x16   :  { %2417 = vmatpush1.bf16.msra.mxu0 %v8532_v7  ;;  %8516 = vmatpush1.bf16.msra.mxu1 %v8532_v7 }
  0x17   :  { %2418 = vmatprep.subr.bf16.mxu0 %v9145_v1  ;;  %8507 = vmatprep.subr.bf16.mxu1 %v9145_v1 }
  0x1a   :  { %2419 = vmatpush1.bf16.msra.mxu0 %v8533_v8  ;;  %8517 = vmatpush1.bf16.msra.mxu1 %v8533_v8 }
  0x1b   :  { %2420 = vmatprep.subr.bf16.mxu0 %v9145_v1  ;;  %8508 = vmatprep.subr.bf16.mxu1 %v9145_v1 }
  0x1e   :  { %2421 = vmatpush1.bf16.msra.mxu0 %v8534_v9  ;;  %8518 = vmatpush1.bf16.msra.mxu1 %v8534_v9 }
  0x1f   :  { %2422 = vmatprep.subr.bf16.mxu0 %v9145_v1  ;;  %8509 = vmatprep.subr.bf16.mxu1 %v9145_v1 }
  0x22   :  { %2423 = vmatpush1.bf16.msra.mxu0 %v8535_v12  ;;  %8519 = vmatpush1.bf16.msra.mxu1 %v8535_v12 }
  0x23   :  { %2424 = vmatprep.subr.bf16.mxu0 %v9145_v1  ;;  %8510 = vmatprep.subr.bf16.mxu1 %v9145_v1 }
  0x26   :  { %2425 = vmatpush1.bf16.msra.mxu0 %v2404_v15  ;;  %8520 = vmatpush1.bf16.msra.mxu1 %v2404_v15 }
  0x29   :  { %2439 = vmatmul.mubr.bf16.vlgmr.msra.gmra.mrb[0].mxu0 %v8537_v16 }
  0x2a   :  { %7862 = vmatprep.mubr.msk.bf16.mxu0 %vm2014_vm0, %v8540_v17 }
  0x31   :  { %2447 = vmatmul.mubr.bf16.gmra.mrb[4].mxu0 %v8542_v18 }
  0x32   :  { %7863 = vmatprep.mubr.msk.bf16.mxu0 %vm2014_vm0, %v8543_v19 }
  0x39   :  { %2455 = vmatmul.mubr.bf16.gmra.mrb[8].mxu0 %v8545_v20 }
  0x3a   :  { %7864 = vmatprep.mubr.msk.bf16.mxu0 %vm2014_vm0, %v8546_v21 }
  0x41   :  { %2463 = vmatmul.mubr.bf16.gmra.mrb[12].mxu0 %v8548_v22 }
  0x42   :  { %7865 = vmatprep.mubr.msk.bf16.mxu0 %vm2014_vm0, %v8549_v23 }
  0x43   :  { %7 = vsyncpa [#allocation4], 0  ;;  %v8554_v26 = vld [vmem:[%s15145_s0 + $0x50] ss:$8 sps:$4 sm:$0xff]   ;;  %v8555_v27 = vld [vmem:[%s15145_s0 + $0x64] ss:$8 sps:$4 sm:$0xff]  }
  0x44   :  { %v8557_v28 = vld [vmem:[%s15145_s0 + $0x60] ss:$8 sps:$4 sm:$0xff]   ;;  %v8558_v29 = vld [vmem:[%s15145_s0 + $0x74] ss:$8 sps:$4 sm:$0xff]   ;;  %v8560_v30 = vld [vmem:[%s15145_s0 + $0x70] ss:$8 sps:$4 sm:$0xff]  }
  0x45   :  { %v8561_v31 = vld [vmem:[%s15145_s0 + $0x84] ss:$8 sps:$4 sm:$0xff]   ;;  %v8563_v32 = vld [vmem:[%s15145_s0 + $0x80] ss:$8 sps:$4 sm:$0xff]   ;;  %v8564_v33 = vld [vmem:[%s15145_s0 + $0x94] ss:$8 sps:$4 sm:$0xff]  }
  0x46   :  { %v8566_v34 = vld [vmem:[%s15145_s0 + $0x90] ss:$8 sps:$4 sm:$0xff]   ;;  %v8567_v35 = vld [vmem:[%s15145_s0 + $0xa4] ss:$8 sps:$4 sm:$0xff]   ;;  %vm17_vm3 = vcmask 523264   ;;  %v9147_v37 = vmov 0.0  }
  0x47   :  { %v9273_v36 = vld [vmem:[%s15145_s0 + $0xa0] ss:$8 sps:$4 sm:$0xff]   ;;  %18 = vst.msk [vmem:[#allocation2] sm:$0xff] %vm17_vm3, %v9147_v37  ;;  %19 = vst.msk [vmem:[#allocation2 + $0x8] sm:$0xff] %vm17_vm3, %v9147_v37  ;;  %v8570_v38 = vld [vmem:[%s15145_s0 + $0xb4] ss:$8 sps:$4 sm:$0xff]  }
  0x48   :  { %20 = vst.msk [vmem:[#allocation2 + $0x10] sm:$0xff] %vm17_vm3, %v9147_v37  ;;  %21 = vst.msk [vmem:[#allocation2 + $0x18] sm:$0xff] %vm17_vm3, %v9147_v37  ;;  %v8572_v39 = vld [vmem:[%s15145_s0 + $0xb0] ss:$8 sps:$4 sm:$0xff]   ;;  %v8573_v40 = vld [vmem:[%s15145_s0 + $0xc4] ss:$8 sps:$4 sm:$0xff]  }
  0x49   :  { %2471 = vmatmul.mubr.bf16.gmra.mrb[16].mxu0 %v8551_v24  ;;  %22 = vst.msk [vmem:[#allocation2 + $0x20] sm:$0xff] %vm17_vm3, %v9147_v37  ;;  %23 = vst.msk [vmem:[#allocation2 + $0x28] sm:$0xff] %vm17_vm3, %v9147_v37  ;;  %v8575_v41 = vld [vmem:[%s15145_s0 + $0xc0] ss:$8 sps:$4 sm:$0xff]   ;;  %v8576_v42 = vld [vmem:[%s15145_s0 + $0xd4] ss:$8 sps:$4 sm:$0xff]  }
  0x4a   :  { %7866 = vmatprep.mubr.msk.bf16.mxu0 %vm2014_vm0, %v8552_v25  ;;  %24 = vst.msk [vmem:[#allocation2 + $0x30] sm:$0xff] %vm17_vm3, %v9147_v37  ;;  %25 = vst.msk [vmem:[#allocation2 + $0x38] sm:$0xff] %vm17_vm3, %v9147_v37  ;;  %v8578_v43 = vld [vmem:[%s15145_s0 + $0xd0] ss:$8 sps:$4 sm:$0xff]   ;;  %v8579_v44 = vld [vmem:[%s15145_s0 + $0xe4] ss:$8 sps:$4 sm:$0xff]  }
  0x4b   :  { %26 = vst.msk [vmem:[#allocation2 + $0x40] sm:$0xff] %vm17_vm3, %v9147_v37  ;;  %27 = vst.msk [vmem:[#allocation2 + $0x48] sm:$0xff] %vm17_vm3, %v9147_v37  ;;  %v8581_v45 = vld [vmem:[%s15145_s0 + $0xe0] ss:$8 sps:$4 sm:$0xff]   ;;  %v8582_v46 = vld [vmem:[%s15145_s0 + $0xf4] ss:$8 sps:$4 sm:$0xff]  }
  0x4c   :  { %28 = vst.msk [vmem:[#allocation2 + $0x50] sm:$0xff] %vm17_vm3, %v9147_v37  ;;  %29 = vst.msk [vmem:[#allocation2 + $0x58] sm:$0xff] %vm17_vm3, %v9147_v37  ;;  %v8584_v47 = vld [vmem:[%s15145_s0 + $0xf0] ss:$8 sps:$4 sm:$0xff]   ;;  %v8585_v48 = vld [vmem:[%s15145_s0 + $0x104] ss:$8 sps:$4 sm:$0xff]  }
  0x4d   :  { %30 = vst.msk [vmem:[#allocation2 + $0x60] sm:$0xff] %vm17_vm3, %v9147_v37  ;;  %31 = vst.msk [vmem:[#allocation2 + $0x68] sm:$0xff] %vm17_vm3, %v9147_v37  ;;  %v8635_v49 = vld [vmem:[%s15145_s0 + $0x404] ss:$8 sps:$4 sm:$0xff]   ;;  %v8633_v50 = vld [vmem:[%s15145_s0 + $0x400] ss:$8 sps:$4 sm:$0xff]  }
  0x4e   :  { %32 = vst.msk [vmem:[#allocation2 + $0x70] sm:$0xff] %vm17_vm3, %v9147_v37  ;;  %33 = vst.msk [vmem:[#allocation2 + $0x78] sm:$0xff] %vm17_vm3, %v9147_v37  ;;  %v8587_v51 = vld [vmem:[%s15145_s0 + $0x100] ss:$8 sps:$4 sm:$0xff]   ;;  %7925 = vmatprep.mubr.msk.bf16.mxu1 %vm2014_vm0, %v8635_v49  ;;  %v8588_v52 = vld [vmem:[%s15145_s0 + $0x114] ss:$8 sps:$4 sm:$0xff]  }
  0x4f   :  { %34 = vst.msk [vmem:[#allocation2 + $0x80] sm:$0xff] %vm17_vm3, %v9147_v37  ;;  %35 = vst.msk [vmem:[#allocation2 + $0x88] sm:$0xff] %vm17_vm3, %v9147_v37  ;;  %2951 = vmatmul.mubr.bf16.vlgmr.msra.gmra.mrb[0].mxu1 %v8633_v50  ;;  %v660_v53 = vld [vmem:[%s15145_s0 + $0x410] sm:$0xff]  ;;  %v661_v54 = vld [vmem:[%s15145_s0 + $0x418] sm:$0xff]  ;;  %vm7322_vm4 = vcmask 519168  }
  0x50   :  { %36 = vst.msk [vmem:[#allocation2 + $0x90] sm:$0xff] %vm17_vm3, %v9147_v37  ;;  %37 = vst.msk [vmem:[#allocation2 + $0x98] sm:$0xff] %vm17_vm3, %v9147_v37  ;;  %v8639_v55 = vld [vmem:[%s15145_s0 + $0x414] ss:$8 sps:$4 sm:$0xff]   ;;  %v7725_v56 = vcombine.low %v660_v53, %v661_v54  ;;  %v8590_v57 = vld [vmem:[%s15145_s0 + $0x110] ss:$8 sps:$4 sm:$0xff]  }
  0x51   :  { %2479 = vmatmul.mubr.bf16.gmra.mrb[20].mxu0 %v8554_v26  ;;  %38 = vst.msk [vmem:[#allocation2 + $0xa0] sm:$0xff] %vm17_vm3, %v9147_v37  ;;  %39 = vst.msk [vmem:[#allocation2 + $0xa8] sm:$0xff] %vm17_vm3, %v9147_v37  ;;  %7926 = vmatprep.mubr.msk.bf16.mxu1 %vm2014_vm0, %v8639_v55  ;;  %v8591_v58 = vld [vmem:[%s15145_s0 + $0x124] ss:$8 sps:$4 sm:$0xff]   ;;  %v8593_v63 = vld [vmem:[%s15145_s0 + $0x120] ss:$8 sps:$4 sm:$0xff]  }
  0x52   :  { %7867 = vmatprep.mubr.msk.bf16.mxu0 %vm2014_vm0, %v8555_v27  ;;  %40 = vst.msk [vmem:[#allocation2 + $0xb0] sm:$0xff] %vm17_vm3, %v9147_v37  ;;  %41 = vst.msk [vmem:[#allocation2 + $0xb8] sm:$0xff] %vm17_vm3, %v9147_v37  ;;  %v662_v59 = vld [vmem:[%s15145_s0 + $0x420] sm:$0xff]  ;;  %v663_v60 = vld [vmem:[%s15145_s0 + $0x428] sm:$0xff] }
  0x53   :  { %42 = vst.msk [vmem:[#allocation2 + $0xc0] sm:$0xff] %vm17_vm3, %v9147_v37  ;;  %43 = vst.msk [vmem:[#allocation2 + $0xc8] sm:$0xff] %vm17_vm3, %v9147_v37  ;;  %v8644_v61 = vld [vmem:[%s15145_s0 + $0x424] ss:$8 sps:$4 sm:$0xff]   ;;  %v7727_v62 = vcombine.low %v662_v59, %v663_v60  ;;  %v8594_v0 = vld [vmem:[%s15145_s0 + $0x134] ss:$8 sps:$4 sm:$0xff]  }
  0x54   :  { %44 = vst.msk [vmem:[#allocation2 + $0xd0] sm:$0xff] %vm17_vm3, %v9147_v37  ;;  %45 = vst.msk [vmem:[#allocation2 + $0xd8] sm:$0xff] %vm17_vm3, %v9147_v37  ;;  %v664_v1 = vld [vmem:[%s15145_s0 + $0x430] sm:$0xff]  ;;  %v665_v2 = vld [vmem:[%s15145_s0 + $0x438] sm:$0xff] }
  0x55   :  { %46 = vst.msk [vmem:[#allocation2 + $0xe0] sm:$0xff] %vm17_vm3, %v9147_v37  ;;  %47 = vst.msk [vmem:[#allocation2 + $0xe8] sm:$0xff] %vm17_vm3, %v9147_v37  ;;  %v8649_v3 = vld [vmem:[%s15145_s0 + $0x434] ss:$8 sps:$4 sm:$0xff]   ;;  %v7729_v4 = vcombine.low %v664_v1, %v665_v2  ;;  %v8596_v5 = vld [vmem:[%s15145_s0 + $0x130] ss:$8 sps:$4 sm:$0xff]  }
  0x56   :  { %48 = vst.msk [vmem:[#allocation2 + $0xf0] sm:$0xff] %vm17_vm3, %v9147_v37  ;;  %49 = vst.msk [vmem:[#allocation2 + $0xf8] sm:$0xff] %vm17_vm3, %v9147_v37  ;;  %v8597_v6 = vld [vmem:[%s15145_s0 + $0x144] ss:$8 sps:$4 sm:$0xff]   ;;  %v8599_v11 = vld [vmem:[%s15145_s0 + $0x140] ss:$8 sps:$4 sm:$0xff]  }
  0x57   :  { %50 = vst.msk [vmem:[#allocation2 + $0x100] sm:$0xff] %vm17_vm3, %v9147_v37  ;;  %51 = vst.msk [vmem:[#allocation2 + $0x108] sm:$0xff] %vm17_vm3, %v9147_v37  ;;  %2959 = vmatmul.mubr.bf16.gmra.mrb[4].mxu1 %v7725_v56  ;;  %v666_v7 = vld [vmem:[%s15145_s0 + $0x440] sm:$0xff]  ;;  %v667_v8 = vld [vmem:[%s15145_s0 + $0x448] sm:$0xff] }
  0x58   :  { %52 = vst.msk [vmem:[#allocation2 + $0x110] sm:$0xff] %vm17_vm3, %v9147_v37  ;;  %53 = vst.msk [vmem:[#allocation2 + $0x118] sm:$0xff] %vm17_vm3, %v9147_v37  ;;  %7927 = vmatprep.mubr.msk.bf16.mxu1 %vm2014_vm0, %v8644_v61  ;;  %v8654_v9 = vld [vmem:[%s15145_s0 + $0x444] ss:$8 sps:$4 sm:$0xff]   ;;  %v7731_v10 = vcombine.low %v666_v7, %v667_v8  ;;  %v8600_v12 = vld [vmem:[%s15145_s0 + $0x154] ss:$8 sps:$4 sm:$0xff]  }
  0x59   :  { %2487 = vmatmul.mubr.bf16.gmra.mrb[24].mxu0 %v8557_v28  ;;  %54 = vst.msk [vmem:[#allocation2 + $0x120] sm:$0xff] %vm17_vm3, %v9147_v37  ;;  %55 = vst.msk [vmem:[#allocation2 + $0x128] sm:$0xff] %vm17_vm3, %v9147_v37  ;;  %v668_v13 = vld [vmem:[%s15145_s0 + $0x450] sm:$0xff]  ;;  %v669_v14 = vld [vmem:[%s15145_s0 + $0x458] sm:$0xff] }
  0x5a   :  { %7868 = vmatprep.mubr.msk.bf16.mxu0 %vm2014_vm0, %v8558_v29  ;;  %56 = vst.msk [vmem:[#allocation2 + $0x130] sm:$0xff] %vm17_vm3, %v9147_v37  ;;  %57 = vst.msk [vmem:[#allocation2 + $0x138] sm:$0xff] %vm17_vm3, %v9147_v37  ;;  %v8659_v15 = vld [vmem:[%s15145_s0 + $0x454] ss:$8 sps:$4 sm:$0xff]   ;;  %v7733_v16 = vcombine.low %v668_v13, %v669_v14  ;;  %v8602_v17 = vld [vmem:[%s15145_s0 + $0x150] ss:$8 sps:$4 sm:$0xff]  }
  0x5b   :  { %58 = vst.msk [vmem:[#allocation2 + $0x140] sm:$0xff] %vm17_vm3, %v9147_v37  ;;  %59 = vst.msk [vmem:[#allocation2 + $0x148] sm:$0xff] %vm17_vm3, %v9147_v37  ;;  %v8603_v18 = vld [vmem:[%s15145_s0 + $0x164] ss:$8 sps:$4 sm:$0xff]   ;;  %v8605_v23 = vld [vmem:[%s15145_s0 + $0x160] ss:$8 sps:$4 sm:$0xff]  }
  0x5c   :  { %60 = vst.msk [vmem:[#allocation2 + $0x150] sm:$0xff] %vm17_vm3, %v9147_v37  ;;  %61 = vst.msk [vmem:[#allocation2 + $0x158] sm:$0xff] %vm17_vm3, %v9147_v37  ;;  %v670_v19 = vld [vmem:[%s15145_s0 + $0x460] sm:$0xff]  ;;  %v671_v20 = vld [vmem:[%s15145_s0 + $0x468] sm:$0xff] }
  0x5d   :  { %62 = vst.msk [vmem:[#allocation2 + $0x160] sm:$0xff] %vm17_vm3, %v9147_v37  ;;  %63 = vst.msk [vmem:[#allocation2 + $0x168] sm:$0xff] %vm17_vm3, %v9147_v37  ;;  %v8664_v21 = vld [vmem:[%s15145_s0 + $0x464] ss:$8 sps:$4 sm:$0xff]   ;;  %v7735_v22 = vcombine.low %v670_v19, %v671_v20  ;;  %v8606_v24 = vld [vmem:[%s15145_s0 + $0x174] ss:$8 sps:$4 sm:$0xff]  }
  0x5e   :  { %64 = vst.msk [vmem:[#allocation2 + $0x170] sm:$0xff] %vm17_vm3, %v9147_v37  ;;  %65 = vst.msk [vmem:[#allocation2 + $0x178] sm:$0xff] %vm17_vm3, %v9147_v37  ;;  %v672_v25 = vld [vmem:[%s15145_s0 + $0x470] sm:$0xff]  ;;  %v673_v26 = vld [vmem:[%s15145_s0 + $0x478] sm:$0xff] }
  0x5f   :  { %66 = vst.msk [vmem:[#allocation2 + $0x180] sm:$0xff] %vm17_vm3, %v9147_v37  ;;  %67 = vst.msk [vmem:[#allocation2 + $0x188] sm:$0xff] %vm17_vm3, %v9147_v37  ;;  %2967 = vmatmul.mubr.bf16.gmra.mrb[8].mxu1 %v7727_v62  ;;  %v8669_v27 = vld [vmem:[%s15145_s0 + $0x474] ss:$8 sps:$4 sm:$0xff]   ;;  %v7737_v28 = vcombine.low %v672_v25, %v673_v26  ;;  %v8608_v29 = vld [vmem:[%s15145_s0 + $0x170] ss:$8 sps:$4 sm:$0xff]  }
  0x60   :  { %68 = vst.msk [vmem:[#allocation2 + $0x190] sm:$0xff] %vm17_vm3, %v9147_v37  ;;  %69 = vst.msk [vmem:[#allocation2 + $0x198] sm:$0xff] %vm17_vm3, %v9147_v37  ;;  %7928 = vmatprep.mubr.msk.bf16.mxu1 %vm2014_vm0, %v8649_v3  ;;  %v274_v49 = vld [vmem:[#allocation2] sm:$0xff]  ;;  %v680_v50 = vld [vmem:[%s15145_s0 + $0x4b0] sm:$0xff] }
  0x61   :  { %2495 = vmatmul.mubr.bf16.gmra.mrb[28].mxu0 %v8560_v30  ;;  %70 = vst.msk [vmem:[#allocation2 + $0x1a0] sm:$0xff] %vm17_vm3, %v9147_v37  ;;  %71 = vst.msk [vmem:[#allocation2 + $0x1a8] sm:$0xff] %vm17_vm3, %v9147_v37  ;;  %v8609_v30 = vld [vmem:[%s15145_s0 + $0x184] ss:$8 sps:$4 sm:$0xff]   ;;  %v8623_v8 = vld [vmem:[%s15145_s0 + $0x1c0] ss:$8 sps:$4 sm:$0xff]  }
  0x62   :  { %7869 = vmatprep.mubr.msk.bf16.mxu0 %vm2014_vm0, %v8561_v31  ;;  %72 = vst.msk [vmem:[#allocation2 + $0x1b0] sm:$0xff] %vm17_vm3, %v9147_v37  ;;  %73 = vst.msk [vmem:[#allocation2 + $0x1b8] sm:$0xff] %vm17_vm3, %v9147_v37  ;;  %v674_v31 = vld [vmem:[%s15145_s0 + $0x480] sm:$0xff]  ;;  %v275_v54 = vld [vmem:[#allocation2 + $0x8] sm:$0xff] }
  0x63   :  { %74 = vst.msk [vmem:[#allocation2 + $0x1c0] sm:$0xff] %vm17_vm3, %v9147_v37  ;;  %75 = vst.msk [vmem:[#allocation2 + $0x1c8] sm:$0xff] %vm17_vm3, %v9147_v37  ;;  %v8621_v60 = vld [vmem:[%s15145_s0 + $0x1c4] ss:$8 sps:$4 sm:$0xff]   ;;  %v684_v14 = vld [vmem:[%s15145_s0 + $0x4d0] sm:$0xff] }
  0x64   :  { %76 = vst.msk [vmem:[#allocation2 + $0x1d0] sm:$0xff] %vm17_vm3, %v9147_v37  ;;  %77 = vst.msk [vmem:[#allocation2 + $0x1d8] sm:$0xff] %vm17_vm3, %v9147_v37  ;;  %v683_v1 = vld [vmem:[%s15145_s0 + $0x4c8] sm:$0xff]  ;;  %v278_v13 = vld [vmem:[#allocation2 + $0x20] sm:$0xff] }
  0x65   :  { %78 = vst.msk [vmem:[#allocation2 + $0x1e0] sm:$0xff] %vm17_vm3, %v9147_v37  ;;  %79 = vst.msk [vmem:[#allocation2 + $0x1e8] sm:$0xff] %vm17_vm3, %v9147_v37  ;;  %v8694_v2 = vld [vmem:[%s15145_s0 + $0x4c4] ss:$8 sps:$4 sm:$0xff]  }
  0x66   :  { %80 = vst.msk [vmem:[#allocation2 + $0x1f0] sm:$0xff] %vm17_vm3, %v9147_v37  ;;  %81 = vst.msk [vmem:[#allocation2 + $0x1f8] sm:$0xff] %vm17_vm3, %v9147_v37 }
  0x67   :  { %82 = vst.msk [vmem:[#allocation2 + $0x200] sm:$0xff] %vm17_vm3, %v9147_v37  ;;  %83 = vst.msk [vmem:[#allocation2 + $0x208] sm:$0xff] %vm17_vm3, %v9147_v37  ;;  %2975 = vmatmul.mubr.bf16.gmra.mrb[12].mxu1 %v7729_v4  ;;  %v277_v4 = vld [vmem:[#allocation2 + $0x18] sm:$0xff] }
  0x68   :  { %84 = vst.msk [vmem:[#allocation2 + $0x210] sm:$0xff] %vm17_vm3, %v9147_v37  ;;  %85 = vst.msk [vmem:[#allocation2 + $0x218] sm:$0xff] %vm17_vm3, %v9147_v37  ;;  %7929 = vmatprep.mubr.msk.bf16.mxu1 %vm2014_vm0, %v8654_v9 }
  0x69   :  { %2503 = vmatmul.mubr.bf16.gmra.mrb[32].mxu0 %v8563_v32  ;;  %86 = vst.msk [vmem:[#allocation2 + $0x220] sm:$0xff] %vm17_vm3, %v9147_v37  ;;  %87 = vst.msk [vmem:[#allocation2 + $0x228] sm:$0xff] %vm17_vm3, %v9147_v37  ;;  %v675_v32 = vld [vmem:[%s15145_s0 + $0x488] sm:$0xff] }
  0x6a   :  { %7870 = vmatprep.mubr.msk.bf16.mxu0 %vm2014_vm0, %v8564_v33  ;;  %88 = vst.msk [vmem:[#allocation2 + $0x230] sm:$0xff] %vm17_vm3, %v9147_v37  ;;  %89 = vst.msk [vmem:[#allocation2 + $0x238] sm:$0xff] %vm17_vm3, %v9147_v37  ;;  %v8674_v33 = vld [vmem:[%s15145_s0 + $0x484] ss:$8 sps:$4 sm:$0xff]  }
  0x6b   :  { %90 = vst.msk [vmem:[#allocation2 + $0x240] sm:$0xff] %vm17_vm3, %v9147_v37  ;;  %91 = vst.msk [vmem:[#allocation2 + $0x248] sm:$0xff] %vm17_vm3, %v9147_v37 }
  0x6c   :  { %92 = vst.msk [vmem:[#allocation2 + $0x250] sm:$0xff] %vm17_vm3, %v9147_v37  ;;  %93 = vst.msk [vmem:[#allocation2 + $0x258] sm:$0xff] %vm17_vm3, %v9147_v37 }
  0x6d   :  { %94 = vst.msk [vmem:[#allocation2 + $0x260] sm:$0xff] %vm17_vm3, %v9147_v37  ;;  %95 = vst.msk [vmem:[#allocation2 + $0x268] sm:$0xff] %vm17_vm3, %v9147_v37 }
  0x6e   :  { %96 = vst.msk [vmem:[#allocation2 + $0x270] sm:$0xff] %vm17_vm3, %v9147_v37  ;;  %97 = vst.msk [vmem:[#allocation2 + $0x278] sm:$0xff] %vm17_vm3, %v9147_v37 }
  0x6f   :  { %98 = vst.msk [vmem:[#allocation2 + $0x280] sm:$0xff] %vm17_vm3, %v9147_v37  ;;  %99 = vst.msk [vmem:[#allocation2 + $0x288] sm:$0xff] %vm17_vm3, %v9147_v37  ;;  %2983 = vmatmul.mubr.bf16.gmra.mrb[16].mxu1 %v7731_v10  ;;  %v8624_v10 = vld [vmem:[%s15145_s0 + $0x1d4] ss:$8 sps:$4 sm:$0xff]  }
  0x70   :  { %100 = vst.msk [vmem:[#allocation2 + $0x290] sm:$0xff] %vm17_vm3, %v9147_v37  ;;  %101 = vst.msk [vmem:[#allocation2 + $0x298] sm:$0xff] %vm17_vm3, %v9147_v37  ;;  %7930 = vmatprep.mubr.msk.bf16.mxu1 %vm2014_vm0, %v8659_v15  ;;  %v685_v15 = vld [vmem:[%s15145_s0 + $0x4d8] sm:$0xff] }
  0x71   :  { %2511 = vmatmul.mubr.bf16.gmra.mrb[36].mxu0 %v8566_v34  ;;  %102 = vst.msk [vmem:[#allocation2 + $0x2a0] sm:$0xff] %vm17_vm3, %v9147_v37  ;;  %103 = vst.msk [vmem:[#allocation2 + $0x2a8] sm:$0xff] %vm17_vm3, %v9147_v37  ;;  %v7739_v34 = vcombine.low %v674_v31, %v675_v32  ;;  %v7749_v19 = vcombine.low %v684_v14, %v685_v15  ;;  %v281_v32 = vld [vmem:[#allocation2 + $0x38] sm:$0xff] }
  0x72   :  { %7871 = vmatprep.mubr.msk.bf16.mxu0 %vm2014_vm0, %v8567_v35  ;;  %104 = vst.msk [vmem:[#allocation2 + $0x2b0] sm:$0xff] %vm17_vm3, %v9147_v37  ;;  %105 = vst.msk [vmem:[#allocation2 + $0x2b8] sm:$0xff] %vm17_vm3, %v9147_v37  ;;  %v8611_v35 = vld [vmem:[%s15145_s0 + $0x180] ss:$8 sps:$4 sm:$0xff]   ;;  %v8643_v14 = vld [vmem:[%s15145_s0 + $0x210] ss:$8 sps:$4 sm:$0xff]  }
  0x73   :  { %106 = vst.msk [vmem:[#allocation2 + $0x2c0] sm:$0xff] %vm17_vm3, %v9147_v37  ;;  %107 = vst.msk [vmem:[#allocation2 + $0x2c8] sm:$0xff] %vm17_vm3, %v9147_v37 }
  0x74   :  { %108 = vst.msk [vmem:[#allocation2 + $0x2d0] sm:$0xff] %vm17_vm3, %v9147_v37  ;;  %109 = vst.msk [vmem:[#allocation2 + $0x2d8] sm:$0xff] %vm17_vm3, %v9147_v37 }
  0x75   :  { %110 = vst.msk [vmem:[#allocation2 + $0x2e0] sm:$0xff] %vm17_vm3, %v9147_v37  ;;  %111 = vst.msk [vmem:[#allocation2 + $0x2e8] sm:$0xff] %vm17_vm3, %v9147_v37 }
  0x76   :  { %112 = vst.msk [vmem:[#allocation2 + $0x2f0] sm:$0xff] %vm17_vm3, %v9147_v37  ;;  %113 = vst.msk [vmem:[#allocation2 + $0x2f8] sm:$0xff] %vm17_vm3, %v9147_v37 }
  0x77   :  { %114 = vst.msk [vmem:[#allocation2 + $0x300] sm:$0xff] %vm17_vm3, %v9147_v37  ;;  %115 = vst.msk [vmem:[#allocation2 + $0x308] sm:$0xff] %vm17_vm3, %v9147_v37  ;;  %2991 = vmatmul.mubr.bf16.gmra.mrb[20].mxu1 %v7733_v16  ;;  %v8699_v16 = vld [vmem:[%s15145_s0 + $0x4d4] ss:$8 sps:$4 sm:$0xff]  }
  0x78   :  { %116 = vst.msk [vmem:[#allocation2 + $0x310] sm:$0xff] %vm17_vm3, %v9147_v37  ;;  %117 = vst.msk [vmem:[#allocation2 + $0x318] sm:$0xff] %vm17_vm3, %v9147_v37  ;;  %7931 = vmatprep.mubr.msk.bf16.mxu1 %vm2014_vm0, %v8664_v21 }
  0x79   :  { %118 = vst.msk [vmem:[#allocation2 + $0x320] sm:$0xff] %vm17_vm3, %v9147_v37  ;;  %119 = vst.msk [vmem:[#allocation2 + $0x328] sm:$0xff] %vm17_vm3, %v9147_v37  ;;  %2519 = vmatmul.mubr.bf16.gmra.mrb[40].mxu0 %v9273_v36  ;;  %v8612_v36 = vld [vmem:[%s15145_s0 + $0x194] ss:$8 sps:$4 sm:$0xff]  }
  0x7a   :  { %120 = vst.msk [vmem:[#allocation2 + $0x330] sm:$0xff] %vm17_vm3, %v9147_v37  ;;  %121 = vst.msk [vmem:[#allocation2 + $0x338] sm:$0xff] %vm17_vm3, %v9147_v37  ;;  %7872 = vmatprep.mubr.msk.bf16.mxu0 %vm2014_vm0, %v8570_v38  ;;  %v677_v38 = vld [vmem:[%s15145_s0 + $0x498] sm:$0xff] }
  0x7b   :  { %122 = vst.msk [vmem:[#allocation2 + $0x340] sm:$0xff] %vm17_vm3, %v9147_v37  ;;  %123 = vst.msk [vmem:[#allocation2 + $0x348] sm:$0xff] %vm17_vm3, %v9147_v37 }
  0x7c   :  { %124 = vst.msk [vmem:[#allocation2 + $0x350] sm:$0xff] %vm17_vm3, %v9147_v37  ;;  %125 = vst.msk [vmem:[#allocation2 + $0x358] sm:$0xff] %vm17_vm3, %v9147_v37 }
  0x7d   :  { %126 = vst.msk [vmem:[#allocation2 + $0x360] sm:$0xff] %vm17_vm3, %v9147_v37  ;;  %127 = vst.msk [vmem:[#allocation2 + $0x368] sm:$0xff] %vm17_vm3, %v9147_v37 }
  0x7e   :  { %128 = vst.msk [vmem:[#allocation2 + $0x370] sm:$0xff] %vm17_vm3, %v9147_v37  ;;  %129 = vst.msk [vmem:[#allocation2 + $0x378] sm:$0xff] %vm17_vm3, %v9147_v37 }
  0x7f   :  { %130 = vst.msk [vmem:[#allocation2 + $0x380] sm:$0xff] %vm17_vm3, %v9147_v37  ;;  %131 = vst.msk [vmem:[#allocation2 + $0x388] sm:$0xff] %vm17_vm3, %v9147_v37  ;;  %2999 = vmatmul.mubr.bf16.gmra.mrb[24].mxu1 %v7735_v22  ;;  %v8626_v22 = vld [vmem:[%s15145_s0 + $0x1d0] ss:$8 sps:$4 sm:$0xff]  }
  0x80   :  { %132 = vst.msk [vmem:[#allocation2 + $0x390] sm:$0xff] %vm17_vm3, %v9147_v37  ;;  %133 = vst.msk [vmem:[#allocation2 + $0x398] sm:$0xff] %vm17_vm3, %v9147_v37  ;;  %7932 = vmatprep.mubr.msk.bf16.mxu1 %vm2014_vm0, %v8669_v27  ;;  %v280_v27 = vld [vmem:[#allocation2 + $0x30] sm:$0xff] }
  0x81   :  { %134 = vst.msk [vmem:[#allocation2 + $0x3a0] sm:$0xff] %vm17_vm3, %v9147_v37  ;;  %135 = vst.msk [vmem:[#allocation2 + $0x3a8] sm:$0xff] %vm17_vm3, %v9147_v37  ;;  %2527 = vmatmul.mubr.bf16.gmra.mrb[44].mxu0 %v8572_v39  ;;  %v8679_v39 = vld [vmem:[%s15145_s0 + $0x494] ss:$8 sps:$4 sm:$0xff]  }
  0x82   :  { %136 = vst.msk [vmem:[#allocation2 + $0x3b0] sm:$0xff] %vm17_vm3, %v9147_v37  ;;  %137 = vst.msk [vmem:[#allocation2 + $0x3b8] sm:$0xff] %vm17_vm3, %v9147_v37  ;;  %7873 = vmatprep.mubr.msk.bf16.mxu0 %vm2014_vm0, %v8573_v40 }
  0x83   :  { %138 = vst.msk [vmem:[#allocation2 + $0x3c0] sm:$0xff] %vm17_vm3, %v9147_v37  ;;  %139 = vst.msk [vmem:[#allocation2 + $0x3c8] sm:$0xff] %vm17_vm3, %v9147_v37 }
  0x84   :  { %140 = vst.msk [vmem:[#allocation2 + $0x3d0] sm:$0xff] %vm17_vm3, %v9147_v37  ;;  %141 = vst.msk [vmem:[#allocation2 + $0x3d8] sm:$0xff] %vm17_vm3, %v9147_v37 }
  0x85   :  { %142 = vst.msk [vmem:[#allocation2 + $0x3e0] sm:$0xff] %vm17_vm3, %v9147_v37  ;;  %143 = vst.msk [vmem:[#allocation2 + $0x3e8] sm:$0xff] %vm17_vm3, %v9147_v37 }
  0x86   :  { %144 = vst.msk [vmem:[#allocation2 + $0x3f0] sm:$0xff] %vm17_vm3, %v9147_v37  ;;  %145 = vst.msk [vmem:[#allocation2 + $0x3f8] sm:$0xff] %vm17_vm3, %v9147_v37 }
  0x87   :  { %146 = vst.msk [vmem:[#allocation2 + $0x400] sm:$0xff] %vm17_vm3, %v9147_v37  ;;  %147 = vst.msk [vmem:[#allocation2 + $0x408] sm:$0xff] %vm17_vm3, %v9147_v37  ;;  %3007 = vmatmul.mubr.bf16.gmra.mrb[28].mxu1 %v7737_v28  ;;  %v686_v28 = vld [vmem:[%s15145_s0 + $0x4e0] sm:$0xff] }
  0x88   :  { %148 = vst.msk [vmem:[#allocation2 + $0x410] sm:$0xff] %vm17_vm3, %v9147_v37  ;;  %149 = vst.msk [vmem:[#allocation2 + $0x418] sm:$0xff] %vm17_vm3, %v9147_v37  ;;  %7933 = vmatprep.mubr.msk.bf16.mxu1 %vm2014_vm0, %v8674_v33 }
  0x89   :  { %150 = vst.msk [vmem:[#allocation2 + $0x420] sm:$0xff] %vm17_vm3, %v9147_v37  ;;  %151 = vst.msk [vmem:[#allocation2 + $0x428] sm:$0xff] %vm17_vm3, %v9147_v37  ;;  %2535 = vmatmul.mubr.bf16.gmra.mrb[48].mxu0 %v8575_v41  ;;  %v8614_v41 = vld [vmem:[%s15145_s0 + $0x190] ss:$8 sps:$4 sm:$0xff]  }
  0x8a   :  { %152 = vst.msk [vmem:[#allocation2 + $0x430] sm:$0xff] %vm17_vm3, %v9147_v37  ;;  %153 = vst.msk [vmem:[#allocation2 + $0x438] sm:$0xff] %vm17_vm3, %v9147_v37  ;;  %7874 = vmatprep.mubr.msk.bf16.mxu0 %vm2014_vm0, %v8576_v42  ;;  %v8615_v42 = vld [vmem:[%s15145_s0 + $0x1a4] ss:$8 sps:$4 sm:$0xff]  }
  0x8b   :  { %154 = vst.msk [vmem:[#allocation2 + $0x440] sm:$0xff] %vm17_vm3, %v9147_v37  ;;  %155 = vst.msk [vmem:[#allocation2 + $0x448] sm:$0xff] %vm17_vm3, %v9147_v37 }
  0x8c   :  { %156 = vst.msk [vmem:[#allocation2 + $0x450] sm:$0xff] %vm17_vm3, %v9147_v37  ;;  %157 = vst.msk [vmem:[#allocation2 + $0x458] sm:$0xff] %vm17_vm3, %v9147_v37 }
  0x8d   :  { %158 = vst.msk [vmem:[#allocation2 + $0x460] sm:$0xff] %vm17_vm3, %v9147_v37  ;;  %159 = vst.msk [vmem:[#allocation2 + $0x468] sm:$0xff] %vm17_vm3, %v9147_v37 }
  0x8e   :  { %160 = vst.msk [vmem:[#allocation2 + $0x470] sm:$0xff] %vm17_vm3, %v9147_v37  ;;  %161 = vst.msk [vmem:[#allocation2 + $0x478] sm:$0xff] %vm17_vm3, %v9147_v37 }
  0x8f   :  { %162 = vst.msk [vmem:[#allocation2 + $0x480] sm:$0xff] %vm17_vm3, %v9147_v37  ;;  %163 = vst.msk [vmem:[#allocation2 + $0x488] sm:$0xff] %vm17_vm3, %v9147_v37  ;;  %3015 = vmatmul.mubr.bf16.gmra.mrb[32].mxu1 %v7739_v34 }
  0x90   :  { %164 = vst.msk [vmem:[#allocation2 + $0x490] sm:$0xff] %vm17_vm3, %v9147_v37  ;;  %165 = vst.msk [vmem:[#allocation2 + $0x498] sm:$0xff] %vm17_vm3, %v9147_v37  ;;  %7934 = vmatprep.mubr.msk.bf16.mxu1 %vm2014_vm0, %v8679_v39 }
  0x91   :  { %166 = vst.msk [vmem:[#allocation2 + $0x4a0] sm:$0xff] %vm17_vm3, %v9147_v37  ;;  %167 = vst.msk [vmem:[#allocation2 + $0x4a8] sm:$0xff] %vm17_vm3, %v9147_v37  ;;  %2543 = vmatmul.mubr.bf16.gmra.mrb[52].mxu0 %v8578_v43  ;;  %v678_v43 = vld [vmem:[%s15145_s0 + $0x4a0] sm:$0xff] }
  0x92   :  { %168 = vst.msk [vmem:[#allocation2 + $0x4b0] sm:$0xff] %vm17_vm3, %v9147_v37  ;;  %169 = vst.msk [vmem:[#allocation2 + $0x4b8] sm:$0xff] %vm17_vm3, %v9147_v37  ;;  %7875 = vmatprep.mubr.msk.bf16.mxu0 %vm2014_vm0, %v8579_v44  ;;  %v679_v44 = vld [vmem:[%s15145_s0 + $0x4a8] sm:$0xff] }
  0x93   :  { %170 = vst.msk [vmem:[#allocation2 + $0x4c0] sm:$0xff] %vm17_vm3, %v9147_v37  ;;  %171 = vst.msk [vmem:[#allocation2 + $0x4c8] sm:$0xff] %vm17_vm3, %v9147_v37 }
  0x94   :  { %172 = vst.msk [vmem:[#allocation2 + $0x4d0] sm:$0xff] %vm17_vm3, %v9147_v37  ;;  %173 = vst.msk [vmem:[#allocation2 + $0x4d8] sm:$0xff] %vm17_vm3, %v9147_v37 }
  0x95   :  { %174 = vst.msk [vmem:[#allocation2 + $0x4e0] sm:$0xff] %vm17_vm3, %v9147_v37  ;;  %175 = vst.msk [vmem:[#allocation2 + $0x4e8] sm:$0xff] %vm17_vm3, %v9147_v37 }
  0x96   :  { %176 = vst.msk [vmem:[#allocation2 + $0x4f0] sm:$0xff] %vm17_vm3, %v9147_v37  ;;  %177 = vst.msk [vmem:[#allocation2 + $0x4f8] sm:$0xff] %vm17_vm3, %v9147_v37 }
  0x97   :  { %178 = vst.msk [vmem:[#allocation2 + $0x500] sm:$0xff] %vm17_vm3, %v9147_v37  ;;  %179 = vst.msk [vmem:[#allocation2 + $0x508] sm:$0xff] %vm17_vm3, %v9147_v37 }
  0x98   :  { %180 = vst.msk [vmem:[#allocation2 + $0x510] sm:$0xff] %vm17_vm3, %v9147_v37  ;;  %181 = vst.msk [vmem:[#allocation2 + $0x518] sm:$0xff] %vm17_vm3, %v9147_v37 }
  0x99   :  { %182 = vst.msk [vmem:[#allocation2 + $0x520] sm:$0xff] %vm17_vm3, %v9147_v37  ;;  %183 = vst.msk [vmem:[#allocation2 + $0x528] sm:$0xff] %vm17_vm3, %v9147_v37  ;;  %2551 = vmatmul.mubr.bf16.gmra.mrb[56].mxu0 %v8581_v45  ;;  %v8684_v45 = vld [vmem:[%s15145_s0 + $0x4a4] ss:$8 sps:$4 sm:$0xff]  }
  0x9a   :  { %184 = vst.msk [vmem:[#allocation2 + $0x530] sm:$0xff] %vm17_vm3, %v9147_v37  ;;  %185 = vst.msk [vmem:[#allocation2 + $0x538] sm:$0xff] %vm17_vm3, %v9147_v37  ;;  %7876 = vmatprep.mubr.msk.bf16.mxu0 %vm2014_vm0, %v8582_v46  ;;  %v7743_v46 = vcombine.low %v678_v43, %v679_v44  ;;  %v689_v43 = vld [vmem:[%s15145_s0 + $0x4f8] sm:$0xff] }
  0x9b   :  { %186 = vst.msk [vmem:[#allocation2 + $0x540] sm:$0xff] %vm17_vm3, %v9147_v37  ;;  %187 = vst.msk [vmem:[#allocation2 + $0x548] sm:$0xff] %vm17_vm3, %v9147_v37  ;;  %v8709_v44 = vld [vmem:[%s15145_s0 + $0x4f4] ss:$8 sps:$4 sm:$0xff]  }
  0x9c   :  { %188 = vst.msk [vmem:[#allocation2 + $0x550] sm:$0xff] %vm17_vm3, %v9147_v37  ;;  %189 = vst.msk [vmem:[#allocation2 + $0x558] sm:$0xff] %vm17_vm3, %v9147_v37 }
  0x9d   :  { %190 = vst.msk [vmem:[#allocation2 + $0x560] sm:$0xff] %vm17_vm3, %v9147_v37  ;;  %191 = vst.msk [vmem:[#allocation2 + $0x568] sm:$0xff] %vm17_vm3, %v9147_v37 }
  0x9e   :  { %192 = vst.msk [vmem:[#allocation2 + $0x570] sm:$0xff] %vm17_vm3, %v9147_v37  ;;  %193 = vst.msk [vmem:[#allocation2 + $0x578] sm:$0xff] %vm17_vm3, %v9147_v37 }
  0x9f   :  { %194 = vst.msk [vmem:[#allocation2 + $0x580] sm:$0xff] %vm17_vm3, %v9147_v37  ;;  %195 = vst.msk [vmem:[#allocation2 + $0x588] sm:$0xff] %vm17_vm3, %v9147_v37 }
  0xa0   :  { %196 = vst.msk [vmem:[#allocation2 + $0x590] sm:$0xff] %vm17_vm3, %v9147_v37  ;;  %197 = vst.msk [vmem:[#allocation2 + $0x598] sm:$0xff] %vm17_vm3, %v9147_v37 }
  0xa1   :  { %198 = vst.msk [vmem:[#allocation2 + $0x5a0] sm:$0xff] %vm17_vm3, %v9147_v37  ;;  %199 = vst.msk [vmem:[#allocation2 + $0x5a8] sm:$0xff] %vm17_vm3, %v9147_v37  ;;  %2559 = vmatmul.mubr.bf16.gmra.mrb[60].mxu0 %v8584_v47  ;;  %v8617_v47 = vld [vmem:[%s15145_s0 + $0x1a0] ss:$8 sps:$4 sm:$0xff]  }
  0xa2   :  { %200 = vst.msk [vmem:[#allocation2 + $0x5b0] sm:$0xff] %vm17_vm3, %v9147_v37  ;;  %201 = vst.msk [vmem:[#allocation2 + $0x5b8] sm:$0xff] %vm17_vm3, %v9147_v37  ;;  %7877 = vmatprep.mubr.msk.bf16.mxu0 %vm2014_vm0, %v8585_v48  ;;  %v8618_v48 = vld [vmem:[%s15145_s0 + $0x1b4] ss:$8 sps:$4 sm:$0xff]  }
  0xa3   :  { %202 = vst.msk [vmem:[#allocation2 + $0x5c0] sm:$0xff] %vm17_vm3, %v9147_v37  ;;  %203 = vst.msk [vmem:[#allocation2 + $0x5c8] sm:$0xff] %vm17_vm3, %v9147_v37 }
  0xa4   :  { %204 = vst.msk [vmem:[#allocation2 + $0x5d0] sm:$0xff] %vm17_vm3, %v9147_v37  ;;  %205 = vst.msk [vmem:[#allocation2 + $0x5d8] sm:$0xff] %vm17_vm3, %v9147_v37 }
  0xa5   :  { %206 = vst.msk [vmem:[#allocation2 + $0x5e0] sm:$0xff] %vm17_vm3, %v9147_v37  ;;  %207 = vst.msk [vmem:[#allocation2 + $0x5e8] sm:$0xff] %vm17_vm3, %v9147_v37 }
  0xa6   :  { %208 = vst.msk [vmem:[#allocation2 + $0x5f0] sm:$0xff] %vm17_vm3, %v9147_v37  ;;  %209 = vst.msk [vmem:[#allocation2 + $0x5f8] sm:$0xff] %vm17_vm3, %v9147_v37 }
  0xa7   :  { %210 = vst.msk [vmem:[#allocation2 + $0x600] sm:$0xff] %vm17_vm3, %v9147_v37  ;;  %211 = vst.msk [vmem:[#allocation2 + $0x608] sm:$0xff] %vm17_vm3, %v9147_v37 }
  0xa8   :  { %212 = vst.msk [vmem:[#allocation2 + $0x610] sm:$0xff] %vm17_vm3, %v9147_v37  ;;  %213 = vst.msk [vmem:[#allocation2 + $0x618] sm:$0xff] %vm17_vm3, %v9147_v37 }
  0xa9   :  { %214 = vst.msk [vmem:[#allocation2 + $0x620] sm:$0xff] %vm17_vm3, %v9147_v37  ;;  %215 = vst.msk [vmem:[#allocation2 + $0x628] sm:$0xff] %vm17_vm3, %v9147_v37  ;;  %2567 = vmatmul.mubr.bf16.gmra.mrb[64].mxu0 %v8587_v51  ;;  %v681_v51 = vld [vmem:[%s15145_s0 + $0x4b8] sm:$0xff] }
  0xaa   :  { %216 = vst.msk [vmem:[#allocation2 + $0x630] sm:$0xff] %vm17_vm3, %v9147_v37  ;;  %217 = vst.msk [vmem:[#allocation2 + $0x638] sm:$0xff] %vm17_vm3, %v9147_v37  ;;  %7878 = vmatprep.mubr.msk.bf16.mxu0 %vm2014_vm0, %v8588_v52  ;;  %v8689_v52 = vld [vmem:[%s15145_s0 + $0x4b4] ss:$8 sps:$4 sm:$0xff]   ;;  %v7745_v55 = vcombine.low %v680_v50, %v681_v51  ;;  %v8632_v50 = vld [vmem:[%s15145_s0 + $0x1f0] ss:$8 sps:$4 sm:$0xff]  }
  0xab   :  { %218 = vst.msk [vmem:[#allocation2 + $0x640] sm:$0xff] %vm17_vm3, %v9147_v37  ;;  %219 = vst.msk [vmem:[#allocation2 + $0x648] sm:$0xff] %vm17_vm3, %v9147_v37 }
  0xac   :  { %220 = vst.msk [vmem:[#allocation2 + $0x650] sm:$0xff] %vm17_vm3, %v9147_v37  ;;  %221 = vst.msk [vmem:[#allocation2 + $0x658] sm:$0xff] %vm17_vm3, %v9147_v37 }
  0xad   :  { %222 = vst.msk [vmem:[#allocation2 + $0x660] sm:$0xff] %vm17_vm3, %v9147_v37  ;;  %223 = vst.msk [vmem:[#allocation2 + $0x668] sm:$0xff] %vm17_vm3, %v9147_v37 }
  0xae   :  { %224 = vst.msk [vmem:[#allocation2 + $0x670] sm:$0xff] %vm17_vm3, %v9147_v37  ;;  %225 = vst.msk [vmem:[#allocation2 + $0x678] sm:$0xff] %vm17_vm3, %v9147_v37 }
  0xaf   :  { %226 = vst.msk [vmem:[#allocation2 + $0x680] sm:$0xff] %vm17_vm3, %v9147_v37  ;;  %227 = vst.msk [vmem:[#allocation2 + $0x688] sm:$0xff] %vm17_vm3, %v9147_v37 }
  0xb0   :  { %228 = vst.msk [vmem:[#allocation2 + $0x690] sm:$0xff] %vm17_vm3, %v9147_v37  ;;  %229 = vst.msk [vmem:[#allocation2 + $0x698] sm:$0xff] %vm17_vm3, %v9147_v37 }
  0xb1   :  { %230 = vst.msk [vmem:[#allocation2 + $0x6a0] sm:$0xff] %vm17_vm3, %v9147_v37  ;;  %231 = vst.msk [vmem:[#allocation2 + $0x6a8] sm:$0xff] %vm17_vm3, %v9147_v37  ;;  %2575 = vmatmul.mubr.bf16.gmra.mrb[68].mxu0 %v8590_v57 }
  0xb2   :  { %232 = vst.msk [vmem:[#allocation2 + $0x6b0] sm:$0xff] %vm17_vm3, %v9147_v37  ;;  %233 = vst.msk [vmem:[#allocation2 + $0x6b8] sm:$0xff] %vm17_vm3, %v9147_v37  ;;  %7879 = vmatprep.mubr.msk.bf16.mxu0 %vm2014_vm0, %v8591_v58  ;;  %v8620_v58 = vld [vmem:[%s15145_s0 + $0x1b0] ss:$8 sps:$4 sm:$0xff]  }
  0xb3   :  { %234 = vst.msk [vmem:[#allocation2 + $0x6c0] sm:$0xff] %vm17_vm3, %v9147_v37  ;;  %235 = vst.msk [vmem:[#allocation2 + $0x6c8] sm:$0xff] %vm17_vm3, %v9147_v37 }
  0xb4   :  { %236 = vst.msk [vmem:[#allocation2 + $0x6d0] sm:$0xff] %vm17_vm3, %v9147_v37  ;;  %237 = vst.msk [vmem:[#allocation2 + $0x6d8] sm:$0xff] %vm17_vm3, %v9147_v37 }
  0xb5   :  { %238 = vst.msk [vmem:[#allocation2 + $0x6e0] sm:$0xff] %vm17_vm3, %v9147_v37  ;;  %239 = vst.msk [vmem:[#allocation2 + $0x6e8] sm:$0xff] %vm17_vm3, %v9147_v37 }
  0xb6   :  { %240 = vst.msk [vmem:[#allocation2 + $0x6f0] sm:$0xff] %vm17_vm3, %v9147_v37  ;;  %241 = vst.msk [vmem:[#allocation2 + $0x6f8] sm:$0xff] %vm17_vm3, %v9147_v37 }
  0xb7   :  { %242 = vst.msk [vmem:[#allocation2 + $0x700] sm:$0xff] %vm17_vm3, %v9147_v37  ;;  %243 = vst.msk [vmem:[#allocation2 + $0x708] sm:$0xff] %vm17_vm3, %v9147_v37 }
  0xb8   :  { %244 = vst.msk [vmem:[#allocation2 + $0x710] sm:$0xff] %vm17_vm3, %v9147_v37  ;;  %245 = vst.msk [vmem:[#allocation2 + $0x718] sm:$0xff] %vm17_vm3, %v9147_v37 }
  0xb9   :  { %246 = vst.msk [vmem:[#allocation2 + $0x720] sm:$0xff] %vm17_vm3, %v9147_v37  ;;  %247 = vst.msk [vmem:[#allocation2 + $0x728] sm:$0xff] %vm17_vm3, %v9147_v37  ;;  %2583 = vmatmul.mubr.bf16.gmra.mrb[72].mxu0 %v8593_v63  ;;  %v276_v63 = vld [vmem:[#allocation2 + $0x10] sm:$0xff] }
  0xba   :  { %248 = vst.msk [vmem:[#allocation2 + $0x730] sm:$0xff] %vm17_vm3, %v9147_v37  ;;  %249 = vst.msk [vmem:[#allocation2 + $0x738] sm:$0xff] %vm17_vm3, %v9147_v37  ;;  %7880 = vmatprep.mubr.msk.bf16.mxu0 %vm2014_vm0, %v8594_v0  ;;  %v682_v0 = vld [vmem:[%s15145_s0 + $0x4c0] sm:$0xff] }
  0xbb   :  { %250 = vst.msk [vmem:[#allocation2 + $0x740] sm:$0xff] %vm17_vm3, %v9147_v37  ;;  %251 = vst.msk [vmem:[#allocation2 + $0x748] sm:$0xff] %vm17_vm3, %v9147_v37 }
  0xbc   :  { %252 = vst.msk [vmem:[#allocation2 + $0x750] sm:$0xff] %vm17_vm3, %v9147_v37  ;;  %253 = vst.msk [vmem:[#allocation2 + $0x758] sm:$0xff] %vm17_vm3, %v9147_v37 }
  0xbd   :  { %254 = vst.msk [vmem:[#allocation2 + $0x760] sm:$0xff] %vm17_vm3, %v9147_v37  ;;  %255 = vst.msk [vmem:[#allocation2 + $0x768] sm:$0xff] %vm17_vm3, %v9147_v37 }
  0xbe   :  { %256 = vst.msk [vmem:[#allocation2 + $0x770] sm:$0xff] %vm17_vm3, %v9147_v37  ;;  %257 = vst.msk [vmem:[#allocation2 + $0x778] sm:$0xff] %vm17_vm3, %v9147_v37 }
  0xbf   :  { %258 = vst.msk [vmem:[#allocation2 + $0x780] sm:$0xff] %vm17_vm3, %v9147_v37  ;;  %259 = vst.msk [vmem:[#allocation2 + $0x788] sm:$0xff] %vm17_vm3, %v9147_v37 }
  0xc0   :  { %260 = vst.msk [vmem:[#allocation2 + $0x790] sm:$0xff] %vm17_vm3, %v9147_v37  ;;  %261 = vst.msk [vmem:[#allocation2 + $0x798] sm:$0xff] %vm17_vm3, %v9147_v37 }
  0xc1   :  { %262 = vst.msk [vmem:[#allocation2 + $0x7a0] sm:$0xff] %vm17_vm3, %v9147_v37  ;;  %263 = vst.msk [vmem:[#allocation2 + $0x7a8] sm:$0xff] %vm17_vm3, %v9147_v37  ;;  %2591 = vmatmul.mubr.bf16.gmra.mrb[76].mxu0 %v8596_v5  ;;  %v7747_v5 = vcombine.low %v682_v0, %v683_v1  ;;  %v8638_v0 = vld [vmem:[%s15145_s0 + $0x200] ss:$8 sps:$4 sm:$0xff]  }
  0xc2   :  { %264 = vst.msk [vmem:[#allocation2 + $0x7b0] sm:$0xff] %vm17_vm3, %v9147_v37  ;;  %265 = vst.msk [vmem:[#allocation2 + $0x7b8] sm:$0xff] %vm17_vm3, %v9147_v37  ;;  %7881 = vmatprep.mubr.msk.bf16.mxu0 %vm2014_vm0, %v8597_v6 }
  0xc3   :  { %266 = vst.msk [vmem:[#allocation2 + $0x7c0] sm:$0xff] %vm17_vm3, %v9147_v37  ;;  %267 = vst.msk [vmem:[#allocation2 + $0x7c8] sm:$0xff] %vm17_vm3, %v9147_v37 }
  0xc4   :  { %268 = vst.msk [vmem:[#allocation2 + $0x7d0] sm:$0xff] %vm17_vm3, %v9147_v37  ;;  %269 = vst.msk [vmem:[#allocation2 + $0x7d8] sm:$0xff] %vm17_vm3, %v9147_v37 }
  0xc5   :  { %270 = vst.msk [vmem:[#allocation2 + $0x7e0] sm:$0xff] %vm17_vm3, %v9147_v37  ;;  %271 = vst.msk [vmem:[#allocation2 + $0x7e8] sm:$0xff] %vm17_vm3, %v9147_v37 }
  0xc6   :  { %272 = vst.msk [vmem:[#allocation2 + $0x7f0] sm:$0xff] %vm17_vm3, %v9147_v37  ;;  %273 = vst.msk [vmem:[#allocation2 + $0x7f8] sm:$0xff] %vm17_vm3, %v9147_v37  ;;  %v676_v37 = vld [vmem:[%s15145_s0 + $0x490] sm:$0xff] }
  0xc7   :  { %v7741_v40 = vcombine.low %v676_v37, %v677_v38  ;;  %v8630_v38 = vld [vmem:[%s15145_s0 + $0x1f4] ss:$8 sps:$4 sm:$0xff]  }
  0xc9   :  { %2599 = vmatmul.mubr.bf16.gmra.mrb[80].mxu0 %v8599_v11  ;;  %3023 = vmatmul.mubr.bf16.gmra.mrb[36].mxu1 %v7741_v40 }
  0xca   :  { %7882 = vmatprep.mubr.msk.bf16.mxu0 %vm2014_vm0, %v8600_v12  ;;  %7935 = vmatprep.mubr.msk.bf16.mxu1 %vm2014_vm0, %v8684_v45 }
  0xd1   :  { %2607 = vmatmul.mubr.bf16.gmra.mrb[84].mxu0 %v8602_v17  ;;  %3031 = vmatmul.mubr.bf16.gmra.mrb[40].mxu1 %v7743_v46  ;;  %v283_v46 = vld [vmem:[#allocation2 + $0x48] sm:$0xff] }
  0xd2   :  { %7883 = vmatprep.mubr.msk.bf16.mxu0 %vm2014_vm0, %v8603_v18  ;;  %7936 = vmatprep.mubr.msk.bf16.mxu1 %vm2014_vm0, %v8689_v52  ;;  %v279_v18 = vld [vmem:[#allocation2 + $0x28] sm:$0xff] }
  0xd3   :  { %v8636_v52 = vld [vmem:[%s15145_s0 + $0x204] ss:$8 sps:$4 sm:$0xff]  }
  0xd9   :  { %2615 = vmatmul.mubr.bf16.gmra.mrb[88].mxu0 %v8605_v23  ;;  %3039 = vmatmul.mubr.bf16.gmra.mrb[44].mxu1 %v7745_v55  ;;  %v284_v55 = vld [vmem:[#allocation2 + $0x50] sm:$0xff] }
  0xda   :  { %7884 = vmatprep.mubr.msk.bf16.mxu0 %vm2014_vm0, %v8606_v24  ;;  %7937 = vmatprep.mubr.msk.bf16.mxu1 %vm2014_vm0, %v8694_v2  ;;  %v8627_v24 = vld [vmem:[%s15145_s0 + $0x1e4] ss:$8 sps:$4 sm:$0xff]   ;;  %v8641_v2 = vld [vmem:[%s15145_s0 + $0x214] ss:$8 sps:$4 sm:$0xff]  }
  0xe1   :  { %2623 = vmatmul.mubr.bf16.gmra.mrb[92].mxu0 %v8608_v29  ;;  %3047 = vmatmul.mubr.bf16.gmra.mrb[48].mxu1 %v7747_v5  ;;  %v687_v29 = vld [vmem:[%s15145_s0 + $0x4e8] sm:$0xff]  ;;  %v286_v5 = vld [vmem:[#allocation2 + $0x60] sm:$0xff] }
  0xe2   :  { %7885 = vmatprep.mubr.msk.bf16.mxu0 %vm2014_vm0, %v8609_v30  ;;  %7938 = vmatprep.mubr.msk.bf16.mxu1 %vm2014_vm0, %v8699_v16  ;;  %v8704_v30 = vld [vmem:[%s15145_s0 + $0x4e4] ss:$8 sps:$4 sm:$0xff]   ;;  %v7751_v33 = vcombine.low %v686_v28, %v687_v29  ;;  %v8648_v28 = vld [vmem:[%s15145_s0 + $0x220] ss:$8 sps:$4 sm:$0xff]  }
  0xe3   :  { %v8646_v16 = vld [vmem:[%s15145_s0 + $0x224] ss:$8 sps:$4 sm:$0xff]  }
  0xe9   :  { %2631 = vmatmul.mubr.bf16.gmra.mrb[96].mxu0 %v8611_v35  ;;  %3055 = vmatmul.mubr.bf16.gmra.mrb[52].mxu1 %v7749_v19  ;;  %v288_v19 = vld [vmem:[#allocation2 + $0x70] sm:$0xff] }
  0xea   :  { %7886 = vmatprep.mubr.msk.bf16.mxu0 %vm2014_vm0, %v8612_v36  ;;  %v8629_v36 = vld [vmem:[%s15145_s0 + $0x1e0] ss:$8 sps:$4 sm:$0xff]   ;;  %7939 = vmatprep.mubr.msk.bf16.mxu1 %vm2014_vm0, %v8704_v30  ;;  %v8651_v30 = vld [vmem:[%s15145_s0 + $0x234] ss:$8 sps:$4 sm:$0xff]  }
  0xf1   :  { %2639 = vmatmul.mubr.bf16.gmra.mrb[100].mxu0 %v8614_v41  ;;  %3063 = vmatmul.mubr.bf16.gmra.mrb[56].mxu1 %v7751_v33  ;;  %v282_v41 = vld [vmem:[#allocation2 + $0x40] sm:$0xff] }
  0xf2   :  { %7887 = vmatprep.mubr.msk.bf16.mxu0 %vm2014_vm0, %v8615_v42  ;;  %v688_v42 = vld [vmem:[%s15145_s0 + $0x4f0] sm:$0xff]  ;;  %7940 = vmatprep.mubr.msk.bf16.mxu1 %vm2014_vm0, %v8709_v44  ;;  %v290_v33 = vld [vmem:[#allocation2 + $0x80] sm:$0xff] }
  0xf3   :  { %v8656_v44 = vld [vmem:[%s15145_s0 + $0x244] ss:$8 sps:$4 sm:$0xff]  }
  0xf9   :  { %2647 = vmatmul.mubr.bf16.gmra.mrb[104].mxu0 %v8617_v47  ;;  %v7753_v47 = vcombine.low %v688_v42, %v689_v43  ;;  %v8653_v42 = vld [vmem:[%s15145_s0 + $0x230] ss:$8 sps:$4 sm:$0xff]  }
  0xfa   :  { %7888 = vmatprep.mubr.msk.bf16.mxu0 %vm2014_vm0, %v8618_v48 }
  0xfb   :  { %3071 = vmatmul.mubr.bf16.gmra.mrb[60].mxu1 %v7753_v47  ;;  %v292_v47 = vld [vmem:[#allocation2 + $0x90] sm:$0xff] }
  0xfc   :  { %v2440_v53 = vpop.f32.mrb[0].mxu0 }
  0xfd   :  { %v3463_v56 = vadd.f32 %v2440_v53, %v274_v49  ;;  %v2442_v57 = vpop.f32.mrb[1].mxu0 }
  0xfe   :  { %v2443_v59 = vpop.f32.mrb[2].mxu0  ;;  %v691_v57 = vld [vmem:[%s15145_s0 + $0x508] sm:$0xff] }
  0xff   :  { %3720 = vst.msk [vmem:[#allocation2] sm:$0xff] %vm17_vm3, %v3463_v56  ;;  %v3464_v61 = vadd.f32 %v2443_v59, %v275_v54  ;;  %v2445_v62 = vpop.f32.mrb[3].mxu0  ;;  %v690_v56 = vld [vmem:[%s15145_s0 + $0x500] sm:$0xff] }
 0x101   :  { %3721 = vst.msk [vmem:[#allocation2 + $0x8] sm:$0xff] %vm17_vm3, %v3464_v61  ;;  %2655 = vmatmul.mubr.bf16.gmra.mrb[108].mxu0 %v8620_v58  ;;  %v8714_v58 = vld [vmem:[%s15145_s0 + $0x504] ss:$8 sps:$4 sm:$0xff]   ;;  %v7755_v61 = vcombine.low %v690_v56, %v691_v57  ;;  %v8658_v56 = vld [vmem:[%s15145_s0 + $0x240] ss:$8 sps:$4 sm:$0xff]  }
 0x102   :  { %7889 = vmatprep.mubr.msk.bf16.mxu0 %vm2014_vm0, %v8621_v60  ;;  %v285_v60 = vld [vmem:[#allocation2 + $0x58] sm:$0xff]  ;;  %7941 = vmatprep.mubr.msk.bf16.mxu1 %vm2014_vm0, %v8714_v58 }
 0x103   :  { %3079 = vmatmul.mubr.bf16.gmra.mrb[64].mxu1 %v7755_v61  ;;  %v8661_v58 = vld [vmem:[%s15145_s0 + $0x254] ss:$8 sps:$4 sm:$0xff]   ;;  %v294_v61 = vld [vmem:[#allocation2 + $0xa0] sm:$0xff] }
 0x104   :  { %v2448_v3 = vpop.f32.mrb[4].mxu0 }
 0x105   :  { %v3465_v6 = vadd.f32 %v2448_v3, %v276_v63  ;;  %v2450_v7 = vpop.f32.mrb[5].mxu0 }
 0x106   :  { %v2451_v9 = vpop.f32.mrb[6].mxu0  ;;  %v693_v7 = vld [vmem:[%s15145_s0 + $0x518] sm:$0xff] }
 0x107   :  { %3722 = vst.msk [vmem:[#allocation2 + $0x10] sm:$0xff] %vm17_vm3, %v3465_v6  ;;  %v3466_v11 = vadd.f32 %v2451_v9, %v277_v4  ;;  %v2453_v12 = vpop.f32.mrb[7].mxu0  ;;  %v692_v6 = vld [vmem:[%s15145_s0 + $0x510] sm:$0xff] }
 0x109   :  { %3723 = vst.msk [vmem:[#allocation2 + $0x18] sm:$0xff] %vm17_vm3, %v3466_v11  ;;  %2663 = vmatmul.mubr.bf16.gmra.mrb[112].mxu0 %v8623_v8  ;;  %v8719_v8 = vld [vmem:[%s15145_s0 + $0x514] ss:$8 sps:$4 sm:$0xff]   ;;  %v7757_v11 = vcombine.low %v692_v6, %v693_v7  ;;  %v8663_v6 = vld [vmem:[%s15145_s0 + $0x250] ss:$8 sps:$4 sm:$0xff]  }
 0x10a   :  { %7890 = vmatprep.mubr.msk.bf16.mxu0 %vm2014_vm0, %v8624_v10  ;;  %v287_v10 = vld [vmem:[#allocation2 + $0x68] sm:$0xff]  ;;  %7942 = vmatprep.mubr.msk.bf16.mxu1 %vm2014_vm0, %v8719_v8 }
 0x10b   :  { %3087 = vmatmul.mubr.bf16.gmra.mrb[68].mxu1 %v7757_v11  ;;  %v8666_v8 = vld [vmem:[%s15145_s0 + $0x264] ss:$8 sps:$4 sm:$0xff]   ;;  %v296_v11 = vld [vmem:[#allocation2 + $0xb0] sm:$0xff] }
 0x10c   :  { %v2456_v17 = vpop.f32.mrb[8].mxu0 }
 0x10d   :  { %v3467_v20 = vadd.f32 %v2456_v17, %v278_v13  ;;  %v2458_v21 = vpop.f32.mrb[9].mxu0 }
 0x10e   :  { %v2459_v23 = vpop.f32.mrb[10].mxu0  ;;  %v695_v21 = vld [vmem:[%s15145_s0 + $0x528] sm:$0xff] }
 0x10f   :  { %3724 = vst.msk [vmem:[#allocation2 + $0x20] sm:$0xff] %vm17_vm3, %v3467_v20  ;;  %v3468_v25 = vadd.f32 %v2459_v23, %v279_v18  ;;  %v2461_v26 = vpop.f32.mrb[11].mxu0  ;;  %v694_v20 = vld [vmem:[%s15145_s0 + $0x520] sm:$0xff] }
 0x111   :  { %3725 = vst.msk [vmem:[#allocation2 + $0x28] sm:$0xff] %vm17_vm3, %v3468_v25  ;;  %2671 = vmatmul.mubr.bf16.gmra.mrb[116].mxu0 %v8626_v22  ;;  %v8724_v22 = vld [vmem:[%s15145_s0 + $0x524] ss:$8 sps:$4 sm:$0xff]   ;;  %v7759_v25 = vcombine.low %v694_v20, %v695_v21  ;;  %v8668_v20 = vld [vmem:[%s15145_s0 + $0x260] ss:$8 sps:$4 sm:$0xff]  }
 0x112   :  { %7891 = vmatprep.mubr.msk.bf16.mxu0 %vm2014_vm0, %v8627_v24  ;;  %v289_v24 = vld [vmem:[#allocation2 + $0x78] sm:$0xff]  ;;  %7943 = vmatprep.mubr.msk.bf16.mxu1 %vm2014_vm0, %v8724_v22 }
 0x113   :  { %3095 = vmatmul.mubr.bf16.gmra.mrb[72].mxu1 %v7759_v25  ;;  %v8671_v22 = vld [vmem:[%s15145_s0 + $0x274] ss:$8 sps:$4 sm:$0xff]   ;;  %v298_v25 = vld [vmem:[#allocation2 + $0xc0] sm:$0xff] }
 0x114   :  { %v2464_v31 = vpop.f32.mrb[12].mxu0 }
 0x115   :  { %v3469_v34 = vadd.f32 %v2464_v31, %v280_v27  ;;  %v2466_v35 = vpop.f32.mrb[13].mxu0 }
 0x116   :  { %v2467_v37 = vpop.f32.mrb[14].mxu0  ;;  %v697_v35 = vld [vmem:[%s15145_s0 + $0x538] sm:$0xff] }
 0x117   :  { %3726 = vst.msk [vmem:[#allocation2 + $0x30] sm:$0xff] %vm17_vm3, %v3469_v34  ;;  %v3470_v39 = vadd.f32 %v2467_v37, %v281_v32  ;;  %v2469_v40 = vpop.f32.mrb[15].mxu0  ;;  %v696_v34 = vld [vmem:[%s15145_s0 + $0x530] sm:$0xff] }
 0x119   :  { %3727 = vst.msk [vmem:[#allocation2 + $0x38] sm:$0xff] %vm17_vm3, %v3470_v39  ;;  %2679 = vmatmul.mubr.bf16.gmra.mrb[120].mxu0 %v8629_v36  ;;  %v8729_v36 = vld [vmem:[%s15145_s0 + $0x534] ss:$8 sps:$4 sm:$0xff]   ;;  %v7761_v39 = vcombine.low %v696_v34, %v697_v35  ;;  %v8673_v34 = vld [vmem:[%s15145_s0 + $0x270] ss:$8 sps:$4 sm:$0xff]  }
 0x11a   :  { %7892 = vmatprep.mubr.msk.bf16.mxu0 %vm2014_vm0, %v8630_v38  ;;  %v291_v38 = vld [vmem:[#allocation2 + $0x88] sm:$0xff]  ;;  %7944 = vmatprep.mubr.msk.bf16.mxu1 %vm2014_vm0, %v8729_v36 }
 0x11b   :  { %3103 = vmatmul.mubr.bf16.gmra.mrb[76].mxu1 %v7761_v39  ;;  %v8676_v36 = vld [vmem:[%s15145_s0 + $0x284] ss:$8 sps:$4 sm:$0xff]   ;;  %v300_v39 = vld [vmem:[#allocation2 + $0xd0] sm:$0xff] }
 0x11c   :  { %v2472_v45 = vpop.f32.mrb[16].mxu0 }
 0x11d   :  { %v3471_v48 = vadd.f32 %v2472_v45, %v282_v41  ;;  %v2474_v49 = vpop.f32.mrb[17].mxu0 }
 0x11e   :  { %v2475_v51 = vpop.f32.mrb[18].mxu0  ;;  %v699_v49 = vld [vmem:[%s15145_s0 + $0x548] sm:$0xff] }
 0x11f   :  { %3728 = vst.msk [vmem:[#allocation2 + $0x40] sm:$0xff] %vm17_vm3, %v3471_v48  ;;  %v3472_v53 = vadd.f32 %v2475_v51, %v283_v46  ;;  %v2477_v54 = vpop.f32.mrb[19].mxu0  ;;  %v698_v48 = vld [vmem:[%s15145_s0 + $0x540] sm:$0xff] }
 0x121   :  { %3729 = vst.msk [vmem:[#allocation2 + $0x48] sm:$0xff] %vm17_vm3, %v3472_v53  ;;  %2687 = vmatmul.mubr.bf16.gmra.mrb[124].mxu0 %v8632_v50  ;;  %v8734_v50 = vld [vmem:[%s15145_s0 + $0x544] ss:$8 sps:$4 sm:$0xff]   ;;  %v7763_v53 = vcombine.low %v698_v48, %v699_v49  ;;  %v8678_v48 = vld [vmem:[%s15145_s0 + $0x280] ss:$8 sps:$4 sm:$0xff]  }
 0x122   :  { %7893 = vmatprep.mubr.msk.bf16.mxu0 %vm2014_vm0, %v8636_v52  ;;  %v293_v52 = vld [vmem:[#allocation2 + $0x98] sm:$0xff]  ;;  %7945 = vmatprep.mubr.msk.bf16.mxu1 %vm2014_vm0, %v8734_v50 }
 0x123   :  { %3111 = vmatmul.mubr.bf16.gmra.mrb[80].mxu1 %v7763_v53  ;;  %v8681_v50 = vld [vmem:[%s15145_s0 + $0x294] ss:$8 sps:$4 sm:$0xff]   ;;  %v302_v53 = vld [vmem:[#allocation2 + $0xe0] sm:$0xff] }
 0x124   :  { %v2480_v59 = vpop.f32.mrb[20].mxu0 }
 0x125   :  { %v3473_v62 = vadd.f32 %v2480_v59, %v284_v55  ;;  %v2482_v63 = vpop.f32.mrb[21].mxu0 }
 0x126   :  { %v2483_v1 = vpop.f32.mrb[22].mxu0  ;;  %v701_v63 = vld [vmem:[%s15145_s0 + $0x558] sm:$0xff] }
 0x127   :  { %3730 = vst.msk [vmem:[#allocation2 + $0x50] sm:$0xff] %vm17_vm3, %v3473_v62  ;;  %v3474_v3 = vadd.f32 %v2483_v1, %v285_v60  ;;  %v2485_v4 = vpop.f32.mrb[23].mxu0  ;;  %v700_v62 = vld [vmem:[%s15145_s0 + $0x550] sm:$0xff] }
 0x129   :  { %3731 = vst.msk [vmem:[#allocation2 + $0x58] sm:$0xff] %vm17_vm3, %v3474_v3  ;;  %2695 = vmatmul.mubr.bf16.gmra.mrb[128].mxu0 %v8638_v0  ;;  %v8739_v0 = vld [vmem:[%s15145_s0 + $0x554] ss:$8 sps:$4 sm:$0xff]   ;;  %v7765_v3 = vcombine.low %v700_v62, %v701_v63  ;;  %v8683_v62 = vld [vmem:[%s15145_s0 + $0x290] ss:$8 sps:$4 sm:$0xff]  }
 0x12a   :  { %7894 = vmatprep.mubr.msk.bf16.mxu0 %vm2014_vm0, %v8641_v2  ;;  %v295_v2 = vld [vmem:[#allocation2 + $0xa8] sm:$0xff]  ;;  %7946 = vmatprep.mubr.msk.bf16.mxu1 %vm2014_vm0, %v8739_v0 }
 0x12b   :  { %3119 = vmatmul.mubr.bf16.gmra.mrb[84].mxu1 %v7765_v3  ;;  %v8686_v0 = vld [vmem:[%s15145_s0 + $0x2a4] ss:$8 sps:$4 sm:$0xff]   ;;  %v304_v3 = vld [vmem:[#allocation2 + $0xf0] sm:$0xff] }
 0x12c   :  { %v2488_v9 = vpop.f32.mrb[24].mxu0 }
 0x12d   :  { %v3475_v12 = vadd.f32 %v2488_v9, %v286_v5  ;;  %v2490_v13 = vpop.f32.mrb[25].mxu0 }
 0x12e   :  { %v2491_v15 = vpop.f32.mrb[26].mxu0  ;;  %v703_v13 = vld [vmem:[%s15145_s0 + $0x568] sm:$0xff] }
 0x12f   :  { %3732 = vst.msk [vmem:[#allocation2 + $0x60] sm:$0xff] %vm17_vm3, %v3475_v12  ;;  %v3476_v17 = vadd.f32 %v2491_v15, %v287_v10  ;;  %v2493_v18 = vpop.f32.mrb[27].mxu0  ;;  %v702_v12 = vld [vmem:[%s15145_s0 + $0x560] sm:$0xff] }
 0x131   :  { %3733 = vst.msk [vmem:[#allocation2 + $0x68] sm:$0xff] %vm17_vm3, %v3476_v17  ;;  %2703 = vmatmul.mubr.bf16.gmra.mrb[132].mxu0 %v8643_v14  ;;  %v8744_v14 = vld [vmem:[%s15145_s0 + $0x564] ss:$8 sps:$4 sm:$0xff]   ;;  %v7767_v17 = vcombine.low %v702_v12, %v703_v13  ;;  %v8688_v12 = vld [vmem:[%s15145_s0 + $0x2a0] ss:$8 sps:$4 sm:$0xff]  }
 0x132   :  { %7895 = vmatprep.mubr.msk.bf16.mxu0 %vm2014_vm0, %v8646_v16  ;;  %v297_v16 = vld [vmem:[#allocation2 + $0xb8] sm:$0xff]  ;;  %7947 = vmatprep.mubr.msk.bf16.mxu1 %vm2014_vm0, %v8744_v14 }
 0x133   :  { %3127 = vmatmul.mubr.bf16.gmra.mrb[88].mxu1 %v7767_v17  ;;  %v8691_v14 = vld [vmem:[%s15145_s0 + $0x2b4] ss:$8 sps:$4 sm:$0xff]   ;;  %v2952_v17 = vpop.f32.mrb[0].mxu1 }
 0x134   :  { %v2496_v23 = vpop.f32.mrb[28].mxu0 }
 0x135   :  { %v3477_v26 = vadd.f32 %v2496_v23, %v288_v19  ;;  %v2498_v27 = vpop.f32.mrb[29].mxu0 }
 0x136   :  { %v2499_v29 = vpop.f32.mrb[30].mxu0  ;;  %v705_v27 = vld [vmem:[%s15145_s0 + $0x578] sm:$0xff] }
 0x137   :  { %3734 = vst.msk [vmem:[#allocation2 + $0x70] sm:$0xff] %vm17_vm3, %v3477_v26  ;;  %v3478_v31 = vadd.f32 %v2499_v29, %v289_v24  ;;  %v2501_v32 = vpop.f32.mrb[31].mxu0  ;;  %v704_v26 = vld [vmem:[%s15145_s0 + $0x570] sm:$0xff] }
 0x139   :  { %3735 = vst.msk [vmem:[#allocation2 + $0x78] sm:$0xff] %vm17_vm3, %v3478_v31  ;;  %2711 = vmatmul.mubr.bf16.gmra.mrb[136].mxu0 %v8648_v28  ;;  %v8749_v28 = vld [vmem:[%s15145_s0 + $0x574] ss:$8 sps:$4 sm:$0xff]   ;;  %v7769_v31 = vcombine.low %v704_v26, %v705_v27  ;;  %v402_v26 = vld [vmem:[#allocation2 + $0x400] sm:$0xff]  ;;  %v403_v27 = vld [vmem:[#allocation2 + $0x408] sm:$0xff] }
 0x13a   :  { %7896 = vmatprep.mubr.msk.bf16.mxu0 %vm2014_vm0, %v8651_v30  ;;  %v299_v30 = vld [vmem:[#allocation2 + $0xc8] sm:$0xff]  ;;  %7948 = vmatprep.mubr.msk.bf16.mxu1 %vm2014_vm0, %v8749_v28 }
 0x13b   :  { %3135 = vmatmul.mubr.bf16.gmra.mrb[92].mxu1 %v7769_v31 }
 0x13c   :  { %v2504_v37 = vpop.f32.mrb[32].mxu0 }
 0x13d   :  { %v3479_v40 = vadd.f32 %v2504_v37, %v290_v33  ;;  %v2506_v41 = vpop.f32.mrb[33].mxu0 }
 0x13e   :  { %v2507_v43 = vpop.f32.mrb[34].mxu0  ;;  %v707_v41 = vld [vmem:[%s15145_s0 + $0x588] sm:$0xff] }
 0x13f   :  { %3736 = vst.msk [vmem:[#allocation2 + $0x80] sm:$0xff] %vm17_vm3, %v3479_v40  ;;  %v3480_v45 = vadd.f32 %v2507_v43, %v291_v38  ;;  %v2509_v46 = vpop.f32.mrb[35].mxu0  ;;  %v706_v40 = vld [vmem:[%s15145_s0 + $0x580] sm:$0xff] }
 0x141   :  { %3737 = vst.msk [vmem:[#allocation2 + $0x88] sm:$0xff] %vm17_vm3, %v3480_v45  ;;  %2719 = vmatmul.mubr.bf16.gmra.mrb[140].mxu0 %v8653_v42  ;;  %v8754_v42 = vld [vmem:[%s15145_s0 + $0x584] ss:$8 sps:$4 sm:$0xff]   ;;  %v7771_v45 = vcombine.low %v706_v40, %v707_v41  ;;  %v308_v40 = vld [vmem:[#allocation2 + $0x110] sm:$0xff]  ;;  %v309_v41 = vld [vmem:[#allocation2 + $0x118] sm:$0xff] }
 0x142   :  { %7897 = vmatprep.mubr.msk.bf16.mxu0 %vm2014_vm0, %v8656_v44  ;;  %v301_v44 = vld [vmem:[#allocation2 + $0xd8] sm:$0xff]  ;;  %7949 = vmatprep.mubr.msk.bf16.mxu1 %vm2014_vm0, %v8754_v42 }
 0x143   :  { %3143 = vmatmul.mubr.bf16.gmra.mrb[96].mxu1 %v7771_v45  ;;  %v715_v45 = vld [vmem:[%s15145_s0 + $0x5c8] sm:$0xff] }
 0x144   :  { %v2512_v51 = vpop.f32.mrb[36].mxu0 }
 0x145   :  { %v3481_v54 = vadd.f32 %v2512_v51, %v292_v47  ;;  %v2514_v55 = vpop.f32.mrb[37].mxu0 }
 0x146   :  { %v2515_v57 = vpop.f32.mrb[38].mxu0  ;;  %v709_v55 = vld [vmem:[%s15145_s0 + $0x598] sm:$0xff] }
 0x147   :  { %3738 = vst.msk [vmem:[#allocation2 + $0x90] sm:$0xff] %vm17_vm3, %v3481_v54  ;;  %v3482_v59 = vadd.f32 %v2515_v57, %v293_v52  ;;  %v2517_v60 = vpop.f32.mrb[39].mxu0  ;;  %v708_v54 = vld [vmem:[%s15145_s0 + $0x590] sm:$0xff] }
 0x149   :  { %3739 = vst.msk [vmem:[#allocation2 + $0x98] sm:$0xff] %vm17_vm3, %v3482_v59  ;;  %2727 = vmatmul.mubr.bf16.gmra.mrb[144].mxu0 %v8658_v56  ;;  %v8759_v56 = vld [vmem:[%s15145_s0 + $0x594] ss:$8 sps:$4 sm:$0xff]   ;;  %v7773_v59 = vcombine.low %v708_v54, %v709_v55  ;;  %v8698_v55 = vld [vmem:[%s15145_s0 + $0x2c0] ss:$8 sps:$4 sm:$0xff]  }
 0x14a   :  { %7898 = vmatprep.mubr.msk.bf16.mxu0 %vm2014_vm0, %v8661_v58  ;;  %v303_v58 = vld [vmem:[#allocation2 + $0xe8] sm:$0xff]  ;;  %7950 = vmatprep.mubr.msk.bf16.mxu1 %vm2014_vm0, %v8759_v56 }
 0x14b   :  { %3151 = vmatmul.mubr.bf16.gmra.mrb[100].mxu1 %v7773_v59  ;;  %v3981_v59 = vld [vmem:[#allocation2 + $0x10] sm:$0xff] }
 0x14c   :  { %v2520_v1 = vpop.f32.mrb[40].mxu0 }
 0x14d   :  { %v3483_v4 = vadd.f32 %v2520_v1, %v294_v61  ;;  %v2522_v5 = vpop.f32.mrb[41].mxu0 }
 0x14e   :  { %v2523_v7 = vpop.f32.mrb[42].mxu0  ;;  %v711_v5 = vld [vmem:[%s15145_s0 + $0x5a8] sm:$0xff] }
 0x14f   :  { %3740 = vst.msk [vmem:[#allocation2 + $0xa0] sm:$0xff] %vm17_vm3, %v3483_v4  ;;  %v3484_v9 = vadd.f32 %v2523_v7, %v295_v2  ;;  %v2525_v10 = vpop.f32.mrb[43].mxu0  ;;  %v710_v4 = vld [vmem:[%s15145_s0 + $0x5a0] sm:$0xff] }
 0x151   :  { %3741 = vst.msk [vmem:[#allocation2 + $0xa8] sm:$0xff] %vm17_vm3, %v3484_v9  ;;  %2735 = vmatmul.mubr.bf16.gmra.mrb[148].mxu0 %v8663_v6  ;;  %v8764_v6 = vld [vmem:[%s15145_s0 + $0x5a4] ss:$8 sps:$4 sm:$0xff]   ;;  %v7775_v9 = vcombine.low %v710_v4, %v711_v5  ;;  %v3982_v5 = vld [vmem:[#allocation2 + $0x18] sm:$0xff] }
 0x152   :  { %7899 = vmatprep.mubr.msk.bf16.mxu0 %vm2014_vm0, %v8666_v8  ;;  %v305_v8 = vld [vmem:[#allocation2 + $0xf8] sm:$0xff]  ;;  %7951 = vmatprep.mubr.msk.bf16.mxu1 %vm2014_vm0, %v8764_v6  ;;  %v310_v6 = vld [vmem:[#allocation2 + $0x120] sm:$0xff] }
 0x153   :  { %3159 = vmatmul.mubr.bf16.gmra.mrb[104].mxu1 %v7775_v9 }
 0x154   :  { %v2528_v15 = vpop.f32.mrb[44].mxu0 }
 0x155   :  { %v3485_v18 = vadd.f32 %v2528_v15, %v296_v11  ;;  %v2530_v19 = vpop.f32.mrb[45].mxu0 }
 0x156   :  { %v2531_v21 = vpop.f32.mrb[46].mxu0  ;;  %v2954_v19 = vpop.f32.mrb[1].mxu1 }
 0x157   :  { %3742 = vst.msk [vmem:[#allocation2 + $0xb0] sm:$0xff] %vm17_vm3, %v3485_v18  ;;  %v3486_v23 = vadd.f32 %v2531_v21, %v297_v16  ;;  %v2533_v24 = vpop.f32.mrb[47].mxu0  ;;  %v306_v18 = vld [vmem:[#allocation2 + $0x100] sm:$0xff]  ;;  %v712_v21 = vld [vmem:[%s15145_s0 + $0x5b0] sm:$0xff] }
 0x159   :  { %3743 = vst.msk [vmem:[#allocation2 + $0xb8] sm:$0xff] %vm17_vm3, %v3486_v23  ;;  %2743 = vmatmul.mubr.bf16.gmra.mrb[152].mxu0 %v8668_v20  ;;  %v2955_v20 = vpop.f32.mrb[2].mxu1  ;;  %v8769_v23 = vld [vmem:[%s15145_s0 + $0x5b4] ss:$8 sps:$4 sm:$0xff]  }
 0x15a   :  { %7900 = vmatprep.mubr.msk.bf16.mxu0 %vm2014_vm0, %v8671_v22  ;;  %v713_v22 = vld [vmem:[%s15145_s0 + $0x5b8] sm:$0xff]  ;;  %v2957_v28 = vpop.f32.mrb[3].mxu1  ;;  %7952 = vmatprep.mubr.msk.bf16.mxu1 %vm2014_vm0, %v8769_v23 }
 0x15b   :  { %v8703_v23 = vld [vmem:[%s15145_s0 + $0x2d0] ss:$8 sps:$4 sm:$0xff]  }
 0x15c   :  { %v2536_v29 = vpop.f32.mrb[48].mxu0 }
 0x15d   :  { %v3487_v32 = vadd.f32 %v2536_v29, %v298_v25  ;;  %v2538_v33 = vpop.f32.mrb[49].mxu0  ;;  %v307_v25 = vld [vmem:[#allocation2 + $0x108] sm:$0xff]  ;;  %v7777_v29 = vcombine.low %v712_v21, %v713_v22 }
 0x15e   :  { %v2539_v35 = vpop.f32.mrb[50].mxu0  ;;  %v3591_v33 = vadd.f32 %v2952_v17, %v402_v26  ;;  %v407_v17 = vld [vmem:[#allocation2 + $0x428] sm:$0xff] }
 0x15f   :  { %3744 = vst.msk [vmem:[#allocation2 + $0xc0] sm:$0xff] %vm17_vm3, %v3487_v32  ;;  %v3488_v37 = vadd.f32 %v2539_v35, %v299_v30  ;;  %v2541_v38 = vpop.f32.mrb[51].mxu0  ;;  %v8693_v32 = vld [vmem:[%s15145_s0 + $0x2b0] ss:$8 sps:$4 sm:$0xff]   ;;  %3167 = vmatmul.mubr.bf16.gmra.mrb[108].mxu1 %v7777_v29 }
 0x160   :  { %3848 = vst.msk [vmem:[#allocation2 + $0x400] sm:$0xff] %vm17_vm3, %v3591_v33 }
 0x161   :  { %3745 = vst.msk [vmem:[#allocation2 + $0xc8] sm:$0xff] %vm17_vm3, %v3488_v37  ;;  %2751 = vmatmul.mubr.bf16.gmra.mrb[156].mxu0 %v8673_v34  ;;  %v3592_v34 = vadd.f32 %v2955_v20, %v403_v27  ;;  %v4240_v20 = vsel %vm17_vm3, %v3982_v5, 0.0  ;;  %v8706_v27 = vld [vmem:[%s15145_s0 + $0x2e4] ss:$8 sps:$4 sm:$0xff]  }
 0x162   :  { %7901 = vmatprep.mubr.msk.bf16.mxu0 %vm2014_vm0, %v8676_v36  ;;  %v8696_v36 = vld [vmem:[%s15145_s0 + $0x2c4] ss:$8 sps:$4 sm:$0xff]  }
 0x163   :  { %3849 = vst.msk [vmem:[#allocation2 + $0x408] sm:$0xff] %vm17_vm3, %v3592_v34 }
 0x164   :  { %v2544_v43 = vpop.f32.mrb[52].mxu0 }
 0x165   :  { %v3489_v46 = vadd.f32 %v2544_v43, %v300_v39  ;;  %v2546_v47 = vpop.f32.mrb[53].mxu0  ;;  %v2960_v39 = vpop.f32.mrb[4].mxu1 }
 0x166   :  { %v2547_v49 = vpop.f32.mrb[54].mxu0  ;;  %v2962_v42 = vpop.f32.mrb[5].mxu1  ;;  %v3980_v47 = vld [vmem:[#allocation2 + $0x8] sm:$0xff] }
 0x167   :  { %3746 = vst.msk [vmem:[#allocation2 + $0xd0] sm:$0xff] %vm17_vm3, %v3489_v46  ;;  %v3490_v51 = vadd.f32 %v2547_v49, %v301_v44  ;;  %v2549_v52 = vpop.f32.mrb[55].mxu0  ;;  %v2963_v43 = vpop.f32.mrb[6].mxu1  ;;  %v714_v44 = vld [vmem:[%s15145_s0 + $0x5c0] sm:$0xff]  ;;  %v404_v49 = vld [vmem:[#allocation2 + $0x410] sm:$0xff] }
 0x168   :  { %v8774_v46 = vld [vmem:[%s15145_s0 + $0x5c4] ss:$8 sps:$4 sm:$0xff]   ;;  %v7779_v52 = vcombine.low %v714_v44, %v715_v45  ;;  %v3593_v56 = vadd.f32 %v2960_v39, %v404_v49  ;;  %v313_v44 = vld [vmem:[#allocation2 + $0x138] sm:$0xff]  ;;  %v408_v45 = vld [vmem:[#allocation2 + $0x430] sm:$0xff] }
 0x169   :  { %3747 = vst.msk [vmem:[#allocation2 + $0xd8] sm:$0xff] %vm17_vm3, %v3490_v51  ;;  %2759 = vmatmul.mubr.bf16.gmra.mrb[160].mxu0 %v8678_v48  ;;  %v2965_v51 = vpop.f32.mrb[7].mxu1  ;;  %7953 = vmatprep.mubr.msk.bf16.mxu1 %vm2014_vm0, %v8774_v46  ;;  %v8784_v42 = vld [vmem:[%s15145_s0 + $0x5e4] ss:$8 sps:$4 sm:$0xff]   ;;  %v409_v46 = vld [vmem:[#allocation2 + $0x438] sm:$0xff] }
 0x16a   :  { %7902 = vmatprep.mubr.msk.bf16.mxu0 %vm2014_vm0, %v8681_v50  ;;  %v405_v50 = vld [vmem:[#allocation2 + $0x418] sm:$0xff]  ;;  %3175 = vmatmul.mubr.bf16.gmra.mrb[112].mxu1 %v7779_v52  ;;  %3850 = vst.msk [vmem:[#allocation2 + $0x410] sm:$0xff] %vm17_vm3, %v3593_v56  ;;  %v8708_v52 = vld [vmem:[%s15145_s0 + $0x2e0] ss:$8 sps:$4 sm:$0xff]  }
 0x16b   :  { %v3986_v56 = vld [vmem:[#allocation2 + $0x38] sm:$0xff] }
 0x16c   :  { %v2552_v57 = vpop.f32.mrb[56].mxu0 }
 0x16d   :  { %v3491_v60 = vadd.f32 %v2552_v57, %v302_v53  ;;  %v2554_v61 = vpop.f32.mrb[57].mxu0  ;;  %v3594_v57 = vadd.f32 %v2963_v43, %v405_v50 }
 0x16e   :  { %v2555_v63 = vpop.f32.mrb[58].mxu0  ;;  %v8701_v61 = vld [vmem:[%s15145_s0 + $0x2d4] ss:$8 sps:$4 sm:$0xff]  }
 0x16f   :  { %3748 = vst.msk [vmem:[#allocation2 + $0xe0] sm:$0xff] %vm17_vm3, %v3491_v60  ;;  %v3492_v1 = vadd.f32 %v2555_v63, %v303_v58  ;;  %v2557_v2 = vpop.f32.mrb[59].mxu0  ;;  %v3979_v58 = vld [vmem:[#allocation2] sm:$0xff]  ;;  %3851 = vst.msk [vmem:[#allocation2 + $0x418] sm:$0xff] %vm17_vm3, %v3594_v57 }
 0x170   :  { %v4238_v2 = vsel %vm17_vm3, %v3981_v59, 0.0 }
 0x171   :  { %3749 = vst.msk [vmem:[#allocation2 + $0xe8] sm:$0xff] %vm17_vm3, %v3492_v1  ;;  %2767 = vmatmul.mubr.bf16.gmra.mrb[164].mxu0 %v8683_v62  ;;  %v4236_v62 = vsel %vm17_vm3, %v3980_v47, 0.0  ;;  %v4235_v1 = vsel %vm17_vm3, %v3979_v58, 0.0  ;;  %v8711_v58 = vld [vmem:[%s15145_s0 + $0x2f4] ss:$8 sps:$4 sm:$0xff]  }
 0x172   :  { %7903 = vmatprep.mubr.msk.bf16.mxu0 %vm2014_vm0, %v8686_v0  ;;  %v4237_v4 = vadd.f32 %v4236_v62, %v4235_v1  ;;  %v3987_v62 = vld [vmem:[#allocation2 + $0x40] sm:$0xff] }
 0x173   :  { %v314_v1 = vld [vmem:[#allocation2 + $0x140] sm:$0xff] }
 0x174   :  { %v2560_v7 = vpop.f32.mrb[60].mxu0 }
 0x175   :  { %v3493_v10 = vadd.f32 %v2560_v7, %v304_v3  ;;  %v2562_v11 = vpop.f32.mrb[61].mxu0  ;;  %v2968_v3 = vpop.f32.mrb[8].mxu1  ;;  %v311_v7 = vld [vmem:[#allocation2 + $0x128] sm:$0xff] }
 0x176   :  { %v2563_v13 = vpop.f32.mrb[62].mxu0  ;;  %v717_v11 = vld [vmem:[%s15145_s0 + $0x5d8] sm:$0xff] }
 0x177   :  { %3750 = vst.msk [vmem:[#allocation2 + $0xf0] sm:$0xff] %vm17_vm3, %v3493_v10  ;;  %v3494_v15 = vadd.f32 %v2563_v13, %v305_v8  ;;  %v2565_v16 = vpop.f32.mrb[63].mxu0  ;;  %v2970_v8 = vpop.f32.mrb[9].mxu1  ;;  %v716_v10 = vld [vmem:[%s15145_s0 + $0x5d0] sm:$0xff]  ;;  %v4239_v13 = vadd.f32 %v4238_v2, %v4237_v4  ;;  %v315_v2 = vld [vmem:[#allocation2 + $0x148] sm:$0xff]  ;;  %v4250_v4 = vsel %vm17_vm3, %v3987_v62, 0.0 }
 0x178   :  { %v2971_v9 = vpop.f32.mrb[10].mxu1  ;;  %v406_v16 = vld [vmem:[#allocation2 + $0x420] sm:$0xff]  ;;  %v7781_v19 = vcombine.low %v716_v10, %v717_v11  ;;  %v8789_v8 = vld [vmem:[%s15145_s0 + $0x5f4] ss:$8 sps:$4 sm:$0xff]   ;;  %v3988_v10 = vld [vmem:[#allocation2 + $0x48] sm:$0xff] }
 0x179   :  { %3751 = vst.msk [vmem:[#allocation2 + $0xf8] sm:$0xff] %vm17_vm3, %v3494_v15  ;;  %2775 = vmatmul.mubr.bf16.gmra.mrb[168].mxu0 %v8688_v12  ;;  %v8779_v12 = vld [vmem:[%s15145_s0 + $0x5d4] ss:$8 sps:$4 sm:$0xff]   ;;  %v318_v62 = vld [vmem:[#allocation2 + $0x160] sm:$0xff] }
 0x17a   :  { %7904 = vmatprep.mubr.msk.bf16.mxu0 %vm2014_vm0, %v8691_v14  ;;  %v3983_v14 = vld [vmem:[#allocation2 + $0x20] sm:$0xff]  ;;  %7954 = vmatprep.mubr.msk.bf16.mxu1 %vm2014_vm0, %v8779_v12 }
 0x17b   :  { %3183 = vmatmul.mubr.bf16.gmra.mrb[116].mxu1 %v7781_v19  ;;  %v4242_v28 = vsel %vm17_vm3, %v3983_v14, 0.0  ;;  %v410_v12 = vld [vmem:[#allocation2 + $0x440] sm:$0xff] }
 0x17c   :  { %v2568_v24 = vpop.f32.mrb[64].mxu0  ;;  %7955 = vmatprep.mubr.msk.bf16.mxu1 %vm2014_vm0, %v8784_v42  ;;  %v412_v42 = vld [vmem:[#allocation2 + $0x450] sm:$0xff] }
 0x17d   :  { %v3495_v30 = vadd.f32 %v2568_v24, %v306_v18  ;;  %v2570_v31 = vpop.f32.mrb[65].mxu0  ;;  %v2973_v18 = vpop.f32.mrb[11].mxu1  ;;  %v3595_v24 = vadd.f32 %v2968_v3, %v406_v16 }
 0x17e   :  { %v2571_v35 = vpop.f32.mrb[66].mxu0  ;;  %v4241_v31 = vadd.f32 %v4240_v20, %v4239_v13  ;;  %v2976_v33 = vpop.f32.mrb[12].mxu1  ;;  %v411_v13 = vld [vmem:[#allocation2 + $0x448] sm:$0xff]  ;;  %v8713_v18 = vld [vmem:[%s15145_s0 + $0x2f0] ss:$8 sps:$4 sm:$0xff]  }
 0x17f   :  { %3752 = vst.msk [vmem:[#allocation2 + $0x100] sm:$0xff] %vm17_vm3, %v3495_v30  ;;  %v3496_v37 = vadd.f32 %v2571_v35, %v307_v25  ;;  %v2573_v38 = vpop.f32.mrb[67].mxu0  ;;  %v3596_v25 = vadd.f32 %v2971_v9, %v407_v17  ;;  %3852 = vst.msk [vmem:[#allocation2 + $0x420] sm:$0xff] %vm17_vm3, %v3595_v24  ;;  %v3985_v35 = vld [vmem:[#allocation2 + $0x30] sm:$0xff]  ;;  %v8716_v24 = vld [vmem:[%s15145_s0 + $0x304] ss:$8 sps:$4 sm:$0xff]  }
 0x180   :  { %v4243_v34 = vadd.f32 %v4242_v28, %v4241_v31  ;;  %v4246_v49 = vsel %vm17_vm3, %v3985_v35, 0.0  ;;  %v3990_v31 = vld [vmem:[#allocation2 + $0x58] sm:$0xff] }
 0x181   :  { %3753 = vst.msk [vmem:[#allocation2 + $0x108] sm:$0xff] %vm17_vm3, %v3496_v37  ;;  %2783 = vmatmul.mubr.bf16.gmra.mrb[172].mxu0 %v8693_v32  ;;  %3853 = vst.msk [vmem:[#allocation2 + $0x428] sm:$0xff] %vm17_vm3, %v3596_v25  ;;  %v3984_v32 = vld [vmem:[#allocation2 + $0x28] sm:$0xff]  ;;  %v2978_v37 = vpop.f32.mrb[13].mxu1  ;;  %v4252_v25 = vsel %vm17_vm3, %v3988_v10, 0.0 }
 0x182   :  { %7905 = vmatprep.mubr.msk.bf16.mxu0 %vm2014_vm0, %v8696_v36  ;;  %v312_v36 = vld [vmem:[#allocation2 + $0x130] sm:$0xff]  ;;  %v4244_v38 = vsel %vm17_vm3, %v3984_v32, 0.0  ;;  %v2979_v39 = vpop.f32.mrb[14].mxu1  ;;  %v723_v37 = vld [vmem:[%s15145_s0 + $0x608] sm:$0xff] }
 0x183   :  { %v2981_v47 = vpop.f32.mrb[15].mxu1  ;;  %v316_v32 = vld [vmem:[#allocation2 + $0x150] sm:$0xff] }
 0x184   :  { %v2576_v48 = vpop.f32.mrb[68].mxu0 }
 0x185   :  { %v3497_v53 = vadd.f32 %v2576_v48, %v308_v40  ;;  %v2578_v54 = vpop.f32.mrb[69].mxu0  ;;  %v718_v40 = vld [vmem:[%s15145_s0 + $0x5e0] sm:$0xff] }
 0x186   :  { %v2579_v60 = vpop.f32.mrb[70].mxu0  ;;  %v3598_v54 = vadd.f32 %v2979_v39, %v409_v46  ;;  %v4256_v46 = vsel %vm17_vm3, %v3990_v31, 0.0 }
 0x187   :  { %3754 = vst.msk [vmem:[#allocation2 + $0x110] sm:$0xff] %vm17_vm3, %v3497_v53  ;;  %v3498_v63 = vadd.f32 %v2579_v60, %v309_v41  ;;  %v2581_v0 = vpop.f32.mrb[71].mxu0  ;;  %v719_v41 = vld [vmem:[%s15145_s0 + $0x5e8] sm:$0xff]  ;;  %v3597_v53 = vadd.f32 %v2976_v33, %v408_v45  ;;  %v317_v33 = vld [vmem:[#allocation2 + $0x158] sm:$0xff] }
 0x188   :  { %v7783_v48 = vcombine.low %v718_v40, %v719_v41  ;;  %3855 = vst.msk [vmem:[#allocation2 + $0x438] sm:$0xff] %vm17_vm3, %v3598_v54  ;;  %v2984_v0 = vpop.f32.mrb[16].mxu1  ;;  %v3991_v40 = vld [vmem:[#allocation2 + $0x60] sm:$0xff] }
 0x189   :  { %3755 = vst.msk [vmem:[#allocation2 + $0x118] sm:$0xff] %vm17_vm3, %v3498_v63  ;;  %2791 = vmatmul.mubr.bf16.gmra.mrb[176].mxu0 %v8698_v55  ;;  %v4245_v55 = vadd.f32 %v4244_v38, %v4243_v34  ;;  %3854 = vst.msk [vmem:[#allocation2 + $0x430] sm:$0xff] %vm17_vm3, %v3597_v53  ;;  %v4248_v63 = vsel %vm17_vm3, %v3986_v56, 0.0  ;;  %v2986_v3 = vpop.f32.mrb[17].mxu1  ;;  %v3599_v19 = vadd.f32 %v2984_v0, %v410_v12  ;;  %v8794_v38 = vld [vmem:[%s15145_s0 + $0x604] ss:$8 sps:$4 sm:$0xff]  }
 0x18a   :  { %7906 = vmatprep.mubr.msk.bf16.mxu0 %vm2014_vm0, %v8701_v61  ;;  %3191 = vmatmul.mubr.bf16.gmra.mrb[120].mxu1 %v7783_v48  ;;  %v2987_v5 = vpop.f32.mrb[18].mxu1  ;;  %v8721_v53 = vld [vmem:[%s15145_s0 + $0x314] ss:$8 sps:$4 sm:$0xff]   ;;  %v4258_v54 = vsel %vm17_vm3, %v3991_v40, 0.0 }
 0x18b   :  { %v4247_v61 = vadd.f32 %v4246_v49, %v4245_v55  ;;  %v2989_v14 = vpop.f32.mrb[19].mxu1  ;;  %v3600_v20 = vadd.f32 %v2987_v5, %v411_v13  ;;  %7956 = vmatprep.mubr.msk.bf16.mxu1 %vm2014_vm0, %v8789_v8  ;;  %3856 = vst.msk [vmem:[#allocation2 + $0x440] sm:$0xff] %vm17_vm3, %v3599_v19  ;;  %v8718_v49 = vld [vmem:[%s15145_s0 + $0x300] ss:$8 sps:$4 sm:$0xff]   ;;  %v725_v3 = vld [vmem:[%s15145_s0 + $0x618] sm:$0xff] }
 0x18c   :  { %v2584_v15 = vpop.f32.mrb[72].mxu0  ;;  %v415_v8 = vld [vmem:[#allocation2 + $0x468] sm:$0xff]  ;;  %v8723_v14 = vld [vmem:[%s15145_s0 + $0x310] ss:$8 sps:$4 sm:$0xff]  }
 0x18d   :  { %v3499_v21 = vadd.f32 %v2584_v15, %v310_v6  ;;  %v2586_v22 = vpop.f32.mrb[73].mxu0  ;;  %v720_v6 = vld [vmem:[%s15145_s0 + $0x5f0] sm:$0xff]  ;;  %v4249_v9 = vadd.f32 %v4248_v63, %v4247_v61  ;;  %3857 = vst.msk [vmem:[#allocation2 + $0x448] sm:$0xff] %vm17_vm3, %v3600_v20  ;;  %v8726_v20 = vld [vmem:[%s15145_s0 + $0x324] ss:$8 sps:$4 sm:$0xff]  }
 0x18e   :  { %v2587_v26 = vpop.f32.mrb[74].mxu0  ;;  %v3989_v22 = vld [vmem:[#allocation2 + $0x50] sm:$0xff] }
 0x18f   :  { %3756 = vst.msk [vmem:[#allocation2 + $0x120] sm:$0xff] %vm17_vm3, %v3499_v21  ;;  %v3500_v29 = vadd.f32 %v2587_v26, %v311_v7  ;;  %v2589_v30 = vpop.f32.mrb[75].mxu0  ;;  %v721_v7 = vld [vmem:[%s15145_s0 + $0x5f8] sm:$0xff]  ;;  %v4251_v21 = vadd.f32 %v4250_v4, %v4249_v9  ;;  %v4254_v28 = vsel %vm17_vm3, %v3989_v22, 0.0  ;;  %v3993_v61 = vld [vmem:[#allocation2 + $0x70] sm:$0xff] }
 0x190   :  { %v7785_v15 = vcombine.low %v720_v6, %v721_v7  ;;  %v8796_v4 = vld [vmem:[%s15145_s0 + $0x614] ss:$8 sps:$4 sm:$0xff]   ;;  %v319_v6 = vld [vmem:[#allocation2 + $0x168] sm:$0xff]  ;;  %v414_v7 = vld [vmem:[#allocation2 + $0x460] sm:$0xff] }
 0x191   :  { %3757 = vst.msk [vmem:[#allocation2 + $0x128] sm:$0xff] %vm17_vm3, %v3500_v29  ;;  %2799 = vmatmul.mubr.bf16.gmra.mrb[180].mxu0 %v8703_v23  ;;  %v2992_v29 = vpop.f32.mrb[20].mxu1  ;;  %v4253_v30 = vadd.f32 %v4252_v25, %v4251_v21 }
 0x192   :  { %7907 = vmatprep.mubr.msk.bf16.mxu0 %vm2014_vm0, %v8706_v27  ;;  %3199 = vmatmul.mubr.bf16.gmra.mrb[124].mxu1 %v7785_v15  ;;  %v2994_v34 = vpop.f32.mrb[21].mxu1 }
 0x193   :  { %v2995_v35 = vpop.f32.mrb[22].mxu1  ;;  %v4255_v39 = vadd.f32 %v4254_v28, %v4253_v30  ;;  %7957 = vmatprep.mubr.msk.bf16.mxu1 %vm2014_vm0, %v8794_v38  ;;  %v321_v28 = vld [vmem:[#allocation2 + $0x178] sm:$0xff]  ;;  %v8798_v34 = vld [vmem:[%s15145_s0 + $0x624] ss:$8 sps:$4 sm:$0xff]   ;;  %v416_v38 = vld [vmem:[#allocation2 + $0x470] sm:$0xff] }
 0x194   :  { %v2592_v43 = vpop.f32.mrb[76].mxu0 }
 0x195   :  { %v3501_v50 = vadd.f32 %v2592_v43, %v312_v36  ;;  %v2594_v51 = vpop.f32.mrb[77].mxu0  ;;  %v722_v36 = vld [vmem:[%s15145_s0 + $0x600] sm:$0xff]  ;;  %v413_v43 = vld [vmem:[#allocation2 + $0x458] sm:$0xff] }
 0x196   :  { %v2595_v57 = vpop.f32.mrb[78].mxu0  ;;  %v7787_v45 = vcombine.low %v722_v36, %v723_v37  ;;  %v3602_v51 = vadd.f32 %v2995_v35, %v413_v43  ;;  %v3996_v36 = vld [vmem:[#allocation2 + $0x88] sm:$0xff] }
 0x197   :  { %3758 = vst.msk [vmem:[#allocation2 + $0x130] sm:$0xff] %vm17_vm3, %v3501_v50  ;;  %v3502_v59 = vadd.f32 %v2595_v57, %v313_v44  ;;  %v2597_v60 = vpop.f32.mrb[79].mxu0  ;;  %v2997_v44 = vpop.f32.mrb[23].mxu1  ;;  %v3601_v50 = vadd.f32 %v2992_v29, %v412_v42  ;;  %v4257_v57 = vadd.f32 %v4256_v46, %v4255_v39  ;;  %v417_v39 = vld [vmem:[#allocation2 + $0x478] sm:$0xff] }
 0x198   :  { %3859 = vst.msk [vmem:[#allocation2 + $0x458] sm:$0xff] %vm17_vm3, %v3602_v51  ;;  %v8728_v44 = vld [vmem:[%s15145_s0 + $0x320] ss:$8 sps:$4 sm:$0xff]   ;;  %v4268_v51 = vsel %vm17_vm3, %v3996_v36, 0.0 }
 0x199   :  { %3759 = vst.msk [vmem:[#allocation2 + $0x138] sm:$0xff] %vm17_vm3, %v3502_v59  ;;  %2807 = vmatmul.mubr.bf16.gmra.mrb[184].mxu0 %v8708_v52  ;;  %3858 = vst.msk [vmem:[#allocation2 + $0x450] sm:$0xff] %vm17_vm3, %v3601_v50  ;;  %v3000_v59 = vpop.f32.mrb[24].mxu1  ;;  %v4259_v60 = vadd.f32 %v4258_v54, %v4257_v57  ;;  %v8731_v50 = vld [vmem:[%s15145_s0 + $0x334] ss:$8 sps:$4 sm:$0xff]  }
 0x19a   :  { %7908 = vmatprep.mubr.msk.bf16.mxu0 %vm2014_vm0, %v8711_v58  ;;  %3207 = vmatmul.mubr.bf16.gmra.mrb[128].mxu1 %v7787_v45  ;;  %v3992_v58 = vld [vmem:[#allocation2 + $0x68] sm:$0xff]  ;;  %v3002_v63 = vpop.f32.mrb[25].mxu1  ;;  %v3603_v15 = vadd.f32 %v3000_v59, %v414_v7  ;;  %v3998_v57 = vld [vmem:[#allocation2 + $0x98] sm:$0xff] }
 0x19b   :  { %v4260_v0 = vsel %vm17_vm3, %v3992_v58, 0.0  ;;  %7958 = vmatprep.mubr.msk.bf16.mxu1 %vm2014_vm0, %v8796_v4  ;;  %v322_v58 = vld [vmem:[#allocation2 + $0x180] sm:$0xff]  ;;  %v323_v59 = vld [vmem:[#allocation2 + $0x188] sm:$0xff]  ;;  %v729_v63 = vld [vmem:[%s15145_s0 + $0x638] sm:$0xff] }
 0x19c   :  { %v2600_v11 = vpop.f32.mrb[80].mxu0  ;;  %3860 = vst.msk [vmem:[#allocation2 + $0x460] sm:$0xff] %vm17_vm3, %v3603_v15  ;;  %v418_v4 = vld [vmem:[#allocation2 + $0x480] sm:$0xff] }
 0x19d   :  { %v3503_v16 = vadd.f32 %v2600_v11, %v314_v1  ;;  %v2602_v17 = vpop.f32.mrb[81].mxu0  ;;  %v3003_v1 = vpop.f32.mrb[26].mxu1  ;;  %v4262_v11 = vsel %vm17_vm3, %v3993_v61, 0.0  ;;  %v8736_v15 = vld [vmem:[%s15145_s0 + $0x344] ss:$8 sps:$4 sm:$0xff]  }
 0x19e   :  { %v2603_v23 = vpop.f32.mrb[82].mxu0  ;;  %v3005_v9 = vpop.f32.mrb[27].mxu1  ;;  %v4261_v17 = vadd.f32 %v4260_v0, %v4259_v60  ;;  %v8800_v0 = vld [vmem:[%s15145_s0 + $0x634] ss:$8 sps:$4 sm:$0xff]  }
 0x19f   :  { %3760 = vst.msk [vmem:[#allocation2 + $0x140] sm:$0xff] %vm17_vm3, %v3503_v16  ;;  %v3504_v26 = vadd.f32 %v2603_v23, %v315_v2  ;;  %v2605_v27 = vpop.f32.mrb[83].mxu0  ;;  %v724_v2 = vld [vmem:[%s15145_s0 + $0x610] sm:$0xff]  ;;  %v3604_v16 = vadd.f32 %v3003_v1, %v415_v8  ;;  %v4272_v8 = vsel %vm17_vm3, %v3998_v57, 0.0 }
 0x1a0   :  { %v7789_v10 = vcombine.low %v724_v2, %v725_v3  ;;  %v4263_v23 = vadd.f32 %v4262_v11, %v4261_v17  ;;  %v320_v27 = vld [vmem:[#allocation2 + $0x170] sm:$0xff]  ;;  %v3999_v2 = vld [vmem:[#allocation2 + $0xa0] sm:$0xff] }
 0x1a1   :  { %3761 = vst.msk [vmem:[#allocation2 + $0x148] sm:$0xff] %vm17_vm3, %v3504_v26  ;;  %2815 = vmatmul.mubr.bf16.gmra.mrb[188].mxu0 %v8713_v18  ;;  %v3994_v18 = vld [vmem:[#allocation2 + $0x78] sm:$0xff]  ;;  %3861 = vst.msk [vmem:[#allocation2 + $0x468] sm:$0xff] %vm17_vm3, %v3604_v16  ;;  %v3008_v26 = vpop.f32.mrb[28].mxu1  ;;  %v4274_v16 = vsel %vm17_vm3, %v3999_v2, 0.0 }
 0x1a2   :  { %7909 = vmatprep.mubr.msk.bf16.mxu0 %vm2014_vm0, %v8716_v24  ;;  %3215 = vmatmul.mubr.bf16.gmra.mrb[132].mxu1 %v7789_v10  ;;  %v3995_v24 = vld [vmem:[#allocation2 + $0x80] sm:$0xff]  ;;  %v4264_v25 = vsel %vm17_vm3, %v3994_v18, 0.0  ;;  %v3010_v29 = vpop.f32.mrb[29].mxu1  ;;  %v3605_v45 = vadd.f32 %v3008_v26, %v416_v38  ;;  %v8733_v11 = vld [vmem:[%s15145_s0 + $0x330] ss:$8 sps:$4 sm:$0xff]  }
 0x1a3   :  { %v4266_v30 = vsel %vm17_vm3, %v3995_v24, 0.0  ;;  %v3011_v31 = vpop.f32.mrb[30].mxu1  ;;  %v4265_v35 = vadd.f32 %v4264_v25, %v4263_v23  ;;  %7959 = vmatprep.mubr.msk.bf16.mxu1 %vm2014_vm0, %v8798_v34  ;;  %v4001_v23 = vld [vmem:[#allocation2 + $0xb0] sm:$0xff]  ;;  %v731_v29 = vld [vmem:[%s15145_s0 + $0x648] sm:$0xff]  ;;  %v421_v34 = vld [vmem:[#allocation2 + $0x498] sm:$0xff] }
 0x1a4   :  { %v2608_v41 = vpop.f32.mrb[84].mxu0  ;;  %v3013_v40 = vpop.f32.mrb[31].mxu1  ;;  %v3606_v46 = vadd.f32 %v3011_v31, %v417_v39  ;;  %3862 = vst.msk [vmem:[#allocation2 + $0x470] sm:$0xff] %vm17_vm3, %v3605_v45  ;;  %v324_v24 = vld [vmem:[#allocation2 + $0x190] sm:$0xff] }
 0x1a5   :  { %v3505_v47 = vadd.f32 %v2608_v41, %v316_v32  ;;  %v2610_v48 = vpop.f32.mrb[85].mxu0  ;;  %v726_v32 = vld [vmem:[%s15145_s0 + $0x620] sm:$0xff] }
 0x1a6   :  { %v2611_v52 = vpop.f32.mrb[86].mxu0  ;;  %v3997_v48 = vld [vmem:[#allocation2 + $0x90] sm:$0xff]  ;;  %3863 = vst.msk [vmem:[#allocation2 + $0x478] sm:$0xff] %vm17_vm3, %v3606_v46  ;;  %v8738_v40 = vld [vmem:[%s15145_s0 + $0x340] ss:$8 sps:$4 sm:$0xff]  }
 0x1a7   :  { %3762 = vst.msk [vmem:[#allocation2 + $0x150] sm:$0xff] %vm17_vm3, %v3505_v47  ;;  %v3506_v55 = vadd.f32 %v2611_v52, %v317_v33  ;;  %v2613_v56 = vpop.f32.mrb[87].mxu0  ;;  %v727_v33 = vld [vmem:[%s15145_s0 + $0x628] sm:$0xff]  ;;  %v4267_v47 = vadd.f32 %v4266_v30, %v4265_v35  ;;  %v4270_v54 = vsel %vm17_vm3, %v3997_v48, 0.0  ;;  %v8741_v46 = vld [vmem:[%s15145_s0 + $0x354] ss:$8 sps:$4 sm:$0xff]  }
 0x1a8   :  { %v7791_v41 = vcombine.low %v726_v32, %v727_v33  ;;  %v8802_v30 = vld [vmem:[%s15145_s0 + $0x644] ss:$8 sps:$4 sm:$0xff]   ;;  %v325_v32 = vld [vmem:[#allocation2 + $0x198] sm:$0xff]  ;;  %v420_v33 = vld [vmem:[#allocation2 + $0x490] sm:$0xff] }
 0x1a9   :  { %3763 = vst.msk [vmem:[#allocation2 + $0x158] sm:$0xff] %vm17_vm3, %v3506_v55  ;;  %2823 = vmatmul.mubr.bf16.gmra.mrb[192].mxu0 %v8718_v49  ;;  %v3016_v55 = vpop.f32.mrb[32].mxu1  ;;  %v4269_v56 = vadd.f32 %v4268_v51, %v4267_v47 }
 0x1aa   :  { %7910 = vmatprep.mubr.msk.bf16.mxu0 %vm2014_vm0, %v8721_v53  ;;  %3223 = vmatmul.mubr.bf16.gmra.mrb[136].mxu1 %v7791_v41  ;;  %v3018_v60 = vpop.f32.mrb[33].mxu1 }
 0x1ab   :  { %v3019_v61 = vpop.f32.mrb[34].mxu1  ;;  %v4271_v1 = vadd.f32 %v4270_v54, %v4269_v56  ;;  %7960 = vmatprep.mubr.msk.bf16.mxu1 %vm2014_vm0, %v8800_v0  ;;  %v327_v54 = vld [vmem:[#allocation2 + $0x1a8] sm:$0xff]  ;;  %v8804_v60 = vld [vmem:[%s15145_s0 + $0x654] ss:$8 sps:$4 sm:$0xff]   ;;  %v422_v0 = vld [vmem:[#allocation2 + $0x4a0] sm:$0xff] }
 0x1ac   :  { %v2616_v5 = vpop.f32.mrb[88].mxu0 }
 0x1ad   :  { %v3507_v12 = vadd.f32 %v2616_v5, %v318_v62  ;;  %v2618_v13 = vpop.f32.mrb[89].mxu0  ;;  %v728_v62 = vld [vmem:[%s15145_s0 + $0x630] sm:$0xff]  ;;  %v419_v5 = vld [vmem:[#allocation2 + $0x488] sm:$0xff] }
 0x1ae   :  { %v2619_v19 = vpop.f32.mrb[90].mxu0  ;;  %v7793_v7 = vcombine.low %v728_v62, %v729_v63  ;;  %v3608_v13 = vadd.f32 %v3019_v61, %v419_v5  ;;  %v4004_v62 = vld [vmem:[#allocation2 + $0xc8] sm:$0xff] }
 0x1af   :  { %3764 = vst.msk [vmem:[#allocation2 + $0x160] sm:$0xff] %vm17_vm3, %v3507_v12  ;;  %v3508_v21 = vadd.f32 %v2619_v19, %v319_v6  ;;  %v2621_v22 = vpop.f32.mrb[91].mxu0  ;;  %v3021_v6 = vpop.f32.mrb[35].mxu1  ;;  %v3607_v12 = vadd.f32 %v3016_v55, %v418_v4  ;;  %v4273_v19 = vadd.f32 %v4272_v8, %v4271_v1  ;;  %v423_v1 = vld [vmem:[#allocation2 + $0x4a8] sm:$0xff] }
 0x1b0   :  { %3865 = vst.msk [vmem:[#allocation2 + $0x488] sm:$0xff] %vm17_vm3, %v3608_v13  ;;  %v8743_v6 = vld [vmem:[%s15145_s0 + $0x350] ss:$8 sps:$4 sm:$0xff]   ;;  %v4284_v13 = vsel %vm17_vm3, %v4004_v62, 0.0 }
 0x1b1   :  { %3765 = vst.msk [vmem:[#allocation2 + $0x168] sm:$0xff] %vm17_vm3, %v3508_v21  ;;  %2831 = vmatmul.mubr.bf16.gmra.mrb[196].mxu0 %v8723_v14  ;;  %3864 = vst.msk [vmem:[#allocation2 + $0x480] sm:$0xff] %vm17_vm3, %v3607_v12  ;;  %v3024_v21 = vpop.f32.mrb[36].mxu1  ;;  %v4275_v22 = vadd.f32 %v4274_v16, %v4273_v19  ;;  %v8746_v12 = vld [vmem:[%s15145_s0 + $0x364] ss:$8 sps:$4 sm:$0xff]   ;;  %v4006_v19 = vld [vmem:[#allocation2 + $0xd8] sm:$0xff] }
 0x1b2   :  { %7911 = vmatprep.mubr.msk.bf16.mxu0 %vm2014_vm0, %v8726_v20  ;;  %3231 = vmatmul.mubr.bf16.gmra.mrb[140].mxu1 %v7793_v7  ;;  %v4000_v20 = vld [vmem:[#allocation2 + $0xa8] sm:$0xff]  ;;  %v3026_v25 = vpop.f32.mrb[37].mxu1  ;;  %v3609_v41 = vadd.f32 %v3024_v21, %v420_v33  ;;  %v329_v21 = vld [vmem:[#allocation2 + $0x1b8] sm:$0xff] }
 0x1b3   :  { %v4276_v26 = vsel %vm17_vm3, %v4000_v20, 0.0  ;;  %7961 = vmatprep.mubr.msk.bf16.mxu1 %vm2014_vm0, %v8802_v30  ;;  %v328_v20 = vld [vmem:[#allocation2 + $0x1b0] sm:$0xff]  ;;  %v735_v25 = vld [vmem:[%s15145_s0 + $0x668] sm:$0xff] }
 0x1b4   :  { %v2624_v37 = vpop.f32.mrb[92].mxu0  ;;  %3866 = vst.msk [vmem:[#allocation2 + $0x490] sm:$0xff] %vm17_vm3, %v3609_v41  ;;  %v424_v30 = vld [vmem:[#allocation2 + $0x4b0] sm:$0xff] }
 0x1b5   :  { %v3509_v42 = vadd.f32 %v2624_v37, %v320_v27  ;;  %v2626_v43 = vpop.f32.mrb[93].mxu0  ;;  %v3027_v27 = vpop.f32.mrb[38].mxu1  ;;  %v4278_v37 = vsel %vm17_vm3, %v4001_v23, 0.0  ;;  %v8751_v41 = vld [vmem:[%s15145_s0 + $0x374] ss:$8 sps:$4 sm:$0xff]  }
 0x1b6   :  { %v2627_v49 = vpop.f32.mrb[94].mxu0  ;;  %v3029_v35 = vpop.f32.mrb[39].mxu1  ;;  %v4277_v43 = vadd.f32 %v4276_v26, %v4275_v22  ;;  %v8806_v26 = vld [vmem:[%s15145_s0 + $0x664] ss:$8 sps:$4 sm:$0xff]  }
 0x1b7   :  { %3766 = vst.msk [vmem:[#allocation2 + $0x170] sm:$0xff] %vm17_vm3, %v3509_v42  ;;  %v3510_v52 = vadd.f32 %v2627_v49, %v321_v28  ;;  %v2629_v53 = vpop.f32.mrb[95].mxu0  ;;  %v730_v28 = vld [vmem:[%s15145_s0 + $0x640] sm:$0xff]  ;;  %v3610_v42 = vadd.f32 %v3027_v27, %v421_v34  ;;  %v4288_v34 = vsel %vm17_vm3, %v4006_v19, 0.0 }
 0x1b8   :  { %v7795_v36 = vcombine.low %v730_v28, %v731_v29  ;;  %v4279_v49 = vadd.f32 %v4278_v37, %v4277_v43  ;;  %v326_v53 = vld [vmem:[#allocation2 + $0x1a0] sm:$0xff] }
 0x1b9   :  { %3767 = vst.msk [vmem:[#allocation2 + $0x178] sm:$0xff] %vm17_vm3, %v3510_v52  ;;  %2839 = vmatmul.mubr.bf16.gmra.mrb[200].mxu0 %v8728_v44  ;;  %v4002_v44 = vld [vmem:[#allocation2 + $0xb8] sm:$0xff]  ;;  %3867 = vst.msk [vmem:[#allocation2 + $0x498] sm:$0xff] %vm17_vm3, %v3610_v42  ;;  %v3032_v52 = vpop.f32.mrb[40].mxu1  ;;  %v4007_v28 = vld [vmem:[#allocation2 + $0xe0] sm:$0xff] }
 0x1ba   :  { %7912 = vmatprep.mubr.msk.bf16.mxu0 %vm2014_vm0, %v8731_v50  ;;  %3239 = vmatmul.mubr.bf16.gmra.mrb[144].mxu1 %v7795_v36  ;;  %v4003_v50 = vld [vmem:[#allocation2 + $0xc0] sm:$0xff]  ;;  %v4280_v51 = vsel %vm17_vm3, %v4002_v44, 0.0  ;;  %v3034_v55 = vpop.f32.mrb[41].mxu1  ;;  %v3611_v7 = vadd.f32 %v3032_v52, %v422_v0  ;;  %v4290_v42 = vsel %vm17_vm3, %v4007_v28, 0.0 }
 0x1bb   :  { %v4282_v56 = vsel %vm17_vm3, %v4003_v50, 0.0  ;;  %v3035_v57 = vpop.f32.mrb[42].mxu1  ;;  %v4281_v61 = vadd.f32 %v4280_v51, %v4279_v49  ;;  %7962 = vmatprep.mubr.msk.bf16.mxu1 %vm2014_vm0, %v8804_v60  ;;  %v8748_v37 = vld [vmem:[%s15145_s0 + $0x360] ss:$8 sps:$4 sm:$0xff]   ;;  %v4009_v49 = vld [vmem:[#allocation2 + $0xf0] sm:$0xff]  ;;  %v737_v55 = vld [vmem:[%s15145_s0 + $0x678] sm:$0xff] }
 0x1bc   :  { %v2632_v3 = vpop.f32.mrb[96].mxu0  ;;  %v3037_v2 = vpop.f32.mrb[43].mxu1  ;;  %v3612_v8 = vadd.f32 %v3035_v57, %v423_v1  ;;  %3868 = vst.msk [vmem:[#allocation2 + $0x4a0] sm:$0xff] %vm17_vm3, %v3611_v7  ;;  %v330_v50 = vld [vmem:[#allocation2 + $0x1c0] sm:$0xff]  ;;  %v427_v60 = vld [vmem:[#allocation2 + $0x4c8] sm:$0xff] }
 0x1bd   :  { %v3511_v9 = vadd.f32 %v2632_v3, %v322_v58  ;;  %v2634_v10 = vpop.f32.mrb[97].mxu0  ;;  %v732_v58 = vld [vmem:[%s15145_s0 + $0x650] sm:$0xff] }
 0x1be   :  { %v2635_v14 = vpop.f32.mrb[98].mxu0  ;;  %v4005_v10 = vld [vmem:[#allocation2 + $0xd0] sm:$0xff]  ;;  %3869 = vst.msk [vmem:[#allocation2 + $0x4a8] sm:$0xff] %vm17_vm3, %v3612_v8  ;;  %v8756_v8 = vld [vmem:[%s15145_s0 + $0x384] ss:$8 sps:$4 sm:$0xff]  }
 0x1bf   :  { %3768 = vst.msk [vmem:[#allocation2 + $0x180] sm:$0xff] %vm17_vm3, %v3511_v9  ;;  %v3512_v17 = vadd.f32 %v2635_v14, %v323_v59  ;;  %v2637_v18 = vpop.f32.mrb[99].mxu0  ;;  %v733_v59 = vld [vmem:[%s15145_s0 + $0x658] sm:$0xff]  ;;  %v4283_v9 = vadd.f32 %v4282_v56, %v4281_v61  ;;  %v4286_v16 = vsel %vm17_vm3, %v4005_v10, 0.0 }
 0x1c0   :  { %v7797_v3 = vcombine.low %v732_v58, %v733_v59  ;;  %v8808_v56 = vld [vmem:[%s15145_s0 + $0x674] ss:$8 sps:$4 sm:$0xff]   ;;  %v331_v58 = vld [vmem:[#allocation2 + $0x1c8] sm:$0xff]  ;;  %v426_v59 = vld [vmem:[#allocation2 + $0x4c0] sm:$0xff] }
 0x1c1   :  { %3769 = vst.msk [vmem:[#allocation2 + $0x188] sm:$0xff] %vm17_vm3, %v3512_v17  ;;  %2847 = vmatmul.mubr.bf16.gmra.mrb[204].mxu0 %v8733_v11  ;;  %v3040_v17 = vpop.f32.mrb[44].mxu1  ;;  %v4285_v18 = vadd.f32 %v4284_v13, %v4283_v9  ;;  %v8753_v2 = vld [vmem:[%s15145_s0 + $0x370] ss:$8 sps:$4 sm:$0xff]  }
 0x1c2   :  { %7913 = vmatprep.mubr.msk.bf16.mxu0 %vm2014_vm0, %v8736_v15  ;;  %3247 = vmatmul.mubr.bf16.gmra.mrb[148].mxu1 %v7797_v3  ;;  %v3042_v22 = vpop.f32.mrb[45].mxu1 }
 0x1c3   :  { %v3043_v23 = vpop.f32.mrb[46].mxu1  ;;  %v4287_v27 = vadd.f32 %v4286_v16, %v4285_v18  ;;  %7963 = vmatprep.mubr.msk.bf16.mxu1 %vm2014_vm0, %v8806_v26  ;;  %v333_v16 = vld [vmem:[#allocation2 + $0x1d8] sm:$0xff]  ;;  %v8810_v22 = vld [vmem:[%s15145_s0 + $0x684] ss:$8 sps:$4 sm:$0xff]   ;;  %v428_v26 = vld [vmem:[#allocation2 + $0x4d0] sm:$0xff] }
 0x1c4   :  { %v2640_v31 = vpop.f32.mrb[100].mxu0 }
 0x1c5   :  { %v3513_v38 = vadd.f32 %v2640_v31, %v324_v24  ;;  %v2642_v39 = vpop.f32.mrb[101].mxu0  ;;  %v734_v24 = vld [vmem:[%s15145_s0 + $0x660] sm:$0xff]  ;;  %v425_v31 = vld [vmem:[#allocation2 + $0x4b8] sm:$0xff] }
 0x1c6   :  { %v2643_v45 = vpop.f32.mrb[102].mxu0  ;;  %v7799_v33 = vcombine.low %v734_v24, %v735_v25  ;;  %v3614_v39 = vadd.f32 %v3043_v23, %v425_v31  ;;  %v4012_v24 = vld [vmem:[#allocation2 + $0x108] sm:$0xff] }
 0x1c7   :  { %3770 = vst.msk [vmem:[#allocation2 + $0x190] sm:$0xff] %vm17_vm3, %v3513_v38  ;;  %v3514_v47 = vadd.f32 %v2643_v45, %v325_v32  ;;  %v2645_v48 = vpop.f32.mrb[103].mxu0  ;;  %v3045_v32 = vpop.f32.mrb[47].mxu1  ;;  %v3613_v38 = vadd.f32 %v3040_v17, %v424_v30  ;;  %v4289_v45 = vadd.f32 %v4288_v34, %v4287_v27  ;;  %v429_v27 = vld [vmem:[#allocation2 + $0x4d8] sm:$0xff] }
 0x1c8   :  { %3871 = vst.msk [vmem:[#allocation2 + $0x4b8] sm:$0xff] %vm17_vm3, %v3614_v39  ;;  %v8758_v32 = vld [vmem:[%s15145_s0 + $0x380] ss:$8 sps:$4 sm:$0xff]   ;;  %v4300_v39 = vsel %vm17_vm3, %v4012_v24, 0.0 }
 0x1c9   :  { %3771 = vst.msk [vmem:[#allocation2 + $0x198] sm:$0xff] %vm17_vm3, %v3514_v47  ;;  %2855 = vmatmul.mubr.bf16.gmra.mrb[208].mxu0 %v8738_v40  ;;  %3870 = vst.msk [vmem:[#allocation2 + $0x4b0] sm:$0xff] %vm17_vm3, %v3613_v38  ;;  %v3048_v47 = vpop.f32.mrb[48].mxu1  ;;  %v4291_v48 = vadd.f32 %v4290_v42, %v4289_v45  ;;  %v8761_v38 = vld [vmem:[%s15145_s0 + $0x394] ss:$8 sps:$4 sm:$0xff]  }
 0x1ca   :  { %7914 = vmatprep.mubr.msk.bf16.mxu0 %vm2014_vm0, %v8741_v46  ;;  %3255 = vmatmul.mubr.bf16.gmra.mrb[152].mxu1 %v7799_v33  ;;  %v4008_v46 = vld [vmem:[#allocation2 + $0xe8] sm:$0xff]  ;;  %v3050_v51 = vpop.f32.mrb[49].mxu1  ;;  %v3615_v3 = vadd.f32 %v3048_v47, %v426_v59  ;;  %v4014_v45 = vld [vmem:[#allocation2 + $0x118] sm:$0xff] }
 0x1cb   :  { %v4292_v52 = vsel %vm17_vm3, %v4008_v46, 0.0  ;;  %7964 = vmatprep.mubr.msk.bf16.mxu1 %vm2014_vm0, %v8808_v56  ;;  %v334_v46 = vld [vmem:[#allocation2 + $0x1e0] sm:$0xff]  ;;  %v335_v47 = vld [vmem:[#allocation2 + $0x1e8] sm:$0xff]  ;;  %v741_v51 = vld [vmem:[%s15145_s0 + $0x698] sm:$0xff] }
 0x1cc   :  { %v2648_v63 = vpop.f32.mrb[104].mxu0  ;;  %3872 = vst.msk [vmem:[#allocation2 + $0x4c0] sm:$0xff] %vm17_vm3, %v3615_v3  ;;  %v430_v56 = vld [vmem:[#allocation2 + $0x4e0] sm:$0xff] }
 0x1cd   :  { %v3515_v4 = vadd.f32 %v2648_v63, %v326_v53  ;;  %v2650_v5 = vpop.f32.mrb[105].mxu0  ;;  %v3051_v53 = vpop.f32.mrb[50].mxu1  ;;  %v4294_v63 = vsel %vm17_vm3, %v4009_v49, 0.0  ;;  %v8766_v3 = vld [vmem:[%s15145_s0 + $0x3a4] ss:$8 sps:$4 sm:$0xff]  }
 0x1ce   :  { %v2651_v11 = vpop.f32.mrb[106].mxu0  ;;  %v3053_v61 = vpop.f32.mrb[51].mxu1  ;;  %v4293_v5 = vadd.f32 %v4292_v52, %v4291_v48  ;;  %v8812_v52 = vld [vmem:[%s15145_s0 + $0x694] ss:$8 sps:$4 sm:$0xff]  }
 0x1cf   :  { %3772 = vst.msk [vmem:[#allocation2 + $0x1a0] sm:$0xff] %vm17_vm3, %v3515_v4  ;;  %v3516_v14 = vadd.f32 %v2651_v11, %v327_v54  ;;  %v2653_v15 = vpop.f32.mrb[107].mxu0  ;;  %v736_v54 = vld [vmem:[%s15145_s0 + $0x670] sm:$0xff]  ;;  %v3616_v4 = vadd.f32 %v3051_v53, %v427_v60  ;;  %v4304_v60 = vsel %vm17_vm3, %v4014_v45, 0.0 }
 0x1d0   :  { %v7801_v62 = vcombine.low %v736_v54, %v737_v55  ;;  %v4295_v11 = vadd.f32 %v4294_v63, %v4293_v5  ;;  %v332_v15 = vld [vmem:[#allocation2 + $0x1d0] sm:$0xff]  ;;  %v4015_v54 = vld [vmem:[#allocation2 + $0x120] sm:$0xff] }
 0x1d1   :  { %3773 = vst.msk [vmem:[#allocation2 + $0x1a8] sm:$0xff] %vm17_vm3, %v3516_v14  ;;  %2863 = vmatmul.mubr.bf16.gmra.mrb[212].mxu0 %v8743_v6  ;;  %v4010_v6 = vld [vmem:[#allocation2 + $0xf8] sm:$0xff]  ;;  %3873 = vst.msk [vmem:[#allocation2 + $0x4c8] sm:$0xff] %vm17_vm3, %v3616_v4  ;;  %v3056_v14 = vpop.f32.mrb[52].mxu1  ;;  %v4306_v4 = vsel %vm17_vm3, %v4015_v54, 0.0 }
 0x1d2   :  { %7915 = vmatprep.mubr.msk.bf16.mxu0 %vm2014_vm0, %v8746_v12  ;;  %3263 = vmatmul.mubr.bf16.gmra.mrb[156].mxu1 %v7801_v62  ;;  %v4011_v12 = vld [vmem:[#allocation2 + $0x100] sm:$0xff]  ;;  %v4296_v13 = vsel %vm17_vm3, %v4010_v6, 0.0  ;;  %v3058_v17 = vpop.f32.mrb[53].mxu1  ;;  %v3617_v33 = vadd.f32 %v3056_v14, %v428_v26  ;;  %v8763_v63 = vld [vmem:[%s15145_s0 + $0x390] ss:$8 sps:$4 sm:$0xff]  }
 0x1d3   :  { %v4298_v18 = vsel %vm17_vm3, %v4011_v12, 0.0  ;;  %v3059_v19 = vpop.f32.mrb[54].mxu1  ;;  %v4297_v23 = vadd.f32 %v4296_v13, %v4295_v11  ;;  %7965 = vmatprep.mubr.msk.bf16.mxu1 %vm2014_vm0, %v8810_v22  ;;  %v4017_v11 = vld [vmem:[#allocation2 + $0x130] sm:$0xff]  ;;  %v743_v17 = vld [vmem:[%s15145_s0 + $0x6a8] sm:$0xff]  ;;  %v433_v22 = vld [vmem:[#allocation2 + $0x4f8] sm:$0xff] }
 0x1d4   :  { %v2656_v29 = vpop.f32.mrb[108].mxu0  ;;  %v3061_v28 = vpop.f32.mrb[55].mxu1  ;;  %v3618_v34 = vadd.f32 %v3059_v19, %v429_v27  ;;  %3874 = vst.msk [vmem:[#allocation2 + $0x4d0] sm:$0xff] %vm17_vm3, %v3617_v33  ;;  %v336_v12 = vld [vmem:[#allocation2 + $0x1f0] sm:$0xff] }
 0x1d5   :  { %v3517_v35 = vadd.f32 %v2656_v29, %v328_v20  ;;  %v2658_v36 = vpop.f32.mrb[109].mxu0  ;;  %v738_v20 = vld [vmem:[%s15145_s0 + $0x680] sm:$0xff] }
 0x1d6   :  { %v2659_v40 = vpop.f32.mrb[110].mxu0  ;;  %v4013_v36 = vld [vmem:[#allocation2 + $0x110] sm:$0xff]  ;;  %3875 = vst.msk [vmem:[#allocation2 + $0x4d8] sm:$0xff] %vm17_vm3, %v3618_v34  ;;  %v8768_v28 = vld [vmem:[%s15145_s0 + $0x3a0] ss:$8 sps:$4 sm:$0xff]  }
 0x1d7   :  { %3774 = vst.msk [vmem:[#allocation2 + $0x1b0] sm:$0xff] %vm17_vm3, %v3517_v35  ;;  %v3518_v43 = vadd.f32 %v2659_v40, %v329_v21  ;;  %v2661_v44 = vpop.f32.mrb[111].mxu0  ;;  %v739_v21 = vld [vmem:[%s15145_s0 + $0x688] sm:$0xff]  ;;  %v4299_v35 = vadd.f32 %v4298_v18, %v4297_v23  ;;  %v4302_v42 = vsel %vm17_vm3, %v4013_v36, 0.0  ;;  %v8771_v34 = vld [vmem:[%s15145_s0 + $0x3b4] ss:$8 sps:$4 sm:$0xff]  }
 0x1d8   :  { %v7803_v29 = vcombine.low %v738_v20, %v739_v21  ;;  %v8814_v18 = vld [vmem:[%s15145_s0 + $0x6a4] ss:$8 sps:$4 sm:$0xff]   ;;  %v337_v20 = vld [vmem:[#allocation2 + $0x1f8] sm:$0xff]  ;;  %v432_v21 = vld [vmem:[#allocation2 + $0x4f0] sm:$0xff] }
 0x1d9   :  { %3775 = vst.msk [vmem:[#allocation2 + $0x1b8] sm:$0xff] %vm17_vm3, %v3518_v43  ;;  %2871 = vmatmul.mubr.bf16.gmra.mrb[216].mxu0 %v8748_v37  ;;  %v3064_v43 = vpop.f32.mrb[56].mxu1  ;;  %v4301_v44 = vadd.f32 %v4300_v39, %v4299_v35 }
 0x1da   :  { %7916 = vmatprep.mubr.msk.bf16.mxu0 %vm2014_vm0, %v8751_v41  ;;  %3271 = vmatmul.mubr.bf16.gmra.mrb[160].mxu1 %v7803_v29  ;;  %v3066_v48 = vpop.f32.mrb[57].mxu1 }
 0x1db   :  { %v3067_v49 = vpop.f32.mrb[58].mxu1  ;;  %v4303_v53 = vadd.f32 %v4302_v42, %v4301_v44  ;;  %7966 = vmatprep.mubr.msk.bf16.mxu1 %vm2014_vm0, %v8812_v52  ;;  %v339_v42 = vld [vmem:[#allocation2 + $0x208] sm:$0xff]  ;;  %v8816_v48 = vld [vmem:[%s15145_s0 + $0x6b4] ss:$8 sps:$4 sm:$0xff]   ;;  %v434_v52 = vld [vmem:[#allocation2 + $0x500] sm:$0xff] }
 0x1dc   :  { %v2664_v57 = vpop.f32.mrb[112].mxu0 }
 0x1dd   :  { %v3519_v0 = vadd.f32 %v2664_v57, %v330_v50  ;;  %v2666_v1 = vpop.f32.mrb[113].mxu0  ;;  %v740_v50 = vld [vmem:[%s15145_s0 + $0x690] sm:$0xff]  ;;  %v431_v57 = vld [vmem:[#allocation2 + $0x4e8] sm:$0xff] }
 0x1de   :  { %v2667_v7 = vpop.f32.mrb[114].mxu0  ;;  %v7805_v59 = vcombine.low %v740_v50, %v741_v51  ;;  %v3620_v1 = vadd.f32 %v3067_v49, %v431_v57  ;;  %v4020_v50 = vld [vmem:[#allocation2 + $0x148] sm:$0xff] }
 0x1df   :  { %3776 = vst.msk [vmem:[#allocation2 + $0x1c0] sm:$0xff] %vm17_vm3, %v3519_v0  ;;  %v3520_v9 = vadd.f32 %v2667_v7, %v331_v58  ;;  %v2669_v10 = vpop.f32.mrb[115].mxu0  ;;  %v3069_v58 = vpop.f32.mrb[59].mxu1  ;;  %v3619_v0 = vadd.f32 %v3064_v43, %v430_v56  ;;  %v4305_v7 = vadd.f32 %v4304_v60, %v4303_v53  ;;  %v435_v53 = vld [vmem:[#allocation2 + $0x508] sm:$0xff] }
 0x1e0   :  { %3877 = vst.msk [vmem:[#allocation2 + $0x4e8] sm:$0xff] %vm17_vm3, %v3620_v1  ;;  %v8773_v58 = vld [vmem:[%s15145_s0 + $0x3b0] ss:$8 sps:$4 sm:$0xff]   ;;  %v4316_v1 = vsel %vm17_vm3, %v4020_v50, 0.0 }
 0x1e1   :  { %3777 = vst.msk [vmem:[#allocation2 + $0x1c8] sm:$0xff] %vm17_vm3, %v3520_v9  ;;  %2879 = vmatmul.mubr.bf16.gmra.mrb[220].mxu0 %v8753_v2  ;;  %3876 = vst.msk [vmem:[#allocation2 + $0x4e0] sm:$0xff] %vm17_vm3, %v3619_v0  ;;  %v3072_v9 = vpop.f32.mrb[60].mxu1  ;;  %v4307_v10 = vadd.f32 %v4306_v4, %v4305_v7  ;;  %v8776_v0 = vld [vmem:[%s15145_s0 + $0x3c4] ss:$8 sps:$4 sm:$0xff]   ;;  %v4022_v7 = vld [vmem:[#allocation2 + $0x158] sm:$0xff] }
 0x1e2   :  { %7917 = vmatprep.mubr.msk.bf16.mxu0 %vm2014_vm0, %v8756_v8  ;;  %3279 = vmatmul.mubr.bf16.gmra.mrb[164].mxu1 %v7805_v59  ;;  %v4016_v8 = vld [vmem:[#allocation2 + $0x128] sm:$0xff]  ;;  %v3074_v13 = vpop.f32.mrb[61].mxu1  ;;  %v3621_v29 = vadd.f32 %v3072_v9, %v432_v21  ;;  %v341_v9 = vld [vmem:[#allocation2 + $0x218] sm:$0xff] }
 0x1e3   :  { %v4308_v14 = vsel %vm17_vm3, %v4016_v8, 0.0  ;;  %7967 = vmatprep.mubr.msk.bf16.mxu1 %vm2014_vm0, %v8814_v18  ;;  %v340_v8 = vld [vmem:[#allocation2 + $0x210] sm:$0xff]  ;;  %v747_v13 = vld [vmem:[%s15145_s0 + $0x6c8] sm:$0xff] }
 0x1e4   :  { %v2672_v25 = vpop.f32.mrb[116].mxu0  ;;  %3878 = vst.msk [vmem:[#allocation2 + $0x4f0] sm:$0xff] %vm17_vm3, %v3621_v29  ;;  %v436_v18 = vld [vmem:[#allocation2 + $0x510] sm:$0xff] }
 0x1e5   :  { %v3521_v30 = vadd.f32 %v2672_v25, %v332_v15  ;;  %v2674_v31 = vpop.f32.mrb[117].mxu0  ;;  %v3075_v15 = vpop.f32.mrb[62].mxu1  ;;  %v4310_v25 = vsel %vm17_vm3, %v4017_v11, 0.0  ;;  %v8781_v29 = vld [vmem:[%s15145_s0 + $0x3d4] ss:$8 sps:$4 sm:$0xff]  }
 0x1e6   :  { %v2675_v37 = vpop.f32.mrb[118].mxu0  ;;  %v3077_v23 = vpop.f32.mrb[63].mxu1  ;;  %v4309_v31 = vadd.f32 %v4308_v14, %v4307_v10  ;;  %v8818_v14 = vld [vmem:[%s15145_s0 + $0x6c4] ss:$8 sps:$4 sm:$0xff]  }
 0x1e7   :  { %3778 = vst.msk [vmem:[#allocation2 + $0x1d0] sm:$0xff] %vm17_vm3, %v3521_v30  ;;  %v3522_v40 = vadd.f32 %v2675_v37, %v333_v16  ;;  %v2677_v41 = vpop.f32.mrb[119].mxu0  ;;  %v742_v16 = vld [vmem:[%s15145_s0 + $0x6a0] sm:$0xff]  ;;  %v3622_v30 = vadd.f32 %v3075_v15, %v433_v22  ;;  %v4320_v22 = vsel %vm17_vm3, %v4022_v7, 0.0 }
 0x1e8   :  { %v7807_v24 = vcombine.low %v742_v16, %v743_v17  ;;  %v4311_v37 = vadd.f32 %v4310_v25, %v4309_v31  ;;  %v338_v41 = vld [vmem:[#allocation2 + $0x200] sm:$0xff] }
 0x1e9   :  { %3779 = vst.msk [vmem:[#allocation2 + $0x1d8] sm:$0xff] %vm17_vm3, %v3522_v40  ;;  %2887 = vmatmul.mubr.bf16.gmra.mrb[224].mxu0 %v8758_v32  ;;  %v4018_v32 = vld [vmem:[#allocation2 + $0x138] sm:$0xff]  ;;  %3879 = vst.msk [vmem:[#allocation2 + $0x4f8] sm:$0xff] %vm17_vm3, %v3622_v30  ;;  %v3080_v40 = vpop.f32.mrb[64].mxu1  ;;  %v4023_v16 = vld [vmem:[#allocation2 + $0x160] sm:$0xff] }
 0x1ea   :  { %7918 = vmatprep.mubr.msk.bf16.mxu0 %vm2014_vm0, %v8761_v38  ;;  %3287 = vmatmul.mubr.bf16.gmra.mrb[168].mxu1 %v7807_v24  ;;  %v4019_v38 = vld [vmem:[#allocation2 + $0x140] sm:$0xff]  ;;  %v4312_v39 = vsel %vm17_vm3, %v4018_v32, 0.0  ;;  %v3082_v43 = vpop.f32.mrb[65].mxu1  ;;  %v3623_v59 = vadd.f32 %v3080_v40, %v434_v52  ;;  %v4322_v30 = vsel %vm17_vm3, %v4023_v16, 0.0 }
 0x1eb   :  { %v4314_v44 = vsel %vm17_vm3, %v4019_v38, 0.0  ;;  %v3083_v45 = vpop.f32.mrb[66].mxu1  ;;  %v4313_v49 = vadd.f32 %v4312_v39, %v4311_v37  ;;  %7968 = vmatprep.mubr.msk.bf16.mxu1 %vm2014_vm0, %v8816_v48  ;;  %v8778_v25 = vld [vmem:[%s15145_s0 + $0x3c0] ss:$8 sps:$4 sm:$0xff]   ;;  %v4025_v37 = vld [vmem:[#allocation2 + $0x170] sm:$0xff]  ;;  %v749_v43 = vld [vmem:[%s15145_s0 + $0x6d8] sm:$0xff] }
 0x1ec   :  { %v2680_v55 = vpop.f32.mrb[120].mxu0  ;;  %v3085_v54 = vpop.f32.mrb[67].mxu1  ;;  %v3624_v60 = vadd.f32 %v3083_v45, %v435_v53  ;;  %3880 = vst.msk [vmem:[#allocation2 + $0x500] sm:$0xff] %vm17_vm3, %v3623_v59  ;;  %v342_v38 = vld [vmem:[#allocation2 + $0x220] sm:$0xff]  ;;  %v439_v48 = vld [vmem:[#allocation2 + $0x528] sm:$0xff] }
 0x1ed   :  { %v3523_v61 = vadd.f32 %v2680_v55, %v334_v46  ;;  %v2682_v62 = vpop.f32.mrb[121].mxu0  ;;  %v744_v46 = vld [vmem:[%s15145_s0 + $0x6b0] sm:$0xff] }
 0x1ee   :  { %v2683_v2 = vpop.f32.mrb[122].mxu0  ;;  %v4021_v62 = vld [vmem:[#allocation2 + $0x150] sm:$0xff]  ;;  %3881 = vst.msk [vmem:[#allocation2 + $0x508] sm:$0xff] %vm17_vm3, %v3624_v60  ;;  %v8786_v60 = vld [vmem:[%s15145_s0 + $0x3e4] ss:$8 sps:$4 sm:$0xff]  }
 0x1ef   :  { %3780 = vst.msk [vmem:[#allocation2 + $0x1e0] sm:$0xff] %vm17_vm3, %v3523_v61  ;;  %v3524_v5 = vadd.f32 %v2683_v2, %v335_v47  ;;  %v2685_v6 = vpop.f32.mrb[123].mxu0  ;;  %v745_v47 = vld [vmem:[%s15145_s0 + $0x6b8] sm:$0xff]  ;;  %v4315_v61 = vadd.f32 %v4314_v44, %v4313_v49  ;;  %v4318_v4 = vsel %vm17_vm3, %v4021_v62, 0.0 }
 0x1f0   :  { %v7809_v55 = vcombine.low %v744_v46, %v745_v47  ;;  %v8820_v44 = vld [vmem:[%s15145_s0 + $0x6d4] ss:$8 sps:$4 sm:$0xff]   ;;  %v343_v46 = vld [vmem:[#allocation2 + $0x228] sm:$0xff]  ;;  %v438_v47 = vld [vmem:[#allocation2 + $0x520] sm:$0xff] }
 0x1f1   :  { %3781 = vst.msk [vmem:[#allocation2 + $0x1e8] sm:$0xff] %vm17_vm3, %v3524_v5  ;;  %2895 = vmatmul.mubr.bf16.gmra.mrb[228].mxu0 %v8763_v63  ;;  %v3088_v5 = vpop.f32.mrb[68].mxu1  ;;  %v4317_v6 = vadd.f32 %v4316_v1, %v4315_v61  ;;  %v8783_v54 = vld [vmem:[%s15145_s0 + $0x3d0] ss:$8 sps:$4 sm:$0xff]  }
 0x1f2   :  { %7919 = vmatprep.mubr.msk.bf16.mxu0 %vm2014_vm0, %v8766_v3  ;;  %3295 = vmatmul.mubr.bf16.gmra.mrb[172].mxu1 %v7809_v55  ;;  %v3090_v10 = vpop.f32.mrb[69].mxu1 }
 0x1f3   :  { %v3091_v11 = vpop.f32.mrb[70].mxu1  ;;  %v4319_v15 = vadd.f32 %v4318_v4, %v4317_v6  ;;  %7969 = vmatprep.mubr.msk.bf16.mxu1 %vm2014_vm0, %v8818_v14  ;;  %v345_v4 = vld [vmem:[#allocation2 + $0x238] sm:$0xff]  ;;  %v8822_v10 = vld [vmem:[%s15145_s0 + $0x6e4] ss:$8 sps:$4 sm:$0xff]   ;;  %v440_v14 = vld [vmem:[#allocation2 + $0x530] sm:$0xff] }
 0x1f4   :  { %v2688_v19 = vpop.f32.mrb[124].mxu0 }
 0x1f5   :  { %v3525_v26 = vadd.f32 %v2688_v19, %v336_v12  ;;  %v2690_v27 = vpop.f32.mrb[125].mxu0  ;;  %v746_v12 = vld [vmem:[%s15145_s0 + $0x6c0] sm:$0xff]  ;;  %v437_v19 = vld [vmem:[#allocation2 + $0x518] sm:$0xff] }
 0x1f6   :  { %v2691_v33 = vpop.f32.mrb[126].mxu0  ;;  %v7811_v21 = vcombine.low %v746_v12, %v747_v13  ;;  %v3626_v27 = vadd.f32 %v3091_v11, %v437_v19  ;;  %v4028_v12 = vld [vmem:[#allocation2 + $0x188] sm:$0xff] }
 0x1f7   :  { %3782 = vst.msk [vmem:[#allocation2 + $0x1f0] sm:$0xff] %vm17_vm3, %v3525_v26  ;;  %v3526_v35 = vadd.f32 %v2691_v33, %v337_v20  ;;  %v2693_v36 = vpop.f32.mrb[127].mxu0  ;;  %v3093_v20 = vpop.f32.mrb[71].mxu1  ;;  %v3625_v26 = vadd.f32 %v3088_v5, %v436_v18  ;;  %v4321_v33 = vadd.f32 %v4320_v22, %v4319_v15  ;;  %v441_v15 = vld [vmem:[#allocation2 + $0x538] sm:$0xff] }
 0x1f8   :  { %3883 = vst.msk [vmem:[#allocation2 + $0x518] sm:$0xff] %vm17_vm3, %v3626_v27  ;;  %v8788_v20 = vld [vmem:[%s15145_s0 + $0x3e0] ss:$8 sps:$4 sm:$0xff]   ;;  %v4332_v27 = vsel %vm17_vm3, %v4028_v12, 0.0 }
 0x1f9   :  { %3783 = vst.msk [vmem:[#allocation2 + $0x1f8] sm:$0xff] %vm17_vm3, %v3526_v35  ;;  %2903 = vmatmul.mubr.bf16.gmra.mrb[232].mxu0 %v8768_v28  ;;  %3882 = vst.msk [vmem:[#allocation2 + $0x510] sm:$0xff] %vm17_vm3, %v3625_v26  ;;  %v3096_v35 = vpop.f32.mrb[72].mxu1  ;;  %v4323_v36 = vadd.f32 %v4322_v30, %v4321_v33  ;;  %v8791_v26 = vld [vmem:[%s15145_s0 + $0x3f4] ss:$8 sps:$4 sm:$0xff]  }
 0x1fa   :  { %7920 = vmatprep.mubr.msk.bf16.mxu0 %vm2014_vm0, %v8771_v34  ;;  %3303 = vmatmul.mubr.bf16.gmra.mrb[176].mxu1 %v7811_v21  ;;  %v4024_v34 = vld [vmem:[#allocation2 + $0x168] sm:$0xff]  ;;  %v3098_v39 = vpop.f32.mrb[73].mxu1  ;;  %v3627_v55 = vadd.f32 %v3096_v35, %v438_v47  ;;  %v4030_v33 = vld [vmem:[#allocation2 + $0x198] sm:$0xff] }
 0x1fb   :  { %v4324_v40 = vsel %vm17_vm3, %v4024_v34, 0.0  ;;  %7970 = vmatprep.mubr.msk.bf16.mxu1 %vm2014_vm0, %v8820_v44  ;;  %v346_v34 = vld [vmem:[#allocation2 + $0x240] sm:$0xff]  ;;  %v347_v35 = vld [vmem:[#allocation2 + $0x248] sm:$0xff]  ;;  %v753_v39 = vld [vmem:[%s15145_s0 + $0x6f8] sm:$0xff] }
 0x1fc   :  { %v2696_v51 = vpop.f32.mrb[128].mxu0  ;;  %3884 = vst.msk [vmem:[#allocation2 + $0x520] sm:$0xff] %vm17_vm3, %v3627_v55  ;;  %v442_v44 = vld [vmem:[#allocation2 + $0x540] sm:$0xff] }
 0x1fd   :  { %v3527_v56 = vadd.f32 %v2696_v51, %v338_v41  ;;  %v2698_v57 = vpop.f32.mrb[129].mxu0  ;;  %v3099_v41 = vpop.f32.mrb[74].mxu1  ;;  %v4326_v51 = vsel %vm17_vm3, %v4025_v37, 0.0 }
 0x1fe   :  { %v2699_v63 = vpop.f32.mrb[130].mxu0  ;;  %v3101_v49 = vpop.f32.mrb[75].mxu1  ;;  %v4325_v57 = vadd.f32 %v4324_v40, %v4323_v36  ;;  %v8824_v40 = vld [vmem:[%s15145_s0 + $0x6f4] ss:$8 sps:$4 sm:$0xff]  }
 0x1ff   :  { %3784 = vst.msk [vmem:[#allocation2 + $0x200] sm:$0xff] %vm17_vm3, %v3527_v56  ;;  %v3528_v2 = vadd.f32 %v2699_v63, %v339_v42  ;;  %v2701_v3 = vpop.f32.mrb[131].mxu0  ;;  %v748_v42 = vld [vmem:[%s15145_s0 + $0x6d0] sm:$0xff]  ;;  %v3628_v56 = vadd.f32 %v3099_v41, %v439_v48  ;;  %v4336_v48 = vsel %vm17_vm3, %v4030_v33, 0.0 }
 0x200   :  { %v7813_v50 = vcombine.low %v748_v42, %v749_v43  ;;  %v4327_v63 = vadd.f32 %v4326_v51, %v4325_v57  ;;  %v344_v3 = vld [vmem:[#allocation2 + $0x230] sm:$0xff]  ;;  %v4031_v42 = vld [vmem:[#allocation2 + $0x1a0] sm:$0xff] }
 0x201   :  { %3785 = vst.msk [vmem:[#allocation2 + $0x208] sm:$0xff] %vm17_vm3, %v3528_v2  ;;  %2911 = vmatmul.mubr.bf16.gmra.mrb[236].mxu0 %v8773_v58  ;;  %v4026_v58 = vld [vmem:[#allocation2 + $0x178] sm:$0xff]  ;;  %3885 = vst.msk [vmem:[#allocation2 + $0x528] sm:$0xff] %vm17_vm3, %v3628_v56  ;;  %v3104_v2 = vpop.f32.mrb[76].mxu1  ;;  %v4338_v55 = vsel %vm17_vm3, %v4031_v42, 0.0 }
 0x202   :  { %7921 = vmatprep.mubr.msk.bf16.mxu0 %vm2014_vm0, %v8776_v0  ;;  %3311 = vmatmul.mubr.bf16.gmra.mrb[180].mxu1 %v7813_v50  ;;  %v4027_v0 = vld [vmem:[#allocation2 + $0x180] sm:$0xff]  ;;  %v4328_v1 = vsel %vm17_vm3, %v4026_v58, 0.0  ;;  %v3106_v5 = vpop.f32.mrb[77].mxu1  ;;  %v3629_v21 = vadd.f32 %v3104_v2, %v440_v14  ;;  %v8793_v51 = vld [vmem:[%s15145_s0 + $0x3f0] ss:$8 sps:$4 sm:$0xff]  }
 0x203   :  { %v4330_v6 = vsel %vm17_vm3, %v4027_v0, 0.0  ;;  %v3107_v7 = vpop.f32.mrb[78].mxu1  ;;  %v4329_v11 = vadd.f32 %v4328_v1, %v4327_v63  ;;  %7971 = vmatprep.mubr.msk.bf16.mxu1 %vm2014_vm0, %v8822_v10  ;;  %v348_v63 = vld [vmem:[#allocation2 + $0x250] sm:$0xff]  ;;  %v8826_v5 = vld [vmem:[%s15145_s0 + $0x704] ss:$8 sps:$4 sm:$0xff]  }
 0x204   :  { %v2704_v17 = vpop.f32.mrb[132].mxu0  ;;  %v3109_v16 = vpop.f32.mrb[79].mxu1  ;;  %v3630_v22 = vadd.f32 %v3107_v7, %v441_v15  ;;  %3886 = vst.msk [vmem:[#allocation2 + $0x530] sm:$0xff] %vm17_vm3, %v3629_v21  ;;  %v349_v7 = vld [vmem:[#allocation2 + $0x258] sm:$0xff] }
 0x205   :  { %v3529_v23 = vadd.f32 %v2704_v17, %v340_v8  ;;  %v2706_v24 = vpop.f32.mrb[133].mxu0  ;;  %v750_v8 = vld [vmem:[%s15145_s0 + $0x6e0] sm:$0xff]  ;;  %v8828_v33 = vld [vmem:[%s15145_s0 + $0x714] ss:$8 sps:$4 sm:$0xff]  }
 0x206   :  { %v2707_v28 = vpop.f32.mrb[134].mxu0  ;;  %v4029_v24 = vld [vmem:[#allocation2 + $0x190] sm:$0xff]  ;;  %3887 = vst.msk [vmem:[#allocation2 + $0x538] sm:$0xff] %vm17_vm3, %v3630_v22 }
 0x207   :  { %3786 = vst.msk [vmem:[#allocation2 + $0x210] sm:$0xff] %vm17_vm3, %v3529_v23  ;;  %v3530_v31 = vadd.f32 %v2707_v28, %v341_v9  ;;  %v2709_v32 = vpop.f32.mrb[135].mxu0  ;;  %v751_v9 = vld [vmem:[%s15145_s0 + $0x6e8] sm:$0xff]  ;;  %v4331_v23 = vadd.f32 %v4330_v6, %v4329_v11  ;;  %v4334_v30 = vsel %vm17_vm3, %v4029_v24, 0.0 }
 0x208   :  { %v7815_v17 = vcombine.low %v750_v8, %v751_v9  ;;  %v444_v8 = vld [vmem:[#allocation2 + $0x550] sm:$0xff]  ;;  %v445_v9 = vld [vmem:[#allocation2 + $0x558] sm:$0xff] }
 0x209   :  { %3787 = vst.msk [vmem:[#allocation2 + $0x218] sm:$0xff] %vm17_vm3, %v3530_v31  ;;  %2919 = vmatmul.mubr.bf16.gmra.mrb[240].mxu0 %v8778_v25  ;;  %v3112_v31 = vpop.f32.mrb[80].mxu1  ;;  %v4333_v32 = vadd.f32 %v4332_v27, %v4331_v23  ;;  %v4035_v23 = vld [vmem:[#allocation2 + $0x1c0] sm:$0xff]  ;;  %v351_v27 = vld [vmem:[#allocation2 + $0x268] sm:$0xff] }
 0x20a   :  { %7922 = vmatprep.mubr.msk.bf16.mxu0 %vm2014_vm0, %v8781_v29  ;;  %3319 = vmatmul.mubr.bf16.gmra.mrb[184].mxu1 %v7815_v17  ;;  %v3114_v36 = vpop.f32.mrb[81].mxu1 }
 0x20b   :  { %v3115_v37 = vpop.f32.mrb[82].mxu1  ;;  %v4335_v41 = vadd.f32 %v4334_v30, %v4333_v32  ;;  %7972 = vmatprep.mubr.msk.bf16.mxu1 %vm2014_vm0, %v8824_v40  ;;  %v757_v32 = vld [vmem:[%s15145_s0 + $0x718] sm:$0xff] }
 0x20c   :  { %v2712_v45 = vpop.f32.mrb[136].mxu0 }
 0x20d   :  { %v3531_v52 = vadd.f32 %v2712_v45, %v342_v38  ;;  %v2714_v53 = vpop.f32.mrb[137].mxu0  ;;  %v752_v38 = vld [vmem:[%s15145_s0 + $0x6f0] sm:$0xff]  ;;  %v443_v45 = vld [vmem:[#allocation2 + $0x548] sm:$0xff]  ;;  %v4337_v58 = vadd.f32 %v4336_v48, %v4335_v41 }
 0x20e   :  { %v2715_v59 = vpop.f32.mrb[138].mxu0  ;;  %v7817_v47 = vcombine.low %v752_v38, %v753_v39  ;;  %v3632_v53 = vadd.f32 %v3115_v37, %v443_v45  ;;  %v446_v37 = vld [vmem:[#allocation2 + $0x560] sm:$0xff]  ;;  %v447_v38 = vld [vmem:[#allocation2 + $0x568] sm:$0xff] }
 0x20f   :  { %3788 = vst.msk [vmem:[#allocation2 + $0x220] sm:$0xff] %vm17_vm3, %v3531_v52  ;;  %v3532_v61 = vadd.f32 %v2715_v59, %v343_v46  ;;  %v2717_v62 = vpop.f32.mrb[139].mxu0  ;;  %v3117_v46 = vpop.f32.mrb[83].mxu1  ;;  %v3631_v52 = vadd.f32 %v3112_v31, %v442_v44  ;;  %v4032_v59 = vld [vmem:[#allocation2 + $0x1a8] sm:$0xff]  ;;  %v756_v31 = vld [vmem:[%s15145_s0 + $0x710] sm:$0xff] }
 0x210   :  { %3889 = vst.msk [vmem:[#allocation2 + $0x548] sm:$0xff] %vm17_vm3, %v3632_v53  ;;  %v4033_v62 = vld [vmem:[#allocation2 + $0x1b0] sm:$0xff]  ;;  %v4340_v1 = vsel %vm17_vm3, %v4032_v59, 0.0  ;;  %v7821_v40 = vcombine.low %v756_v31, %v757_v32  ;;  %v758_v59 = vld [vmem:[%s15145_s0 + $0x720] sm:$0xff] }
 0x211   :  { %3789 = vst.msk [vmem:[#allocation2 + $0x228] sm:$0xff] %vm17_vm3, %v3532_v61  ;;  %2927 = vmatmul.mubr.bf16.gmra.mrb[244].mxu0 %v8783_v54  ;;  %3888 = vst.msk [vmem:[#allocation2 + $0x540] sm:$0xff] %vm17_vm3, %v3631_v52  ;;  %v4339_v61 = vadd.f32 %v4338_v55, %v4337_v58  ;;  %v4342_v12 = vsel %vm17_vm3, %v4033_v62, 0.0  ;;  %v4037_v46 = vld [vmem:[#allocation2 + $0x1d0] sm:$0xff] }
 0x212   :  { %7923 = vmatprep.mubr.msk.bf16.mxu0 %vm2014_vm0, %v8786_v60  ;;  %3327 = vmatmul.mubr.bf16.gmra.mrb[188].mxu1 %v7817_v47  ;;  %v3120_v60 = vpop.f32.mrb[84].mxu1  ;;  %v352_v55 = vld [vmem:[#allocation2 + $0x270] sm:$0xff] }
 0x213   :  { %v3122_v0 = vpop.f32.mrb[85].mxu1  ;;  %v3633_v15 = vadd.f32 %v3120_v60, %v444_v8  ;;  %7973 = vmatprep.mubr.msk.bf16.mxu1 %vm2014_vm0, %v8826_v5  ;;  %v4341_v17 = vadd.f32 %v4340_v1, %v4339_v61  ;;  %v759_v60 = vld [vmem:[%s15145_s0 + $0x728] sm:$0xff]  ;;  %v448_v1 = vld [vmem:[#allocation2 + $0x570] sm:$0xff] }
 0x214   :  { %v2720_v13 = vpop.f32.mrb[140].mxu0  ;;  %v3123_v2 = vpop.f32.mrb[86].mxu1  ;;  %v8830_v61 = vld [vmem:[%s15145_s0 + $0x724] ss:$8 sps:$4 sm:$0xff]  }
 0x215   :  { %v3533_v18 = vadd.f32 %v2720_v13, %v344_v3  ;;  %v2722_v19 = vpop.f32.mrb[141].mxu0  ;;  %v754_v3 = vld [vmem:[%s15145_s0 + $0x700] sm:$0xff]  ;;  %v3125_v10 = vpop.f32.mrb[87].mxu1  ;;  %v3634_v16 = vadd.f32 %v3123_v2, %v445_v9  ;;  %3890 = vst.msk [vmem:[#allocation2 + $0x550] sm:$0xff] %vm17_vm3, %v3633_v15  ;;  %v4343_v22 = vadd.f32 %v4342_v12, %v4341_v17  ;;  %v449_v2 = vld [vmem:[#allocation2 + $0x578] sm:$0xff]  ;;  %v4040_v15 = vld [vmem:[#allocation2 + $0x1e8] sm:$0xff] }
 0x216   :  { %v2723_v25 = vpop.f32.mrb[142].mxu0 }
 0x217   :  { %3790 = vst.msk [vmem:[#allocation2 + $0x230] sm:$0xff] %vm17_vm3, %v3533_v18  ;;  %v3534_v28 = vadd.f32 %v2723_v25, %v345_v4  ;;  %v2725_v29 = vpop.f32.mrb[143].mxu0  ;;  %v755_v4 = vld [vmem:[%s15145_s0 + $0x708] sm:$0xff]  ;;  %v4034_v18 = vld [vmem:[#allocation2 + $0x1b8] sm:$0xff]  ;;  %3891 = vst.msk [vmem:[#allocation2 + $0x558] sm:$0xff] %vm17_vm3, %v3634_v16  ;;  %v3128_v25 = vpop.f32.mrb[88].mxu1 }
 0x218   :  { %v7819_v11 = vcombine.low %v754_v3, %v755_v4  ;;  %v4344_v24 = vsel %vm17_vm3, %v4034_v18, 0.0  ;;  %v4346_v29 = vsel %vm17_vm3, %v4035_v23, 0.0  ;;  %v7823_v4 = vcombine.low %v758_v59, %v759_v60  ;;  %v4041_v18 = vld [vmem:[#allocation2 + $0x1f0] sm:$0xff] }
 0x219   :  { %3791 = vst.msk [vmem:[#allocation2 + $0x238] sm:$0xff] %vm17_vm3, %v3534_v28  ;;  %2935 = vmatmul.mubr.bf16.gmra.mrb[248].mxu0 %v8788_v20  ;;  %v3130_v28 = vpop.f32.mrb[89].mxu1  ;;  %v760_v23 = vld [vmem:[%s15145_s0 + $0x730] sm:$0xff]  ;;  %v4358_v32 = vsel %vm17_vm3, %v4041_v18, 0.0 }
 0x21a   :  { %7924 = vmatprep.mubr.msk.bf16.mxu0 %vm2014_vm0, %v8791_v26  ;;  %3335 = vmatmul.mubr.bf16.gmra.mrb[192].mxu1 %v7819_v11  ;;  %v350_v26 = vld [vmem:[#allocation2 + $0x260] sm:$0xff]  ;;  %v3131_v30 = vpop.f32.mrb[90].mxu1 }
 0x21b   :  { %v3133_v39 = vpop.f32.mrb[91].mxu1  ;;  %v3636_v44 = vadd.f32 %v3131_v30, %v447_v38  ;;  %7974 = vmatprep.mubr.msk.bf16.mxu1 %vm2014_vm0, %v8828_v33  ;;  %v450_v28 = vld [vmem:[#allocation2 + $0x580] sm:$0xff]  ;;  %v4042_v38 = vld [vmem:[#allocation2 + $0x1f8] sm:$0xff] }
 0x21c   :  { %v2728_v43 = vpop.f32.mrb[144].mxu0  ;;  %v3136_v52 = vpop.f32.mrb[92].mxu1 }
 0x21d   :  { %v3535_v49 = vadd.f32 %v2728_v43, %v346_v34  ;;  %v2730_v50 = vpop.f32.mrb[145].mxu0  ;;  %v4345_v34 = vadd.f32 %v4344_v24, %v4343_v22  ;;  %v3635_v43 = vadd.f32 %v3128_v25, %v446_v37  ;;  %3893 = vst.msk [vmem:[#allocation2 + $0x568] sm:$0xff] %vm17_vm3, %v3636_v44  ;;  %v3637_v8 = vadd.f32 %v3136_v52, %v448_v1  ;;  %v761_v24 = vld [vmem:[%s15145_s0 + $0x738] sm:$0xff]  ;;  %v763_v52 = vld [vmem:[%s15145_s0 + $0x748] sm:$0xff] }
 0x21e   :  { %v2731_v54 = vpop.f32.mrb[146].mxu0  ;;  %v8832_v25 = vld [vmem:[%s15145_s0 + $0x734] ss:$8 sps:$4 sm:$0xff]   ;;  %v7825_v31 = vcombine.low %v760_v23, %v761_v24  ;;  %v4360_v44 = vsel %vm17_vm3, %v4042_v38, 0.0 }
 0x21f   :  { %3792 = vst.msk [vmem:[#allocation2 + $0x240] sm:$0xff] %vm17_vm3, %v3535_v49  ;;  %v3536_v56 = vadd.f32 %v2731_v54, %v347_v35  ;;  %v2733_v57 = vpop.f32.mrb[147].mxu0  ;;  %v4036_v35 = vld [vmem:[#allocation2 + $0x1c8] sm:$0xff]  ;;  %v4347_v45 = vadd.f32 %v4346_v29, %v4345_v34  ;;  %3892 = vst.msk [vmem:[#allocation2 + $0x560] sm:$0xff] %vm17_vm3, %v3635_v43  ;;  %v4038_v54 = vld [vmem:[#allocation2 + $0x1d8] sm:$0xff] }
 0x220   :  { %v4348_v48 = vsel %vm17_vm3, %v4036_v35, 0.0  ;;  %v3138_v57 = vpop.f32.mrb[93].mxu1  ;;  %v4352_v5 = vsel %vm17_vm3, %v4038_v54, 0.0  ;;  %3894 = vst.msk [vmem:[#allocation2 + $0x570] sm:$0xff] %vm17_vm3, %v3637_v8  ;;  %v451_v29 = vld [vmem:[#allocation2 + $0x588] sm:$0xff]  ;;  %v4043_v43 = vld [vmem:[#allocation2 + $0x200] sm:$0xff] }
 0x221   :  { %3793 = vst.msk [vmem:[#allocation2 + $0x248] sm:$0xff] %vm17_vm3, %v3536_v56  ;;  %2943 = vmatmul.mubr.bf16.gmra.mrb[252].mxu0 %v8793_v51  ;;  %v4350_v51 = vsel %vm17_vm3, %v4037_v46, 0.0  ;;  %v4349_v53 = vadd.f32 %v4348_v48, %v4347_v45  ;;  %v353_v56 = vld [vmem:[#allocation2 + $0x278] sm:$0xff]  ;;  %v3139_v58 = vpop.f32.mrb[94].mxu1  ;;  %v356_v46 = vld [vmem:[#allocation2 + $0x290] sm:$0xff] }
 0x222   :  { %3343 = vmatmul.mubr.bf16.gmra.mrb[196].mxu1 %v7821_v40  ;;  %v3141_v3 = vpop.f32.mrb[95].mxu1  ;;  %v3638_v9 = vadd.f32 %v3139_v58, %v449_v2  ;;  %v452_v57 = vld [vmem:[#allocation2 + $0x590] sm:$0xff]  ;;  %v453_v58 = vld [vmem:[#allocation2 + $0x598] sm:$0xff] }
 0x223   :  { %v4351_v62 = vadd.f32 %v4350_v51, %v4349_v53  ;;  %7975 = vmatprep.mubr.msk.bf16.mxu1 %vm2014_vm0, %v8830_v61  ;;  %v3144_v16 = vpop.f32.mrb[96].mxu1  ;;  %v762_v51 = vld [vmem:[%s15145_s0 + $0x740] sm:$0xff]  ;;  %v4045_v2 = vld [vmem:[#allocation2 + $0x210] sm:$0xff] }
 0x224   :  { %v2736_v6 = vpop.f32.mrb[148].mxu0  ;;  %3895 = vst.msk [vmem:[#allocation2 + $0x578] sm:$0xff] %vm17_vm3, %v3638_v9  ;;  %v3639_v35 = vadd.f32 %v3144_v16, %v450_v28  ;;  %v8834_v53 = vld [vmem:[%s15145_s0 + $0x744] ss:$8 sps:$4 sm:$0xff]   ;;  %v7827_v60 = vcombine.low %v762_v51, %v763_v52  ;;  %v765_v16 = vld [vmem:[%s15145_s0 + $0x758] sm:$0xff]  ;;  %v4049_v38 = vld [vmem:[#allocation2 + $0x230] sm:$0xff] }
 0x225   :  { %v3537_v13 = vadd.f32 %v2736_v6, %v348_v63  ;;  %v2738_v14 = vpop.f32.mrb[149].mxu0  ;;  %v4039_v63 = vld [vmem:[#allocation2 + $0x1e0] sm:$0xff]  ;;  %v4374_v52 = vsel %vm17_vm3, %v4049_v38, 0.0 }
 0x226   :  { %v2739_v19 = vpop.f32.mrb[150].mxu0  ;;  %v4354_v11 = vsel %vm17_vm3, %v4039_v63, 0.0  ;;  %v4353_v14 = vadd.f32 %v4352_v5, %v4351_v62  ;;  %3896 = vst.msk [vmem:[#allocation2 + $0x580] sm:$0xff] %vm17_vm3, %v3639_v35  ;;  %v4048_v35 = vld [vmem:[#allocation2 + $0x228] sm:$0xff] }
 0x227   :  { %3794 = vst.msk [vmem:[#allocation2 + $0x250] sm:$0xff] %vm17_vm3, %v3537_v13  ;;  %v3538_v20 = vadd.f32 %v2739_v19, %v349_v7  ;;  %v2741_v21 = vpop.f32.mrb[151].mxu0  ;;  %v354_v19 = vld [vmem:[#allocation2 + $0x280] sm:$0xff] }
 0x228   :  { %v4355_v17 = vadd.f32 %v4354_v11, %v4353_v14  ;;  %v4356_v21 = vsel %vm17_vm3, %v4040_v15, 0.0  ;;  %v358_v11 = vld [vmem:[#allocation2 + $0x2a0] sm:$0xff]  ;;  %v764_v15 = vld [vmem:[%s15145_s0 + $0x750] sm:$0xff] }
 0x229   :  { %3795 = vst.msk [vmem:[#allocation2 + $0x258] sm:$0xff] %vm17_vm3, %v3538_v20  ;;  %v3146_v20 = vpop.f32.mrb[97].mxu1  ;;  %v7829_v24 = vcombine.low %v764_v15, %v765_v16 }
 0x22a   :  { %3351 = vmatmul.mubr.bf16.gmra.mrb[200].mxu1 %v7823_v4  ;;  %v3147_v22 = vpop.f32.mrb[98].mxu1  ;;  %v4357_v37 = vadd.f32 %v4356_v21, %v4355_v17  ;;  %v8836_v17 = vld [vmem:[%s15145_s0 + $0x754] ss:$8 sps:$4 sm:$0xff]   ;;  %v454_v21 = vld [vmem:[#allocation2 + $0x5a0] sm:$0xff] }
 0x22b   :  { %v3149_v30 = vpop.f32.mrb[99].mxu1  ;;  %7976 = vmatprep.mubr.msk.bf16.mxu1 %vm2014_vm0, %v8832_v25 }
 0x22c   :  { %v2744_v36 = vpop.f32.mrb[152].mxu0  ;;  %v3152_v45 = vpop.f32.mrb[100].mxu1 }
 0x22d   :  { %v3539_v41 = vadd.f32 %v2744_v36, %v350_v26  ;;  %v2746_v42 = vpop.f32.mrb[153].mxu0  ;;  %v3640_v36 = vadd.f32 %v3147_v22, %v451_v29  ;;  %v3154_v48 = vpop.f32.mrb[101].mxu1  ;;  %v3641_v63 = vadd.f32 %v3152_v45, %v452_v57  ;;  %v455_v22 = vld [vmem:[#allocation2 + $0x5a8] sm:$0xff] }
 0x22e   :  { %v2747_v47 = vpop.f32.mrb[154].mxu0  ;;  %v4359_v42 = vadd.f32 %v4358_v32, %v4357_v37  ;;  %v8838_v45 = vld [vmem:[%s15145_s0 + $0x764] ss:$8 sps:$4 sm:$0xff]   ;;  %v456_v48 = vld [vmem:[#allocation2 + $0x5b0] sm:$0xff] }
 0x22f   :  { %3796 = vst.msk [vmem:[#allocation2 + $0x260] sm:$0xff] %vm17_vm3, %v3539_v41  ;;  %v3540_v49 = vadd.f32 %v2747_v47, %v351_v27  ;;  %v2749_v50 = vpop.f32.mrb[155].mxu0  ;;  %v355_v27 = vld [vmem:[#allocation2 + $0x288] sm:$0xff]  ;;  %3897 = vst.msk [vmem:[#allocation2 + $0x588] sm:$0xff] %vm17_vm3, %v3640_v36  ;;  %v357_v47 = vld [vmem:[#allocation2 + $0x298] sm:$0xff] }
 0x230   :  { %v3155_v50 = vpop.f32.mrb[102].mxu1  ;;  %v4361_v54 = vadd.f32 %v4360_v44, %v4359_v42  ;;  %3898 = vst.msk [vmem:[#allocation2 + $0x590] sm:$0xff] %vm17_vm3, %v3641_v63  ;;  %v767_v44 = vld [vmem:[%s15145_s0 + $0x768] sm:$0xff]  ;;  %v4051_v63 = vld [vmem:[#allocation2 + $0x240] sm:$0xff] }
 0x231   :  { %3797 = vst.msk [vmem:[#allocation2 + $0x268] sm:$0xff] %vm17_vm3, %v3540_v49  ;;  %v4362_v49 = vsel %vm17_vm3, %v4043_v43, 0.0  ;;  %v3157_v59 = vpop.f32.mrb[103].mxu1  ;;  %v766_v43 = vld [vmem:[%s15145_s0 + $0x760] sm:$0xff] }
 0x232   :  { %3359 = vmatmul.mubr.bf16.gmra.mrb[204].mxu1 %v7825_v31  ;;  %v4363_v1 = vadd.f32 %v4362_v49, %v4361_v54  ;;  %v3160_v8 = vpop.f32.mrb[104].mxu1  ;;  %v457_v49 = vld [vmem:[#allocation2 + $0x5b8] sm:$0xff]  ;;  %v7831_v51 = vcombine.low %v766_v43, %v767_v44 }
 0x233   :  { %7977 = vmatprep.mubr.msk.bf16.mxu1 %vm2014_vm0, %v8834_v53  ;;  %v3643_v28 = vadd.f32 %v3160_v8, %v454_v21  ;;  %v769_v8 = vld [vmem:[%s15145_s0 + $0x778] sm:$0xff] }
 0x234   :  { %v2752_v0 = vpop.f32.mrb[156].mxu0 }
 0x235   :  { %v3541_v6 = vadd.f32 %v2752_v0, %v352_v55  ;;  %v2754_v7 = vpop.f32.mrb[157].mxu0  ;;  %v4044_v55 = vld [vmem:[#allocation2 + $0x208] sm:$0xff]  ;;  %v3642_v0 = vadd.f32 %v3155_v50, %v453_v58  ;;  %3900 = vst.msk [vmem:[#allocation2 + $0x5a0] sm:$0xff] %vm17_vm3, %v3643_v28  ;;  %v4050_v58 = vld [vmem:[#allocation2 + $0x238] sm:$0xff] }
 0x236   :  { %v2755_v10 = vpop.f32.mrb[158].mxu0  ;;  %v4364_v4 = vsel %vm17_vm3, %v4044_v55, 0.0  ;;  %v4366_v7 = vsel %vm17_vm3, %v4045_v2, 0.0  ;;  %v362_v2 = vld [vmem:[#allocation2 + $0x2c0] sm:$0xff] }
 0x237   :  { %3798 = vst.msk [vmem:[#allocation2 + $0x270] sm:$0xff] %vm17_vm3, %v3541_v6  ;;  %v3542_v12 = vadd.f32 %v2755_v10, %v353_v56  ;;  %v2757_v13 = vpop.f32.mrb[159].mxu0  ;;  %3899 = vst.msk [vmem:[#allocation2 + $0x598] sm:$0xff] %vm17_vm3, %v3642_v0  ;;  %v4365_v9 = vadd.f32 %v4364_v4, %v4363_v1  ;;  %v4046_v10 = vld [vmem:[#allocation2 + $0x218] sm:$0xff]  ;;  %v4376_v0 = vsel %vm17_vm3, %v4050_v58, 0.0 }
 0x238   :  { %v3162_v13 = vpop.f32.mrb[105].mxu1  ;;  %v4368_v25 = vsel %vm17_vm3, %v4046_v10, 0.0 }
 0x239   :  { %3799 = vst.msk [vmem:[#allocation2 + $0x278] sm:$0xff] %vm17_vm3, %v3542_v12  ;;  %v359_v12 = vld [vmem:[#allocation2 + $0x2a8] sm:$0xff]  ;;  %v3163_v14 = vpop.f32.mrb[106].mxu1  ;;  %v4367_v18 = vadd.f32 %v4366_v7, %v4365_v9  ;;  %v768_v7 = vld [vmem:[%s15145_s0 + $0x770] sm:$0xff]  ;;  %v458_v13 = vld [vmem:[#allocation2 + $0x5c0] sm:$0xff] }
 0x23a   :  { %3367 = vmatmul.mubr.bf16.gmra.mrb[208].mxu1 %v7827_v60  ;;  %v3165_v23 = vpop.f32.mrb[107].mxu1  ;;  %v3644_v29 = vadd.f32 %v3163_v14, %v455_v22  ;;  %v8840_v9 = vld [vmem:[%s15145_s0 + $0x774] ss:$8 sps:$4 sm:$0xff]   ;;  %v459_v14 = vld [vmem:[#allocation2 + $0x5c8] sm:$0xff]  ;;  %v7833_v16 = vcombine.low %v768_v7, %v769_v8 }
 0x23b   :  { %7978 = vmatprep.mubr.msk.bf16.mxu1 %vm2014_vm0, %v8836_v17  ;;  %v3168_v36 = vpop.f32.mrb[108].mxu1  ;;  %v4053_v22 = vld [vmem:[#allocation2 + $0x250] sm:$0xff] }
 0x23c   :  { %v2760_v26 = vpop.f32.mrb[160].mxu0  ;;  %3901 = vst.msk [vmem:[#allocation2 + $0x5a8] sm:$0xff] %vm17_vm3, %v3644_v29  ;;  %v3645_v55 = vadd.f32 %v3168_v36, %v456_v48  ;;  %v771_v36 = vld [vmem:[%s15145_s0 + $0x788] sm:$0xff] }
 0x23d   :  { %v3543_v33 = vadd.f32 %v2760_v26, %v354_v19  ;;  %v2762_v34 = vpop.f32.mrb[161].mxu0  ;;  %v4047_v19 = vld [vmem:[#allocation2 + $0x220] sm:$0xff] }
 0x23e   :  { %v2763_v39 = vpop.f32.mrb[162].mxu0  ;;  %v4370_v31 = vsel %vm17_vm3, %v4047_v19, 0.0  ;;  %v4369_v34 = vadd.f32 %v4368_v25, %v4367_v18  ;;  %3902 = vst.msk [vmem:[#allocation2 + $0x5b0] sm:$0xff] %vm17_vm3, %v3645_v55  ;;  %v4056_v55 = vld [vmem:[#allocation2 + $0x268] sm:$0xff]  ;;  %v4057_v58 = vld [vmem:[#allocation2 + $0x270] sm:$0xff] }
 0x23f   :  { %3800 = vst.msk [vmem:[#allocation2 + $0x280] sm:$0xff] %vm17_vm3, %v3543_v33  ;;  %v3544_v40 = vadd.f32 %v2763_v39, %v355_v27  ;;  %v2765_v41 = vpop.f32.mrb[163].mxu0  ;;  %v360_v39 = vld [vmem:[#allocation2 + $0x2b0] sm:$0xff]  ;;  %v4390_v8 = vsel %vm17_vm3, %v4057_v58, 0.0 }
 0x240   :  { %v4371_v37 = vadd.f32 %v4370_v31, %v4369_v34  ;;  %v4372_v41 = vsel %vm17_vm3, %v4048_v35, 0.0  ;;  %v364_v31 = vld [vmem:[#allocation2 + $0x2d0] sm:$0xff]  ;;  %v770_v35 = vld [vmem:[%s15145_s0 + $0x780] sm:$0xff] }
 0x241   :  { %3801 = vst.msk [vmem:[#allocation2 + $0x288] sm:$0xff] %vm17_vm3, %v3544_v40  ;;  %v3170_v40 = vpop.f32.mrb[109].mxu1  ;;  %v7835_v44 = vcombine.low %v770_v35, %v771_v36 }
 0x242   :  { %3375 = vmatmul.mubr.bf16.gmra.mrb[212].mxu1 %v7829_v24  ;;  %v3171_v42 = vpop.f32.mrb[110].mxu1  ;;  %v4373_v57 = vadd.f32 %v4372_v41, %v4371_v37  ;;  %v8842_v37 = vld [vmem:[%s15145_s0 + $0x784] ss:$8 sps:$4 sm:$0xff]   ;;  %v460_v41 = vld [vmem:[#allocation2 + $0x5d0] sm:$0xff] }
 0x243   :  { %v3173_v50 = vpop.f32.mrb[111].mxu1  ;;  %7979 = vmatprep.mubr.msk.bf16.mxu1 %vm2014_vm0, %v8838_v45 }
 0x244   :  { %v2768_v56 = vpop.f32.mrb[164].mxu0  ;;  %v3176_v1 = vpop.f32.mrb[112].mxu1 }
 0x245   :  { %v3545_v61 = vadd.f32 %v2768_v56, %v356_v46  ;;  %v2770_v62 = vpop.f32.mrb[165].mxu0  ;;  %v3646_v56 = vadd.f32 %v3171_v42, %v457_v49  ;;  %v3178_v4 = vpop.f32.mrb[113].mxu1  ;;  %v3647_v19 = vadd.f32 %v3176_v1, %v458_v13  ;;  %v461_v42 = vld [vmem:[#allocation2 + $0x5d8] sm:$0xff] }
 0x246   :  { %v2771_v3 = vpop.f32.mrb[166].mxu0  ;;  %v4375_v62 = vadd.f32 %v4374_v52, %v4373_v57  ;;  %v8844_v1 = vld [vmem:[%s15145_s0 + $0x794] ss:$8 sps:$4 sm:$0xff]   ;;  %v462_v4 = vld [vmem:[#allocation2 + $0x5e0] sm:$0xff] }
 0x247   :  { %3802 = vst.msk [vmem:[#allocation2 + $0x290] sm:$0xff] %vm17_vm3, %v3545_v61  ;;  %v3546_v5 = vadd.f32 %v2771_v3, %v357_v47  ;;  %v2773_v6 = vpop.f32.mrb[167].mxu0  ;;  %v361_v47 = vld [vmem:[#allocation2 + $0x2b8] sm:$0xff]  ;;  %3903 = vst.msk [vmem:[#allocation2 + $0x5b8] sm:$0xff] %vm17_vm3, %v3646_v56  ;;  %v363_v3 = vld [vmem:[#allocation2 + $0x2c8] sm:$0xff] }
 0x248   :  { %v3179_v6 = vpop.f32.mrb[114].mxu1  ;;  %v4377_v10 = vadd.f32 %v4376_v0, %v4375_v62  ;;  %3904 = vst.msk [vmem:[#allocation2 + $0x5c0] sm:$0xff] %vm17_vm3, %v3647_v19  ;;  %v773_v0 = vld [vmem:[%s15145_s0 + $0x798] sm:$0xff]  ;;  %v4059_v19 = vld [vmem:[#allocation2 + $0x280] sm:$0xff] }
 0x249   :  { %3803 = vst.msk [vmem:[#allocation2 + $0x298] sm:$0xff] %vm17_vm3, %v3546_v5  ;;  %v4378_v5 = vsel %vm17_vm3, %v4051_v63, 0.0  ;;  %v3181_v15 = vpop.f32.mrb[115].mxu1  ;;  %v772_v63 = vld [vmem:[%s15145_s0 + $0x790] sm:$0xff] }
 0x24a   :  { %3383 = vmatmul.mubr.bf16.gmra.mrb[216].mxu1 %v7831_v51  ;;  %v4379_v21 = vadd.f32 %v4378_v5, %v4377_v10  ;;  %v463_v5 = vld [vmem:[#allocation2 + $0x5e8] sm:$0xff]  ;;  %v7837_v7 = vcombine.low %v772_v63, %v773_v0 }
 0x24b   :  { %7980 = vmatprep.mubr.msk.bf16.mxu1 %vm2014_vm0, %v8840_v9 }
 0x24c   :  { %v2776_v20 = vpop.f32.mrb[168].mxu0 }
 0x24d   :  { %v3547_v26 = vadd.f32 %v2776_v20, %v358_v11  ;;  %v2778_v27 = vpop.f32.mrb[169].mxu0  ;;  %v4052_v11 = vld [vmem:[#allocation2 + $0x248] sm:$0xff]  ;;  %v3648_v20 = vadd.f32 %v3179_v6, %v459_v14  ;;  %v4058_v14 = vld [vmem:[#allocation2 + $0x278] sm:$0xff] }
 0x24e   :  { %v2779_v30 = vpop.f32.mrb[170].mxu0  ;;  %v4380_v24 = vsel %vm17_vm3, %v4052_v11, 0.0  ;;  %v4382_v27 = vsel %vm17_vm3, %v4053_v22, 0.0  ;;  %v3184_v28 = vpop.f32.mrb[116].mxu1  ;;  %v368_v22 = vld [vmem:[#allocation2 + $0x2f0] sm:$0xff] }
 0x24f   :  { %3804 = vst.msk [vmem:[#allocation2 + $0x2a0] sm:$0xff] %vm17_vm3, %v3547_v26  ;;  %v3548_v32 = vadd.f32 %v2779_v30, %v359_v12  ;;  %v2781_v33 = vpop.f32.mrb[171].mxu0  ;;  %3905 = vst.msk [vmem:[#allocation2 + $0x5c8] sm:$0xff] %vm17_vm3, %v3648_v20  ;;  %v4381_v29 = vadd.f32 %v4380_v24, %v4379_v21  ;;  %v4054_v30 = vld [vmem:[#allocation2 + $0x258] sm:$0xff]  ;;  %v3649_v48 = vadd.f32 %v3184_v28, %v460_v41  ;;  %v4392_v20 = vsel %vm17_vm3, %v4058_v14, 0.0  ;;  %v775_v28 = vld [vmem:[%s15145_s0 + $0x7a8] sm:$0xff] }
 0x250   :  { %v3186_v33 = vpop.f32.mrb[117].mxu1  ;;  %v4384_v45 = vsel %vm17_vm3, %v4054_v30, 0.0 }
 0x251   :  { %3805 = vst.msk [vmem:[#allocation2 + $0x2a8] sm:$0xff] %vm17_vm3, %v3548_v32  ;;  %v365_v32 = vld [vmem:[#allocation2 + $0x2d8] sm:$0xff]  ;;  %v3187_v34 = vpop.f32.mrb[118].mxu1  ;;  %v4383_v38 = vadd.f32 %v4382_v27, %v4381_v29  ;;  %3906 = vst.msk [vmem:[#allocation2 + $0x5d0] sm:$0xff] %vm17_vm3, %v3649_v48  ;;  %v774_v27 = vld [vmem:[%s15145_s0 + $0x7a0] sm:$0xff] }
 0x252   :  { %3391 = vmatmul.mubr.bf16.gmra.mrb[220].mxu1 %v7833_v16  ;;  %v3189_v43 = vpop.f32.mrb[119].mxu1  ;;  %v3650_v49 = vadd.f32 %v3187_v34, %v461_v42  ;;  %v8846_v29 = vld [vmem:[%s15145_s0 + $0x7a4] ss:$8 sps:$4 sm:$0xff]   ;;  %v464_v33 = vld [vmem:[#allocation2 + $0x5f0] sm:$0xff]  ;;  %v465_v34 = vld [vmem:[#allocation2 + $0x5f8] sm:$0xff]  ;;  %v7839_v36 = vcombine.low %v774_v27, %v775_v28 }
 0x253   :  { %7981 = vmatprep.mubr.msk.bf16.mxu1 %vm2014_vm0, %v8842_v37  ;;  %v4061_v42 = vld [vmem:[#allocation2 + $0x290] sm:$0xff] }
 0x254   :  { %v2784_v46 = vpop.f32.mrb[172].mxu0  ;;  %3907 = vst.msk [vmem:[#allocation2 + $0x5d8] sm:$0xff] %vm17_vm3, %v3650_v49 }
 0x255   :  { %v3549_v53 = vadd.f32 %v2784_v46, %v360_v39  ;;  %v2786_v54 = vpop.f32.mrb[173].mxu0  ;;  %v4055_v39 = vld [vmem:[#allocation2 + $0x260] sm:$0xff] }
 0x256   :  { %v2787_v59 = vpop.f32.mrb[174].mxu0  ;;  %v4386_v51 = vsel %vm17_vm3, %v4055_v39, 0.0  ;;  %v4385_v54 = vadd.f32 %v4384_v45, %v4383_v38 }
 0x257   :  { %3806 = vst.msk [vmem:[#allocation2 + $0x2b0] sm:$0xff] %vm17_vm3, %v3549_v53  ;;  %v3550_v60 = vadd.f32 %v2787_v59, %v361_v47  ;;  %v2789_v61 = vpop.f32.mrb[175].mxu0  ;;  %v366_v59 = vld [vmem:[#allocation2 + $0x2e0] sm:$0xff] }
 0x258   :  { %v4387_v57 = vadd.f32 %v4386_v51, %v4385_v54  ;;  %v4388_v61 = vsel %vm17_vm3, %v4056_v55, 0.0  ;;  %v370_v51 = vld [vmem:[#allocation2 + $0x300] sm:$0xff]  ;;  %v371_v54 = vld [vmem:[#allocation2 + $0x308] sm:$0xff] }
 0x259   :  { %3807 = vst.msk [vmem:[#allocation2 + $0x2b8] sm:$0xff] %vm17_vm3, %v3550_v60 }
 0x25a   :  { %3399 = vmatmul.mubr.bf16.gmra.mrb[224].mxu1 %v7835_v44  ;;  %v4389_v13 = vadd.f32 %v4388_v61, %v4387_v57 }
 0x25b   :  { %7982 = vmatprep.mubr.msk.bf16.mxu1 %vm2014_vm0, %v8844_v1 }
 0x25c   :  { %v2792_v12 = vpop.f32.mrb[176].mxu0 }
 0x25d   :  { %v3551_v17 = vadd.f32 %v2792_v12, %v362_v2  ;;  %v2794_v18 = vpop.f32.mrb[177].mxu0  ;;  %v3192_v56 = vpop.f32.mrb[120].mxu1 }
 0x25e   :  { %v2795_v23 = vpop.f32.mrb[178].mxu0  ;;  %v3194_v60 = vpop.f32.mrb[121].mxu1  ;;  %v3651_v11 = vadd.f32 %v3192_v56, %v462_v4  ;;  %v4391_v18 = vadd.f32 %v4390_v8, %v4389_v13  ;;  %v8848_v56 = vld [vmem:[%s15145_s0 + $0x7b4] ss:$8 sps:$4 sm:$0xff]  }
 0x25f   :  { %3808 = vst.msk [vmem:[#allocation2 + $0x2c0] sm:$0xff] %vm17_vm3, %v3551_v17  ;;  %v3552_v25 = vadd.f32 %v2795_v23, %v363_v3  ;;  %v2797_v26 = vpop.f32.mrb[179].mxu0  ;;  %v3195_v62 = vpop.f32.mrb[122].mxu1  ;;  %v367_v3 = vld [vmem:[#allocation2 + $0x2e8] sm:$0xff]  ;;  %v369_v23 = vld [vmem:[#allocation2 + $0x2f8] sm:$0xff]  ;;  %v372_v13 = vld [vmem:[#allocation2 + $0x310] sm:$0xff] }
 0x260   :  { %v3197_v6 = vpop.f32.mrb[123].mxu1  ;;  %v3652_v12 = vadd.f32 %v3195_v62, %v463_v5  ;;  %3908 = vst.msk [vmem:[#allocation2 + $0x5e0] sm:$0xff] %vm17_vm3, %v3651_v11  ;;  %v4393_v30 = vadd.f32 %v4392_v20, %v4391_v18  ;;  %v467_v60 = vld [vmem:[#allocation2 + $0x608] sm:$0xff]  ;;  %v8850_v62 = vld [vmem:[%s15145_s0 + $0x7b0] ss:$8 sps:$4 sm:$0xff]  }
 0x261   :  { %3809 = vst.msk [vmem:[#allocation2 + $0x2c8] sm:$0xff] %vm17_vm3, %v3552_v25  ;;  %v4394_v25 = vsel %vm17_vm3, %v4059_v19, 0.0  ;;  %v8851_v18 = vld [vmem:[%s15145_s0 + $0x7c4] ss:$8 sps:$4 sm:$0xff]   ;;  %v468_v20 = vld [vmem:[#allocation2 + $0x610] sm:$0xff] }
 0x262   :  { %3407 = vmatmul.mubr.bf16.gmra.mrb[228].mxu1 %v7837_v7  ;;  %3909 = vst.msk [vmem:[#allocation2 + $0x5e8] sm:$0xff] %vm17_vm3, %v3652_v12  ;;  %v4395_v41 = vadd.f32 %v4394_v25, %v4393_v30  ;;  %v4065_v12 = vld [vmem:[#allocation2 + $0x2b0] sm:$0xff]  ;;  %v4066_v30 = vld [vmem:[#allocation2 + $0x2b8] sm:$0xff] }
 0x263   :  { %7983 = vmatprep.mubr.msk.bf16.mxu1 %vm2014_vm0, %v8846_v29 }
 0x264   :  { %v2800_v40 = vpop.f32.mrb[180].mxu0 }
 0x265   :  { %v3553_v46 = vadd.f32 %v2800_v40, %v364_v31  ;;  %v2802_v47 = vpop.f32.mrb[181].mxu0  ;;  %v3200_v21 = vpop.f32.mrb[124].mxu1  ;;  %v4060_v31 = vld [vmem:[#allocation2 + $0x288] sm:$0xff] }
 0x266   :  { %v2803_v50 = vpop.f32.mrb[182].mxu0  ;;  %v3202_v24 = vpop.f32.mrb[125].mxu1  ;;  %v3653_v39 = vadd.f32 %v3200_v21, %v464_v33  ;;  %v4396_v44 = vsel %vm17_vm3, %v4060_v31, 0.0  ;;  %v4398_v47 = vsel %vm17_vm3, %v4061_v42, 0.0  ;;  %v469_v21 = vld [vmem:[#allocation2 + $0x618] sm:$0xff]  ;;  %v375_v42 = vld [vmem:[#allocation2 + $0x328] sm:$0xff] }
 0x267   :  { %3810 = vst.msk [vmem:[#allocation2 + $0x2d0] sm:$0xff] %vm17_vm3, %v3553_v46  ;;  %v3554_v52 = vadd.f32 %v2803_v50, %v365_v32  ;;  %v2805_v53 = vpop.f32.mrb[183].mxu0  ;;  %v3203_v26 = vpop.f32.mrb[126].mxu1  ;;  %v4397_v49 = vadd.f32 %v4396_v44, %v4395_v41  ;;  %v4062_v50 = vld [vmem:[#allocation2 + $0x298] sm:$0xff]  ;;  %v4406_v24 = vsel %vm17_vm3, %v4065_v12, 0.0 }
 0x268   :  { %v3205_v35 = vpop.f32.mrb[127].mxu1  ;;  %v3654_v40 = vadd.f32 %v3203_v26, %v465_v34  ;;  %3910 = vst.msk [vmem:[#allocation2 + $0x5f0] sm:$0xff] %vm17_vm3, %v3653_v39  ;;  %v4063_v53 = vld [vmem:[#allocation2 + $0x2a0] sm:$0xff]  ;;  %v4400_v63 = vsel %vm17_vm3, %v4062_v50, 0.0  ;;  %v4068_v41 = vld [vmem:[#allocation2 + $0x2c8] sm:$0xff] }
 0x269   :  { %3811 = vst.msk [vmem:[#allocation2 + $0x2d8] sm:$0xff] %vm17_vm3, %v3554_v52  ;;  %v4399_v57 = vadd.f32 %v4398_v47, %v4397_v49  ;;  %v4402_v5 = vsel %vm17_vm3, %v4063_v53, 0.0  ;;  %v4067_v35 = vld [vmem:[#allocation2 + $0x2c0] sm:$0xff]  ;;  %v8854_v44 = vld [vmem:[%s15145_s0 + $0x7d4] ss:$8 sps:$4 sm:$0xff]  }
 0x26a   :  { %3415 = vmatmul.mubr.bf16.gmra.mrb[232].mxu1 %v7839_v36  ;;  %3911 = vst.msk [vmem:[#allocation2 + $0x5f8] sm:$0xff] %vm17_vm3, %v3654_v40  ;;  %v4408_v36 = vsel %vm17_vm3, %v4066_v30, 0.0  ;;  %v4410_v40 = vsel %vm17_vm3, %v4067_v35, 0.0  ;;  %v470_v47 = vld [vmem:[#allocation2 + $0x620] sm:$0xff]  ;;  %v8856_v50 = vld [vmem:[%s15145_s0 + $0x7d0] ss:$8 sps:$4 sm:$0xff]  }
 0x26b   :  { %7984 = vmatprep.mubr.msk.bf16.mxu1 %vm2014_vm0, %v8848_v56  ;;  %v4401_v8 = vadd.f32 %v4400_v63, %v4399_v57  ;;  %v8859_v12 = vld [vmem:[%s15145_s0 + $0x7e0] ss:$8 sps:$4 sm:$0xff]  }
 0x26c   :  { %v2808_v2 = vpop.f32.mrb[184].mxu0  ;;  %v379_v30 = vld [vmem:[#allocation2 + $0x348] sm:$0xff] }
 0x26d   :  { %v3555_v9 = vadd.f32 %v2808_v2, %v366_v59  ;;  %v2810_v10 = vpop.f32.mrb[185].mxu0  ;;  %v3208_v48 = vpop.f32.mrb[128].mxu1  ;;  %v466_v59 = vld [vmem:[#allocation2 + $0x600] sm:$0xff]  ;;  %v4403_v11 = vadd.f32 %v4402_v5, %v4401_v8  ;;  %v475_v35 = vld [vmem:[#allocation2 + $0x648] sm:$0xff] }
 0x26e   :  { %v2811_v15 = vpop.f32.mrb[186].mxu0  ;;  %v3210_v52 = vpop.f32.mrb[129].mxu1  ;;  %v3655_v2 = vadd.f32 %v3208_v48, %v466_v59  ;;  %v471_v48 = vld [vmem:[#allocation2 + $0x628] sm:$0xff]  ;;  %v4069_v56 = vld [vmem:[#allocation2 + $0x2d0] sm:$0xff] }
 0x26f   :  { %3812 = vst.msk [vmem:[#allocation2 + $0x2e0] sm:$0xff] %vm17_vm3, %v3555_v9  ;;  %v3556_v16 = vadd.f32 %v2811_v15, %v367_v3  ;;  %v2813_v17 = vpop.f32.mrb[187].mxu0  ;;  %v3211_v55 = vpop.f32.mrb[130].mxu1  ;;  %v4064_v9 = vld [vmem:[#allocation2 + $0x2a8] sm:$0xff] }
 0x270   :  { %v3213_v61 = vpop.f32.mrb[131].mxu1  ;;  %v3656_v3 = vadd.f32 %v3211_v55, %v467_v60  ;;  %3912 = vst.msk [vmem:[#allocation2 + $0x600] sm:$0xff] %vm17_vm3, %v3655_v2  ;;  %v4404_v15 = vsel %vm17_vm3, %v4064_v9, 0.0  ;;  %v472_v9 = vld [vmem:[#allocation2 + $0x630] sm:$0xff] }
 0x271   :  { %3813 = vst.msk [vmem:[#allocation2 + $0x2e8] sm:$0xff] %vm17_vm3, %v3556_v16  ;;  %v373_v16 = vld [vmem:[#allocation2 + $0x318] sm:$0xff]  ;;  %v4405_v29 = vadd.f32 %v4404_v15, %v4403_v11  ;;  %v4414_v61 = vsel %vm17_vm3, %v4069_v56, 0.0 }
 0x272   :  { %3423 = vmatmul.mubr.bf16.gmra.mrb[236].mxu1 %v8850_v62  ;;  %3913 = vst.msk [vmem:[#allocation2 + $0x608] sm:$0xff] %vm17_vm3, %v3656_v3 }
 0x273   :  { %7985 = vmatprep.mubr.msk.bf16.mxu1 %vm2014_vm0, %v8851_v18  ;;  %v4407_v34 = vadd.f32 %v4406_v24, %v4405_v29 }
 0x274   :  { %v2816_v32 = vpop.f32.mrb[188].mxu0 }
 0x275   :  { %v3557_v37 = vadd.f32 %v2816_v32, %v368_v22  ;;  %v2818_v38 = vpop.f32.mrb[189].mxu0  ;;  %v3216_v10 = vpop.f32.mrb[132].mxu1 }
 0x276   :  { %v2819_v43 = vpop.f32.mrb[190].mxu0  ;;  %v3218_v14 = vpop.f32.mrb[133].mxu1  ;;  %v3657_v27 = vadd.f32 %v3216_v10, %v468_v20  ;;  %v374_v38 = vld [vmem:[#allocation2 + $0x320] sm:$0xff]  ;;  %v473_v10 = vld [vmem:[#allocation2 + $0x638] sm:$0xff] }
 0x277   :  { %3814 = vst.msk [vmem:[#allocation2 + $0x2f0] sm:$0xff] %vm17_vm3, %v3557_v37  ;;  %v3558_v45 = vadd.f32 %v2819_v43, %v369_v23  ;;  %v2821_v46 = vpop.f32.mrb[191].mxu0  ;;  %v3219_v17 = vpop.f32.mrb[134].mxu1  ;;  %v8853_v23 = vld [vmem:[%s15145_s0 + $0x7c0] ss:$8 sps:$4 sm:$0xff]  }
 0x278   :  { %v3221_v22 = vpop.f32.mrb[135].mxu1  ;;  %v3658_v28 = vadd.f32 %v3219_v17, %v469_v21  ;;  %3914 = vst.msk [vmem:[#allocation2 + $0x610] sm:$0xff] %vm17_vm3, %v3657_v27  ;;  %v4071_v3 = vld [vmem:[#allocation2 + $0x2e0] sm:$0xff] }
 0x279   :  { %3815 = vst.msk [vmem:[#allocation2 + $0x2f8] sm:$0xff] %vm17_vm3, %v3558_v45  ;;  %v4409_v45 = vadd.f32 %v4408_v36, %v4407_v34  ;;  %v378_v27 = vld [vmem:[#allocation2 + $0x340] sm:$0xff] }
 0x27a   :  { %3431 = vmatmul.mubr.bf16.gmra.mrb[240].mxu1 %v8853_v23  ;;  %3915 = vst.msk [vmem:[#allocation2 + $0x618] sm:$0xff] %vm17_vm3, %v3658_v28  ;;  %v4072_v23 = vld [vmem:[#allocation2 + $0x2e8] sm:$0xff]  ;;  %v474_v34 = vld [vmem:[#allocation2 + $0x640] sm:$0xff] }
 0x27b   :  { %7986 = vmatprep.mubr.msk.bf16.mxu1 %vm2014_vm0, %v8854_v44  ;;  %v4411_v55 = vadd.f32 %v4410_v40, %v4409_v45  ;;  %v4420_v29 = vsel %vm17_vm3, %v4072_v23, 0.0 }
 0x27c   :  { %v2824_v58 = vpop.f32.mrb[192].mxu0 }
 0x27d   :  { %v3559_v0 = vadd.f32 %v2824_v58, %v370_v51  ;;  %v2826_v1 = vpop.f32.mrb[193].mxu0  ;;  %v3224_v37 = vpop.f32.mrb[136].mxu1  ;;  %v4412_v58 = vsel %vm17_vm3, %v4068_v41, 0.0 }
 0x27e   :  { %v2827_v4 = vpop.f32.mrb[194].mxu0  ;;  %v3226_v39 = vpop.f32.mrb[137].mxu1  ;;  %v3659_v53 = vadd.f32 %v3224_v37, %v470_v47  ;;  %v4413_v63 = vadd.f32 %v4412_v58, %v4411_v55  ;;  %v376_v1 = vld [vmem:[#allocation2 + $0x330] sm:$0xff]  ;;  %v381_v55 = vld [vmem:[#allocation2 + $0x358] sm:$0xff] }
 0x27f   :  { %3816 = vst.msk [vmem:[#allocation2 + $0x300] sm:$0xff] %vm17_vm3, %v3559_v0  ;;  %v3560_v6 = vadd.f32 %v2827_v4, %v371_v54  ;;  %v2829_v7 = vpop.f32.mrb[195].mxu0  ;;  %v3227_v43 = vpop.f32.mrb[138].mxu1  ;;  %v4070_v0 = vld [vmem:[#allocation2 + $0x2d8] sm:$0xff] }
 0x280   :  { %v3229_v49 = vpop.f32.mrb[139].mxu1  ;;  %v3660_v54 = vadd.f32 %v3227_v43, %v471_v48  ;;  %3916 = vst.msk [vmem:[#allocation2 + $0x620] sm:$0xff] %vm17_vm3, %v3659_v53  ;;  %v377_v4 = vld [vmem:[#allocation2 + $0x338] sm:$0xff]  ;;  %v4415_v7 = vadd.f32 %v4414_v61, %v4413_v63 }
 0x281   :  { %3817 = vst.msk [vmem:[#allocation2 + $0x308] sm:$0xff] %vm17_vm3, %v3560_v6  ;;  %v8857_v6 = vld [vmem:[%s15145_s0 + $0x7e4] ss:$8 sps:$4 sm:$0xff]   ;;  %v8862_v37 = vld [vmem:[%s15145_s0 + $0x7f0] ss:$8 sps:$4 sm:$0xff]  }
 0x282   :  { %3439 = vmatmul.mubr.bf16.gmra.mrb[244].mxu1 %v8856_v50  ;;  %3917 = vst.msk [vmem:[#allocation2 + $0x628] sm:$0xff] %vm17_vm3, %v3660_v54  ;;  %v4074_v44 = vld [vmem:[#allocation2 + $0x2f8] sm:$0xff] }
 0x283   :  { %7987 = vmatprep.mubr.msk.bf16.mxu1 %vm2014_vm0, %v8857_v6  ;;  %v4424_v50 = vsel %vm17_vm3, %v4074_v44, 0.0  ;;  %v477_v61 = vld [vmem:[#allocation2 + $0x658] sm:$0xff] }
 0x284   :  { %v2832_v19 = vpop.f32.mrb[196].mxu0  ;;  %v481_v44 = vld [vmem:[#allocation2 + $0x678] sm:$0xff] }
 0x285   :  { %v3561_v25 = vadd.f32 %v2832_v19, %v372_v13  ;;  %v2834_v26 = vpop.f32.mrb[197].mxu0  ;;  %v3232_v62 = vpop.f32.mrb[140].mxu1  ;;  %v4416_v13 = vsel %vm17_vm3, %v4070_v0, 0.0  ;;  %v4418_v19 = vsel %vm17_vm3, %v4071_v3, 0.0 }
 0x286   :  { %v2835_v31 = vpop.f32.mrb[198].mxu0  ;;  %v3234_v2 = vpop.f32.mrb[141].mxu1  ;;  %v4417_v22 = vadd.f32 %v4416_v13, %v4415_v7  ;;  %v4073_v26 = vld [vmem:[#allocation2 + $0x2f0] sm:$0xff]  ;;  %v4075_v49 = vld [vmem:[#allocation2 + $0x300] sm:$0xff] }
 0x287   :  { %3818 = vst.msk [vmem:[#allocation2 + $0x310] sm:$0xff] %vm17_vm3, %v3561_v25  ;;  %v3562_v32 = vadd.f32 %v2835_v31, %v373_v16  ;;  %v2837_v33 = vpop.f32.mrb[199].mxu0  ;;  %v3235_v5 = vpop.f32.mrb[142].mxu1  ;;  %v3661_v16 = vadd.f32 %v3232_v62, %v472_v9  ;;  %v4426_v54 = vsel %vm17_vm3, %v4075_v49, 0.0  ;;  %v382_v13 = vld [vmem:[#allocation2 + $0x360] sm:$0xff] }
 0x288   :  { %v3237_v11 = vpop.f32.mrb[143].mxu1  ;;  %v3662_v17 = vadd.f32 %v3235_v5, %v473_v10  ;;  %v4419_v25 = vadd.f32 %v4418_v19, %v4417_v22  ;;  %v4076_v58 = vld [vmem:[#allocation2 + $0x308] sm:$0xff] }
 0x289   :  { %3819 = vst.msk [vmem:[#allocation2 + $0x318] sm:$0xff] %vm17_vm3, %v3562_v32  ;;  %3918 = vst.msk [vmem:[#allocation2 + $0x630] sm:$0xff] %vm17_vm3, %v3661_v16  ;;  %v8860_v32 = vld [vmem:[%s15145_s0 + $0x7f4] ss:$8 sps:$4 sm:$0xff]   ;;  %v4428_v6 = vsel %vm17_vm3, %v4076_v58, 0.0  ;;  %s9148_s0 = smov [#allocation3]  }
 0x28a   :  { %3447 = vmatmul.mubr.bf16.gmra.mrb[248].mxu1 %v8859_v12  ;;  %3919 = vst.msk [vmem:[#allocation2 + $0x638] sm:$0xff] %vm17_vm3, %v3662_v17  ;;  %v4421_v43 = vadd.f32 %v4420_v29, %v4419_v25  ;;  %s7584_s19 = sshll.u32 %s9148_s0, 4  ;;  %s15102_s19 = int_to_ptr.vmem [resolvable:$true] %s7584_s19 }
 0x28b   :  { %7988 = vmatprep.mubr.msk.bf16.mxu1 %vm2014_vm0, %v8860_v32  ;;  %s9121_s20 = scalar_lea.vmem %s15102_s19, 16384  ;;  %p9126_p1 = scmp.lt.s32.totalorder %s15102_s19, %s15102_s19 }
 0x28c   :  { %v2840_v46 = vpop.f32.mrb[200].mxu0  ;;  %p9122_p0 = scmp.ne.s32.totalorder %s15102_s19, %s9121_s20  ;;  %p9127_p2 = scmp.lt.s32.totalorder %s9121_s20, %s9121_s20 }
 0x28d   :  { %v3563_v51 = vadd.f32 %v2840_v46, %v374_v38  ;;  %v2842_v52 = vpop.f32.mrb[201].mxu0  ;;  %v3240_v24 = vpop.f32.mrb[144].mxu1  ;;  %v4422_v38 = vsel %vm17_vm3, %v4073_v26, 0.0 }
 0x28e   :  { %v2843_v57 = vpop.f32.mrb[202].mxu0  ;;  %v3242_v28 = vpop.f32.mrb[145].mxu1  ;;  %v3663_v41 = vadd.f32 %v3240_v24, %v474_v34  ;;  %v4423_v48 = vadd.f32 %v4422_v38, %v4421_v43  ;;  %v380_v52 = vld [vmem:[#allocation2 + $0x350] sm:$0xff]  ;;  %p9128_p3 = por %p9127_p2, %p9126_p1 }
 0x28f   :  { %3820 = vst.msk [vmem:[#allocation2 + $0x320] sm:$0xff] %vm17_vm3, %v3563_v51  ;;  %v3564_v59 = vadd.f32 %v2843_v57, %v375_v42  ;;  %v2845_v60 = vpop.f32.mrb[203].mxu0  ;;  %v3243_v31 = vpop.f32.mrb[146].mxu1  ;;  %v480_v43 = vld [vmem:[#allocation2 + $0x670] sm:$0xff] }
 0x290   :  { %v3245_v36 = vpop.f32.mrb[147].mxu1  ;;  %v3664_v42 = vadd.f32 %v3243_v31, %v475_v35  ;;  %3920 = vst.msk [vmem:[#allocation2 + $0x640] sm:$0xff] %vm17_vm3, %v3663_v41  ;;  %v4425_v57 = vadd.f32 %v4424_v50, %v4423_v48  ;;  %v476_v60 = vld [vmem:[#allocation2 + $0x650] sm:$0xff]  ;;  %v4078_v12 = vld [vmem:[#allocation2 + $0x318] sm:$0xff]  ;;  %p9129_p4 = pnand %p9128_p3, %p9122_p0 }
 0x291   :  { %3821 = vst.msk [vmem:[#allocation2 + $0x328] sm:$0xff] %vm17_vm3, %v3564_v59  ;;  %v4432_v23 = vsel %vm17_vm3, %v4078_v12, 0.0 }
 0x292   :  { %3455 = vmatmul.mubr.bf16.gmra.mrb[252].mxu1 %v8862_v37  ;;  %3921 = vst.msk [vmem:[#allocation2 + $0x648] sm:$0xff] %vm17_vm3, %v3664_v42  ;;  %v4427_v3 = vadd.f32 %v4426_v54, %v4425_v57  ;;  %v384_v37 = vld [vmem:[#allocation2 + $0x370] sm:$0xff]  ;;  %v385_v42 = vld [vmem:[#allocation2 + $0x378] sm:$0xff] }
 0x294   :  { %v2848_v8 = vpop.f32.mrb[204].mxu0  ;;  %v4429_v11 = vadd.f32 %v4428_v6, %v4427_v3 }
 0x295   :  { %v3565_v14 = vadd.f32 %v2848_v8, %v376_v1  ;;  %v2850_v15 = vpop.f32.mrb[205].mxu0  ;;  %v3248_v51 = vpop.f32.mrb[148].mxu1 }
 0x296   :  { %v2851_v18 = vpop.f32.mrb[206].mxu0  ;;  %v3250_v53 = vpop.f32.mrb[149].mxu1  ;;  %v3665_v1 = vadd.f32 %v3248_v51, %v476_v60  ;;  %v383_v15 = vld [vmem:[#allocation2 + $0x368] sm:$0xff]  ;;  %v386_v60 = vld [vmem:[#allocation2 + $0x380] sm:$0xff] }
 0x297   :  { %3822 = vst.msk [vmem:[#allocation2 + $0x330] sm:$0xff] %vm17_vm3, %v3565_v14  ;;  %v3566_v20 = vadd.f32 %v2851_v18, %v377_v4  ;;  %v2853_v21 = vpop.f32.mrb[207].mxu0  ;;  %v3251_v56 = vpop.f32.mrb[150].mxu1  ;;  %v4077_v4 = vld [vmem:[#allocation2 + $0x310] sm:$0xff]  ;;  %v4079_v18 = vld [vmem:[#allocation2 + $0x320] sm:$0xff] }
 0x298   :  { %v3253_v62 = vpop.f32.mrb[151].mxu1  ;;  %v3666_v2 = vadd.f32 %v3251_v56, %v477_v61  ;;  %3922 = vst.msk [vmem:[#allocation2 + $0x650] sm:$0xff] %vm17_vm3, %v3665_v1  ;;  %v4430_v9 = vsel %vm17_vm3, %v4077_v4, 0.0  ;;  %v479_v21 = vld [vmem:[#allocation2 + $0x668] sm:$0xff]  ;;  %v4434_v29 = vsel %vm17_vm3, %v4079_v18, 0.0  ;;  %v482_v4 = vld [vmem:[#allocation2 + $0x680] sm:$0xff] }
 0x299   :  { %3823 = vst.msk [vmem:[#allocation2 + $0x338] sm:$0xff] %vm17_vm3, %v3566_v20  ;;  %v4431_v17 = vadd.f32 %v4430_v9, %v4429_v11  ;;  %v478_v20 = vld [vmem:[#allocation2 + $0x660] sm:$0xff] }
 0x29a   :  { %3923 = vst.msk [vmem:[#allocation2 + $0x658] sm:$0xff] %vm17_vm3, %v3666_v2 }
 0x29b   :  { %v4433_v32 = vadd.f32 %v4432_v23, %v4431_v17  ;;  %v389_v23 = vld [vmem:[#allocation2 + $0x398] sm:$0xff] }
 0x29c   :  { %v2856_v33 = vpop.f32.mrb[208].mxu0 }
 0x29d   :  { %v3567_v39 = vadd.f32 %v2856_v33, %v378_v27  ;;  %v2858_v40 = vpop.f32.mrb[209].mxu0  ;;  %v3256_v10 = vpop.f32.mrb[152].mxu1  ;;  %v4080_v33 = vld [vmem:[#allocation2 + $0x328] sm:$0xff]  ;;  %v4435_v35 = vadd.f32 %v4434_v29, %v4433_v32  ;;  %v485_v29 = vld [vmem:[#allocation2 + $0x698] sm:$0xff] }
 0x29e   :  { %v2859_v45 = vpop.f32.mrb[210].mxu0  ;;  %v3258_v14 = vpop.f32.mrb[153].mxu1  ;;  %v3667_v26 = vadd.f32 %v3256_v10, %v478_v20  ;;  %v4081_v36 = vld [vmem:[#allocation2 + $0x330] sm:$0xff] }
 0x29f   :  { %3824 = vst.msk [vmem:[#allocation2 + $0x340] sm:$0xff] %vm17_vm3, %v3567_v39  ;;  %v3568_v46 = vadd.f32 %v2859_v45, %v379_v30  ;;  %v2861_v47 = vpop.f32.mrb[211].mxu0  ;;  %v3259_v16 = vpop.f32.mrb[154].mxu1  ;;  %v4436_v39 = vsel %vm17_vm3, %v4080_v33, 0.0 }
 0x2a0   :  { %v3261_v22 = vpop.f32.mrb[155].mxu1  ;;  %v3668_v27 = vadd.f32 %v3259_v16, %v479_v21  ;;  %3924 = vst.msk [vmem:[#allocation2 + $0x660] sm:$0xff] %vm17_vm3, %v3667_v26  ;;  %v4437_v51 = vadd.f32 %v4436_v39, %v4435_v35  ;;  %v388_v21 = vld [vmem:[#allocation2 + $0x390] sm:$0xff] }
 0x2a1   :  { %3825 = vst.msk [vmem:[#allocation2 + $0x348] sm:$0xff] %vm17_vm3, %v3568_v46  ;;  %v4438_v46 = vsel %vm17_vm3, %v4081_v36, 0.0 }
 0x2a2   :  { %3925 = vst.msk [vmem:[#allocation2 + $0x668] sm:$0xff] %vm17_vm3, %v3668_v27  ;;  %v4439_v56 = vadd.f32 %v4438_v46, %v4437_v51  ;;  %v486_v51 = vld [vmem:[#allocation2 + $0x6a0] sm:$0xff] }
 0x2a4   :  { %v2864_v59 = vpop.f32.mrb[212].mxu0 }
 0x2a5   :  { %v3569_v63 = vadd.f32 %v2864_v59, %v380_v52  ;;  %v2866_v0 = vpop.f32.mrb[213].mxu0  ;;  %v3264_v34 = vpop.f32.mrb[156].mxu1  ;;  %v4082_v52 = vld [vmem:[#allocation2 + $0x338] sm:$0xff] }
 0x2a6   :  { %v2867_v5 = vpop.f32.mrb[214].mxu0  ;;  %v3266_v38 = vpop.f32.mrb[157].mxu1  ;;  %v3669_v49 = vadd.f32 %v3264_v34, %v480_v43  ;;  %v4083_v57 = vld [vmem:[#allocation2 + $0x340] sm:$0xff]  ;;  %v4440_v58 = vsel %vm17_vm3, %v4082_v52, 0.0  ;;  %v487_v52 = vld [vmem:[#allocation2 + $0x6a8] sm:$0xff] }
 0x2a7   :  { %3826 = vst.msk [vmem:[#allocation2 + $0x350] sm:$0xff] %vm17_vm3, %v3569_v63  ;;  %v3570_v7 = vadd.f32 %v2867_v5, %v381_v55  ;;  %v2869_v8 = vpop.f32.mrb[215].mxu0  ;;  %v3267_v40 = vpop.f32.mrb[158].mxu1  ;;  %v4442_v62 = vsel %vm17_vm3, %v4083_v57, 0.0  ;;  %v387_v63 = vld [vmem:[#allocation2 + $0x388] sm:$0xff]  ;;  %v4441_v1 = vadd.f32 %v4440_v58, %v4439_v56 }
 0x2a8   :  { %v3269_v45 = vpop.f32.mrb[159].mxu1  ;;  %v3670_v50 = vadd.f32 %v3267_v40, %v481_v44  ;;  %3926 = vst.msk [vmem:[#allocation2 + $0x670] sm:$0xff] %vm17_vm3, %v3669_v49  ;;  %v4084_v2 = vld [vmem:[#allocation2 + $0x348] sm:$0xff] }
 0x2a9   :  { %3827 = vst.msk [vmem:[#allocation2 + $0x358] sm:$0xff] %vm17_vm3, %v3570_v7  ;;  %v483_v5 = vld [vmem:[#allocation2 + $0x688] sm:$0xff]  ;;  %v4443_v11 = vadd.f32 %v4442_v62, %v4441_v1  ;;  %v4444_v14 = vsel %vm17_vm3, %v4084_v2, 0.0  ;;  %v390_v45 = vld [vmem:[#allocation2 + $0x3a0] sm:$0xff] }
 0x2aa   :  { %3927 = vst.msk [vmem:[#allocation2 + $0x678] sm:$0xff] %vm17_vm3, %v3670_v50  ;;  %v391_v50 = vld [vmem:[#allocation2 + $0x3a8] sm:$0xff] }
 0x2ac   :  { %v2872_v19 = vpop.f32.mrb[216].mxu0 }
 0x2ad   :  { %v3571_v24 = vadd.f32 %v2872_v19, %v382_v13  ;;  %v2874_v25 = vpop.f32.mrb[217].mxu0  ;;  %v3272_v59 = vpop.f32.mrb[160].mxu1  ;;  %v4445_v19 = vadd.f32 %v4444_v14, %v4443_v11 }
 0x2ae   :  { %v2875_v28 = vpop.f32.mrb[218].mxu0  ;;  %v3274_v61 = vpop.f32.mrb[161].mxu1  ;;  %v3671_v9 = vadd.f32 %v3272_v59, %v482_v4  ;;  %v4085_v12 = vld [vmem:[#allocation2 + $0x350] sm:$0xff] }
 0x2af   :  { %3828 = vst.msk [vmem:[#allocation2 + $0x360] sm:$0xff] %vm17_vm3, %v3571_v24  ;;  %v3572_v30 = vadd.f32 %v2875_v28, %v383_v15  ;;  %v2877_v31 = vpop.f32.mrb[219].mxu0  ;;  %v3275_v0 = vpop.f32.mrb[162].mxu1  ;;  %v4446_v17 = vsel %vm17_vm3, %v4085_v12, 0.0  ;;  %v484_v28 = vld [vmem:[#allocation2 + $0x690] sm:$0xff] }
 0x2b0   :  { %v3277_v6 = vpop.f32.mrb[163].mxu1  ;;  %v3672_v10 = vadd.f32 %v3275_v0, %v483_v5  ;;  %3928 = vst.msk [vmem:[#allocation2 + $0x680] sm:$0xff] %vm17_vm3, %v3671_v9  ;;  %v4086_v20 = vld [vmem:[#allocation2 + $0x358] sm:$0xff]  ;;  %v4447_v25 = vadd.f32 %v4446_v17, %v4445_v19  ;;  %v392_v4 = vld [vmem:[#allocation2 + $0x3b0] sm:$0xff] }
 0x2b1   :  { %3829 = vst.msk [vmem:[#allocation2 + $0x368] sm:$0xff] %vm17_vm3, %v3572_v30  ;;  %v4448_v31 = vsel %vm17_vm3, %v4086_v20, 0.0  ;;  %v488_v12 = vld [vmem:[#allocation2 + $0x6b0] sm:$0xff] }
 0x2b2   :  { %3929 = vst.msk [vmem:[#allocation2 + $0x688] sm:$0xff] %vm17_vm3, %v3672_v10  ;;  %v4449_v40 = vadd.f32 %v4448_v31, %v4447_v25  ;;  %v395_v31 = vld [vmem:[#allocation2 + $0x3c8] sm:$0xff] }
 0x2b4   :  { %v2880_v41 = vpop.f32.mrb[220].mxu0 }
 0x2b5   :  { %v3573_v47 = vadd.f32 %v2880_v41, %v384_v37  ;;  %v2882_v48 = vpop.f32.mrb[221].mxu0  ;;  %v3280_v18 = vpop.f32.mrb[164].mxu1 }
 0x2b6   :  { %v2883_v53 = vpop.f32.mrb[222].mxu0  ;;  %v3282_v22 = vpop.f32.mrb[165].mxu1  ;;  %v4087_v26 = vld [vmem:[#allocation2 + $0x360] sm:$0xff]  ;;  %v3673_v34 = vadd.f32 %v3280_v18, %v484_v28 }
 0x2b7   :  { %3830 = vst.msk [vmem:[#allocation2 + $0x370] sm:$0xff] %vm17_vm3, %v3573_v47  ;;  %v3574_v54 = vadd.f32 %v2883_v53, %v385_v42  ;;  %v2885_v55 = vpop.f32.mrb[223].mxu0  ;;  %v3283_v24 = vpop.f32.mrb[166].mxu1  ;;  %v4450_v37 = vsel %vm17_vm3, %v4087_v26, 0.0 }
 0x2b8   :  { %v3285_v30 = vpop.f32.mrb[167].mxu1  ;;  %v3674_v35 = vadd.f32 %v3283_v24, %v485_v29  ;;  %3930 = vst.msk [vmem:[#allocation2 + $0x690] sm:$0xff] %vm17_vm3, %v3673_v34  ;;  %v4088_v41 = vld [vmem:[#allocation2 + $0x368] sm:$0xff]  ;;  %v4451_v43 = vadd.f32 %v4450_v37, %v4449_v40  ;;  %v394_v29 = vld [vmem:[#allocation2 + $0x3c0] sm:$0xff] }
 0x2b9   :  { %3831 = vst.msk [vmem:[#allocation2 + $0x378] sm:$0xff] %vm17_vm3, %v3574_v54  ;;  %v4452_v47 = vsel %vm17_vm3, %v4088_v41, 0.0  ;;  %v491_v37 = vld [vmem:[#allocation2 + $0x6c8] sm:$0xff] }
 0x2ba   :  { %3931 = vst.msk [vmem:[#allocation2 + $0x698] sm:$0xff] %vm17_vm3, %v3674_v35  ;;  %v4453_v59 = vadd.f32 %v4452_v47, %v4451_v43 }
 0x2bc   :  { %v2888_v3 = vpop.f32.mrb[224].mxu0 }
 0x2bd   :  { %v3575_v7 = vadd.f32 %v2888_v3, %v386_v60  ;;  %v2890_v8 = vpop.f32.mrb[225].mxu0  ;;  %v3288_v42 = vpop.f32.mrb[168].mxu1 }
 0x2be   :  { %v2891_v13 = vpop.f32.mrb[226].mxu0  ;;  %v4089_v44 = vld [vmem:[#allocation2 + $0x370] sm:$0xff]  ;;  %v3290_v46 = vpop.f32.mrb[169].mxu1  ;;  %v3675_v57 = vadd.f32 %v3288_v42, %v486_v51 }
 0x2bf   :  { %3832 = vst.msk [vmem:[#allocation2 + $0x380] sm:$0xff] %vm17_vm3, %v3575_v7  ;;  %v3576_v15 = vadd.f32 %v2891_v13, %v387_v63  ;;  %v2893_v16 = vpop.f32.mrb[227].mxu0  ;;  %v3291_v48 = vpop.f32.mrb[170].mxu1  ;;  %v4454_v54 = vsel %vm17_vm3, %v4089_v44, 0.0  ;;  %v393_v7 = vld [vmem:[#allocation2 + $0x3b8] sm:$0xff] }
 0x2c0   :  { %v3293_v53 = vpop.f32.mrb[171].mxu1  ;;  %v3676_v58 = vadd.f32 %v3291_v48, %v487_v52  ;;  %v4090_v60 = vld [vmem:[#allocation2 + $0x378] sm:$0xff]  ;;  %3932 = vst.msk [vmem:[#allocation2 + $0x6a0] sm:$0xff] %vm17_vm3, %v3675_v57  ;;  %v4455_v0 = vadd.f32 %v4454_v54, %v4453_v59  ;;  %v492_v59 = vld [vmem:[#allocation2 + $0x6d0] sm:$0xff] }
 0x2c1   :  { %3833 = vst.msk [vmem:[#allocation2 + $0x388] sm:$0xff] %vm17_vm3, %v3576_v15  ;;  %v4456_v2 = vsel %vm17_vm3, %v4090_v60, 0.0  ;;  %v489_v13 = vld [vmem:[#allocation2 + $0x6b8] sm:$0xff]  ;;  %v396_v53 = vld [vmem:[#allocation2 + $0x3d0] sm:$0xff] }
 0x2c2   :  { %3933 = vst.msk [vmem:[#allocation2 + $0x6a8] sm:$0xff] %vm17_vm3, %v3676_v58  ;;  %v4457_v9 = vadd.f32 %v4456_v2, %v4455_v0  ;;  %v397_v58 = vld [vmem:[#allocation2 + $0x3d8] sm:$0xff] }
 0x2c3   :  { %v493_v60 = vld [vmem:[#allocation2 + $0x6d8] sm:$0xff] }
 0x2c4   :  { %v2896_v27 = vpop.f32.mrb[228].mxu0 }
 0x2c5   :  { %v3577_v32 = vadd.f32 %v2896_v27, %v388_v21  ;;  %v2898_v33 = vpop.f32.mrb[229].mxu0  ;;  %v3296_v3 = vpop.f32.mrb[172].mxu1 }
 0x2c6   :  { %v2899_v36 = vpop.f32.mrb[230].mxu0  ;;  %v4091_v1 = vld [vmem:[#allocation2 + $0x380] sm:$0xff]  ;;  %v3298_v5 = vpop.f32.mrb[173].mxu1  ;;  %v3677_v17 = vadd.f32 %v3296_v3, %v488_v12 }
 0x2c7   :  { %3834 = vst.msk [vmem:[#allocation2 + $0x390] sm:$0xff] %vm17_vm3, %v3577_v32  ;;  %v3578_v38 = vadd.f32 %v2899_v36, %v389_v23  ;;  %v2901_v39 = vpop.f32.mrb[231].mxu0  ;;  %v4458_v6 = vsel %vm17_vm3, %v4091_v1, 0.0  ;;  %v3299_v8 = vpop.f32.mrb[174].mxu1  ;;  %v490_v36 = vld [vmem:[#allocation2 + $0x6c0] sm:$0xff] }
 0x2c8   :  { %v4092_v10 = vld [vmem:[#allocation2 + $0x388] sm:$0xff]  ;;  %v3301_v14 = vpop.f32.mrb[175].mxu1  ;;  %v3678_v18 = vadd.f32 %v3299_v8, %v489_v13  ;;  %v4459_v19 = vadd.f32 %v4458_v6, %v4457_v9  ;;  %3934 = vst.msk [vmem:[#allocation2 + $0x6b0] sm:$0xff] %vm17_vm3, %v3677_v17  ;;  %v398_v12 = vld [vmem:[#allocation2 + $0x3e0] sm:$0xff] }
 0x2c9   :  { %3835 = vst.msk [vmem:[#allocation2 + $0x398] sm:$0xff] %vm17_vm3, %v3578_v38  ;;  %v4460_v22 = vsel %vm17_vm3, %v4092_v10, 0.0 }
 0x2ca   :  { %3935 = vst.msk [vmem:[#allocation2 + $0x6b8] sm:$0xff] %vm17_vm3, %v3678_v18  ;;  %v4461_v27 = vadd.f32 %v4460_v22, %v4459_v19 }
 0x2cc   :  { %v2904_v49 = vpop.f32.mrb[232].mxu0 }
 0x2cd   :  { %v3579_v55 = vadd.f32 %v2904_v49, %v390_v45  ;;  %v2906_v56 = vpop.f32.mrb[233].mxu0  ;;  %v3304_v26 = vpop.f32.mrb[176].mxu1 }
 0x2ce   :  { %v2907_v61 = vpop.f32.mrb[234].mxu0  ;;  %v4093_v20 = vld [vmem:[#allocation2 + $0x390] sm:$0xff]  ;;  %v3306_v30 = vpop.f32.mrb[177].mxu1  ;;  %v3679_v42 = vadd.f32 %v3304_v26, %v490_v36 }
 0x2cf   :  { %3836 = vst.msk [vmem:[#allocation2 + $0x3a0] sm:$0xff] %vm17_vm3, %v3579_v55  ;;  %v3580_v62 = vadd.f32 %v2907_v61, %v391_v50  ;;  %v2909_v63 = vpop.f32.mrb[235].mxu0  ;;  %v4462_v25 = vsel %vm17_vm3, %v4093_v20, 0.0  ;;  %v3307_v32 = vpop.f32.mrb[178].mxu1  ;;  %v494_v20 = vld [vmem:[#allocation2 + $0x6e0] sm:$0xff] }
 0x2d0   :  { %v4094_v28 = vld [vmem:[#allocation2 + $0x398] sm:$0xff]  ;;  %v4463_v33 = vadd.f32 %v4462_v25, %v4461_v27  ;;  %v3309_v38 = vpop.f32.mrb[179].mxu1  ;;  %v3680_v43 = vadd.f32 %v3307_v32, %v491_v37  ;;  %3936 = vst.msk [vmem:[#allocation2 + $0x6c0] sm:$0xff] %vm17_vm3, %v3679_v42  ;;  %v400_v37 = vld [vmem:[#allocation2 + $0x3f0] sm:$0xff] }
 0x2d1   :  { %3837 = vst.msk [vmem:[#allocation2 + $0x3a8] sm:$0xff] %vm17_vm3, %v3580_v62  ;;  %v4464_v39 = vsel %vm17_vm3, %v4094_v28, 0.0  ;;  %v401_v42 = vld [vmem:[#allocation2 + $0x3f8] sm:$0xff] }
 0x2d2   :  { %3937 = vst.msk [vmem:[#allocation2 + $0x6c8] sm:$0xff] %vm17_vm3, %v3680_v43  ;;  %v4465_v48 = vadd.f32 %v4464_v39, %v4463_v33  ;;  %v496_v43 = vld [vmem:[#allocation2 + $0x6f0] sm:$0xff] }
 0x2d4   :  { %v2912_v11 = vpop.f32.mrb[236].mxu0 }
 0x2d5   :  { %v3581_v15 = vadd.f32 %v2912_v11, %v392_v4  ;;  %v2914_v16 = vpop.f32.mrb[237].mxu0  ;;  %v3312_v50 = vpop.f32.mrb[180].mxu1 }
 0x2d6   :  { %v2915_v21 = vpop.f32.mrb[238].mxu0  ;;  %v4095_v34 = vld [vmem:[#allocation2 + $0x3a0] sm:$0xff]  ;;  %v3314_v54 = vpop.f32.mrb[181].mxu1  ;;  %v3681_v1 = vadd.f32 %v3312_v50, %v492_v59 }
 0x2d7   :  { %3838 = vst.msk [vmem:[#allocation2 + $0x3b0] sm:$0xff] %vm17_vm3, %v3581_v15  ;;  %v3582_v23 = vadd.f32 %v2915_v21, %v393_v7  ;;  %v2917_v24 = vpop.f32.mrb[239].mxu0  ;;  %v4466_v45 = vsel %vm17_vm3, %v4095_v34, 0.0  ;;  %v3315_v56 = vpop.f32.mrb[182].mxu1  ;;  %v399_v15 = vld [vmem:[#allocation2 + $0x3e8] sm:$0xff] }
 0x2d8   :  { %v4096_v49 = vld [vmem:[#allocation2 + $0x3a8] sm:$0xff]  ;;  %v4467_v51 = vadd.f32 %v4466_v45, %v4465_v48  ;;  %v3317_v61 = vpop.f32.mrb[183].mxu1  ;;  %v3682_v2 = vadd.f32 %v3315_v56, %v493_v60  ;;  %3938 = vst.msk [vmem:[#allocation2 + $0x6d0] sm:$0xff] %vm17_vm3, %v3681_v1 }
 0x2d9   :  { %3839 = vst.msk [vmem:[#allocation2 + $0x3b8] sm:$0xff] %vm17_vm3, %v3582_v23  ;;  %v4468_v55 = vsel %vm17_vm3, %v4096_v49, 0.0  ;;  %v495_v21 = vld [vmem:[#allocation2 + $0x6e8] sm:$0xff] }
 0x2da   :  { %v4469_v3 = vadd.f32 %v4468_v55, %v4467_v51  ;;  %3939 = vst.msk [vmem:[#allocation2 + $0x6d8] sm:$0xff] %vm17_vm3, %v3682_v2 }
 0x2dc   :  { %v2920_v35 = vpop.f32.mrb[240].mxu0 }
 0x2dd   :  { %v3583_v40 = vadd.f32 %v2920_v35, %v394_v29  ;;  %v2922_v41 = vpop.f32.mrb[241].mxu0  ;;  %v3320_v11 = vpop.f32.mrb[184].mxu1 }
 0x2de   :  { %v2923_v44 = vpop.f32.mrb[242].mxu0  ;;  %v4097_v52 = vld [vmem:[#allocation2 + $0x3b0] sm:$0xff]  ;;  %v3322_v13 = vpop.f32.mrb[185].mxu1  ;;  %v3683_v25 = vadd.f32 %v3320_v11, %v494_v20  ;;  %v501_v20 = vld [vmem:[#allocation2 + $0x718] sm:$0xff] }
 0x2df   :  { %3840 = vst.msk [vmem:[#allocation2 + $0x3c0] sm:$0xff] %vm17_vm3, %v3583_v40  ;;  %v3584_v46 = vadd.f32 %v2923_v44, %v395_v31  ;;  %v2925_v47 = vpop.f32.mrb[243].mxu0  ;;  %v4470_v62 = vsel %vm17_vm3, %v4097_v52, 0.0  ;;  %v3323_v16 = vpop.f32.mrb[186].mxu1  ;;  %v497_v44 = vld [vmem:[#allocation2 + $0x6f8] sm:$0xff] }
 0x2e0   :  { %v4098_v4 = vld [vmem:[#allocation2 + $0x3b8] sm:$0xff]  ;;  %v4471_v8 = vadd.f32 %v4470_v62, %v4469_v3  ;;  %v3325_v22 = vpop.f32.mrb[187].mxu1  ;;  %v3684_v26 = vadd.f32 %v3323_v16, %v495_v21  ;;  %3940 = vst.msk [vmem:[#allocation2 + $0x6e0] sm:$0xff] %vm17_vm3, %v3683_v25 }
 0x2e1   :  { %3841 = vst.msk [vmem:[#allocation2 + $0x3c8] sm:$0xff] %vm17_vm3, %v3584_v46  ;;  %v4472_v10 = vsel %vm17_vm3, %v4098_v4, 0.0  ;;  %v4110_v25 = vld [vmem:[#allocation2 + $0x418] sm:$0xff] }
 0x2e2   :  { %v4473_v17 = vadd.f32 %v4472_v10, %v4471_v8  ;;  %3941 = vst.msk [vmem:[#allocation2 + $0x6e8] sm:$0xff] %vm17_vm3, %v3684_v26 }
 0x2e4   :  { %v2928_v57 = vpop.f32.mrb[244].mxu0 }
 0x2e5   :  { %v3585_v63 = vadd.f32 %v2928_v57, %v396_v53  ;;  %v2930_v0 = vpop.f32.mrb[245].mxu0  ;;  %v3328_v34 = vpop.f32.mrb[188].mxu1 }
 0x2e6   :  { %v2931_v5 = vpop.f32.mrb[246].mxu0  ;;  %v4099_v9 = vld [vmem:[#allocation2 + $0x3c0] sm:$0xff]  ;;  %v3330_v38 = vpop.f32.mrb[189].mxu1  ;;  %v3685_v49 = vadd.f32 %v3328_v34, %v496_v43  ;;  %v499_v0 = vld [vmem:[#allocation2 + $0x708] sm:$0xff] }
 0x2e7   :  { %3842 = vst.msk [vmem:[#allocation2 + $0x3d0] sm:$0xff] %vm17_vm3, %v3585_v63  ;;  %v3586_v6 = vadd.f32 %v2931_v5, %v397_v58  ;;  %v2933_v7 = vpop.f32.mrb[247].mxu0  ;;  %v4474_v14 = vsel %vm17_vm3, %v4099_v9, 0.0  ;;  %v3331_v39 = vpop.f32.mrb[190].mxu1  ;;  %v498_v63 = vld [vmem:[#allocation2 + $0x700] sm:$0xff] }
 0x2e8   :  { %v4100_v18 = vld [vmem:[#allocation2 + $0x3c8] sm:$0xff]  ;;  %v4475_v27 = vadd.f32 %v4474_v14, %v4473_v17  ;;  %v3333_v45 = vpop.f32.mrb[191].mxu1  ;;  %v3686_v50 = vadd.f32 %v3331_v39, %v497_v44  ;;  %3942 = vst.msk [vmem:[#allocation2 + $0x6f0] sm:$0xff] %vm17_vm3, %v3685_v49  ;;  %v4107_v7 = vld [vmem:[#allocation2 + $0x400] sm:$0xff]  ;;  %v4109_v17 = vld [vmem:[#allocation2 + $0x410] sm:$0xff] }
 0x2e9   :  { %3843 = vst.msk [vmem:[#allocation2 + $0x3d8] sm:$0xff] %vm17_vm3, %v3586_v6  ;;  %v4476_v30 = vsel %vm17_vm3, %v4100_v18, 0.0  ;;  %v502_v39 = vld [vmem:[#allocation2 + $0x720] sm:$0xff]  ;;  %v4114_v45 = vld [vmem:[#allocation2 + $0x438] sm:$0xff] }
 0x2ea   :  { %v4477_v35 = vadd.f32 %v4476_v30, %v4475_v27  ;;  %3943 = vst.msk [vmem:[#allocation2 + $0x6f8] sm:$0xff] %vm17_vm3, %v3686_v50  ;;  %v4494_v27 = vsel %vm17_vm3, %v4109_v17, 0.0  ;;  %v4496_v30 = vsel %vm17_vm3, %v4110_v25, 0.0  ;;  %v4504_v50 = vsel %vm17_vm3, %v4114_v45, 0.0 }
 0x2ec   :  { %v2936_v19 = vpop.f32.mrb[248].mxu0 }
 0x2ed   :  { %v3587_v23 = vadd.f32 %v2936_v19, %v398_v12  ;;  %v2938_v24 = vpop.f32.mrb[249].mxu0  ;;  %v3336_v58 = vpop.f32.mrb[192].mxu1  ;;  %v4108_v12 = vld [vmem:[#allocation2 + $0x408] sm:$0xff]  ;;  %v500_v19 = vld [vmem:[#allocation2 + $0x710] sm:$0xff] }
 0x2ee   :  { %v4101_v28 = vld [vmem:[#allocation2 + $0x3d0] sm:$0xff]  ;;  %v2939_v29 = vpop.f32.mrb[250].mxu0  ;;  %v3338_v60 = vpop.f32.mrb[193].mxu1  ;;  %v3687_v2 = vadd.f32 %v3336_v58, %v498_v63  ;;  %v4492_v22 = vsel %vm17_vm3, %v4108_v12, 0.0 }
 0x2ef   :  { %3844 = vst.msk [vmem:[#allocation2 + $0x3e0] sm:$0xff] %vm17_vm3, %v3587_v23  ;;  %v3588_v31 = vadd.f32 %v2939_v29, %v399_v15  ;;  %v2941_v32 = vpop.f32.mrb[251].mxu0  ;;  %v4478_v33 = vsel %vm17_vm3, %v4101_v28, 0.0  ;;  %v3339_v62 = vpop.f32.mrb[194].mxu1  ;;  %v4490_v15 = vsel %vm17_vm3, %v4107_v7, 0.0  ;;  %v4111_v28 = vld [vmem:[#allocation2 + $0x420] sm:$0xff] }
 0x2f0   :  { %v4102_v36 = vld [vmem:[#allocation2 + $0x3d8] sm:$0xff]  ;;  %v4479_v40 = vadd.f32 %v4478_v33, %v4477_v35  ;;  %v3341_v1 = vpop.f32.mrb[195].mxu1  ;;  %v3688_v3 = vadd.f32 %v3339_v62, %v499_v0  ;;  %3944 = vst.msk [vmem:[#allocation2 + $0x700] sm:$0xff] %vm17_vm3, %v3687_v2  ;;  %v4112_v32 = vld [vmem:[#allocation2 + $0x428] sm:$0xff]  ;;  %v4498_v35 = vsel %vm17_vm3, %v4111_v28, 0.0 }
 0x2f1   :  { %3845 = vst.msk [vmem:[#allocation2 + $0x3e8] sm:$0xff] %vm17_vm3, %v3588_v31  ;;  %v4480_v46 = vsel %vm17_vm3, %v4102_v36, 0.0  ;;  %v505_v60 = vld [vmem:[#allocation2 + $0x738] sm:$0xff]  ;;  %v4124_v28 = vld [vmem:[#allocation2 + $0x488] sm:$0xff] }
 0x2f2   :  { %v4481_v56 = vadd.f32 %v4480_v46, %v4479_v40  ;;  %3945 = vst.msk [vmem:[#allocation2 + $0x708] sm:$0xff] %vm17_vm3, %v3688_v3  ;;  %v503_v40 = vld [vmem:[#allocation2 + $0x728] sm:$0xff]  ;;  %v4118_v1 = vld [vmem:[#allocation2 + $0x458] sm:$0xff] }
 0x2f4   :  { %v2944_v41 = vpop.f32.mrb[252].mxu0 }
 0x2f5   :  { %v3589_v47 = vadd.f32 %v2944_v41, %v400_v37  ;;  %v2946_v48 = vpop.f32.mrb[253].mxu0  ;;  %v3344_v11 = vpop.f32.mrb[196].mxu1  ;;  %v4113_v37 = vld [vmem:[#allocation2 + $0x430] sm:$0xff] }
 0x2f6   :  { %v4103_v51 = vld [vmem:[#allocation2 + $0x3e0] sm:$0xff]  ;;  %v2947_v52 = vpop.f32.mrb[254].mxu0  ;;  %v3346_v14 = vpop.f32.mrb[197].mxu1  ;;  %v3689_v23 = vadd.f32 %v3344_v11, %v500_v19 }
 0x2f7   :  { %v4482_v53 = vsel %vm17_vm3, %v4103_v51, 0.0  ;;  %3846 = vst.msk [vmem:[#allocation2 + $0x3f0] sm:$0xff] %vm17_vm3, %v3589_v47  ;;  %v3590_v54 = vadd.f32 %v2947_v52, %v401_v42  ;;  %v2949_v55 = vpop.f32.mrb[255].mxu0  ;;  %v3347_v16 = vpop.f32.mrb[198].mxu1  ;;  %v4500_v42 = vsel %vm17_vm3, %v4112_v32, 0.0  ;;  %v4502_v47 = vsel %vm17_vm3, %v4113_v37, 0.0 }
 0x2f8   :  { %v4104_v57 = vld [vmem:[#allocation2 + $0x3e8] sm:$0xff]  ;;  %v4483_v59 = vadd.f32 %v4482_v53, %v4481_v56  ;;  %v3349_v21 = vpop.f32.mrb[199].mxu1  ;;  %v3690_v24 = vadd.f32 %v3347_v16, %v501_v20  ;;  %3946 = vst.msk [vmem:[#allocation2 + $0x710] sm:$0xff] %vm17_vm3, %v3689_v23  ;;  %v4115_v48 = vld [vmem:[#allocation2 + $0x440] sm:$0xff] }
 0x2f9   :  { %3847 = vst.msk [vmem:[#allocation2 + $0x3f8] sm:$0xff] %vm17_vm3, %v3590_v54  ;;  %v4484_v61 = vsel %vm17_vm3, %v4104_v57, 0.0  ;;  %v4116_v52 = vld [vmem:[#allocation2 + $0x448] sm:$0xff]  ;;  %v4506_v55 = vsel %vm17_vm3, %v4115_v48, 0.0  ;;  %v4117_v57 = vld [vmem:[#allocation2 + $0x450] sm:$0xff]  ;;  %v4122_v21 = vld [vmem:[#allocation2 + $0x478] sm:$0xff] }
 0x2fa   :  { %v4485_v4 = vadd.f32 %v4484_v61, %v4483_v59  ;;  %3947 = vst.msk [vmem:[#allocation2 + $0x718] sm:$0xff] %vm17_vm3, %v3690_v24  ;;  %v504_v59 = vld [vmem:[#allocation2 + $0x730] sm:$0xff]  ;;  %v4508_v62 = vsel %vm17_vm3, %v4116_v52, 0.0  ;;  %v4510_v3 = vsel %vm17_vm3, %v4117_v57, 0.0  ;;  %v507_v16 = vld [vmem:[#allocation2 + $0x748] sm:$0xff]  ;;  %v4123_v24 = vld [vmem:[#allocation2 + $0x480] sm:$0xff] }
 0x2fb   :  { %v4128_v48 = vld [vmem:[#allocation2 + $0x4a8] sm:$0xff] }
 0x2fd   :  { %v3352_v31 = vpop.f32.mrb[200].mxu1 }
 0x2fe   :  { %v4105_v5 = vld [vmem:[#allocation2 + $0x3f0] sm:$0xff]  ;;  %v3354_v34 = vpop.f32.mrb[201].mxu1  ;;  %v3691_v43 = vadd.f32 %v3352_v31, %v502_v39  ;;  %v4522_v31 = vsel %vm17_vm3, %v4123_v24, 0.0  ;;  %v4136_v24 = vld [vmem:[#allocation2 + $0x4e8] sm:$0xff] }
 0x2ff   :  { %v4486_v6 = vsel %vm17_vm3, %v4105_v5, 0.0  ;;  %v3355_v36 = vpop.f32.mrb[202].mxu1 }
 0x300   :  { %v4487_v8 = vadd.f32 %v4486_v6, %v4485_v4  ;;  %v4106_v9 = vld [vmem:[#allocation2 + $0x3f8] sm:$0xff]  ;;  %v3357_v41 = vpop.f32.mrb[203].mxu1  ;;  %v3692_v44 = vadd.f32 %v3355_v36, %v503_v40  ;;  %3948 = vst.msk [vmem:[#allocation2 + $0x720] sm:$0xff] %vm17_vm3, %v3691_v43  ;;  %v4119_v4 = vld [vmem:[#allocation2 + $0x460] sm:$0xff]  ;;  %v4512_v6 = vsel %vm17_vm3, %v4118_v1, 0.0 }
 0x301   :  { %v4488_v10 = vsel %vm17_vm3, %v4106_v9, 0.0  ;;  %v4514_v11 = vsel %vm17_vm3, %v4119_v4, 0.0  ;;  %v509_v36 = vld [vmem:[#allocation2 + $0x758] sm:$0xff]  ;;  %v4132_v4 = vld [vmem:[#allocation2 + $0x4c8] sm:$0xff] }
 0x302   :  { %v4489_v13 = vadd.f32 %v4488_v10, %v4487_v8  ;;  %3949 = vst.msk [vmem:[#allocation2 + $0x728] sm:$0xff] %vm17_vm3, %v3692_v44  ;;  %v4120_v8 = vld [vmem:[#allocation2 + $0x468] sm:$0xff]  ;;  %v4126_v41 = vld [vmem:[#allocation2 + $0x498] sm:$0xff]  ;;  %v4127_v44 = vld [vmem:[#allocation2 + $0x4a0] sm:$0xff] }
 0x304   :  { %v4491_v18 = vadd.f32 %v4490_v15, %v4489_v13  ;;  %v4121_v13 = vld [vmem:[#allocation2 + $0x470] sm:$0xff]  ;;  %v506_v15 = vld [vmem:[#allocation2 + $0x740] sm:$0xff] }
 0x305   :  { %v3360_v51 = vpop.f32.mrb[204].mxu1  ;;  %v4518_v23 = vsel %vm17_vm3, %v4121_v13, 0.0 }
 0x306   :  { %v4493_v26 = vadd.f32 %v4492_v22, %v4491_v18  ;;  %v3362_v54 = vpop.f32.mrb[205].mxu1  ;;  %v3693_v63 = vadd.f32 %v3360_v51, %v504_v59  ;;  %v4516_v18 = vsel %vm17_vm3, %v4120_v8, 0.0  ;;  %v4530_v51 = vsel %vm17_vm3, %v4127_v44, 0.0  ;;  %v4140_v44 = vld [vmem:[#allocation2 + $0x508] sm:$0xff] }
 0x307   :  { %v3363_v56 = vpop.f32.mrb[206].mxu1 }
 0x308   :  { %v4495_v29 = vadd.f32 %v4494_v27, %v4493_v26  ;;  %v3365_v61 = vpop.f32.mrb[207].mxu1  ;;  %v3694_v0 = vadd.f32 %v3363_v56, %v505_v60  ;;  %3950 = vst.msk [vmem:[#allocation2 + $0x730] sm:$0xff] %vm17_vm3, %v3693_v63  ;;  %v4520_v26 = vsel %vm17_vm3, %v4122_v21, 0.0  ;;  %v511_v56 = vld [vmem:[#allocation2 + $0x768] sm:$0xff] }
 0x309   :  { %v4130_v61 = vld [vmem:[#allocation2 + $0x4b8] sm:$0xff] }
 0x30a   :  { %v4497_v33 = vadd.f32 %v4496_v30, %v4495_v29  ;;  %3951 = vst.msk [vmem:[#allocation2 + $0x738] sm:$0xff] %vm17_vm3, %v3694_v0  ;;  %v4131_v0 = vld [vmem:[#allocation2 + $0x4c0] sm:$0xff] }
 0x30c   :  { %v4499_v38 = vadd.f32 %v4498_v35, %v4497_v33  ;;  %v4125_v33 = vld [vmem:[#allocation2 + $0x490] sm:$0xff] }
 0x30d   :  { %v3368_v7 = vpop.f32.mrb[208].mxu1  ;;  %v508_v35 = vld [vmem:[#allocation2 + $0x750] sm:$0xff]  ;;  %v4526_v43 = vsel %vm17_vm3, %v4125_v33, 0.0 }
 0x30e   :  { %v4501_v46 = vadd.f32 %v4500_v42, %v4499_v38  ;;  %v3370_v10 = vpop.f32.mrb[209].mxu1  ;;  %v3695_v19 = vadd.f32 %v3368_v7, %v506_v15  ;;  %v4524_v38 = vsel %vm17_vm3, %v4124_v28, 0.0  ;;  %v4538_v7 = vsel %vm17_vm3, %v4131_v0, 0.0  ;;  %v4144_v0 = vld [vmem:[#allocation2 + $0x528] sm:$0xff] }
 0x30f   :  { %v3371_v12 = vpop.f32.mrb[210].mxu1 }
 0x310   :  { %v4503_v49 = vadd.f32 %v4502_v47, %v4501_v46  ;;  %v3373_v17 = vpop.f32.mrb[211].mxu1  ;;  %v3696_v20 = vadd.f32 %v3371_v12, %v507_v16  ;;  %3952 = vst.msk [vmem:[#allocation2 + $0x740] sm:$0xff] %vm17_vm3, %v3695_v19  ;;  %v4528_v46 = vsel %vm17_vm3, %v4126_v41, 0.0  ;;  %v513_v12 = vld [vmem:[#allocation2 + $0x778] sm:$0xff] }
 0x311   :  { %v4134_v17 = vld [vmem:[#allocation2 + $0x4d8] sm:$0xff] }
 0x312   :  { %v4505_v53 = vadd.f32 %v4504_v50, %v4503_v49  ;;  %3953 = vst.msk [vmem:[#allocation2 + $0x748] sm:$0xff] %vm17_vm3, %v3696_v20  ;;  %v4135_v20 = vld [vmem:[#allocation2 + $0x4e0] sm:$0xff] }
 0x314   :  { %v4507_v58 = vadd.f32 %v4506_v55, %v4505_v53  ;;  %v4129_v53 = vld [vmem:[#allocation2 + $0x4b0] sm:$0xff]  ;;  %v510_v55 = vld [vmem:[#allocation2 + $0x760] sm:$0xff] }
 0x315   :  { %v3376_v27 = vpop.f32.mrb[212].mxu1  ;;  %v4534_v63 = vsel %vm17_vm3, %v4129_v53, 0.0 }
 0x316   :  { %v4509_v2 = vadd.f32 %v4508_v62, %v4507_v58  ;;  %v3378_v30 = vpop.f32.mrb[213].mxu1  ;;  %v3697_v39 = vadd.f32 %v3376_v27, %v508_v35  ;;  %v4532_v58 = vsel %vm17_vm3, %v4128_v48, 0.0  ;;  %v4546_v27 = vsel %vm17_vm3, %v4135_v20, 0.0  ;;  %v4148_v20 = vld [vmem:[#allocation2 + $0x548] sm:$0xff] }
 0x317   :  { %v3379_v32 = vpop.f32.mrb[214].mxu1 }
 0x318   :  { %v4511_v5 = vadd.f32 %v4510_v3, %v4509_v2  ;;  %v3381_v37 = vpop.f32.mrb[215].mxu1  ;;  %v3698_v40 = vadd.f32 %v3379_v32, %v509_v36  ;;  %3954 = vst.msk [vmem:[#allocation2 + $0x750] sm:$0xff] %vm17_vm3, %v3697_v39  ;;  %v4536_v2 = vsel %vm17_vm3, %v4130_v61, 0.0  ;;  %v515_v32 = vld [vmem:[#allocation2 + $0x788] sm:$0xff] }
 0x319   :  { %v4138_v37 = vld [vmem:[#allocation2 + $0x4f8] sm:$0xff] }
 0x31a   :  { %v4513_v9 = vadd.f32 %v4512_v6, %v4511_v5  ;;  %3955 = vst.msk [vmem:[#allocation2 + $0x758] sm:$0xff] %vm17_vm3, %v3698_v40  ;;  %v4139_v40 = vld [vmem:[#allocation2 + $0x500] sm:$0xff] }
 0x31c   :  { %v4515_v14 = vadd.f32 %v4514_v11, %v4513_v9  ;;  %v4133_v9 = vld [vmem:[#allocation2 + $0x4d0] sm:$0xff] }
 0x31d   :  { %v3384_v47 = vpop.f32.mrb[216].mxu1  ;;  %v512_v11 = vld [vmem:[#allocation2 + $0x770] sm:$0xff]  ;;  %v4542_v19 = vsel %vm17_vm3, %v4133_v9, 0.0 }
 0x31e   :  { %v4517_v22 = vadd.f32 %v4516_v18, %v4515_v14  ;;  %v3386_v50 = vpop.f32.mrb[217].mxu1  ;;  %v3699_v59 = vadd.f32 %v3384_v47, %v510_v55  ;;  %v4540_v14 = vsel %vm17_vm3, %v4132_v4, 0.0  ;;  %v4554_v47 = vsel %vm17_vm3, %v4139_v40, 0.0  ;;  %v4152_v40 = vld [vmem:[#allocation2 + $0x568] sm:$0xff] }
 0x31f   :  { %v3387_v52 = vpop.f32.mrb[218].mxu1 }
 0x320   :  { %v4519_v25 = vadd.f32 %v4518_v23, %v4517_v22  ;;  %v3389_v57 = vpop.f32.mrb[219].mxu1  ;;  %v3700_v60 = vadd.f32 %v3387_v52, %v511_v56  ;;  %3956 = vst.msk [vmem:[#allocation2 + $0x760] sm:$0xff] %vm17_vm3, %v3699_v59  ;;  %v4544_v22 = vsel %vm17_vm3, %v4134_v17, 0.0  ;;  %v517_v52 = vld [vmem:[#allocation2 + $0x798] sm:$0xff] }
 0x321   :  { %v4142_v57 = vld [vmem:[#allocation2 + $0x518] sm:$0xff] }
 0x322   :  { %v4521_v29 = vadd.f32 %v4520_v26, %v4519_v25  ;;  %3957 = vst.msk [vmem:[#allocation2 + $0x768] sm:$0xff] %vm17_vm3, %v3700_v60  ;;  %v4143_v60 = vld [vmem:[#allocation2 + $0x520] sm:$0xff] }
 0x324   :  { %v4523_v34 = vadd.f32 %v4522_v31, %v4521_v29  ;;  %v4137_v29 = vld [vmem:[#allocation2 + $0x4f0] sm:$0xff]  ;;  %v514_v31 = vld [vmem:[#allocation2 + $0x780] sm:$0xff] }
 0x325   :  { %v3392_v3 = vpop.f32.mrb[220].mxu1  ;;  %v4550_v39 = vsel %vm17_vm3, %v4137_v29, 0.0 }
 0x326   :  { %v4525_v42 = vadd.f32 %v4524_v38, %v4523_v34  ;;  %v3394_v6 = vpop.f32.mrb[221].mxu1  ;;  %v3701_v15 = vadd.f32 %v3392_v3, %v512_v11  ;;  %v4548_v34 = vsel %vm17_vm3, %v4136_v24, 0.0  ;;  %v4562_v3 = vsel %vm17_vm3, %v4143_v60, 0.0  ;;  %v4156_v60 = vld [vmem:[#allocation2 + $0x588] sm:$0xff] }
 0x327   :  { %v3395_v8 = vpop.f32.mrb[222].mxu1 }
 0x328   :  { %v4527_v45 = vadd.f32 %v4526_v43, %v4525_v42  ;;  %v3397_v13 = vpop.f32.mrb[223].mxu1  ;;  %v3702_v16 = vadd.f32 %v3395_v8, %v513_v12  ;;  %3958 = vst.msk [vmem:[#allocation2 + $0x770] sm:$0xff] %vm17_vm3, %v3701_v15  ;;  %v4552_v42 = vsel %vm17_vm3, %v4138_v37, 0.0  ;;  %v519_v8 = vld [vmem:[#allocation2 + $0x7a8] sm:$0xff] }
 0x329   :  { %v4146_v13 = vld [vmem:[#allocation2 + $0x538] sm:$0xff] }
 0x32a   :  { %v4529_v49 = vadd.f32 %v4528_v46, %v4527_v45  ;;  %3959 = vst.msk [vmem:[#allocation2 + $0x778] sm:$0xff] %vm17_vm3, %v3702_v16  ;;  %v4147_v16 = vld [vmem:[#allocation2 + $0x540] sm:$0xff] }
 0x32c   :  { %v4531_v54 = vadd.f32 %v4530_v51, %v4529_v49  ;;  %v4141_v49 = vld [vmem:[#allocation2 + $0x510] sm:$0xff] }
 0x32d   :  { %v3400_v23 = vpop.f32.mrb[224].mxu1  ;;  %v516_v51 = vld [vmem:[#allocation2 + $0x790] sm:$0xff]  ;;  %v4558_v59 = vsel %vm17_vm3, %v4141_v49, 0.0 }
 0x32e   :  { %v4533_v62 = vadd.f32 %v4532_v58, %v4531_v54  ;;  %v3402_v26 = vpop.f32.mrb[225].mxu1  ;;  %v3703_v35 = vadd.f32 %v3400_v23, %v514_v31  ;;  %v4556_v54 = vsel %vm17_vm3, %v4140_v44, 0.0  ;;  %v4570_v23 = vsel %vm17_vm3, %v4147_v16, 0.0  ;;  %v4160_v16 = vld [vmem:[#allocation2 + $0x5a8] sm:$0xff] }
 0x32f   :  { %v3403_v28 = vpop.f32.mrb[226].mxu1 }
 0x330   :  { %v4535_v1 = vadd.f32 %v4534_v63, %v4533_v62  ;;  %v3405_v33 = vpop.f32.mrb[227].mxu1  ;;  %v3704_v36 = vadd.f32 %v3403_v28, %v515_v32  ;;  %3960 = vst.msk [vmem:[#allocation2 + $0x780] sm:$0xff] %vm17_vm3, %v3703_v35  ;;  %v4560_v62 = vsel %vm17_vm3, %v4142_v57, 0.0  ;;  %v521_v28 = vld [vmem:[#allocation2 + $0x7b8] sm:$0xff] }
 0x331   :  { %v4150_v33 = vld [vmem:[#allocation2 + $0x558] sm:$0xff] }
 0x332   :  { %v4537_v5 = vadd.f32 %v4536_v2, %v4535_v1  ;;  %3961 = vst.msk [vmem:[#allocation2 + $0x788] sm:$0xff] %vm17_vm3, %v3704_v36  ;;  %v4151_v36 = vld [vmem:[#allocation2 + $0x560] sm:$0xff] }
 0x334   :  { %v4539_v10 = vadd.f32 %v4538_v7, %v4537_v5  ;;  %v4145_v5 = vld [vmem:[#allocation2 + $0x530] sm:$0xff]  ;;  %v518_v7 = vld [vmem:[#allocation2 + $0x7a0] sm:$0xff] }
 0x335   :  { %v3408_v43 = vpop.f32.mrb[228].mxu1  ;;  %v4566_v15 = vsel %vm17_vm3, %v4145_v5, 0.0 }
 0x336   :  { %v4541_v18 = vadd.f32 %v4540_v14, %v4539_v10  ;;  %v3410_v46 = vpop.f32.mrb[229].mxu1  ;;  %v3705_v55 = vadd.f32 %v3408_v43, %v516_v51  ;;  %v4564_v10 = vsel %vm17_vm3, %v4144_v0, 0.0  ;;  %v4578_v43 = vsel %vm17_vm3, %v4151_v36, 0.0  ;;  %v4164_v36 = vld [vmem:[#allocation2 + $0x5c8] sm:$0xff] }
 0x337   :  { %v3411_v48 = vpop.f32.mrb[230].mxu1 }
 0x338   :  { %v4543_v21 = vadd.f32 %v4542_v19, %v4541_v18  ;;  %v3413_v53 = vpop.f32.mrb[231].mxu1  ;;  %v3706_v56 = vadd.f32 %v3411_v48, %v517_v52  ;;  %3962 = vst.msk [vmem:[#allocation2 + $0x790] sm:$0xff] %vm17_vm3, %v3705_v55  ;;  %v4568_v18 = vsel %vm17_vm3, %v4146_v13, 0.0  ;;  %v523_v48 = vld [vmem:[#allocation2 + $0x7c8] sm:$0xff] }
 0x339   :  { %v4154_v53 = vld [vmem:[#allocation2 + $0x578] sm:$0xff] }
 0x33a   :  { %v4545_v25 = vadd.f32 %v4544_v22, %v4543_v21  ;;  %3963 = vst.msk [vmem:[#allocation2 + $0x798] sm:$0xff] %vm17_vm3, %v3706_v56  ;;  %v4155_v56 = vld [vmem:[#allocation2 + $0x580] sm:$0xff] }
 0x33c   :  { %v4547_v30 = vadd.f32 %v4546_v27, %v4545_v25  ;;  %v4149_v25 = vld [vmem:[#allocation2 + $0x550] sm:$0xff] }
 0x33d   :  { %v3416_v63 = vpop.f32.mrb[232].mxu1  ;;  %v520_v27 = vld [vmem:[#allocation2 + $0x7b0] sm:$0xff]  ;;  %v4574_v35 = vsel %vm17_vm3, %v4149_v25, 0.0 }
 0x33e   :  { %v4549_v38 = vadd.f32 %v4548_v34, %v4547_v30  ;;  %v3418_v2 = vpop.f32.mrb[233].mxu1  ;;  %v3707_v11 = vadd.f32 %v3416_v63, %v518_v7  ;;  %v4572_v30 = vsel %vm17_vm3, %v4148_v20, 0.0  ;;  %v4586_v63 = vsel %vm17_vm3, %v4155_v56, 0.0 }
 0x33f   :  { %v3419_v4 = vpop.f32.mrb[234].mxu1 }
 0x340   :  { %v4551_v41 = vadd.f32 %v4550_v39, %v4549_v38  ;;  %v3421_v9 = vpop.f32.mrb[235].mxu1  ;;  %v3708_v12 = vadd.f32 %v3419_v4, %v519_v8  ;;  %3964 = vst.msk [vmem:[#allocation2 + $0x7a0] sm:$0xff] %vm17_vm3, %v3707_v11  ;;  %v4576_v38 = vsel %vm17_vm3, %v4150_v33, 0.0  ;;  %v525_v4 = vld [vmem:[#allocation2 + $0x7d8] sm:$0xff] }
 0x341   :  { %v4158_v9 = vld [vmem:[#allocation2 + $0x598] sm:$0xff] }
 0x342   :  { %v4553_v45 = vadd.f32 %v4552_v42, %v4551_v41  ;;  %3965 = vst.msk [vmem:[#allocation2 + $0x7a8] sm:$0xff] %vm17_vm3, %v3708_v12  ;;  %v4159_v12 = vld [vmem:[#allocation2 + $0x5a0] sm:$0xff] }
 0x344   :  { %v4555_v50 = vadd.f32 %v4554_v47, %v4553_v45  ;;  %v4153_v45 = vld [vmem:[#allocation2 + $0x570] sm:$0xff]  ;;  %v522_v47 = vld [vmem:[#allocation2 + $0x7c0] sm:$0xff] }
 0x345   :  { %v3424_v19 = vpop.f32.mrb[236].mxu1  ;;  %v4582_v55 = vsel %vm17_vm3, %v4153_v45, 0.0 }
 0x346   :  { %v4557_v58 = vadd.f32 %v4556_v54, %v4555_v50  ;;  %v3426_v22 = vpop.f32.mrb[237].mxu1  ;;  %v3709_v31 = vadd.f32 %v3424_v19, %v520_v27  ;;  %v4580_v50 = vsel %vm17_vm3, %v4152_v40, 0.0  ;;  %v4594_v19 = vsel %vm17_vm3, %v4159_v12, 0.0 }
 0x347   :  { %v3427_v24 = vpop.f32.mrb[238].mxu1 }
 0x348   :  { %v4559_v61 = vadd.f32 %v4558_v59, %v4557_v58  ;;  %v3429_v29 = vpop.f32.mrb[239].mxu1  ;;  %v3710_v32 = vadd.f32 %v3427_v24, %v521_v28  ;;  %3966 = vst.msk [vmem:[#allocation2 + $0x7b0] sm:$0xff] %vm17_vm3, %v3709_v31  ;;  %v4584_v58 = vsel %vm17_vm3, %v4154_v53, 0.0  ;;  %v527_v24 = vld [vmem:[#allocation2 + $0x7e8] sm:$0xff] }
 0x349   :  { %v4162_v29 = vld [vmem:[#allocation2 + $0x5b8] sm:$0xff] }
 0x34a   :  { %v4561_v1 = vadd.f32 %v4560_v62, %v4559_v61  ;;  %3967 = vst.msk [vmem:[#allocation2 + $0x7b8] sm:$0xff] %vm17_vm3, %v3710_v32  ;;  %v4163_v32 = vld [vmem:[#allocation2 + $0x5c0] sm:$0xff] }
 0x34c   :  { %v4563_v6 = vadd.f32 %v4562_v3, %v4561_v1  ;;  %v4157_v1 = vld [vmem:[#allocation2 + $0x590] sm:$0xff] }
 0x34d   :  { %v3432_v39 = vpop.f32.mrb[240].mxu1  ;;  %v524_v3 = vld [vmem:[#allocation2 + $0x7d0] sm:$0xff]  ;;  %v4590_v11 = vsel %vm17_vm3, %v4157_v1, 0.0 }
 0x34e   :  { %v4565_v14 = vadd.f32 %v4564_v10, %v4563_v6  ;;  %v3434_v42 = vpop.f32.mrb[241].mxu1  ;;  %v3711_v51 = vadd.f32 %v3432_v39, %v522_v47  ;;  %v4588_v6 = vsel %vm17_vm3, %v4156_v60, 0.0  ;;  %v4602_v39 = vsel %vm17_vm3, %v4163_v32, 0.0 }
 0x34f   :  { %v3435_v44 = vpop.f32.mrb[242].mxu1 }
 0x350   :  { %v4567_v17 = vadd.f32 %v4566_v15, %v4565_v14  ;;  %v3437_v49 = vpop.f32.mrb[243].mxu1  ;;  %v3712_v52 = vadd.f32 %v3435_v44, %v523_v48  ;;  %3968 = vst.msk [vmem:[#allocation2 + $0x7c0] sm:$0xff] %vm17_vm3, %v3711_v51  ;;  %v4592_v14 = vsel %vm17_vm3, %v4158_v9, 0.0  ;;  %v529_v44 = vld [vmem:[#allocation2 + $0x7f8] sm:$0xff] }
 0x351   :  { %v4166_v49 = vld [vmem:[#allocation2 + $0x5d8] sm:$0xff] }
 0x352   :  { %v4569_v21 = vadd.f32 %v4568_v18, %v4567_v17  ;;  %3969 = vst.msk [vmem:[#allocation2 + $0x7c8] sm:$0xff] %vm17_vm3, %v3712_v52  ;;  %v4167_v52 = vld [vmem:[#allocation2 + $0x5e0] sm:$0xff] }
 0x354   :  { %v4571_v26 = vadd.f32 %v4570_v23, %v4569_v21  ;;  %v4161_v21 = vld [vmem:[#allocation2 + $0x5b0] sm:$0xff]  ;;  %v526_v23 = vld [vmem:[#allocation2 + $0x7e0] sm:$0xff] }
 0x355   :  { %v3440_v59 = vpop.f32.mrb[244].mxu1  ;;  %v4598_v31 = vsel %vm17_vm3, %v4161_v21, 0.0 }
 0x356   :  { %v4573_v34 = vadd.f32 %v4572_v30, %v4571_v26  ;;  %v3442_v62 = vpop.f32.mrb[245].mxu1  ;;  %v3713_v7 = vadd.f32 %v3440_v59, %v524_v3  ;;  %v4596_v26 = vsel %vm17_vm3, %v4160_v16, 0.0  ;;  %v4176_v16 = vld [vmem:[#allocation2 + $0x628] sm:$0xff] }
 0x357   :  { %v3443_v0 = vpop.f32.mrb[246].mxu1 }
 0x358   :  { %v4575_v37 = vadd.f32 %v4574_v35, %v4573_v34  ;;  %v3445_v5 = vpop.f32.mrb[247].mxu1  ;;  %v3714_v8 = vadd.f32 %v3443_v0, %v525_v4  ;;  %3970 = vst.msk [vmem:[#allocation2 + $0x7d0] sm:$0xff] %vm17_vm3, %v3713_v7  ;;  %v4600_v34 = vsel %vm17_vm3, %v4162_v29, 0.0  ;;  %v4171_v0 = vld [vmem:[#allocation2 + $0x600] sm:$0xff]  ;;  %v4172_v4 = vld [vmem:[#allocation2 + $0x608] sm:$0xff]  ;;  %v4173_v7 = vld [vmem:[#allocation2 + $0x610] sm:$0xff] }
 0x359   :  { %v4618_v5 = vsel %vm17_vm3, %v4171_v0, 0.0 }
 0x35a   :  { %v4577_v41 = vadd.f32 %v4576_v38, %v4575_v37  ;;  %3971 = vst.msk [vmem:[#allocation2 + $0x7d8] sm:$0xff] %vm17_vm3, %v3714_v8  ;;  %v4620_v8 = vsel %vm17_vm3, %v4172_v4, 0.0 }
 0x35c   :  { %v4579_v46 = vadd.f32 %v4578_v43, %v4577_v41  ;;  %v4165_v41 = vld [vmem:[#allocation2 + $0x5d0] sm:$0xff] }
 0x35d   :  { %v3448_v15 = vpop.f32.mrb[248].mxu1  ;;  %v528_v43 = vld [vmem:[#allocation2 + $0x7f0] sm:$0xff]  ;;  %v4606_v51 = vsel %vm17_vm3, %v4165_v41, 0.0 }
 0x35e   :  { %v4581_v54 = vadd.f32 %v4580_v50, %v4579_v46  ;;  %v3450_v18 = vpop.f32.mrb[249].mxu1  ;;  %v3715_v27 = vadd.f32 %v3448_v15, %v526_v23  ;;  %v4604_v46 = vsel %vm17_vm3, %v4164_v36, 0.0 }
 0x35f   :  { %v3451_v20 = vpop.f32.mrb[250].mxu1 }
 0x360   :  { %v4583_v57 = vadd.f32 %v4582_v55, %v4581_v54  ;;  %v3453_v25 = vpop.f32.mrb[251].mxu1  ;;  %v3716_v28 = vadd.f32 %v3451_v20, %v527_v24  ;;  %3972 = vst.msk [vmem:[#allocation2 + $0x7e0] sm:$0xff] %vm17_vm3, %v3715_v27  ;;  %v4608_v54 = vsel %vm17_vm3, %v4166_v49, 0.0  ;;  %v4168_v55 = vld [vmem:[#allocation2 + $0x5e8] sm:$0xff]  ;;  %v4628_v20 = vsel %vm17_vm3, %v4176_v16, 0.0 }
 0x361   :  { %v4612_v60 = vsel %vm17_vm3, %v4168_v55, 0.0  ;;  %v4179_v25 = vld [vmem:[#allocation2 + $0x640] sm:$0xff] }
 0x362   :  { %v4585_v61 = vadd.f32 %v4584_v58, %v4583_v57  ;;  %3973 = vst.msk [vmem:[#allocation2 + $0x7e8] sm:$0xff] %vm17_vm3, %v3716_v28  ;;  %v4610_v57 = vsel %vm17_vm3, %v4167_v52, 0.0  ;;  %v4169_v58 = vld [vmem:[#allocation2 + $0x5f0] sm:$0xff]  ;;  %v4180_v28 = vld [vmem:[#allocation2 + $0x648] sm:$0xff]  ;;  %v4634_v29 = vsel %vm17_vm3, %v4179_v25, 0.0 }
 0x363   :  { %v4636_v32 = vsel %vm17_vm3, %v4180_v28, 0.0 }
 0x364   :  { %v4587_v2 = vadd.f32 %v4586_v63, %v4585_v61  ;;  %v4170_v61 = vld [vmem:[#allocation2 + $0x5f8] sm:$0xff]  ;;  %v4614_v63 = vsel %vm17_vm3, %v4169_v58, 0.0 }
 0x365   :  { %v3456_v35 = vpop.f32.mrb[252].mxu1 }
 0x366   :  { %v4589_v10 = vadd.f32 %v4588_v6, %v4587_v2  ;;  %v3458_v38 = vpop.f32.mrb[253].mxu1  ;;  %v3717_v47 = vadd.f32 %v3456_v35, %v528_v43  ;;  %v4616_v2 = vsel %vm17_vm3, %v4170_v61, 0.0 }
 0x367   :  { %v3459_v40 = vpop.f32.mrb[254].mxu1 }
 0x368   :  { %v4591_v13 = vadd.f32 %v4590_v11, %v4589_v10  ;;  %v3461_v45 = vpop.f32.mrb[255].mxu1  ;;  %v3718_v48 = vadd.f32 %v3459_v40, %v529_v44  ;;  %3974 = vst.msk [vmem:[#allocation2 + $0x7f0] sm:$0xff] %vm17_vm3, %v3717_v47  ;;  %v4174_v10 = vld [vmem:[#allocation2 + $0x618] sm:$0xff]  ;;  %v4622_v11 = vsel %vm17_vm3, %v4173_v7, 0.0 }
 0x369   :  { %v4185_v45 = vld [vmem:[#allocation2 + $0x670] sm:$0xff] }
 0x36a   :  { %v4593_v17 = vadd.f32 %v4592_v14, %v4591_v13  ;;  %3975 = vst.msk [vmem:[#allocation2 + $0x7f8] sm:$0xff] %vm17_vm3, %v3718_v48  ;;  %v4175_v13 = vld [vmem:[#allocation2 + $0x620] sm:$0xff]  ;;  %v4624_v14 = vsel %vm17_vm3, %v4174_v10, 0.0  ;;  %v4186_v48 = vld [vmem:[#allocation2 + $0x678] sm:$0xff] }
 0x36b   :  { %v4648_v49 = vsel %vm17_vm3, %v4186_v48, 0.0 }
 0x36c   :  { %v4595_v22 = vadd.f32 %v4594_v19, %v4593_v17  ;;  %v4626_v17 = vsel %vm17_vm3, %v4175_v13, 0.0  ;;  %v4177_v19 = vld [vmem:[#allocation2 + $0x630] sm:$0xff] }
 0x36d   :  { %v4630_v23 = vsel %vm17_vm3, %v4177_v19, 0.0 }
 0x36e   :  { %v4597_v30 = vadd.f32 %v4596_v26, %v4595_v22  ;;  %v4178_v22 = vld [vmem:[#allocation2 + $0x638] sm:$0xff] }
 0x36f   :  { %v4632_v26 = vsel %vm17_vm3, %v4178_v22, 0.0 }
 0x370   :  { %v4599_v33 = vadd.f32 %v4598_v31, %v4597_v30  ;;  %v4181_v31 = vld [vmem:[#allocation2 + $0x650] sm:$0xff] }
 0x371   :  { %v4638_v35 = vsel %vm17_vm3, %v4181_v31, 0.0 }
 0x372   :  { %v4601_v37 = vadd.f32 %v4600_v34, %v4599_v33  ;;  %v4182_v34 = vld [vmem:[#allocation2 + $0x658] sm:$0xff] }
 0x374   :  { %v4603_v42 = vadd.f32 %v4602_v39, %v4601_v37  ;;  %v4640_v37 = vsel %vm17_vm3, %v4182_v34, 0.0  ;;  %v4183_v39 = vld [vmem:[#allocation2 + $0x660] sm:$0xff] }
 0x375   :  { %v4642_v40 = vsel %vm17_vm3, %v4183_v39, 0.0 }
 0x376   :  { %v4605_v50 = vadd.f32 %v4604_v46, %v4603_v42  ;;  %v4184_v42 = vld [vmem:[#allocation2 + $0x668] sm:$0xff]  ;;  %v4646_v46 = vsel %vm17_vm3, %v4185_v45, 0.0 }
 0x377   :  { %v4644_v43 = vsel %vm17_vm3, %v4184_v42, 0.0 }
 0x378   :  { %v4607_v53 = vadd.f32 %v4606_v51, %v4605_v50  ;;  %v4187_v51 = vld [vmem:[#allocation2 + $0x680] sm:$0xff] }
 0x379   :  { %v4650_v52 = vsel %vm17_vm3, %v4187_v51, 0.0 }
 0x37a   :  { %v4609_v56 = vadd.f32 %v4608_v54, %v4607_v53  ;;  %v4188_v54 = vld [vmem:[#allocation2 + $0x688] sm:$0xff] }
 0x37b   :  { %v4652_v55 = vsel %vm17_vm3, %v4188_v54, 0.0 }
 0x37c   :  { %v4611_v59 = vadd.f32 %v4610_v57, %v4609_v56  ;;  %v4189_v57 = vld [vmem:[#allocation2 + $0x690] sm:$0xff] }
 0x37d   :  { %v4654_v58 = vsel %vm17_vm3, %v4189_v57, 0.0 }
 0x37e   :  { %v4613_v62 = vadd.f32 %v4612_v60, %v4611_v59  ;;  %v4190_v60 = vld [vmem:[#allocation2 + $0x698] sm:$0xff] }
 0x37f   :  { %v4656_v61 = vsel %vm17_vm3, %v4190_v60, 0.0 }
 0x380   :  { %v4615_v1 = vadd.f32 %v4614_v63, %v4613_v62  ;;  %v4191_v63 = vld [vmem:[#allocation2 + $0x6a0] sm:$0xff] }
 0x381   :  { %v4658_v0 = vsel %vm17_vm3, %v4191_v63, 0.0 }
 0x382   :  { %v4617_v3 = vadd.f32 %v4616_v2, %v4615_v1  ;;  %v4192_v2 = vld [vmem:[#allocation2 + $0x6a8] sm:$0xff] }
 0x384   :  { %v4619_v6 = vadd.f32 %v4618_v5, %v4617_v3  ;;  %v4660_v3 = vsel %vm17_vm3, %v4192_v2, 0.0  ;;  %v4193_v5 = vld [vmem:[#allocation2 + $0x6b0] sm:$0xff] }
 0x386   :  { %v4621_v9 = vadd.f32 %v4620_v8, %v4619_v6  ;;  %v4662_v6 = vsel %vm17_vm3, %v4193_v5, 0.0  ;;  %v4194_v8 = vld [vmem:[#allocation2 + $0x6b8] sm:$0xff] }
 0x388   :  { %v4623_v12 = vadd.f32 %v4622_v11, %v4621_v9  ;;  %v4664_v9 = vsel %vm17_vm3, %v4194_v8, 0.0  ;;  %v4195_v11 = vld [vmem:[#allocation2 + $0x6c0] sm:$0xff] }
 0x38a   :  { %v4625_v15 = vadd.f32 %v4624_v14, %v4623_v12  ;;  %v4666_v12 = vsel %vm17_vm3, %v4195_v11, 0.0  ;;  %v4196_v14 = vld [vmem:[#allocation2 + $0x6c8] sm:$0xff] }
 0x38c   :  { %v4627_v18 = vadd.f32 %v4626_v17, %v4625_v15  ;;  %v4668_v15 = vsel %vm17_vm3, %v4196_v14, 0.0  ;;  %v4197_v17 = vld [vmem:[#allocation2 + $0x6d0] sm:$0xff] }
 0x38e   :  { %v4629_v21 = vadd.f32 %v4628_v20, %v4627_v18  ;;  %v4670_v18 = vsel %vm17_vm3, %v4197_v17, 0.0  ;;  %v4198_v20 = vld [vmem:[#allocation2 + $0x6d8] sm:$0xff] }
 0x390   :  { %v4631_v24 = vadd.f32 %v4630_v23, %v4629_v21  ;;  %v4672_v21 = vsel %vm17_vm3, %v4198_v20, 0.0  ;;  %v4199_v23 = vld [vmem:[#allocation2 + $0x6e0] sm:$0xff] }
 0x392   :  { %v4633_v27 = vadd.f32 %v4632_v26, %v4631_v24  ;;  %v4674_v24 = vsel %vm17_vm3, %v4199_v23, 0.0  ;;  %v4200_v26 = vld [vmem:[#allocation2 + $0x6e8] sm:$0xff] }
 0x394   :  { %v4635_v30 = vadd.f32 %v4634_v29, %v4633_v27  ;;  %v4676_v27 = vsel %vm17_vm3, %v4200_v26, 0.0  ;;  %v4201_v29 = vld [vmem:[#allocation2 + $0x6f0] sm:$0xff] }
 0x396   :  { %v4637_v33 = vadd.f32 %v4636_v32, %v4635_v30  ;;  %v4678_v30 = vsel %vm17_vm3, %v4201_v29, 0.0  ;;  %v4202_v32 = vld [vmem:[#allocation2 + $0x6f8] sm:$0xff] }
 0x398   :  { %v4639_v36 = vadd.f32 %v4638_v35, %v4637_v33  ;;  %v4680_v33 = vsel %vm17_vm3, %v4202_v32, 0.0  ;;  %v4203_v35 = vld [vmem:[#allocation2 + $0x700] sm:$0xff] }
 0x39a   :  { %v4641_v38 = vadd.f32 %v4640_v37, %v4639_v36  ;;  %v4682_v36 = vsel %vm17_vm3, %v4203_v35, 0.0 }
 0x39c   :  { %v4643_v41 = vadd.f32 %v4642_v40, %v4641_v38  ;;  %v4204_v38 = vld [vmem:[#allocation2 + $0x708] sm:$0xff] }
 0x39d   :  { %v4684_v39 = vsel %vm17_vm3, %v4204_v38, 0.0 }
 0x39e   :  { %v4645_v44 = vadd.f32 %v4644_v43, %v4643_v41  ;;  %v4205_v41 = vld [vmem:[#allocation2 + $0x710] sm:$0xff] }
 0x39f   :  { %v4686_v42 = vsel %vm17_vm3, %v4205_v41, 0.0 }
 0x3a0   :  { %v4647_v47 = vadd.f32 %v4646_v46, %v4645_v44  ;;  %v4206_v44 = vld [vmem:[#allocation2 + $0x718] sm:$0xff] }
 0x3a1   :  { %v4688_v45 = vsel %vm17_vm3, %v4206_v44, 0.0 }
 0x3a2   :  { %v4649_v50 = vadd.f32 %v4648_v49, %v4647_v47  ;;  %v4207_v47 = vld [vmem:[#allocation2 + $0x720] sm:$0xff] }
 0x3a3   :  { %v4690_v48 = vsel %vm17_vm3, %v4207_v47, 0.0 }
 0x3a4   :  { %v4651_v53 = vadd.f32 %v4650_v52, %v4649_v50  ;;  %v4208_v50 = vld [vmem:[#allocation2 + $0x728] sm:$0xff] }
 0x3a5   :  { %v4692_v51 = vsel %vm17_vm3, %v4208_v50, 0.0 }
 0x3a6   :  { %v4653_v56 = vadd.f32 %v4652_v55, %v4651_v53  ;;  %v4209_v53 = vld [vmem:[#allocation2 + $0x730] sm:$0xff] }
 0x3a7   :  { %v4694_v54 = vsel %vm17_vm3, %v4209_v53, 0.0 }
 0x3a8   :  { %v4655_v59 = vadd.f32 %v4654_v58, %v4653_v56  ;;  %v4210_v56 = vld [vmem:[#allocation2 + $0x738] sm:$0xff] }
 0x3a9   :  { %v4696_v57 = vsel %vm17_vm3, %v4210_v56, 0.0 }
 0x3aa   :  { %v4657_v62 = vadd.f32 %v4656_v61, %v4655_v59  ;;  %v4211_v59 = vld [vmem:[#allocation2 + $0x740] sm:$0xff] }
 0x3ab   :  { %v4698_v60 = vsel %vm17_vm3, %v4211_v59, 0.0  ;;  %v4233_v59 = vld [vmem:[#allocation2 + $0x7f0] sm:$0xff] }
 0x3ac   :  { %v4659_v1 = vadd.f32 %v4658_v0, %v4657_v62  ;;  %v4212_v62 = vld [vmem:[#allocation2 + $0x748] sm:$0xff] }
 0x3ad   :  { %v4700_v63 = vsel %vm17_vm3, %v4212_v62, 0.0  ;;  %v4742_v62 = vsel %vm17_vm3, %v4233_v59, 0.0  ;;  %v8877_v59 = vld [vmem:[#allocation2 + $0x60] sm:$0xff] }
 0x3ae   :  { %v4661_v4 = vadd.f32 %v4660_v3, %v4659_v1  ;;  %v4213_v1 = vld [vmem:[#allocation2 + $0x750] sm:$0xff] }
 0x3af   :  { %v4702_v2 = vsel %vm17_vm3, %v4213_v1, 0.0 }
 0x3b0   :  { %v4663_v7 = vadd.f32 %v4662_v6, %v4661_v4  ;;  %v4214_v4 = vld [vmem:[#allocation2 + $0x758] sm:$0xff] }
 0x3b1   :  { %v4704_v5 = vsel %vm17_vm3, %v4214_v4, 0.0 }
 0x3b2   :  { %v4665_v10 = vadd.f32 %v4664_v9, %v4663_v7  ;;  %v4215_v7 = vld [vmem:[#allocation2 + $0x760] sm:$0xff] }
 0x3b3   :  { %v4706_v8 = vsel %vm17_vm3, %v4215_v7, 0.0 }
 0x3b4   :  { %v4667_v13 = vadd.f32 %v4666_v12, %v4665_v10  ;;  %v4216_v10 = vld [vmem:[#allocation2 + $0x768] sm:$0xff] }
 0x3b5   :  { %v4708_v11 = vsel %vm17_vm3, %v4216_v10, 0.0  ;;  %v8865_v10 = vld [vmem:[#allocation2] sm:$0xff] }
 0x3b6   :  { %v4669_v16 = vadd.f32 %v4668_v15, %v4667_v13  ;;  %v4217_v13 = vld [vmem:[#allocation2 + $0x770] sm:$0xff] }
 0x3b7   :  { %v4710_v14 = vsel %vm17_vm3, %v4217_v13, 0.0 }
 0x3b8   :  { %v4671_v19 = vadd.f32 %v4670_v18, %v4669_v16  ;;  %v4218_v16 = vld [vmem:[#allocation2 + $0x778] sm:$0xff] }
 0x3b9   :  { %v4712_v17 = vsel %vm17_vm3, %v4218_v16, 0.0  ;;  %v8868_v16 = vld [vmem:[#allocation2 + $0x18] sm:$0xff] }
 0x3ba   :  { %v4673_v22 = vadd.f32 %v4672_v21, %v4671_v19  ;;  %v4219_v19 = vld [vmem:[#allocation2 + $0x780] sm:$0xff] }
 0x3bb   :  { %v4714_v20 = vsel %vm17_vm3, %v4219_v19, 0.0 }
 0x3bc   :  { %v4675_v25 = vadd.f32 %v4674_v24, %v4673_v22  ;;  %v4220_v22 = vld [vmem:[#allocation2 + $0x788] sm:$0xff] }
 0x3bd   :  { %v4716_v23 = vsel %vm17_vm3, %v4220_v22, 0.0 }
 0x3be   :  { %v4677_v28 = vadd.f32 %v4676_v27, %v4675_v25  ;;  %v4221_v25 = vld [vmem:[#allocation2 + $0x790] sm:$0xff] }
 0x3bf   :  { %v4718_v26 = vsel %vm17_vm3, %v4221_v25, 0.0 }
 0x3c0   :  { %v4679_v31 = vadd.f32 %v4678_v30, %v4677_v28  ;;  %v4222_v28 = vld [vmem:[#allocation2 + $0x798] sm:$0xff] }
 0x3c1   :  { %v4720_v29 = vsel %vm17_vm3, %v4222_v28, 0.0 }
 0x3c2   :  { %v4681_v34 = vadd.f32 %v4680_v33, %v4679_v31  ;;  %v4223_v31 = vld [vmem:[#allocation2 + $0x7a0] sm:$0xff] }
 0x3c3   :  { %v4722_v32 = vsel %vm17_vm3, %v4223_v31, 0.0 }
 0x3c4   :  { %v4683_v37 = vadd.f32 %v4682_v36, %v4681_v34  ;;  %v4224_v34 = vld [vmem:[#allocation2 + $0x7a8] sm:$0xff] }
 0x3c5   :  { %v4724_v35 = vsel %vm17_vm3, %v4224_v34, 0.0  ;;  %v8872_v34 = vld [vmem:[#allocation2 + $0x38] sm:$0xff] }
 0x3c6   :  { %v4685_v40 = vadd.f32 %v4684_v39, %v4683_v37  ;;  %v4225_v37 = vld [vmem:[#allocation2 + $0x7b0] sm:$0xff] }
 0x3c7   :  { %v4726_v38 = vsel %vm17_vm3, %v4225_v37, 0.0 }
 0x3c8   :  { %v4687_v43 = vadd.f32 %v4686_v42, %v4685_v40  ;;  %v4226_v40 = vld [vmem:[#allocation2 + $0x7b8] sm:$0xff] }
 0x3c9   :  { %v4728_v41 = vsel %vm17_vm3, %v4226_v40, 0.0 }
 0x3ca   :  { %v4689_v46 = vadd.f32 %v4688_v45, %v4687_v43  ;;  %v4227_v43 = vld [vmem:[#allocation2 + $0x7c0] sm:$0xff] }
 0x3cb   :  { %v4730_v44 = vsel %vm17_vm3, %v4227_v43, 0.0 }
 0x3cc   :  { %v4691_v49 = vadd.f32 %v4690_v48, %v4689_v46  ;;  %v4228_v46 = vld [vmem:[#allocation2 + $0x7c8] sm:$0xff] }
 0x3cd   :  { %v4732_v47 = vsel %vm17_vm3, %v4228_v46, 0.0 }
 0x3ce   :  { %v4693_v52 = vadd.f32 %v4692_v51, %v4691_v49  ;;  %v4229_v49 = vld [vmem:[#allocation2 + $0x7d0] sm:$0xff] }
 0x3cf   :  { %v4734_v50 = vsel %vm17_vm3, %v4229_v49, 0.0  ;;  %v8875_v49 = vld [vmem:[#allocation2 + $0x50] sm:$0xff] }
 0x3d0   :  { %v4695_v55 = vadd.f32 %v4694_v54, %v4693_v52  ;;  %v4230_v52 = vld [vmem:[#allocation2 + $0x7d8] sm:$0xff] }
 0x3d1   :  { %v4736_v53 = vsel %vm17_vm3, %v4230_v52, 0.0 }
 0x3d2   :  { %v4697_v58 = vadd.f32 %v4696_v57, %v4695_v55  ;;  %v4231_v55 = vld [vmem:[#allocation2 + $0x7e0] sm:$0xff] }
 0x3d3   :  { %v4738_v56 = vsel %vm17_vm3, %v4231_v55, 0.0 }
 0x3d4   :  { %v4699_v61 = vadd.f32 %v4698_v60, %v4697_v58  ;;  %v4232_v58 = vld [vmem:[#allocation2 + $0x7e8] sm:$0xff] }
 0x3d5   :  { %v4740_v60 = vsel %vm17_vm3, %v4232_v58, 0.0 }
 0x3d6   :  { %v4701_v0 = vadd.f32 %v4700_v63, %v4699_v61 }
 0x3d8   :  { %v4703_v3 = vadd.f32 %v4702_v2, %v4701_v0  ;;  %v4234_v0 = vld [vmem:[#allocation2 + $0x7f8] sm:$0xff] }
 0x3d9   :  { %v4744_v1 = vsel %vm17_vm3, %v4234_v0, 0.0  ;;  %v8878_v0 = vld [vmem:[#allocation2 + $0x68] sm:$0xff] }
 0x3da   :  { %v4705_v6 = vadd.f32 %v4704_v5, %v4703_v3 }
 0x3dc   :  { %v4707_v9 = vadd.f32 %v4706_v8, %v4705_v6 }
 0x3de   :  { %v4709_v12 = vadd.f32 %v4708_v11, %v4707_v9 }
 0x3e0   :  { %v4711_v15 = vadd.f32 %v4710_v14, %v4709_v12  ;;  %v8866_v12 = vld [vmem:[#allocation2 + $0x8] sm:$0xff]  ;;  %v8867_v14 = vld [vmem:[#allocation2 + $0x10] sm:$0xff] }
 0x3e2   :  { %v4713_v18 = vadd.f32 %v4712_v17, %v4711_v15 }
 0x3e4   :  { %v4715_v21 = vadd.f32 %v4714_v20, %v4713_v18  ;;  %v8869_v20 = vld [vmem:[#allocation2 + $0x20] sm:$0xff] }
 0x3e6   :  { %v4717_v24 = vadd.f32 %v4716_v23, %v4715_v21  ;;  %v8870_v23 = vld [vmem:[#allocation2 + $0x28] sm:$0xff] }
 0x3e8   :  { %v4719_v27 = vadd.f32 %v4718_v26, %v4717_v24 }
 0x3ea   :  { %v4721_v30 = vadd.f32 %v4720_v29, %v4719_v27  ;;  %v8871_v29 = vld [vmem:[#allocation2 + $0x30] sm:$0xff] }
 0x3ec   :  { %v4723_v33 = vadd.f32 %v4722_v32, %v4721_v30 }
 0x3ee   :  { %v4725_v36 = vadd.f32 %v4724_v35, %v4723_v33 }
 0x3f0   :  { %v4727_v39 = vadd.f32 %v4726_v38, %v4725_v36 }
 0x3f2   :  { %v4729_v42 = vadd.f32 %v4728_v41, %v4727_v39  ;;  %v8873_v39 = vld [vmem:[#allocation2 + $0x40] sm:$0xff] }
 0x3f4   :  { %v4731_v45 = vadd.f32 %v4730_v44, %v4729_v42  ;;  %v8874_v44 = vld [vmem:[#allocation2 + $0x48] sm:$0xff] }
 0x3f6   :  { %v4733_v48 = vadd.f32 %v4732_v47, %v4731_v45 }
 0x3f8   :  { %v4735_v51 = vadd.f32 %v4734_v50, %v4733_v48 }
 0x3fa   :  { %v4737_v54 = vadd.f32 %v4736_v53, %v4735_v51 }
 0x3fc   :  { %v4739_v57 = vadd.f32 %v4738_v56, %v4737_v54  ;;  %v8876_v54 = vld [vmem:[#allocation2 + $0x58] sm:$0xff] }
 0x3fe   :  { %v4741_v61 = vadd.f32 %v4740_v60, %v4739_v57 }
 0x400   :  { %v4743_v63 = vadd.f32 %v4742_v62, %v4741_v61 }
 0x402   :  { %v4745_v2 = vadd.f32 %v4744_v1, %v4743_v63 }
 0x404   :  { %v4746_v3 = vrot.slane %v4745_v2, 4 }
 0x406   :  { %v4747_v4 = vadd.f32 %v4746_v3, %v4745_v2 }
 0x408   :  { %v4748_v5 = vrot.slane %v4747_v4, 2 }
 0x40a   :  { %v4749_v6 = vadd.f32 %v4748_v5, %v4747_v4  ;;  %v8879_v5 = vld [vmem:[#allocation2 + $0x70] sm:$0xff] }
 0x40c   :  { %v4750_v7 = vrot.slane %v4749_v6, 1 }
 0x40e   :  { %v4751_v8 = vadd.f32 %v4750_v7, %v4749_v6 }
 0x410   :  { %v11293_v9 = vmul.f32 0.00048828125, %v4751_v8 }
 0x412   :  { %v11296_v11 = vsub.f32 %v8865_v10, %v11293_v9  ;;  %v11299_v13 = vsub.f32 %v8866_v12, %v11293_v9  ;;  %v11302_v15 = vsub.f32 %v8867_v14, %v11293_v9  ;;  %v11305_v17 = vsub.f32 %v8868_v16, %v11293_v9  ;;  %v8880_v12 = vld [vmem:[#allocation2 + $0x78] sm:$0xff] }
 0x413   :  { %v11312_v21 = vsub.f32 %v8869_v20, %v11293_v9  ;;  %v11317_v24 = vsub.f32 %v8870_v23, %v11293_v9  ;;  %v11324_v30 = vsub.f32 %v8871_v29, %v11293_v9  ;;  %v11330_v35 = vsub.f32 %v8872_v34, %v11293_v9  ;;  %v8881_v20 = vld [vmem:[#allocation2 + $0x80] sm:$0xff] }
 0x414   :  { %v5010_v18 = vmul.f32 %v11296_v11, %v11296_v11  ;;  %v5011_v19 = vmul.f32 %v11299_v13, %v11299_v13  ;;  %v5012_v22 = vmul.f32 %v11302_v15, %v11302_v15  ;;  %v5013_v25 = vmul.f32 %v11305_v17, %v11305_v17 }
 0x415   :  { %v5014_v31 = vmul.f32 %v11312_v21, %v11312_v21  ;;  %v5015_v36 = vmul.f32 %v11317_v24, %v11317_v24  ;;  %v11336_v40 = vsub.f32 %v8873_v39, %v11293_v9  ;;  %v5016_v41 = vmul.f32 %v11324_v30, %v11324_v30  ;;  %v8884_v39 = vld [vmem:[#allocation2 + $0x98] sm:$0xff] }
 0x416   :  { %v5266_v26 = vsel %vm17_vm3, %v5010_v18, 0.0  ;;  %v5267_v27 = vsel %vm17_vm3, %v5011_v19, 0.0  ;;  %v5269_v32 = vsel %vm17_vm3, %v5012_v22, 0.0  ;;  %v5271_v37 = vsel %vm17_vm3, %v5013_v25, 0.0 }
 0x417   :  { %v5268_v28 = vadd.f32 %v5267_v27, %v5266_v26  ;;  %v5273_v42 = vsel %vm17_vm3, %v5014_v31, 0.0  ;;  %v11342_v45 = vsub.f32 %v8874_v44, %v11293_v9  ;;  %v5017_v46 = vmul.f32 %v11330_v35, %v11330_v35  ;;  %v8882_v27 = vld [vmem:[#allocation2 + $0x88] sm:$0xff] }
 0x418   :  { %v5275_v47 = vsel %vm17_vm3, %v5015_v36, 0.0  ;;  %v11348_v50 = vsub.f32 %v8875_v49, %v11293_v9  ;;  %v5018_v51 = vmul.f32 %v11336_v40, %v11336_v40  ;;  %v5277_v52 = vsel %vm17_vm3, %v5016_v41, 0.0 }
 0x419   :  { %v5270_v33 = vadd.f32 %v5269_v32, %v5268_v28  ;;  %v11354_v55 = vsub.f32 %v8876_v54, %v11293_v9  ;;  %v5019_v56 = vmul.f32 %v11342_v45, %v11342_v45  ;;  %v5279_v57 = vsel %vm17_vm3, %v5017_v46, 0.0  ;;  %v8885_v46 = vld [vmem:[#allocation2 + $0xa0] sm:$0xff] }
 0x41a   :  { %v11360_v60 = vsub.f32 %v8877_v59, %v11293_v9  ;;  %v5020_v61 = vmul.f32 %v11348_v50, %v11348_v50  ;;  %v5281_v62 = vsel %vm17_vm3, %v5018_v51, 0.0  ;;  %v11366_v1 = vsub.f32 %v8878_v0, %v11293_v9  ;;  %v8888_v0 = vld [vmem:[#allocation2 + $0xb8] sm:$0xff] }
 0x41b   :  { %v5272_v38 = vadd.f32 %v5271_v37, %v5270_v33  ;;  %v5021_v2 = vmul.f32 %v11354_v55, %v11354_v55  ;;  %v5283_v3 = vsel %vm17_vm3, %v5019_v56, 0.0  ;;  %v11372_v6 = vsub.f32 %v8879_v5, %v11293_v9  ;;  %v8883_v33 = vld [vmem:[#allocation2 + $0x90] sm:$0xff] }
 0x41c   :  { %v5022_v7 = vmul.f32 %v11360_v60, %v11360_v60  ;;  %v5285_v8 = vsel %vm17_vm3, %v5020_v61, 0.0  ;;  %v11378_v14 = vsub.f32 %v8880_v12, %v11293_v9  ;;  %v5023_v16 = vmul.f32 %v11366_v1, %v11366_v1 }
 0x41d   :  { %v5274_v43 = vadd.f32 %v5273_v42, %v5272_v38  ;;  %v5287_v18 = vsel %vm17_vm3, %v5021_v2, 0.0  ;;  %v11384_v22 = vsub.f32 %v8881_v20, %v11293_v9  ;;  %v5024_v23 = vmul.f32 %v11372_v6, %v11372_v6 }
 0x41e   :  { %v5289_v25 = vsel %vm17_vm3, %v5022_v7, 0.0  ;;  %v11390_v28 = vsub.f32 %v8882_v27, %v11293_v9  ;;  %v5025_v29 = vmul.f32 %v11378_v14, %v11378_v14  ;;  %v5291_v31 = vsel %vm17_vm3, %v5023_v16, 0.0  ;;  %v8889_v7 = vld [vmem:[#allocation2 + $0xc0] sm:$0xff] }
 0x41f   :  { %v5276_v48 = vadd.f32 %v5275_v47, %v5274_v43  ;;  %v11396_v34 = vsub.f32 %v8883_v33, %v11293_v9  ;;  %v5026_v36 = vmul.f32 %v11384_v22, %v11384_v22  ;;  %v5293_v37 = vsel %vm17_vm3, %v5024_v23, 0.0  ;;  %v8892_v33 = vld [vmem:[#allocation2 + $0xd8] sm:$0xff] }
 0x420   :  { %v11402_v41 = vsub.f32 %v8884_v39, %v11293_v9  ;;  %v5027_v42 = vmul.f32 %v11390_v28, %v11390_v28  ;;  %v5295_v43 = vsel %vm17_vm3, %v5025_v29, 0.0  ;;  %v11408_v47 = vsub.f32 %v8885_v46, %v11293_v9 }
 0x421   :  { %v5278_v53 = vadd.f32 %v5277_v52, %v5276_v48  ;;  %v5028_v48 = vmul.f32 %v11396_v34, %v11396_v34  ;;  %v5297_v49 = vsel %vm17_vm3, %v5026_v36, 0.0  ;;  %v8886_v52 = vld [vmem:[#allocation2 + $0xa8] sm:$0xff]  ;;  %v11426_v2 = vsub.f32 %v8888_v0, %v11293_v9  ;;  %v8896_v0 = vld [vmem:[#allocation2 + $0xf8] sm:$0xff] }
 0x422   :  { %v5029_v54 = vmul.f32 %v11402_v41, %v11402_v41  ;;  %v5299_v56 = vsel %vm17_vm3, %v5027_v42, 0.0  ;;  %v5030_v61 = vmul.f32 %v11408_v47, %v11408_v47  ;;  %v11450_v36 = vsub.f32 %v8892_v33, %v11293_v9  ;;  %v8893_v42 = vld [vmem:[#allocation2 + $0xe0] sm:$0xff] }
 0x423   :  { %v5280_v58 = vadd.f32 %v5279_v57, %v5278_v53  ;;  %v11414_v53 = vsub.f32 %v8886_v52, %v11293_v9  ;;  %v5033_v20 = vmul.f32 %v11426_v2, %v11426_v2 }
 0x424   :  { %v5305_v12 = vsel %vm17_vm3, %v5030_v61, 0.0  ;;  %v5037_v52 = vmul.f32 %v11450_v36, %v11450_v36 }
 0x425   :  { %v5282_v63 = vadd.f32 %v5281_v62, %v5280_v58  ;;  %v8887_v58 = vld [vmem:[#allocation2 + $0xb0] sm:$0xff]  ;;  %v5301_v62 = vsel %vm17_vm3, %v5028_v48, 0.0 }
 0x426   :  { %v11420_v59 = vsub.f32 %v8887_v58, %v11293_v9 }
 0x427   :  { %v5284_v4 = vadd.f32 %v5283_v3, %v5282_v63  ;;  %v5031_v3 = vmul.f32 %v11414_v53, %v11414_v53 }
 0x429   :  { %v5286_v10 = vadd.f32 %v5285_v8, %v5284_v4  ;;  %v5303_v4 = vsel %vm17_vm3, %v5029_v54, 0.0  ;;  %v11432_v8 = vsub.f32 %v8889_v7, %v11293_v9  ;;  %v5307_v23 = vsel %vm17_vm3, %v5031_v3, 0.0 }
 0x42a   :  { %v11474_v3 = vsub.f32 %v8896_v0, %v11293_v9 }
 0x42b   :  { %v5288_v19 = vadd.f32 %v5287_v18, %v5286_v10  ;;  %v5032_v10 = vmul.f32 %v11420_v59, %v11420_v59  ;;  %v8890_v18 = vld [vmem:[#allocation2 + $0xc8] sm:$0xff]  ;;  %v5034_v29 = vmul.f32 %v11432_v8, %v11432_v8 }
 0x42d   :  { %v5290_v26 = vadd.f32 %v5289_v25, %v5288_v19  ;;  %v11438_v19 = vsub.f32 %v8890_v18, %v11293_v9  ;;  %v5313_v46 = vsel %vm17_vm3, %v5034_v29, 0.0 }
 0x42f   :  { %v5292_v32 = vadd.f32 %v5291_v31, %v5290_v26  ;;  %v8891_v26 = vld [vmem:[#allocation2 + $0xd0] sm:$0xff]  ;;  %v5309_v31 = vsel %vm17_vm3, %v5032_v10, 0.0  ;;  %v8897_v10 = vld [vmem:[#allocation2 + $0x100] sm:$0xff] }
 0x430   :  { %v11444_v27 = vsub.f32 %v8891_v26, %v11293_v9  ;;  %v5041_v26 = vmul.f32 %v11474_v3, %v11474_v3 }
 0x431   :  { %v5294_v38 = vadd.f32 %v5293_v37, %v5292_v32  ;;  %v5035_v37 = vmul.f32 %v11438_v19, %v11438_v19 }
 0x433   :  { %v5296_v44 = vadd.f32 %v5295_v43, %v5294_v38  ;;  %v5311_v38 = vsel %vm17_vm3, %v5033_v20, 0.0  ;;  %v11456_v43 = vsub.f32 %v8893_v42, %v11293_v9  ;;  %v5315_v54 = vsel %vm17_vm3, %v5035_v37, 0.0  ;;  %v8900_v42 = vld [vmem:[#allocation2 + $0x118] sm:$0xff] }
 0x435   :  { %v5298_v51 = vadd.f32 %v5297_v49, %v5296_v44  ;;  %v5036_v44 = vmul.f32 %v11444_v27, %v11444_v27  ;;  %v8894_v49 = vld [vmem:[#allocation2 + $0xe8] sm:$0xff]  ;;  %v5038_v61 = vmul.f32 %v11456_v43, %v11456_v43 }
 0x437   :  { %v5300_v57 = vadd.f32 %v5299_v56, %v5298_v51  ;;  %v11462_v51 = vsub.f32 %v8894_v49, %v11293_v9  ;;  %v5321_v18 = vsel %vm17_vm3, %v5038_v61, 0.0 }
 0x439   :  { %v5302_v63 = vadd.f32 %v5301_v62, %v5300_v57  ;;  %v8895_v57 = vld [vmem:[#allocation2 + $0xf0] sm:$0xff]  ;;  %v5317_v62 = vsel %vm17_vm3, %v5036_v44, 0.0  ;;  %v11498_v44 = vsub.f32 %v8900_v42, %v11293_v9 }
 0x43a   :  { %v11468_v58 = vsub.f32 %v8895_v57, %v11293_v9 }
 0x43b   :  { %v5304_v5 = vadd.f32 %v5303_v4, %v5302_v63  ;;  %v5039_v4 = vmul.f32 %v11462_v51, %v11462_v51  ;;  %v5045_v0 = vmul.f32 %v11498_v44, %v11498_v44 }
 0x43d   :  { %v5306_v16 = vadd.f32 %v5305_v12, %v5304_v5  ;;  %v5319_v5 = vsel %vm17_vm3, %v5037_v52, 0.0  ;;  %v11480_v12 = vsub.f32 %v8897_v10, %v11293_v9  ;;  %v5323_v29 = vsel %vm17_vm3, %v5039_v4, 0.0  ;;  %v8901_v52 = vld [vmem:[#allocation2 + $0x120] sm:$0xff] }
 0x43f   :  { %v5308_v25 = vadd.f32 %v5307_v23, %v5306_v16  ;;  %v5040_v16 = vmul.f32 %v11468_v58, %v11468_v58  ;;  %v8898_v23 = vld [vmem:[#allocation2 + $0x108] sm:$0xff]  ;;  %v5042_v37 = vmul.f32 %v11480_v12, %v11480_v12 }
 0x441   :  { %v5310_v32 = vadd.f32 %v5309_v31, %v5308_v25  ;;  %v11486_v25 = vsub.f32 %v8898_v23, %v11293_v9  ;;  %v5329_v57 = vsel %vm17_vm3, %v5042_v37, 0.0  ;;  %v8904_v23 = vld [vmem:[#allocation2 + $0x138] sm:$0xff]  ;;  %v8905_v37 = vld [vmem:[#allocation2 + $0x140] sm:$0xff] }
 0x443   :  { %v5312_v39 = vadd.f32 %v5311_v38, %v5310_v32  ;;  %v8899_v32 = vld [vmem:[#allocation2 + $0x110] sm:$0xff]  ;;  %v5325_v38 = vsel %vm17_vm3, %v5040_v16, 0.0 }
 0x444   :  { %v11492_v33 = vsub.f32 %v8899_v32, %v11293_v9 }
 0x445   :  { %v5314_v48 = vadd.f32 %v5313_v46, %v5312_v39  ;;  %v5043_v46 = vmul.f32 %v11486_v25, %v11486_v25 }
 0x447   :  { %v5316_v56 = vadd.f32 %v5315_v54, %v5314_v48  ;;  %v5327_v48 = vsel %vm17_vm3, %v5041_v26, 0.0  ;;  %v11504_v54 = vsub.f32 %v8901_v52, %v11293_v9  ;;  %v5331_v4 = vsel %vm17_vm3, %v5043_v46, 0.0 }
 0x448   :  { %v11522_v26 = vsub.f32 %v8904_v23, %v11293_v9 }
 0x449   :  { %v5318_v63 = vadd.f32 %v5317_v62, %v5316_v56  ;;  %v5044_v56 = vmul.f32 %v11492_v33, %v11492_v33  ;;  %v8902_v62 = vld [vmem:[#allocation2 + $0x128] sm:$0xff]  ;;  %v5046_v16 = vmul.f32 %v11504_v54, %v11504_v54 }
 0x44a   :  { %v5049_v52 = vmul.f32 %v11522_v26, %v11522_v26 }
 0x44b   :  { %v5320_v7 = vadd.f32 %v5319_v5, %v5318_v63  ;;  %v11510_v63 = vsub.f32 %v8902_v62, %v11293_v9  ;;  %v5337_v42 = vsel %vm17_vm3, %v5046_v16, 0.0 }
 0x44d   :  { %v5322_v20 = vadd.f32 %v5321_v18, %v5320_v7  ;;  %v8903_v7 = vld [vmem:[#allocation2 + $0x130] sm:$0xff]  ;;  %v5333_v18 = vsel %vm17_vm3, %v5044_v56, 0.0 }
 0x44e   :  { %v11516_v10 = vsub.f32 %v8903_v7, %v11293_v9  ;;  %v8908_v7 = vld [vmem:[#allocation2 + $0x158] sm:$0xff] }
 0x44f   :  { %v5324_v31 = vadd.f32 %v5323_v29, %v5322_v20  ;;  %v5047_v29 = vmul.f32 %v11510_v63, %v11510_v63  ;;  %v11546_v16 = vsub.f32 %v8908_v7, %v11293_v9  ;;  %v8912_v7 = vld [vmem:[#allocation2 + $0x178] sm:$0xff] }
 0x451   :  { %v5326_v39 = vadd.f32 %v5325_v38, %v5324_v31  ;;  %v5335_v31 = vsel %vm17_vm3, %v5045_v0, 0.0  ;;  %v11528_v38 = vsub.f32 %v8905_v37, %v11293_v9  ;;  %v5339_v56 = vsel %vm17_vm3, %v5047_v29, 0.0  ;;  %15574 = vst [vmem:[#allocation7_spill] sm:$0xff] %v11546_v16  ;;  %v8909_v29 = vld [vmem:[#allocation2 + $0x160] sm:$0xff] }
 0x453   :  { %v5328_v49 = vadd.f32 %v5327_v48, %v5326_v39  ;;  %v5048_v39 = vmul.f32 %v11516_v10, %v11516_v10  ;;  %v8906_v48 = vld [vmem:[#allocation2 + $0x148] sm:$0xff]  ;;  %v5050_v0 = vmul.f32 %v11528_v38, %v11528_v38 }
 0x455   :  { %v5330_v61 = vadd.f32 %v5329_v57, %v5328_v49  ;;  %v11534_v49 = vsub.f32 %v8906_v48, %v11293_v9  ;;  %v5345_v37 = vsel %vm17_vm3, %v5050_v0, 0.0  ;;  %v5053_v48 = vmul.f32 %v11546_v16, %v11546_v16 }
 0x457   :  { %v5332_v5 = vadd.f32 %v5331_v4, %v5330_v61  ;;  %v8907_v61 = vld [vmem:[#allocation2 + $0x150] sm:$0xff]  ;;  %v5341_v4 = vsel %vm17_vm3, %v5048_v39, 0.0 }
 0x458   :  { %v11540_v62 = vsub.f32 %v8907_v61, %v11293_v9 }
 0x459   :  { %v5334_v20 = vadd.f32 %v5333_v18, %v5332_v5  ;;  %v5051_v18 = vmul.f32 %v11534_v49, %v11534_v49 }
 0x45a   :  { %15573 = vst [vmem:[#allocation6_spill] sm:$0xff] %v11540_v62 }
 0x45b   :  { %v5336_v32 = vadd.f32 %v5335_v31, %v5334_v20  ;;  %v5343_v20 = vsel %vm17_vm3, %v5049_v52, 0.0  ;;  %v11552_v31 = vsub.f32 %v8909_v29, %v11293_v9  ;;  %v5347_v52 = vsel %vm17_vm3, %v5051_v18, 0.0 }
 0x45c   :  { %v5351_v18 = vsel %vm17_vm3, %v5053_v48, 0.0 }
 0x45d   :  { %v5338_v46 = vadd.f32 %v5337_v42, %v5336_v32  ;;  %15575 = vst [vmem:[#allocation8_spill] sm:$0xff] %v11552_v31  ;;  %v5052_v32 = vmul.f32 %v11540_v62, %v11540_v62  ;;  %v8910_v42 = vld [vmem:[#allocation2 + $0x168] sm:$0xff] }
 0x45f   :  { %v5340_v57 = vadd.f32 %v5339_v56, %v5338_v46  ;;  %v11558_v46 = vsub.f32 %v8910_v42, %v11293_v9  ;;  %v5349_v0 = vsel %vm17_vm3, %v5052_v32, 0.0 }
 0x461   :  { %v5342_v5 = vadd.f32 %v5341_v4, %v5340_v57  ;;  %15576 = vst [vmem:[#allocation9_spill] sm:$0xff] %v11558_v46  ;;  %v8911_v57 = vld [vmem:[#allocation2 + $0x170] sm:$0xff]  ;;  %v5054_v4 = vmul.f32 %v11552_v31, %v11552_v31 }
 0x462   :  { %v11564_v61 = vsub.f32 %v8911_v57, %v11293_v9 }
 0x463   :  { %v5344_v23 = vadd.f32 %v5343_v20, %v5342_v5  ;;  %v11570_v20 = vsub.f32 %v8912_v7, %v11293_v9  ;;  %v5353_v32 = vsel %vm17_vm3, %v5054_v4, 0.0  ;;  %v8915_v7 = vld [vmem:[#allocation2 + $0x190] sm:$0xff] }
 0x464   :  { %15577 = vst [vmem:[#allocation10_spill] sm:$0xff] %v11564_v61  ;;  %v5056_v42 = vmul.f32 %v11564_v61, %v11564_v61 }
 0x465   :  { %v5346_v39 = vadd.f32 %v5345_v37, %v5344_v23  ;;  %15578 = vst [vmem:[#allocation11_spill] sm:$0xff] %v11570_v20  ;;  %v5055_v23 = vmul.f32 %v11558_v46, %v11558_v46  ;;  %v8913_v37 = vld [vmem:[#allocation2 + $0x180] sm:$0xff] }
 0x466   :  { %v5357_v4 = vsel %vm17_vm3, %v5056_v42, 0.0 }
 0x467   :  { %v5348_v56 = vadd.f32 %v5347_v52, %v5346_v39  ;;  %v11576_v39 = vsub.f32 %v8913_v37, %v11293_v9  ;;  %v5355_v48 = vsel %vm17_vm3, %v5055_v23, 0.0 }
 0x469   :  { %v5350_v5 = vadd.f32 %v5349_v0, %v5348_v56  ;;  %15579 = vst [vmem:[#allocation12_spill] sm:$0xff] %v11576_v39  ;;  %v8914_v56 = vld [vmem:[#allocation2 + $0x188] sm:$0xff]  ;;  %v5057_v0 = vmul.f32 %v11570_v20, %v11570_v20  ;;  %v5058_v37 = vmul.f32 %v11576_v39, %v11576_v39 }
 0x46a   :  { %v11582_v57 = vsub.f32 %v8914_v56, %v11293_v9 }
 0x46b   :  { %v5352_v29 = vadd.f32 %v5351_v18, %v5350_v5  ;;  %v11588_v18 = vsub.f32 %v8915_v7, %v11293_v9  ;;  %v5359_v23 = vsel %vm17_vm3, %v5057_v0, 0.0  ;;  %v5361_v42 = vsel %vm17_vm3, %v5058_v37, 0.0 }
 0x46c   :  { %15580 = vst [vmem:[#allocation13_spill] sm:$0xff] %v11582_v57  ;;  %v5059_v20 = vmul.f32 %v11582_v57, %v11582_v57 }
 0x46d   :  { %v5354_v52 = vadd.f32 %v5353_v32, %v5352_v29  ;;  %15581 = vst [vmem:[#allocation14_spill] sm:$0xff] %v11588_v18  ;;  %v8916_v32 = vld [vmem:[#allocation2 + $0x198] sm:$0xff]  ;;  %v5060_v39 = vmul.f32 %v11588_v18, %v11588_v18 }
 0x46e   :  { %v11594_v56 = vsub.f32 %v8916_v32, %v11293_v9  ;;  %v5363_v0 = vsel %vm17_vm3, %v5059_v20, 0.0 }
 0x46f   :  { %v5356_v5 = vadd.f32 %v5355_v48, %v5354_v52  ;;  %v8917_v48 = vld [vmem:[#allocation2 + $0x1a0] sm:$0xff]  ;;  %v5365_v37 = vsel %vm17_vm3, %v5060_v39, 0.0 }
 0x470   :  { %15582 = vst [vmem:[#allocation15_spill] sm:$0xff] %v11594_v56  ;;  %v11600_v7 = vsub.f32 %v8917_v48, %v11293_v9  ;;  %v5061_v57 = vmul.f32 %v11594_v56, %v11594_v56 }
 0x471   :  { %v5358_v29 = vadd.f32 %v5357_v4, %v5356_v5  ;;  %v8918_v4 = vld [vmem:[#allocation2 + $0x1a8] sm:$0xff] }
 0x472   :  { %15583 = vst [vmem:[#allocation16_spill] sm:$0xff] %v11600_v7  ;;  %v11606_v32 = vsub.f32 %v8918_v4, %v11293_v9  ;;  %v5062_v18 = vmul.f32 %v11600_v7, %v11600_v7  ;;  %v5367_v20 = vsel %vm17_vm3, %v5061_v57, 0.0 }
 0x473   :  { %v5360_v52 = vadd.f32 %v5359_v23, %v5358_v29  ;;  %v8919_v23 = vld [vmem:[#allocation2 + $0x1b0] sm:$0xff] }
 0x474   :  { %15584 = vst [vmem:[#allocation17_spill] sm:$0xff] %v11606_v32  ;;  %v11612_v48 = vsub.f32 %v8919_v23, %v11293_v9  ;;  %v5063_v56 = vmul.f32 %v11606_v32, %v11606_v32  ;;  %v5369_v39 = vsel %vm17_vm3, %v5062_v18, 0.0 }
 0x475   :  { %v5362_v5 = vadd.f32 %v5361_v42, %v5360_v52  ;;  %v8920_v42 = vld [vmem:[#allocation2 + $0x1b8] sm:$0xff] }
 0x476   :  { %15585 = vst [vmem:[#allocation18_spill] sm:$0xff] %v11612_v48  ;;  %v11618_v4 = vsub.f32 %v8920_v42, %v11293_v9  ;;  %v5064_v7 = vmul.f32 %v11612_v48, %v11612_v48  ;;  %v5371_v57 = vsel %vm17_vm3, %v5063_v56, 0.0 }
 0x477   :  { %v5364_v29 = vadd.f32 %v5363_v0, %v5362_v5  ;;  %v8921_v0 = vld [vmem:[#allocation2 + $0x1c0] sm:$0xff] }
 0x478   :  { %15586 = vst [vmem:[#allocation19_spill] sm:$0xff] %v11618_v4  ;;  %v11624_v23 = vsub.f32 %v8921_v0, %v11293_v9  ;;  %v5065_v32 = vmul.f32 %v11618_v4, %v11618_v4  ;;  %v5373_v18 = vsel %vm17_vm3, %v5064_v7, 0.0 }
 0x479   :  { %v5366_v52 = vadd.f32 %v5365_v37, %v5364_v29  ;;  %v8922_v37 = vld [vmem:[#allocation2 + $0x1c8] sm:$0xff] }
 0x47a   :  { %15587 = vst [vmem:[#allocation20_spill] sm:$0xff] %v11624_v23  ;;  %v11630_v42 = vsub.f32 %v8922_v37, %v11293_v9  ;;  %v5066_v48 = vmul.f32 %v11624_v23, %v11624_v23  ;;  %v5375_v56 = vsel %vm17_vm3, %v5065_v32, 0.0 }
 0x47b   :  { %v5368_v5 = vadd.f32 %v5367_v20, %v5366_v52  ;;  %v8923_v20 = vld [vmem:[#allocation2 + $0x1d0] sm:$0xff] }
 0x47c   :  { %15588 = vst [vmem:[#allocation21_spill] sm:$0xff] %v11630_v42  ;;  %v11636_v0 = vsub.f32 %v8923_v20, %v11293_v9  ;;  %v5067_v4 = vmul.f32 %v11630_v42, %v11630_v42  ;;  %v5377_v7 = vsel %vm17_vm3, %v5066_v48, 0.0 }
 0x47d   :  { %v5370_v29 = vadd.f32 %v5369_v39, %v5368_v5  ;;  %v8924_v39 = vld [vmem:[#allocation2 + $0x1d8] sm:$0xff] }
 0x47e   :  { %15589 = vst [vmem:[#allocation22_spill] sm:$0xff] %v11636_v0  ;;  %v11642_v37 = vsub.f32 %v8924_v39, %v11293_v9  ;;  %v5068_v23 = vmul.f32 %v11636_v0, %v11636_v0  ;;  %v5379_v32 = vsel %vm17_vm3, %v5067_v4, 0.0 }
 0x47f   :  { %v5372_v52 = vadd.f32 %v5371_v57, %v5370_v29  ;;  %v8925_v57 = vld [vmem:[#allocation2 + $0x1e0] sm:$0xff] }
 0x480   :  { %15590 = vst [vmem:[#allocation23_spill] sm:$0xff] %v11642_v37  ;;  %v11648_v20 = vsub.f32 %v8925_v57, %v11293_v9  ;;  %v5069_v42 = vmul.f32 %v11642_v37, %v11642_v37  ;;  %v5381_v48 = vsel %vm17_vm3, %v5068_v23, 0.0 }
 0x481   :  { %v5374_v5 = vadd.f32 %v5373_v18, %v5372_v52  ;;  %v8926_v18 = vld [vmem:[#allocation2 + $0x1e8] sm:$0xff] }
 0x482   :  { %15591 = vst [vmem:[#allocation24_spill] sm:$0xff] %v11648_v20  ;;  %v11654_v39 = vsub.f32 %v8926_v18, %v11293_v9  ;;  %v5070_v0 = vmul.f32 %v11648_v20, %v11648_v20  ;;  %v5383_v4 = vsel %vm17_vm3, %v5069_v42, 0.0 }
 0x483   :  { %v5376_v29 = vadd.f32 %v5375_v56, %v5374_v5  ;;  %v8927_v56 = vld [vmem:[#allocation2 + $0x1f0] sm:$0xff] }
 0x484   :  { %15592 = vst [vmem:[#allocation25_spill] sm:$0xff] %v11654_v39  ;;  %v11660_v57 = vsub.f32 %v8927_v56, %v11293_v9  ;;  %v5071_v37 = vmul.f32 %v11654_v39, %v11654_v39  ;;  %v5385_v23 = vsel %vm17_vm3, %v5070_v0, 0.0 }
 0x485   :  { %v5378_v52 = vadd.f32 %v5377_v7, %v5376_v29  ;;  %v8928_v7 = vld [vmem:[#allocation2 + $0x1f8] sm:$0xff] }
 0x486   :  { %15593 = vst [vmem:[#allocation26_spill] sm:$0xff] %v11660_v57  ;;  %v11666_v18 = vsub.f32 %v8928_v7, %v11293_v9  ;;  %v5072_v20 = vmul.f32 %v11660_v57, %v11660_v57  ;;  %v5387_v42 = vsel %vm17_vm3, %v5071_v37, 0.0 }
 0x487   :  { %v5380_v5 = vadd.f32 %v5379_v32, %v5378_v52  ;;  %v8929_v32 = vld [vmem:[#allocation2 + $0x200] sm:$0xff] }
 0x488   :  { %15594 = vst [vmem:[#allocation27_spill] sm:$0xff] %v11666_v18  ;;  %v11672_v56 = vsub.f32 %v8929_v32, %v11293_v9  ;;  %v5073_v39 = vmul.f32 %v11666_v18, %v11666_v18  ;;  %v5389_v0 = vsel %vm17_vm3, %v5072_v20, 0.0 }
 0x489   :  { %v5382_v29 = vadd.f32 %v5381_v48, %v5380_v5  ;;  %v8930_v48 = vld [vmem:[#allocation2 + $0x208] sm:$0xff] }
 0x48a   :  { %15595 = vst [vmem:[#allocation28_spill] sm:$0xff] %v11672_v56  ;;  %v11678_v7 = vsub.f32 %v8930_v48, %v11293_v9  ;;  %v5074_v57 = vmul.f32 %v11672_v56, %v11672_v56  ;;  %v5391_v37 = vsel %vm17_vm3, %v5073_v39, 0.0 }
 0x48b   :  { %v5384_v52 = vadd.f32 %v5383_v4, %v5382_v29  ;;  %v8931_v4 = vld [vmem:[#allocation2 + $0x210] sm:$0xff] }
 0x48c   :  { %15596 = vst [vmem:[#allocation29_spill] sm:$0xff] %v11678_v7  ;;  %v11684_v32 = vsub.f32 %v8931_v4, %v11293_v9  ;;  %v5075_v18 = vmul.f32 %v11678_v7, %v11678_v7  ;;  %v5393_v20 = vsel %vm17_vm3, %v5074_v57, 0.0 }
 0x48d   :  { %v5386_v5 = vadd.f32 %v5385_v23, %v5384_v52  ;;  %v8932_v23 = vld [vmem:[#allocation2 + $0x218] sm:$0xff] }
 0x48e   :  { %15597 = vst [vmem:[#allocation30_spill] sm:$0xff] %v11684_v32  ;;  %v11690_v48 = vsub.f32 %v8932_v23, %v11293_v9  ;;  %v5076_v56 = vmul.f32 %v11684_v32, %v11684_v32  ;;  %v5395_v39 = vsel %vm17_vm3, %v5075_v18, 0.0 }
 0x48f   :  { %v5388_v29 = vadd.f32 %v5387_v42, %v5386_v5  ;;  %v8933_v42 = vld [vmem:[#allocation2 + $0x220] sm:$0xff] }
 0x490   :  { %15598 = vst [vmem:[#allocation31_spill] sm:$0xff] %v11690_v48  ;;  %v11696_v4 = vsub.f32 %v8933_v42, %v11293_v9  ;;  %v5077_v7 = vmul.f32 %v11690_v48, %v11690_v48  ;;  %v5397_v57 = vsel %vm17_vm3, %v5076_v56, 0.0 }
 0x491   :  { %v5390_v52 = vadd.f32 %v5389_v0, %v5388_v29  ;;  %v8934_v0 = vld [vmem:[#allocation2 + $0x228] sm:$0xff] }
 0x492   :  { %15599 = vst [vmem:[#allocation32_spill] sm:$0xff] %v11696_v4  ;;  %v11702_v23 = vsub.f32 %v8934_v0, %v11293_v9  ;;  %v5078_v32 = vmul.f32 %v11696_v4, %v11696_v4  ;;  %v5399_v18 = vsel %vm17_vm3, %v5077_v7, 0.0 }
 0x493   :  { %v5392_v5 = vadd.f32 %v5391_v37, %v5390_v52  ;;  %v8935_v37 = vld [vmem:[#allocation2 + $0x230] sm:$0xff] }
 0x494   :  { %15600 = vst [vmem:[#allocation33_spill] sm:$0xff] %v11702_v23  ;;  %v11708_v42 = vsub.f32 %v8935_v37, %v11293_v9  ;;  %v5079_v48 = vmul.f32 %v11702_v23, %v11702_v23  ;;  %v5401_v56 = vsel %vm17_vm3, %v5078_v32, 0.0 }
 0x495   :  { %v5394_v29 = vadd.f32 %v5393_v20, %v5392_v5  ;;  %v8936_v20 = vld [vmem:[#allocation2 + $0x238] sm:$0xff] }
 0x496   :  { %15601 = vst [vmem:[#allocation34_spill] sm:$0xff] %v11708_v42  ;;  %v11714_v0 = vsub.f32 %v8936_v20, %v11293_v9  ;;  %v5080_v4 = vmul.f32 %v11708_v42, %v11708_v42  ;;  %v5403_v7 = vsel %vm17_vm3, %v5079_v48, 0.0 }
 0x497   :  { %v5396_v52 = vadd.f32 %v5395_v39, %v5394_v29  ;;  %v8937_v39 = vld [vmem:[#allocation2 + $0x240] sm:$0xff] }
 0x498   :  { %15602 = vst [vmem:[#allocation35_spill] sm:$0xff] %v11714_v0  ;;  %v11720_v37 = vsub.f32 %v8937_v39, %v11293_v9  ;;  %v5081_v23 = vmul.f32 %v11714_v0, %v11714_v0  ;;  %v5405_v32 = vsel %vm17_vm3, %v5080_v4, 0.0 }
 0x499   :  { %v5398_v5 = vadd.f32 %v5397_v57, %v5396_v52  ;;  %v8938_v57 = vld [vmem:[#allocation2 + $0x248] sm:$0xff] }
 0x49a   :  { %15603 = vst [vmem:[#allocation36_spill] sm:$0xff] %v11720_v37  ;;  %v11726_v20 = vsub.f32 %v8938_v57, %v11293_v9  ;;  %v5082_v42 = vmul.f32 %v11720_v37, %v11720_v37  ;;  %v5407_v48 = vsel %vm17_vm3, %v5081_v23, 0.0 }
 0x49b   :  { %v5400_v29 = vadd.f32 %v5399_v18, %v5398_v5  ;;  %v8939_v18 = vld [vmem:[#allocation2 + $0x250] sm:$0xff] }
 0x49c   :  { %15604 = vst [vmem:[#allocation37_spill] sm:$0xff] %v11726_v20  ;;  %v11732_v39 = vsub.f32 %v8939_v18, %v11293_v9  ;;  %v5083_v0 = vmul.f32 %v11726_v20, %v11726_v20  ;;  %v5409_v4 = vsel %vm17_vm3, %v5082_v42, 0.0 }
 0x49d   :  { %v5402_v52 = vadd.f32 %v5401_v56, %v5400_v29  ;;  %v8940_v56 = vld [vmem:[#allocation2 + $0x258] sm:$0xff] }
 0x49e   :  { %15605 = vst [vmem:[#allocation38_spill] sm:$0xff] %v11732_v39  ;;  %v11738_v57 = vsub.f32 %v8940_v56, %v11293_v9  ;;  %v5084_v37 = vmul.f32 %v11732_v39, %v11732_v39  ;;  %v5411_v23 = vsel %vm17_vm3, %v5083_v0, 0.0 }
 0x49f   :  { %v5404_v5 = vadd.f32 %v5403_v7, %v5402_v52  ;;  %v8941_v7 = vld [vmem:[#allocation2 + $0x260] sm:$0xff] }
 0x4a0   :  { %15606 = vst [vmem:[#allocation39_spill] sm:$0xff] %v11738_v57  ;;  %v11744_v18 = vsub.f32 %v8941_v7, %v11293_v9  ;;  %v5085_v20 = vmul.f32 %v11738_v57, %v11738_v57  ;;  %v5413_v42 = vsel %vm17_vm3, %v5084_v37, 0.0 }
 0x4a1   :  { %v5406_v29 = vadd.f32 %v5405_v32, %v5404_v5  ;;  %v8942_v32 = vld [vmem:[#allocation2 + $0x268] sm:$0xff] }
 0x4a2   :  { %15607 = vst [vmem:[#allocation40_spill] sm:$0xff] %v11744_v18  ;;  %v11750_v56 = vsub.f32 %v8942_v32, %v11293_v9  ;;  %v5086_v39 = vmul.f32 %v11744_v18, %v11744_v18  ;;  %v5415_v0 = vsel %vm17_vm3, %v5085_v20, 0.0 }
 0x4a3   :  { %v5408_v52 = vadd.f32 %v5407_v48, %v5406_v29  ;;  %v8943_v48 = vld [vmem:[#allocation2 + $0x270] sm:$0xff] }
 0x4a4   :  { %15608 = vst [vmem:[#allocation41_spill] sm:$0xff] %v11750_v56  ;;  %v11756_v7 = vsub.f32 %v8943_v48, %v11293_v9  ;;  %v5087_v57 = vmul.f32 %v11750_v56, %v11750_v56  ;;  %v5417_v37 = vsel %vm17_vm3, %v5086_v39, 0.0 }
 0x4a5   :  { %v5410_v5 = vadd.f32 %v5409_v4, %v5408_v52  ;;  %v8944_v4 = vld [vmem:[#allocation2 + $0x278] sm:$0xff] }
 0x4a6   :  { %15609 = vst [vmem:[#allocation42_spill] sm:$0xff] %v11756_v7  ;;  %v11762_v32 = vsub.f32 %v8944_v4, %v11293_v9  ;;  %v5088_v18 = vmul.f32 %v11756_v7, %v11756_v7  ;;  %v5419_v20 = vsel %vm17_vm3, %v5087_v57, 0.0 }
 0x4a7   :  { %v5412_v29 = vadd.f32 %v5411_v23, %v5410_v5  ;;  %v8945_v23 = vld [vmem:[#allocation2 + $0x280] sm:$0xff] }
 0x4a8   :  { %15610 = vst [vmem:[#allocation43_spill] sm:$0xff] %v11762_v32  ;;  %v11768_v48 = vsub.f32 %v8945_v23, %v11293_v9  ;;  %v5089_v56 = vmul.f32 %v11762_v32, %v11762_v32  ;;  %v5421_v39 = vsel %vm17_vm3, %v5088_v18, 0.0 }
 0x4a9   :  { %v5414_v52 = vadd.f32 %v5413_v42, %v5412_v29  ;;  %v8946_v42 = vld [vmem:[#allocation2 + $0x288] sm:$0xff] }
 0x4aa   :  { %15611 = vst [vmem:[#allocation44_spill] sm:$0xff] %v11768_v48  ;;  %v11774_v4 = vsub.f32 %v8946_v42, %v11293_v9  ;;  %v5090_v7 = vmul.f32 %v11768_v48, %v11768_v48  ;;  %v5423_v57 = vsel %vm17_vm3, %v5089_v56, 0.0 }
 0x4ab   :  { %v5416_v5 = vadd.f32 %v5415_v0, %v5414_v52  ;;  %v8947_v0 = vld [vmem:[#allocation2 + $0x290] sm:$0xff] }
 0x4ac   :  { %15612 = vst [vmem:[#allocation45_spill] sm:$0xff] %v11774_v4  ;;  %v11780_v23 = vsub.f32 %v8947_v0, %v11293_v9  ;;  %v5091_v32 = vmul.f32 %v11774_v4, %v11774_v4  ;;  %v5425_v18 = vsel %vm17_vm3, %v5090_v7, 0.0 }
 0x4ad   :  { %v5418_v29 = vadd.f32 %v5417_v37, %v5416_v5  ;;  %v8948_v37 = vld [vmem:[#allocation2 + $0x298] sm:$0xff] }
 0x4ae   :  { %15613 = vst [vmem:[#allocation46_spill] sm:$0xff] %v11780_v23  ;;  %v11786_v42 = vsub.f32 %v8948_v37, %v11293_v9  ;;  %v5092_v48 = vmul.f32 %v11780_v23, %v11780_v23  ;;  %v5427_v56 = vsel %vm17_vm3, %v5091_v32, 0.0 }
 0x4af   :  { %v5420_v52 = vadd.f32 %v5419_v20, %v5418_v29  ;;  %v8949_v20 = vld [vmem:[#allocation2 + $0x2a0] sm:$0xff] }
 0x4b0   :  { %15614 = vst [vmem:[#allocation47_spill] sm:$0xff] %v11786_v42  ;;  %v11792_v0 = vsub.f32 %v8949_v20, %v11293_v9  ;;  %v5093_v4 = vmul.f32 %v11786_v42, %v11786_v42  ;;  %v5429_v7 = vsel %vm17_vm3, %v5092_v48, 0.0 }
 0x4b1   :  { %v5422_v5 = vadd.f32 %v5421_v39, %v5420_v52  ;;  %v8950_v39 = vld [vmem:[#allocation2 + $0x2a8] sm:$0xff] }
 0x4b2   :  { %15615 = vst [vmem:[#allocation48_spill] sm:$0xff] %v11792_v0  ;;  %v11798_v37 = vsub.f32 %v8950_v39, %v11293_v9  ;;  %v5094_v23 = vmul.f32 %v11792_v0, %v11792_v0  ;;  %v5431_v32 = vsel %vm17_vm3, %v5093_v4, 0.0 }
 0x4b3   :  { %v5424_v29 = vadd.f32 %v5423_v57, %v5422_v5  ;;  %v8951_v57 = vld [vmem:[#allocation2 + $0x2b0] sm:$0xff] }
 0x4b4   :  { %15616 = vst [vmem:[#allocation49_spill] sm:$0xff] %v11798_v37  ;;  %v11804_v20 = vsub.f32 %v8951_v57, %v11293_v9  ;;  %v5095_v42 = vmul.f32 %v11798_v37, %v11798_v37  ;;  %v5433_v48 = vsel %vm17_vm3, %v5094_v23, 0.0 }
 0x4b5   :  { %v5426_v52 = vadd.f32 %v5425_v18, %v5424_v29  ;;  %v8952_v18 = vld [vmem:[#allocation2 + $0x2b8] sm:$0xff] }
 0x4b6   :  { %15617 = vst [vmem:[#allocation50_spill] sm:$0xff] %v11804_v20  ;;  %v11810_v39 = vsub.f32 %v8952_v18, %v11293_v9  ;;  %v5096_v0 = vmul.f32 %v11804_v20, %v11804_v20  ;;  %v5435_v4 = vsel %vm17_vm3, %v5095_v42, 0.0 }
 0x4b7   :  { %v5428_v5 = vadd.f32 %v5427_v56, %v5426_v52  ;;  %v8953_v56 = vld [vmem:[#allocation2 + $0x2c0] sm:$0xff] }
 0x4b8   :  { %15618 = vst [vmem:[#allocation51_spill] sm:$0xff] %v11810_v39  ;;  %v11816_v57 = vsub.f32 %v8953_v56, %v11293_v9  ;;  %v5097_v37 = vmul.f32 %v11810_v39, %v11810_v39  ;;  %v5437_v23 = vsel %vm17_vm3, %v5096_v0, 0.0 }
 0x4b9   :  { %v5430_v29 = vadd.f32 %v5429_v7, %v5428_v5  ;;  %v8954_v7 = vld [vmem:[#allocation2 + $0x2c8] sm:$0xff] }
 0x4ba   :  { %15619 = vst [vmem:[#allocation52_spill] sm:$0xff] %v11816_v57  ;;  %v11822_v18 = vsub.f32 %v8954_v7, %v11293_v9  ;;  %v5098_v20 = vmul.f32 %v11816_v57, %v11816_v57  ;;  %v5439_v42 = vsel %vm17_vm3, %v5097_v37, 0.0 }
 0x4bb   :  { %v5432_v52 = vadd.f32 %v5431_v32, %v5430_v29  ;;  %v8955_v32 = vld [vmem:[#allocation2 + $0x2d0] sm:$0xff] }
 0x4bc   :  { %15620 = vst [vmem:[#allocation53_spill] sm:$0xff] %v11822_v18  ;;  %v11828_v56 = vsub.f32 %v8955_v32, %v11293_v9  ;;  %v5099_v39 = vmul.f32 %v11822_v18, %v11822_v18  ;;  %v5441_v0 = vsel %vm17_vm3, %v5098_v20, 0.0 }
 0x4bd   :  { %v5434_v5 = vadd.f32 %v5433_v48, %v5432_v52  ;;  %v8956_v48 = vld [vmem:[#allocation2 + $0x2d8] sm:$0xff] }
 0x4be   :  { %15621 = vst [vmem:[#allocation54_spill] sm:$0xff] %v11828_v56  ;;  %v11834_v7 = vsub.f32 %v8956_v48, %v11293_v9  ;;  %v5100_v57 = vmul.f32 %v11828_v56, %v11828_v56  ;;  %v5443_v37 = vsel %vm17_vm3, %v5099_v39, 0.0 }
 0x4bf   :  { %v5436_v29 = vadd.f32 %v5435_v4, %v5434_v5  ;;  %v8957_v4 = vld [vmem:[#allocation2 + $0x2e0] sm:$0xff] }
 0x4c0   :  { %15622 = vst [vmem:[#allocation55_spill] sm:$0xff] %v11834_v7  ;;  %v11840_v32 = vsub.f32 %v8957_v4, %v11293_v9  ;;  %v5101_v18 = vmul.f32 %v11834_v7, %v11834_v7  ;;  %v5445_v20 = vsel %vm17_vm3, %v5100_v57, 0.0 }
 0x4c1   :  { %v5438_v52 = vadd.f32 %v5437_v23, %v5436_v29  ;;  %v8958_v23 = vld [vmem:[#allocation2 + $0x2e8] sm:$0xff] }
 0x4c2   :  { %15623 = vst [vmem:[#allocation56_spill] sm:$0xff] %v11840_v32  ;;  %v11846_v48 = vsub.f32 %v8958_v23, %v11293_v9  ;;  %v5102_v56 = vmul.f32 %v11840_v32, %v11840_v32  ;;  %v5447_v39 = vsel %vm17_vm3, %v5101_v18, 0.0 }
 0x4c3   :  { %v5440_v5 = vadd.f32 %v5439_v42, %v5438_v52  ;;  %v8959_v42 = vld [vmem:[#allocation2 + $0x2f0] sm:$0xff] }
 0x4c4   :  { %15624 = vst [vmem:[#allocation57_spill] sm:$0xff] %v11846_v48  ;;  %v11852_v4 = vsub.f32 %v8959_v42, %v11293_v9  ;;  %v5103_v7 = vmul.f32 %v11846_v48, %v11846_v48  ;;  %v5449_v57 = vsel %vm17_vm3, %v5102_v56, 0.0 }
 0x4c5   :  { %v5442_v29 = vadd.f32 %v5441_v0, %v5440_v5  ;;  %v8960_v0 = vld [vmem:[#allocation2 + $0x2f8] sm:$0xff] }
 0x4c6   :  { %15625 = vst [vmem:[#allocation58_spill] sm:$0xff] %v11852_v4  ;;  %v11858_v23 = vsub.f32 %v8960_v0, %v11293_v9  ;;  %v5104_v32 = vmul.f32 %v11852_v4, %v11852_v4  ;;  %v5451_v18 = vsel %vm17_vm3, %v5103_v7, 0.0 }
 0x4c7   :  { %v5444_v52 = vadd.f32 %v5443_v37, %v5442_v29  ;;  %v8961_v37 = vld [vmem:[#allocation2 + $0x300] sm:$0xff] }
 0x4c8   :  { %15626 = vst [vmem:[#allocation59_spill] sm:$0xff] %v11858_v23  ;;  %v11864_v42 = vsub.f32 %v8961_v37, %v11293_v9  ;;  %v5105_v48 = vmul.f32 %v11858_v23, %v11858_v23  ;;  %v5453_v56 = vsel %vm17_vm3, %v5104_v32, 0.0 }
 0x4c9   :  { %v5446_v5 = vadd.f32 %v5445_v20, %v5444_v52  ;;  %v8962_v20 = vld [vmem:[#allocation2 + $0x308] sm:$0xff] }
 0x4ca   :  { %15627 = vst [vmem:[#allocation60_spill] sm:$0xff] %v11864_v42  ;;  %v11870_v0 = vsub.f32 %v8962_v20, %v11293_v9  ;;  %v5106_v4 = vmul.f32 %v11864_v42, %v11864_v42  ;;  %v5455_v7 = vsel %vm17_vm3, %v5105_v48, 0.0 }
 0x4cb   :  { %v5448_v29 = vadd.f32 %v5447_v39, %v5446_v5  ;;  %v8963_v39 = vld [vmem:[#allocation2 + $0x310] sm:$0xff] }
 0x4cc   :  { %15628 = vst [vmem:[#allocation61_spill] sm:$0xff] %v11870_v0  ;;  %v11876_v37 = vsub.f32 %v8963_v39, %v11293_v9  ;;  %v5107_v23 = vmul.f32 %v11870_v0, %v11870_v0  ;;  %v5457_v32 = vsel %vm17_vm3, %v5106_v4, 0.0 }
 0x4cd   :  { %v5450_v52 = vadd.f32 %v5449_v57, %v5448_v29  ;;  %v8964_v57 = vld [vmem:[#allocation2 + $0x318] sm:$0xff] }
 0x4ce   :  { %15629 = vst [vmem:[#allocation62_spill] sm:$0xff] %v11876_v37  ;;  %v11882_v20 = vsub.f32 %v8964_v57, %v11293_v9  ;;  %v5108_v42 = vmul.f32 %v11876_v37, %v11876_v37  ;;  %v5459_v48 = vsel %vm17_vm3, %v5107_v23, 0.0 }
 0x4cf   :  { %v5452_v5 = vadd.f32 %v5451_v18, %v5450_v52  ;;  %v8965_v18 = vld [vmem:[#allocation2 + $0x320] sm:$0xff] }
 0x4d0   :  { %15630 = vst [vmem:[#allocation63_spill] sm:$0xff] %v11882_v20  ;;  %v11888_v39 = vsub.f32 %v8965_v18, %v11293_v9  ;;  %v5109_v0 = vmul.f32 %v11882_v20, %v11882_v20  ;;  %v5461_v4 = vsel %vm17_vm3, %v5108_v42, 0.0 }
 0x4d1   :  { %v5454_v29 = vadd.f32 %v5453_v56, %v5452_v5  ;;  %v8966_v56 = vld [vmem:[#allocation2 + $0x328] sm:$0xff] }
 0x4d2   :  { %15631 = vst [vmem:[#allocation64_spill] sm:$0xff] %v11888_v39  ;;  %v11894_v57 = vsub.f32 %v8966_v56, %v11293_v9  ;;  %v5110_v37 = vmul.f32 %v11888_v39, %v11888_v39  ;;  %v5463_v23 = vsel %vm17_vm3, %v5109_v0, 0.0 }
 0x4d3   :  { %v5456_v52 = vadd.f32 %v5455_v7, %v5454_v29  ;;  %v8967_v7 = vld [vmem:[#allocation2 + $0x330] sm:$0xff] }
 0x4d4   :  { %15632 = vst [vmem:[#allocation65_spill] sm:$0xff] %v11894_v57  ;;  %v11900_v18 = vsub.f32 %v8967_v7, %v11293_v9  ;;  %v5111_v20 = vmul.f32 %v11894_v57, %v11894_v57  ;;  %v5465_v42 = vsel %vm17_vm3, %v5110_v37, 0.0 }
 0x4d5   :  { %v5458_v5 = vadd.f32 %v5457_v32, %v5456_v52  ;;  %v8968_v32 = vld [vmem:[#allocation2 + $0x338] sm:$0xff] }
 0x4d6   :  { %15633 = vst [vmem:[#allocation66_spill] sm:$0xff] %v11900_v18  ;;  %v11906_v56 = vsub.f32 %v8968_v32, %v11293_v9  ;;  %v5112_v39 = vmul.f32 %v11900_v18, %v11900_v18  ;;  %v5467_v0 = vsel %vm17_vm3, %v5111_v20, 0.0 }
 0x4d7   :  { %v5460_v29 = vadd.f32 %v5459_v48, %v5458_v5  ;;  %v8969_v48 = vld [vmem:[#allocation2 + $0x340] sm:$0xff] }
 0x4d8   :  { %15634 = vst [vmem:[#allocation67_spill] sm:$0xff] %v11906_v56  ;;  %v11912_v7 = vsub.f32 %v8969_v48, %v11293_v9  ;;  %v5113_v57 = vmul.f32 %v11906_v56, %v11906_v56  ;;  %v5469_v37 = vsel %vm17_vm3, %v5112_v39, 0.0 }
 0x4d9   :  { %v5462_v52 = vadd.f32 %v5461_v4, %v5460_v29  ;;  %v8970_v4 = vld [vmem:[#allocation2 + $0x348] sm:$0xff] }
 0x4da   :  { %15635 = vst [vmem:[#allocation68_spill] sm:$0xff] %v11912_v7  ;;  %v11918_v32 = vsub.f32 %v8970_v4, %v11293_v9  ;;  %v5114_v18 = vmul.f32 %v11912_v7, %v11912_v7  ;;  %v5471_v20 = vsel %vm17_vm3, %v5113_v57, 0.0 }
 0x4db   :  { %v5464_v5 = vadd.f32 %v5463_v23, %v5462_v52  ;;  %v8971_v23 = vld [vmem:[#allocation2 + $0x350] sm:$0xff] }
 0x4dc   :  { %15636 = vst [vmem:[#allocation69_spill] sm:$0xff] %v11918_v32  ;;  %v11924_v48 = vsub.f32 %v8971_v23, %v11293_v9  ;;  %v5115_v56 = vmul.f32 %v11918_v32, %v11918_v32  ;;  %v5473_v39 = vsel %vm17_vm3, %v5114_v18, 0.0 }
 0x4dd   :  { %v5466_v29 = vadd.f32 %v5465_v42, %v5464_v5  ;;  %v8972_v42 = vld [vmem:[#allocation2 + $0x358] sm:$0xff] }
 0x4de   :  { %15637 = vst [vmem:[#allocation70_spill] sm:$0xff] %v11924_v48  ;;  %v11930_v4 = vsub.f32 %v8972_v42, %v11293_v9  ;;  %v5116_v7 = vmul.f32 %v11924_v48, %v11924_v48  ;;  %v5475_v57 = vsel %vm17_vm3, %v5115_v56, 0.0 }
 0x4df   :  { %v5468_v52 = vadd.f32 %v5467_v0, %v5466_v29  ;;  %v8973_v0 = vld [vmem:[#allocation2 + $0x360] sm:$0xff] }
 0x4e0   :  { %15638 = vst [vmem:[#allocation71_spill] sm:$0xff] %v11930_v4  ;;  %v11936_v23 = vsub.f32 %v8973_v0, %v11293_v9  ;;  %v5117_v32 = vmul.f32 %v11930_v4, %v11930_v4  ;;  %v5477_v18 = vsel %vm17_vm3, %v5116_v7, 0.0 }
 0x4e1   :  { %v5470_v5 = vadd.f32 %v5469_v37, %v5468_v52  ;;  %v8974_v37 = vld [vmem:[#allocation2 + $0x368] sm:$0xff] }
 0x4e2   :  { %15639 = vst [vmem:[#allocation72_spill] sm:$0xff] %v11936_v23  ;;  %v11942_v42 = vsub.f32 %v8974_v37, %v11293_v9  ;;  %v5118_v48 = vmul.f32 %v11936_v23, %v11936_v23  ;;  %v5479_v56 = vsel %vm17_vm3, %v5117_v32, 0.0 }
 0x4e3   :  { %v5472_v29 = vadd.f32 %v5471_v20, %v5470_v5  ;;  %v8975_v20 = vld [vmem:[#allocation2 + $0x370] sm:$0xff] }
 0x4e4   :  { %15640 = vst [vmem:[#allocation73_spill] sm:$0xff] %v11942_v42  ;;  %v11948_v0 = vsub.f32 %v8975_v20, %v11293_v9  ;;  %v5119_v4 = vmul.f32 %v11942_v42, %v11942_v42  ;;  %v5481_v7 = vsel %vm17_vm3, %v5118_v48, 0.0 }
 0x4e5   :  { %v5474_v52 = vadd.f32 %v5473_v39, %v5472_v29  ;;  %v8976_v39 = vld [vmem:[#allocation2 + $0x378] sm:$0xff] }
 0x4e6   :  { %15641 = vst [vmem:[#allocation74_spill] sm:$0xff] %v11948_v0  ;;  %v11954_v37 = vsub.f32 %v8976_v39, %v11293_v9  ;;  %v5120_v23 = vmul.f32 %v11948_v0, %v11948_v0  ;;  %v5483_v32 = vsel %vm17_vm3, %v5119_v4, 0.0 }
 0x4e7   :  { %v5476_v5 = vadd.f32 %v5475_v57, %v5474_v52  ;;  %v8977_v57 = vld [vmem:[#allocation2 + $0x380] sm:$0xff] }
 0x4e8   :  { %15642 = vst [vmem:[#allocation75_spill] sm:$0xff] %v11954_v37  ;;  %v11960_v20 = vsub.f32 %v8977_v57, %v11293_v9  ;;  %v5121_v42 = vmul.f32 %v11954_v37, %v11954_v37  ;;  %v5485_v48 = vsel %vm17_vm3, %v5120_v23, 0.0 }
 0x4e9   :  { %v5478_v29 = vadd.f32 %v5477_v18, %v5476_v5  ;;  %v8978_v18 = vld [vmem:[#allocation2 + $0x388] sm:$0xff] }
 0x4ea   :  { %15643 = vst [vmem:[#allocation76_spill] sm:$0xff] %v11960_v20  ;;  %v11966_v39 = vsub.f32 %v8978_v18, %v11293_v9  ;;  %v5122_v0 = vmul.f32 %v11960_v20, %v11960_v20  ;;  %v5487_v4 = vsel %vm17_vm3, %v5121_v42, 0.0 }
 0x4eb   :  { %v5480_v52 = vadd.f32 %v5479_v56, %v5478_v29  ;;  %v8979_v56 = vld [vmem:[#allocation2 + $0x390] sm:$0xff] }
 0x4ec   :  { %15644 = vst [vmem:[#allocation77_spill] sm:$0xff] %v11966_v39  ;;  %v11972_v57 = vsub.f32 %v8979_v56, %v11293_v9  ;;  %v5123_v37 = vmul.f32 %v11966_v39, %v11966_v39  ;;  %v5489_v23 = vsel %vm17_vm3, %v5122_v0, 0.0 }
 0x4ed   :  { %v5482_v5 = vadd.f32 %v5481_v7, %v5480_v52  ;;  %v8980_v7 = vld [vmem:[#allocation2 + $0x398] sm:$0xff] }
 0x4ee   :  { %15645 = vst [vmem:[#allocation78_spill] sm:$0xff] %v11972_v57  ;;  %v11978_v18 = vsub.f32 %v8980_v7, %v11293_v9  ;;  %v5124_v20 = vmul.f32 %v11972_v57, %v11972_v57  ;;  %v5491_v42 = vsel %vm17_vm3, %v5123_v37, 0.0 }
 0x4ef   :  { %v5484_v29 = vadd.f32 %v5483_v32, %v5482_v5  ;;  %v8981_v32 = vld [vmem:[#allocation2 + $0x3a0] sm:$0xff] }
 0x4f0   :  { %15646 = vst [vmem:[#allocation79_spill] sm:$0xff] %v11978_v18  ;;  %v11984_v56 = vsub.f32 %v8981_v32, %v11293_v9  ;;  %v5125_v39 = vmul.f32 %v11978_v18, %v11978_v18  ;;  %v5493_v0 = vsel %vm17_vm3, %v5124_v20, 0.0 }
 0x4f1   :  { %v5486_v52 = vadd.f32 %v5485_v48, %v5484_v29  ;;  %v8982_v48 = vld [vmem:[#allocation2 + $0x3a8] sm:$0xff] }
 0x4f2   :  { %15647 = vst [vmem:[#allocation80_spill] sm:$0xff] %v11984_v56  ;;  %v11990_v7 = vsub.f32 %v8982_v48, %v11293_v9  ;;  %v5126_v57 = vmul.f32 %v11984_v56, %v11984_v56  ;;  %v5495_v37 = vsel %vm17_vm3, %v5125_v39, 0.0 }
 0x4f3   :  { %v5488_v5 = vadd.f32 %v5487_v4, %v5486_v52  ;;  %v8983_v4 = vld [vmem:[#allocation2 + $0x3b0] sm:$0xff] }
 0x4f4   :  { %15648 = vst [vmem:[#allocation81_spill] sm:$0xff] %v11990_v7  ;;  %v11996_v32 = vsub.f32 %v8983_v4, %v11293_v9  ;;  %v5127_v18 = vmul.f32 %v11990_v7, %v11990_v7  ;;  %v5497_v20 = vsel %vm17_vm3, %v5126_v57, 0.0 }
 0x4f5   :  { %v5490_v29 = vadd.f32 %v5489_v23, %v5488_v5  ;;  %v8984_v23 = vld [vmem:[#allocation2 + $0x3b8] sm:$0xff] }
 0x4f6   :  { %15649 = vst [vmem:[#allocation82_spill] sm:$0xff] %v11996_v32  ;;  %v12002_v48 = vsub.f32 %v8984_v23, %v11293_v9  ;;  %v5128_v56 = vmul.f32 %v11996_v32, %v11996_v32  ;;  %v5499_v39 = vsel %vm17_vm3, %v5127_v18, 0.0 }
 0x4f7   :  { %v5492_v52 = vadd.f32 %v5491_v42, %v5490_v29  ;;  %v8985_v42 = vld [vmem:[#allocation2 + $0x3c0] sm:$0xff] }
 0x4f8   :  { %15650 = vst [vmem:[#allocation83_spill] sm:$0xff] %v12002_v48  ;;  %v12008_v4 = vsub.f32 %v8985_v42, %v11293_v9  ;;  %v5129_v7 = vmul.f32 %v12002_v48, %v12002_v48  ;;  %v5501_v57 = vsel %vm17_vm3, %v5128_v56, 0.0 }
 0x4f9   :  { %v5494_v5 = vadd.f32 %v5493_v0, %v5492_v52  ;;  %v8986_v0 = vld [vmem:[#allocation2 + $0x3c8] sm:$0xff] }
 0x4fa   :  { %15651 = vst [vmem:[#allocation84_spill] sm:$0xff] %v12008_v4  ;;  %v12014_v23 = vsub.f32 %v8986_v0, %v11293_v9  ;;  %v5130_v32 = vmul.f32 %v12008_v4, %v12008_v4  ;;  %v5503_v18 = vsel %vm17_vm3, %v5129_v7, 0.0 }
 0x4fb   :  { %v5496_v29 = vadd.f32 %v5495_v37, %v5494_v5  ;;  %v8987_v37 = vld [vmem:[#allocation2 + $0x3d0] sm:$0xff] }
 0x4fc   :  { %15652 = vst [vmem:[#allocation85_spill] sm:$0xff] %v12014_v23  ;;  %v12020_v42 = vsub.f32 %v8987_v37, %v11293_v9  ;;  %v5131_v48 = vmul.f32 %v12014_v23, %v12014_v23  ;;  %v5505_v56 = vsel %vm17_vm3, %v5130_v32, 0.0 }
 0x4fd   :  { %v5498_v52 = vadd.f32 %v5497_v20, %v5496_v29  ;;  %v8988_v20 = vld [vmem:[#allocation2 + $0x3d8] sm:$0xff] }
 0x4fe   :  { %15653 = vst [vmem:[#allocation86_spill] sm:$0xff] %v12020_v42  ;;  %v12026_v0 = vsub.f32 %v8988_v20, %v11293_v9  ;;  %v5132_v4 = vmul.f32 %v12020_v42, %v12020_v42  ;;  %v5507_v7 = vsel %vm17_vm3, %v5131_v48, 0.0 }
 0x4ff   :  { %v5500_v5 = vadd.f32 %v5499_v39, %v5498_v52  ;;  %v8989_v39 = vld [vmem:[#allocation2 + $0x3e0] sm:$0xff] }
 0x500   :  { %15654 = vst [vmem:[#allocation87_spill] sm:$0xff] %v12026_v0  ;;  %v12032_v37 = vsub.f32 %v8989_v39, %v11293_v9  ;;  %v5133_v23 = vmul.f32 %v12026_v0, %v12026_v0  ;;  %v5509_v32 = vsel %vm17_vm3, %v5132_v4, 0.0 }
 0x501   :  { %v5502_v29 = vadd.f32 %v5501_v57, %v5500_v5  ;;  %v8990_v57 = vld [vmem:[#allocation2 + $0x3e8] sm:$0xff] }
 0x502   :  { %15655 = vst [vmem:[#allocation88_spill] sm:$0xff] %v12032_v37  ;;  %v12038_v20 = vsub.f32 %v8990_v57, %v11293_v9  ;;  %v5134_v42 = vmul.f32 %v12032_v37, %v12032_v37  ;;  %v5511_v48 = vsel %vm17_vm3, %v5133_v23, 0.0 }
 0x503   :  { %v5504_v52 = vadd.f32 %v5503_v18, %v5502_v29  ;;  %v8991_v18 = vld [vmem:[#allocation2 + $0x3f0] sm:$0xff] }
 0x504   :  { %15656 = vst [vmem:[#allocation89_spill] sm:$0xff] %v12038_v20  ;;  %v12044_v39 = vsub.f32 %v8991_v18, %v11293_v9  ;;  %v5135_v0 = vmul.f32 %v12038_v20, %v12038_v20  ;;  %v5513_v4 = vsel %vm17_vm3, %v5134_v42, 0.0 }
 0x505   :  { %v5506_v5 = vadd.f32 %v5505_v56, %v5504_v52  ;;  %v8992_v56 = vld [vmem:[#allocation2 + $0x3f8] sm:$0xff] }
 0x506   :  { %15657 = vst [vmem:[#allocation90_spill] sm:$0xff] %v12044_v39  ;;  %v12050_v57 = vsub.f32 %v8992_v56, %v11293_v9  ;;  %v5136_v37 = vmul.f32 %v12044_v39, %v12044_v39  ;;  %v5515_v23 = vsel %vm17_vm3, %v5135_v0, 0.0 }
 0x507   :  { %v5508_v29 = vadd.f32 %v5507_v7, %v5506_v5  ;;  %v8993_v7 = vld [vmem:[#allocation2 + $0x400] sm:$0xff] }
 0x508   :  { %15658 = vst [vmem:[#allocation91_spill] sm:$0xff] %v12050_v57  ;;  %v12056_v18 = vsub.f32 %v8993_v7, %v11293_v9  ;;  %v5137_v20 = vmul.f32 %v12050_v57, %v12050_v57  ;;  %v5517_v42 = vsel %vm17_vm3, %v5136_v37, 0.0 }
 0x509   :  { %v5510_v52 = vadd.f32 %v5509_v32, %v5508_v29  ;;  %v8994_v32 = vld [vmem:[#allocation2 + $0x408] sm:$0xff] }
 0x50a   :  { %15659 = vst [vmem:[#allocation92_spill] sm:$0xff] %v12056_v18  ;;  %v12062_v56 = vsub.f32 %v8994_v32, %v11293_v9  ;;  %v5138_v39 = vmul.f32 %v12056_v18, %v12056_v18  ;;  %v5519_v0 = vsel %vm17_vm3, %v5137_v20, 0.0 }
 0x50b   :  { %v5512_v5 = vadd.f32 %v5511_v48, %v5510_v52  ;;  %v8995_v48 = vld [vmem:[#allocation2 + $0x410] sm:$0xff] }
 0x50c   :  { %15660 = vst [vmem:[#allocation93_spill] sm:$0xff] %v12062_v56  ;;  %v12068_v7 = vsub.f32 %v8995_v48, %v11293_v9  ;;  %v5139_v57 = vmul.f32 %v12062_v56, %v12062_v56  ;;  %v5521_v37 = vsel %vm17_vm3, %v5138_v39, 0.0 }
 0x50d   :  { %v5514_v29 = vadd.f32 %v5513_v4, %v5512_v5  ;;  %v8996_v4 = vld [vmem:[#allocation2 + $0x418] sm:$0xff] }
 0x50e   :  { %15661 = vst [vmem:[#allocation94_spill] sm:$0xff] %v12068_v7  ;;  %v12074_v32 = vsub.f32 %v8996_v4, %v11293_v9  ;;  %v5140_v18 = vmul.f32 %v12068_v7, %v12068_v7  ;;  %v5523_v20 = vsel %vm17_vm3, %v5139_v57, 0.0 }
 0x50f   :  { %v5516_v52 = vadd.f32 %v5515_v23, %v5514_v29  ;;  %v8997_v23 = vld [vmem:[#allocation2 + $0x420] sm:$0xff] }
 0x510   :  { %15662 = vst [vmem:[#allocation95_spill] sm:$0xff] %v12074_v32  ;;  %v12080_v48 = vsub.f32 %v8997_v23, %v11293_v9  ;;  %v5141_v56 = vmul.f32 %v12074_v32, %v12074_v32  ;;  %v5525_v39 = vsel %vm17_vm3, %v5140_v18, 0.0 }
 0x511   :  { %v5518_v5 = vadd.f32 %v5517_v42, %v5516_v52  ;;  %v8998_v42 = vld [vmem:[#allocation2 + $0x428] sm:$0xff] }
 0x512   :  { %15663 = vst [vmem:[#allocation96_spill] sm:$0xff] %v12080_v48  ;;  %v12086_v4 = vsub.f32 %v8998_v42, %v11293_v9  ;;  %v5142_v7 = vmul.f32 %v12080_v48, %v12080_v48  ;;  %v5527_v57 = vsel %vm17_vm3, %v5141_v56, 0.0 }
 0x513   :  { %v5520_v29 = vadd.f32 %v5519_v0, %v5518_v5  ;;  %v8999_v0 = vld [vmem:[#allocation2 + $0x430] sm:$0xff] }
 0x514   :  { %15664 = vst [vmem:[#allocation97_spill] sm:$0xff] %v12086_v4  ;;  %v12092_v23 = vsub.f32 %v8999_v0, %v11293_v9  ;;  %v5143_v32 = vmul.f32 %v12086_v4, %v12086_v4  ;;  %v5529_v18 = vsel %vm17_vm3, %v5142_v7, 0.0 }
 0x515   :  { %v5522_v52 = vadd.f32 %v5521_v37, %v5520_v29  ;;  %v9000_v37 = vld [vmem:[#allocation2 + $0x438] sm:$0xff] }
 0x516   :  { %15665 = vst [vmem:[#allocation98_spill] sm:$0xff] %v12092_v23  ;;  %v12098_v42 = vsub.f32 %v9000_v37, %v11293_v9  ;;  %v5144_v48 = vmul.f32 %v12092_v23, %v12092_v23  ;;  %v5531_v56 = vsel %vm17_vm3, %v5143_v32, 0.0 }
 0x517   :  { %v5524_v5 = vadd.f32 %v5523_v20, %v5522_v52  ;;  %v9001_v20 = vld [vmem:[#allocation2 + $0x440] sm:$0xff] }
 0x518   :  { %15666 = vst [vmem:[#allocation99_spill] sm:$0xff] %v12098_v42  ;;  %v12104_v0 = vsub.f32 %v9001_v20, %v11293_v9  ;;  %v5145_v4 = vmul.f32 %v12098_v42, %v12098_v42  ;;  %v5533_v7 = vsel %vm17_vm3, %v5144_v48, 0.0 }
 0x519   :  { %v5526_v29 = vadd.f32 %v5525_v39, %v5524_v5  ;;  %v9002_v39 = vld [vmem:[#allocation2 + $0x448] sm:$0xff] }
 0x51a   :  { %15667 = vst [vmem:[#allocation100_spill] sm:$0xff] %v12104_v0  ;;  %v12110_v37 = vsub.f32 %v9002_v39, %v11293_v9  ;;  %v5146_v23 = vmul.f32 %v12104_v0, %v12104_v0  ;;  %v5535_v32 = vsel %vm17_vm3, %v5145_v4, 0.0 }
 0x51b   :  { %v5528_v52 = vadd.f32 %v5527_v57, %v5526_v29  ;;  %v9003_v57 = vld [vmem:[#allocation2 + $0x450] sm:$0xff] }
 0x51c   :  { %15668 = vst [vmem:[#allocation101_spill] sm:$0xff] %v12110_v37  ;;  %v12116_v20 = vsub.f32 %v9003_v57, %v11293_v9  ;;  %v5147_v42 = vmul.f32 %v12110_v37, %v12110_v37  ;;  %v5537_v48 = vsel %vm17_vm3, %v5146_v23, 0.0 }
 0x51d   :  { %v5530_v5 = vadd.f32 %v5529_v18, %v5528_v52  ;;  %v9004_v18 = vld [vmem:[#allocation2 + $0x458] sm:$0xff] }
 0x51e   :  { %15669 = vst [vmem:[#allocation102_spill] sm:$0xff] %v12116_v20  ;;  %v12122_v39 = vsub.f32 %v9004_v18, %v11293_v9  ;;  %v5148_v0 = vmul.f32 %v12116_v20, %v12116_v20  ;;  %v5539_v4 = vsel %vm17_vm3, %v5147_v42, 0.0 }
 0x51f   :  { %v5532_v29 = vadd.f32 %v5531_v56, %v5530_v5  ;;  %v9005_v56 = vld [vmem:[#allocation2 + $0x460] sm:$0xff] }
 0x520   :  { %15670 = vst [vmem:[#allocation103_spill] sm:$0xff] %v12122_v39  ;;  %v12128_v57 = vsub.f32 %v9005_v56, %v11293_v9  ;;  %v5149_v37 = vmul.f32 %v12122_v39, %v12122_v39  ;;  %v5541_v23 = vsel %vm17_vm3, %v5148_v0, 0.0 }
 0x521   :  { %v5534_v52 = vadd.f32 %v5533_v7, %v5532_v29  ;;  %v9006_v7 = vld [vmem:[#allocation2 + $0x468] sm:$0xff] }
 0x522   :  { %15671 = vst [vmem:[#allocation104_spill] sm:$0xff] %v12128_v57  ;;  %v12134_v18 = vsub.f32 %v9006_v7, %v11293_v9  ;;  %v5150_v20 = vmul.f32 %v12128_v57, %v12128_v57  ;;  %v5543_v42 = vsel %vm17_vm3, %v5149_v37, 0.0 }
 0x523   :  { %v5536_v5 = vadd.f32 %v5535_v32, %v5534_v52  ;;  %v9007_v32 = vld [vmem:[#allocation2 + $0x470] sm:$0xff] }
 0x524   :  { %15672 = vst [vmem:[#allocation105_spill] sm:$0xff] %v12134_v18  ;;  %v12140_v56 = vsub.f32 %v9007_v32, %v11293_v9  ;;  %v5151_v39 = vmul.f32 %v12134_v18, %v12134_v18  ;;  %v5545_v0 = vsel %vm17_vm3, %v5150_v20, 0.0 }
 0x525   :  { %v5538_v29 = vadd.f32 %v5537_v48, %v5536_v5  ;;  %v9008_v48 = vld [vmem:[#allocation2 + $0x478] sm:$0xff] }
 0x526   :  { %15673 = vst [vmem:[#allocation106_spill] sm:$0xff] %v12140_v56  ;;  %v12146_v7 = vsub.f32 %v9008_v48, %v11293_v9  ;;  %v5152_v57 = vmul.f32 %v12140_v56, %v12140_v56  ;;  %v5547_v37 = vsel %vm17_vm3, %v5151_v39, 0.0 }
 0x527   :  { %v5540_v52 = vadd.f32 %v5539_v4, %v5538_v29  ;;  %v9009_v4 = vld [vmem:[#allocation2 + $0x480] sm:$0xff] }
 0x528   :  { %15674 = vst [vmem:[#allocation107_spill] sm:$0xff] %v12146_v7  ;;  %v12152_v32 = vsub.f32 %v9009_v4, %v11293_v9  ;;  %v5153_v18 = vmul.f32 %v12146_v7, %v12146_v7  ;;  %v5549_v20 = vsel %vm17_vm3, %v5152_v57, 0.0 }
 0x529   :  { %v5542_v5 = vadd.f32 %v5541_v23, %v5540_v52  ;;  %v9010_v23 = vld [vmem:[#allocation2 + $0x488] sm:$0xff] }
 0x52a   :  { %15675 = vst [vmem:[#allocation108_spill] sm:$0xff] %v12152_v32  ;;  %v12158_v48 = vsub.f32 %v9010_v23, %v11293_v9  ;;  %v5154_v56 = vmul.f32 %v12152_v32, %v12152_v32  ;;  %v5551_v39 = vsel %vm17_vm3, %v5153_v18, 0.0 }
 0x52b   :  { %v5544_v29 = vadd.f32 %v5543_v42, %v5542_v5  ;;  %v9011_v42 = vld [vmem:[#allocation2 + $0x490] sm:$0xff] }
 0x52c   :  { %15676 = vst [vmem:[#allocation109_spill] sm:$0xff] %v12158_v48  ;;  %v12164_v4 = vsub.f32 %v9011_v42, %v11293_v9  ;;  %v5155_v7 = vmul.f32 %v12158_v48, %v12158_v48  ;;  %v5553_v57 = vsel %vm17_vm3, %v5154_v56, 0.0 }
 0x52d   :  { %v5546_v52 = vadd.f32 %v5545_v0, %v5544_v29  ;;  %v9012_v0 = vld [vmem:[#allocation2 + $0x498] sm:$0xff] }
 0x52e   :  { %15677 = vst [vmem:[#allocation110_spill] sm:$0xff] %v12164_v4  ;;  %v12170_v23 = vsub.f32 %v9012_v0, %v11293_v9  ;;  %v5156_v32 = vmul.f32 %v12164_v4, %v12164_v4  ;;  %v5555_v18 = vsel %vm17_vm3, %v5155_v7, 0.0 }
 0x52f   :  { %v5548_v5 = vadd.f32 %v5547_v37, %v5546_v52  ;;  %v9013_v37 = vld [vmem:[#allocation2 + $0x4a0] sm:$0xff] }
 0x530   :  { %15678 = vst [vmem:[#allocation111_spill] sm:$0xff] %v12170_v23  ;;  %v12176_v42 = vsub.f32 %v9013_v37, %v11293_v9  ;;  %v5157_v48 = vmul.f32 %v12170_v23, %v12170_v23  ;;  %v5557_v56 = vsel %vm17_vm3, %v5156_v32, 0.0 }
 0x531   :  { %v5550_v29 = vadd.f32 %v5549_v20, %v5548_v5  ;;  %v9014_v20 = vld [vmem:[#allocation2 + $0x4a8] sm:$0xff] }
 0x532   :  { %15679 = vst [vmem:[#allocation112_spill] sm:$0xff] %v12176_v42  ;;  %v12182_v0 = vsub.f32 %v9014_v20, %v11293_v9  ;;  %v5158_v4 = vmul.f32 %v12176_v42, %v12176_v42  ;;  %v5559_v7 = vsel %vm17_vm3, %v5157_v48, 0.0 }
 0x533   :  { %v5552_v52 = vadd.f32 %v5551_v39, %v5550_v29  ;;  %v9015_v39 = vld [vmem:[#allocation2 + $0x4b0] sm:$0xff] }
 0x534   :  { %15680 = vst [vmem:[#allocation113_spill] sm:$0xff] %v12182_v0  ;;  %v12188_v37 = vsub.f32 %v9015_v39, %v11293_v9  ;;  %v5159_v23 = vmul.f32 %v12182_v0, %v12182_v0  ;;  %v5561_v32 = vsel %vm17_vm3, %v5158_v4, 0.0 }
 0x535   :  { %v5554_v5 = vadd.f32 %v5553_v57, %v5552_v52  ;;  %v9016_v57 = vld [vmem:[#allocation2 + $0x4b8] sm:$0xff] }
 0x536   :  { %15681 = vst [vmem:[#allocation114_spill] sm:$0xff] %v12188_v37  ;;  %v12194_v20 = vsub.f32 %v9016_v57, %v11293_v9  ;;  %v5160_v42 = vmul.f32 %v12188_v37, %v12188_v37  ;;  %v5563_v48 = vsel %vm17_vm3, %v5159_v23, 0.0 }
 0x537   :  { %v5556_v29 = vadd.f32 %v5555_v18, %v5554_v5  ;;  %v9017_v18 = vld [vmem:[#allocation2 + $0x4c0] sm:$0xff] }
 0x538   :  { %15682 = vst [vmem:[#allocation115_spill] sm:$0xff] %v12194_v20  ;;  %v12200_v39 = vsub.f32 %v9017_v18, %v11293_v9  ;;  %v5161_v0 = vmul.f32 %v12194_v20, %v12194_v20  ;;  %v5565_v4 = vsel %vm17_vm3, %v5160_v42, 0.0 }
 0x539   :  { %v5558_v52 = vadd.f32 %v5557_v56, %v5556_v29  ;;  %v9018_v56 = vld [vmem:[#allocation2 + $0x4c8] sm:$0xff] }
 0x53a   :  { %15683 = vst [vmem:[#allocation116_spill] sm:$0xff] %v12200_v39  ;;  %v12206_v57 = vsub.f32 %v9018_v56, %v11293_v9  ;;  %v5162_v37 = vmul.f32 %v12200_v39, %v12200_v39  ;;  %v5567_v23 = vsel %vm17_vm3, %v5161_v0, 0.0 }
 0x53b   :  { %v5560_v5 = vadd.f32 %v5559_v7, %v5558_v52  ;;  %v9019_v7 = vld [vmem:[#allocation2 + $0x4d0] sm:$0xff] }
 0x53c   :  { %15684 = vst [vmem:[#allocation117_spill] sm:$0xff] %v12206_v57  ;;  %v12212_v18 = vsub.f32 %v9019_v7, %v11293_v9  ;;  %v5163_v20 = vmul.f32 %v12206_v57, %v12206_v57  ;;  %v5569_v42 = vsel %vm17_vm3, %v5162_v37, 0.0 }
 0x53d   :  { %v5562_v29 = vadd.f32 %v5561_v32, %v5560_v5  ;;  %v9020_v32 = vld [vmem:[#allocation2 + $0x4d8] sm:$0xff] }
 0x53e   :  { %15685 = vst [vmem:[#allocation118_spill] sm:$0xff] %v12212_v18  ;;  %v12218_v56 = vsub.f32 %v9020_v32, %v11293_v9  ;;  %v5164_v39 = vmul.f32 %v12212_v18, %v12212_v18  ;;  %v5571_v0 = vsel %vm17_vm3, %v5163_v20, 0.0 }
 0x53f   :  { %v5564_v52 = vadd.f32 %v5563_v48, %v5562_v29  ;;  %v9021_v48 = vld [vmem:[#allocation2 + $0x4e0] sm:$0xff] }
 0x540   :  { %15686 = vst [vmem:[#allocation119_spill] sm:$0xff] %v12218_v56  ;;  %v12224_v7 = vsub.f32 %v9021_v48, %v11293_v9  ;;  %v5165_v57 = vmul.f32 %v12218_v56, %v12218_v56  ;;  %v5573_v37 = vsel %vm17_vm3, %v5164_v39, 0.0 }
 0x541   :  { %v5566_v5 = vadd.f32 %v5565_v4, %v5564_v52  ;;  %v9022_v4 = vld [vmem:[#allocation2 + $0x4e8] sm:$0xff] }
 0x542   :  { %15687 = vst [vmem:[#allocation120_spill] sm:$0xff] %v12224_v7  ;;  %v12230_v32 = vsub.f32 %v9022_v4, %v11293_v9  ;;  %v5166_v18 = vmul.f32 %v12224_v7, %v12224_v7  ;;  %v5575_v20 = vsel %vm17_vm3, %v5165_v57, 0.0 }
 0x543   :  { %v5568_v29 = vadd.f32 %v5567_v23, %v5566_v5  ;;  %v9023_v23 = vld [vmem:[#allocation2 + $0x4f0] sm:$0xff] }
 0x544   :  { %15688 = vst [vmem:[#allocation121_spill] sm:$0xff] %v12230_v32  ;;  %v12236_v48 = vsub.f32 %v9023_v23, %v11293_v9  ;;  %v5167_v56 = vmul.f32 %v12230_v32, %v12230_v32  ;;  %v5577_v39 = vsel %vm17_vm3, %v5166_v18, 0.0 }
 0x545   :  { %v5570_v52 = vadd.f32 %v5569_v42, %v5568_v29  ;;  %v9024_v42 = vld [vmem:[#allocation2 + $0x4f8] sm:$0xff] }
 0x546   :  { %15689 = vst [vmem:[#allocation122_spill] sm:$0xff] %v12236_v48  ;;  %v12242_v4 = vsub.f32 %v9024_v42, %v11293_v9  ;;  %v5168_v7 = vmul.f32 %v12236_v48, %v12236_v48  ;;  %v5579_v57 = vsel %vm17_vm3, %v5167_v56, 0.0 }
 0x547   :  { %v5572_v5 = vadd.f32 %v5571_v0, %v5570_v52  ;;  %v9025_v0 = vld [vmem:[#allocation2 + $0x500] sm:$0xff] }
 0x548   :  { %15690 = vst [vmem:[#allocation123_spill] sm:$0xff] %v12242_v4  ;;  %v12248_v23 = vsub.f32 %v9025_v0, %v11293_v9  ;;  %v5169_v32 = vmul.f32 %v12242_v4, %v12242_v4  ;;  %v5581_v18 = vsel %vm17_vm3, %v5168_v7, 0.0 }
 0x549   :  { %v5574_v29 = vadd.f32 %v5573_v37, %v5572_v5  ;;  %v9026_v37 = vld [vmem:[#allocation2 + $0x508] sm:$0xff] }
 0x54a   :  { %15691 = vst [vmem:[#allocation124_spill] sm:$0xff] %v12248_v23  ;;  %v12254_v42 = vsub.f32 %v9026_v37, %v11293_v9  ;;  %v5170_v48 = vmul.f32 %v12248_v23, %v12248_v23  ;;  %v5583_v56 = vsel %vm17_vm3, %v5169_v32, 0.0 }
 0x54b   :  { %v5576_v52 = vadd.f32 %v5575_v20, %v5574_v29  ;;  %v9027_v20 = vld [vmem:[#allocation2 + $0x510] sm:$0xff] }
 0x54c   :  { %15692 = vst [vmem:[#allocation125_spill] sm:$0xff] %v12254_v42  ;;  %v12260_v0 = vsub.f32 %v9027_v20, %v11293_v9  ;;  %v5171_v4 = vmul.f32 %v12254_v42, %v12254_v42  ;;  %v5585_v7 = vsel %vm17_vm3, %v5170_v48, 0.0 }
 0x54d   :  { %v5578_v5 = vadd.f32 %v5577_v39, %v5576_v52  ;;  %v9028_v39 = vld [vmem:[#allocation2 + $0x518] sm:$0xff] }
 0x54e   :  { %15693 = vst [vmem:[#allocation126_spill] sm:$0xff] %v12260_v0  ;;  %v12266_v37 = vsub.f32 %v9028_v39, %v11293_v9  ;;  %v5172_v23 = vmul.f32 %v12260_v0, %v12260_v0  ;;  %v5587_v32 = vsel %vm17_vm3, %v5171_v4, 0.0 }
 0x54f   :  { %v5580_v29 = vadd.f32 %v5579_v57, %v5578_v5  ;;  %v9029_v57 = vld [vmem:[#allocation2 + $0x520] sm:$0xff] }
 0x550   :  { %15694 = vst [vmem:[#allocation127_spill] sm:$0xff] %v12266_v37  ;;  %v12272_v20 = vsub.f32 %v9029_v57, %v11293_v9  ;;  %v5173_v42 = vmul.f32 %v12266_v37, %v12266_v37  ;;  %v5589_v48 = vsel %vm17_vm3, %v5172_v23, 0.0 }
 0x551   :  { %v5582_v52 = vadd.f32 %v5581_v18, %v5580_v29  ;;  %v9030_v18 = vld [vmem:[#allocation2 + $0x528] sm:$0xff] }
 0x552   :  { %15695 = vst [vmem:[#allocation128_spill] sm:$0xff] %v12272_v20  ;;  %v12278_v39 = vsub.f32 %v9030_v18, %v11293_v9  ;;  %v5174_v0 = vmul.f32 %v12272_v20, %v12272_v20  ;;  %v5591_v4 = vsel %vm17_vm3, %v5173_v42, 0.0 }
 0x553   :  { %v5584_v5 = vadd.f32 %v5583_v56, %v5582_v52  ;;  %v9031_v56 = vld [vmem:[#allocation2 + $0x530] sm:$0xff] }
 0x554   :  { %15696 = vst [vmem:[#allocation129_spill] sm:$0xff] %v12278_v39  ;;  %v12284_v57 = vsub.f32 %v9031_v56, %v11293_v9  ;;  %v5175_v37 = vmul.f32 %v12278_v39, %v12278_v39  ;;  %v5593_v23 = vsel %vm17_vm3, %v5174_v0, 0.0 }
 0x555   :  { %v5586_v29 = vadd.f32 %v5585_v7, %v5584_v5  ;;  %v9032_v7 = vld [vmem:[#allocation2 + $0x538] sm:$0xff] }
 0x556   :  { %15697 = vst [vmem:[#allocation130_spill] sm:$0xff] %v12284_v57  ;;  %v12290_v18 = vsub.f32 %v9032_v7, %v11293_v9  ;;  %v5176_v20 = vmul.f32 %v12284_v57, %v12284_v57  ;;  %v5595_v42 = vsel %vm17_vm3, %v5175_v37, 0.0 }
 0x557   :  { %v5588_v52 = vadd.f32 %v5587_v32, %v5586_v29  ;;  %v9033_v32 = vld [vmem:[#allocation2 + $0x540] sm:$0xff] }
 0x558   :  { %15698 = vst [vmem:[#allocation131_spill] sm:$0xff] %v12290_v18  ;;  %v12296_v56 = vsub.f32 %v9033_v32, %v11293_v9  ;;  %v5177_v39 = vmul.f32 %v12290_v18, %v12290_v18  ;;  %v5597_v0 = vsel %vm17_vm3, %v5176_v20, 0.0 }
 0x559   :  { %v5590_v5 = vadd.f32 %v5589_v48, %v5588_v52  ;;  %v9034_v48 = vld [vmem:[#allocation2 + $0x548] sm:$0xff] }
 0x55a   :  { %15699 = vst [vmem:[#allocation132_spill] sm:$0xff] %v12296_v56  ;;  %v12302_v7 = vsub.f32 %v9034_v48, %v11293_v9  ;;  %v5178_v57 = vmul.f32 %v12296_v56, %v12296_v56  ;;  %v5599_v37 = vsel %vm17_vm3, %v5177_v39, 0.0 }
 0x55b   :  { %v5592_v29 = vadd.f32 %v5591_v4, %v5590_v5  ;;  %v9035_v4 = vld [vmem:[#allocation2 + $0x550] sm:$0xff] }
 0x55c   :  { %15700 = vst [vmem:[#allocation133_spill] sm:$0xff] %v12302_v7  ;;  %v12308_v32 = vsub.f32 %v9035_v4, %v11293_v9  ;;  %v5179_v18 = vmul.f32 %v12302_v7, %v12302_v7  ;;  %v5601_v20 = vsel %vm17_vm3, %v5178_v57, 0.0 }
 0x55d   :  { %v5594_v52 = vadd.f32 %v5593_v23, %v5592_v29  ;;  %v9036_v23 = vld [vmem:[#allocation2 + $0x558] sm:$0xff] }
 0x55e   :  { %15701 = vst [vmem:[#allocation134_spill] sm:$0xff] %v12308_v32  ;;  %v12314_v48 = vsub.f32 %v9036_v23, %v11293_v9  ;;  %v5180_v56 = vmul.f32 %v12308_v32, %v12308_v32  ;;  %v5603_v39 = vsel %vm17_vm3, %v5179_v18, 0.0 }
 0x55f   :  { %v5596_v5 = vadd.f32 %v5595_v42, %v5594_v52  ;;  %v9037_v42 = vld [vmem:[#allocation2 + $0x560] sm:$0xff] }
 0x560   :  { %15702 = vst [vmem:[#allocation135_spill] sm:$0xff] %v12314_v48  ;;  %v12320_v4 = vsub.f32 %v9037_v42, %v11293_v9  ;;  %v5181_v7 = vmul.f32 %v12314_v48, %v12314_v48  ;;  %v5605_v57 = vsel %vm17_vm3, %v5180_v56, 0.0 }
 0x561   :  { %v5598_v29 = vadd.f32 %v5597_v0, %v5596_v5  ;;  %v9038_v0 = vld [vmem:[#allocation2 + $0x568] sm:$0xff] }
 0x562   :  { %15703 = vst [vmem:[#allocation136_spill] sm:$0xff] %v12320_v4  ;;  %v12326_v23 = vsub.f32 %v9038_v0, %v11293_v9  ;;  %v5182_v32 = vmul.f32 %v12320_v4, %v12320_v4  ;;  %v5607_v18 = vsel %vm17_vm3, %v5181_v7, 0.0 }
 0x563   :  { %v5600_v52 = vadd.f32 %v5599_v37, %v5598_v29  ;;  %v9039_v37 = vld [vmem:[#allocation2 + $0x570] sm:$0xff] }
 0x564   :  { %15704 = vst [vmem:[#allocation137_spill] sm:$0xff] %v12326_v23  ;;  %v12332_v42 = vsub.f32 %v9039_v37, %v11293_v9  ;;  %v5183_v48 = vmul.f32 %v12326_v23, %v12326_v23  ;;  %v5609_v56 = vsel %vm17_vm3, %v5182_v32, 0.0 }
 0x565   :  { %v5602_v5 = vadd.f32 %v5601_v20, %v5600_v52  ;;  %v9040_v20 = vld [vmem:[#allocation2 + $0x578] sm:$0xff] }
 0x566   :  { %15705 = vst [vmem:[#allocation138_spill] sm:$0xff] %v12332_v42  ;;  %v12338_v0 = vsub.f32 %v9040_v20, %v11293_v9  ;;  %v5184_v4 = vmul.f32 %v12332_v42, %v12332_v42  ;;  %v5611_v7 = vsel %vm17_vm3, %v5183_v48, 0.0 }
 0x567   :  { %v5604_v29 = vadd.f32 %v5603_v39, %v5602_v5  ;;  %v9041_v39 = vld [vmem:[#allocation2 + $0x580] sm:$0xff] }
 0x568   :  { %15706 = vst [vmem:[#allocation139_spill] sm:$0xff] %v12338_v0  ;;  %v12344_v37 = vsub.f32 %v9041_v39, %v11293_v9  ;;  %v5185_v23 = vmul.f32 %v12338_v0, %v12338_v0  ;;  %v5613_v32 = vsel %vm17_vm3, %v5184_v4, 0.0 }
 0x569   :  { %v5606_v52 = vadd.f32 %v5605_v57, %v5604_v29  ;;  %v9042_v57 = vld [vmem:[#allocation2 + $0x588] sm:$0xff] }
 0x56a   :  { %15707 = vst [vmem:[#allocation140_spill] sm:$0xff] %v12344_v37  ;;  %v12350_v20 = vsub.f32 %v9042_v57, %v11293_v9  ;;  %v5186_v42 = vmul.f32 %v12344_v37, %v12344_v37  ;;  %v5615_v48 = vsel %vm17_vm3, %v5185_v23, 0.0 }
 0x56b   :  { %v5608_v5 = vadd.f32 %v5607_v18, %v5606_v52  ;;  %v9043_v18 = vld [vmem:[#allocation2 + $0x590] sm:$0xff] }
 0x56c   :  { %15708 = vst [vmem:[#allocation141_spill] sm:$0xff] %v12350_v20  ;;  %v12356_v39 = vsub.f32 %v9043_v18, %v11293_v9  ;;  %v5187_v0 = vmul.f32 %v12350_v20, %v12350_v20  ;;  %v5617_v4 = vsel %vm17_vm3, %v5186_v42, 0.0 }
 0x56d   :  { %v5610_v29 = vadd.f32 %v5609_v56, %v5608_v5  ;;  %v9044_v56 = vld [vmem:[#allocation2 + $0x598] sm:$0xff] }
 0x56e   :  { %15709 = vst [vmem:[#allocation142_spill] sm:$0xff] %v12356_v39  ;;  %v12362_v57 = vsub.f32 %v9044_v56, %v11293_v9  ;;  %v5188_v37 = vmul.f32 %v12356_v39, %v12356_v39  ;;  %v5619_v23 = vsel %vm17_vm3, %v5187_v0, 0.0 }
 0x56f   :  { %v5612_v52 = vadd.f32 %v5611_v7, %v5610_v29  ;;  %v9045_v7 = vld [vmem:[#allocation2 + $0x5a0] sm:$0xff] }
 0x570   :  { %15710 = vst [vmem:[#allocation143_spill] sm:$0xff] %v12362_v57  ;;  %v12368_v18 = vsub.f32 %v9045_v7, %v11293_v9  ;;  %v5189_v20 = vmul.f32 %v12362_v57, %v12362_v57  ;;  %v5621_v42 = vsel %vm17_vm3, %v5188_v37, 0.0 }
 0x571   :  { %v5614_v5 = vadd.f32 %v5613_v32, %v5612_v52  ;;  %v9046_v32 = vld [vmem:[#allocation2 + $0x5a8] sm:$0xff] }
 0x572   :  { %15711 = vst [vmem:[#allocation144_spill] sm:$0xff] %v12368_v18  ;;  %v12374_v56 = vsub.f32 %v9046_v32, %v11293_v9  ;;  %v5190_v39 = vmul.f32 %v12368_v18, %v12368_v18  ;;  %v5623_v0 = vsel %vm17_vm3, %v5189_v20, 0.0 }
 0x573   :  { %v5616_v29 = vadd.f32 %v5615_v48, %v5614_v5  ;;  %v9047_v48 = vld [vmem:[#allocation2 + $0x5b0] sm:$0xff] }
 0x574   :  { %15712 = vst [vmem:[#allocation145_spill] sm:$0xff] %v12374_v56  ;;  %v12380_v7 = vsub.f32 %v9047_v48, %v11293_v9  ;;  %v5191_v57 = vmul.f32 %v12374_v56, %v12374_v56  ;;  %v5625_v37 = vsel %vm17_vm3, %v5190_v39, 0.0 }
 0x575   :  { %v5618_v52 = vadd.f32 %v5617_v4, %v5616_v29  ;;  %v9048_v4 = vld [vmem:[#allocation2 + $0x5b8] sm:$0xff] }
 0x576   :  { %15713 = vst [vmem:[#allocation146_spill] sm:$0xff] %v12380_v7  ;;  %v12386_v32 = vsub.f32 %v9048_v4, %v11293_v9  ;;  %v5192_v18 = vmul.f32 %v12380_v7, %v12380_v7  ;;  %v5627_v20 = vsel %vm17_vm3, %v5191_v57, 0.0 }
 0x577   :  { %v5620_v5 = vadd.f32 %v5619_v23, %v5618_v52  ;;  %v9049_v23 = vld [vmem:[#allocation2 + $0x5c0] sm:$0xff] }
 0x578   :  { %15714 = vst [vmem:[#allocation147_spill] sm:$0xff] %v12386_v32  ;;  %v12392_v48 = vsub.f32 %v9049_v23, %v11293_v9  ;;  %v5193_v56 = vmul.f32 %v12386_v32, %v12386_v32  ;;  %v5629_v39 = vsel %vm17_vm3, %v5192_v18, 0.0 }
 0x579   :  { %v5622_v29 = vadd.f32 %v5621_v42, %v5620_v5  ;;  %v9050_v42 = vld [vmem:[#allocation2 + $0x5c8] sm:$0xff] }
 0x57a   :  { %15715 = vst [vmem:[#allocation148_spill] sm:$0xff] %v12392_v48  ;;  %v12398_v4 = vsub.f32 %v9050_v42, %v11293_v9  ;;  %v5194_v7 = vmul.f32 %v12392_v48, %v12392_v48  ;;  %v5631_v57 = vsel %vm17_vm3, %v5193_v56, 0.0 }
 0x57b   :  { %v5624_v52 = vadd.f32 %v5623_v0, %v5622_v29  ;;  %v9051_v0 = vld [vmem:[#allocation2 + $0x5d0] sm:$0xff] }
 0x57c   :  { %15716 = vst [vmem:[#allocation149_spill] sm:$0xff] %v12398_v4  ;;  %v12404_v23 = vsub.f32 %v9051_v0, %v11293_v9  ;;  %v5195_v32 = vmul.f32 %v12398_v4, %v12398_v4  ;;  %v5633_v18 = vsel %vm17_vm3, %v5194_v7, 0.0 }
 0x57d   :  { %v5626_v5 = vadd.f32 %v5625_v37, %v5624_v52  ;;  %v9052_v37 = vld [vmem:[#allocation2 + $0x5d8] sm:$0xff] }
 0x57e   :  { %15717 = vst [vmem:[#allocation150_spill] sm:$0xff] %v12404_v23  ;;  %v12410_v42 = vsub.f32 %v9052_v37, %v11293_v9  ;;  %v5196_v48 = vmul.f32 %v12404_v23, %v12404_v23  ;;  %v5635_v56 = vsel %vm17_vm3, %v5195_v32, 0.0 }
 0x57f   :  { %v5628_v29 = vadd.f32 %v5627_v20, %v5626_v5  ;;  %v9053_v20 = vld [vmem:[#allocation2 + $0x5e0] sm:$0xff] }
 0x580   :  { %15718 = vst [vmem:[#allocation151_spill] sm:$0xff] %v12410_v42  ;;  %v12416_v0 = vsub.f32 %v9053_v20, %v11293_v9  ;;  %v5197_v4 = vmul.f32 %v12410_v42, %v12410_v42  ;;  %v5637_v7 = vsel %vm17_vm3, %v5196_v48, 0.0 }
 0x581   :  { %v5630_v52 = vadd.f32 %v5629_v39, %v5628_v29  ;;  %v9054_v39 = vld [vmem:[#allocation2 + $0x5e8] sm:$0xff] }
 0x582   :  { %15719 = vst [vmem:[#allocation152_spill] sm:$0xff] %v12416_v0  ;;  %v12422_v37 = vsub.f32 %v9054_v39, %v11293_v9  ;;  %v5198_v23 = vmul.f32 %v12416_v0, %v12416_v0  ;;  %v5639_v32 = vsel %vm17_vm3, %v5197_v4, 0.0 }
 0x583   :  { %v5632_v5 = vadd.f32 %v5631_v57, %v5630_v52  ;;  %v9055_v57 = vld [vmem:[#allocation2 + $0x5f0] sm:$0xff] }
 0x584   :  { %15720 = vst [vmem:[#allocation153_spill] sm:$0xff] %v12422_v37  ;;  %v12428_v20 = vsub.f32 %v9055_v57, %v11293_v9  ;;  %v5199_v42 = vmul.f32 %v12422_v37, %v12422_v37  ;;  %v5641_v48 = vsel %vm17_vm3, %v5198_v23, 0.0 }
 0x585   :  { %v5634_v29 = vadd.f32 %v5633_v18, %v5632_v5  ;;  %v9056_v18 = vld [vmem:[#allocation2 + $0x5f8] sm:$0xff] }
 0x586   :  { %15721 = vst [vmem:[#allocation154_spill] sm:$0xff] %v12428_v20  ;;  %v12434_v39 = vsub.f32 %v9056_v18, %v11293_v9  ;;  %v5200_v0 = vmul.f32 %v12428_v20, %v12428_v20  ;;  %v5643_v4 = vsel %vm17_vm3, %v5199_v42, 0.0 }
 0x587   :  { %v5636_v52 = vadd.f32 %v5635_v56, %v5634_v29  ;;  %v9057_v56 = vld [vmem:[#allocation2 + $0x600] sm:$0xff] }
 0x588   :  { %15722 = vst [vmem:[#allocation155_spill] sm:$0xff] %v12434_v39  ;;  %v12440_v57 = vsub.f32 %v9057_v56, %v11293_v9  ;;  %v5201_v37 = vmul.f32 %v12434_v39, %v12434_v39  ;;  %v5645_v23 = vsel %vm17_vm3, %v5200_v0, 0.0 }
 0x589   :  { %v5638_v5 = vadd.f32 %v5637_v7, %v5636_v52  ;;  %v9058_v7 = vld [vmem:[#allocation2 + $0x608] sm:$0xff] }
 0x58a   :  { %15723 = vst [vmem:[#allocation156_spill] sm:$0xff] %v12440_v57  ;;  %v12446_v18 = vsub.f32 %v9058_v7, %v11293_v9  ;;  %v5202_v20 = vmul.f32 %v12440_v57, %v12440_v57  ;;  %v5647_v42 = vsel %vm17_vm3, %v5201_v37, 0.0 }
 0x58b   :  { %v5640_v29 = vadd.f32 %v5639_v32, %v5638_v5  ;;  %v9059_v32 = vld [vmem:[#allocation2 + $0x610] sm:$0xff] }
 0x58c   :  { %15724 = vst [vmem:[#allocation157_spill] sm:$0xff] %v12446_v18  ;;  %v12452_v56 = vsub.f32 %v9059_v32, %v11293_v9  ;;  %v5203_v39 = vmul.f32 %v12446_v18, %v12446_v18  ;;  %v5649_v0 = vsel %vm17_vm3, %v5202_v20, 0.0 }
 0x58d   :  { %v5642_v52 = vadd.f32 %v5641_v48, %v5640_v29  ;;  %v9060_v48 = vld [vmem:[#allocation2 + $0x618] sm:$0xff] }
 0x58e   :  { %15725 = vst [vmem:[#allocation158_spill] sm:$0xff] %v12452_v56  ;;  %v12458_v7 = vsub.f32 %v9060_v48, %v11293_v9  ;;  %v5204_v57 = vmul.f32 %v12452_v56, %v12452_v56  ;;  %v5651_v37 = vsel %vm17_vm3, %v5203_v39, 0.0 }
 0x58f   :  { %v5644_v5 = vadd.f32 %v5643_v4, %v5642_v52  ;;  %v9061_v4 = vld [vmem:[#allocation2 + $0x620] sm:$0xff] }
 0x590   :  { %15726 = vst [vmem:[#allocation159_spill] sm:$0xff] %v12458_v7  ;;  %v12464_v32 = vsub.f32 %v9061_v4, %v11293_v9  ;;  %v5205_v18 = vmul.f32 %v12458_v7, %v12458_v7  ;;  %v5653_v20 = vsel %vm17_vm3, %v5204_v57, 0.0 }
 0x591   :  { %v5646_v29 = vadd.f32 %v5645_v23, %v5644_v5  ;;  %v9062_v23 = vld [vmem:[#allocation2 + $0x628] sm:$0xff] }
 0x592   :  { %15727 = vst [vmem:[#allocation160_spill] sm:$0xff] %v12464_v32  ;;  %v12470_v48 = vsub.f32 %v9062_v23, %v11293_v9  ;;  %v5206_v56 = vmul.f32 %v12464_v32, %v12464_v32  ;;  %v5655_v39 = vsel %vm17_vm3, %v5205_v18, 0.0 }
 0x593   :  { %v5648_v52 = vadd.f32 %v5647_v42, %v5646_v29  ;;  %v9063_v42 = vld [vmem:[#allocation2 + $0x630] sm:$0xff] }
 0x594   :  { %15728 = vst [vmem:[#allocation161_spill] sm:$0xff] %v12470_v48  ;;  %v12476_v4 = vsub.f32 %v9063_v42, %v11293_v9  ;;  %v5207_v7 = vmul.f32 %v12470_v48, %v12470_v48  ;;  %v5657_v57 = vsel %vm17_vm3, %v5206_v56, 0.0 }
 0x595   :  { %v5650_v5 = vadd.f32 %v5649_v0, %v5648_v52  ;;  %v9064_v0 = vld [vmem:[#allocation2 + $0x638] sm:$0xff] }
 0x596   :  { %15729 = vst [vmem:[#allocation162_spill] sm:$0xff] %v12476_v4  ;;  %v12482_v23 = vsub.f32 %v9064_v0, %v11293_v9  ;;  %v5208_v32 = vmul.f32 %v12476_v4, %v12476_v4  ;;  %v5659_v18 = vsel %vm17_vm3, %v5207_v7, 0.0 }
 0x597   :  { %v5652_v29 = vadd.f32 %v5651_v37, %v5650_v5  ;;  %v9065_v37 = vld [vmem:[#allocation2 + $0x640] sm:$0xff] }
 0x598   :  { %15730 = vst [vmem:[#allocation163_spill] sm:$0xff] %v12482_v23  ;;  %v12488_v42 = vsub.f32 %v9065_v37, %v11293_v9  ;;  %v5209_v48 = vmul.f32 %v12482_v23, %v12482_v23  ;;  %v5661_v56 = vsel %vm17_vm3, %v5208_v32, 0.0 }
 0x599   :  { %v5654_v52 = vadd.f32 %v5653_v20, %v5652_v29  ;;  %v9066_v20 = vld [vmem:[#allocation2 + $0x648] sm:$0xff] }
 0x59a   :  { %15731 = vst [vmem:[#allocation164_spill] sm:$0xff] %v12488_v42  ;;  %v12494_v0 = vsub.f32 %v9066_v20, %v11293_v9  ;;  %v5210_v4 = vmul.f32 %v12488_v42, %v12488_v42  ;;  %v5663_v7 = vsel %vm17_vm3, %v5209_v48, 0.0 }
 0x59b   :  { %v5656_v5 = vadd.f32 %v5655_v39, %v5654_v52  ;;  %v9067_v39 = vld [vmem:[#allocation2 + $0x650] sm:$0xff] }
 0x59c   :  { %15732 = vst [vmem:[#allocation165_spill] sm:$0xff] %v12494_v0  ;;  %v12500_v37 = vsub.f32 %v9067_v39, %v11293_v9  ;;  %v5211_v23 = vmul.f32 %v12494_v0, %v12494_v0  ;;  %v5665_v32 = vsel %vm17_vm3, %v5210_v4, 0.0 }
 0x59d   :  { %v5658_v29 = vadd.f32 %v5657_v57, %v5656_v5  ;;  %v9068_v57 = vld [vmem:[#allocation2 + $0x658] sm:$0xff] }
 0x59e   :  { %15733 = vst [vmem:[#allocation166_spill] sm:$0xff] %v12500_v37  ;;  %v12506_v20 = vsub.f32 %v9068_v57, %v11293_v9  ;;  %v5212_v42 = vmul.f32 %v12500_v37, %v12500_v37  ;;  %v5667_v48 = vsel %vm17_vm3, %v5211_v23, 0.0 }
 0x59f   :  { %v5660_v52 = vadd.f32 %v5659_v18, %v5658_v29  ;;  %v9069_v18 = vld [vmem:[#allocation2 + $0x660] sm:$0xff] }
 0x5a0   :  { %15734 = vst [vmem:[#allocation167_spill] sm:$0xff] %v12506_v20  ;;  %v12512_v39 = vsub.f32 %v9069_v18, %v11293_v9  ;;  %v5213_v0 = vmul.f32 %v12506_v20, %v12506_v20  ;;  %v5669_v4 = vsel %vm17_vm3, %v5212_v42, 0.0 }
 0x5a1   :  { %v5662_v5 = vadd.f32 %v5661_v56, %v5660_v52  ;;  %v9070_v56 = vld [vmem:[#allocation2 + $0x668] sm:$0xff] }
 0x5a2   :  { %15735 = vst [vmem:[#allocation168_spill] sm:$0xff] %v12512_v39  ;;  %v12518_v57 = vsub.f32 %v9070_v56, %v11293_v9  ;;  %v5214_v37 = vmul.f32 %v12512_v39, %v12512_v39  ;;  %v5671_v23 = vsel %vm17_vm3, %v5213_v0, 0.0 }
 0x5a3   :  { %v5664_v29 = vadd.f32 %v5663_v7, %v5662_v5  ;;  %v9071_v7 = vld [vmem:[#allocation2 + $0x670] sm:$0xff] }
 0x5a4   :  { %15736 = vst [vmem:[#allocation169_spill] sm:$0xff] %v12518_v57  ;;  %v12524_v18 = vsub.f32 %v9071_v7, %v11293_v9  ;;  %v5215_v20 = vmul.f32 %v12518_v57, %v12518_v57  ;;  %v5673_v42 = vsel %vm17_vm3, %v5214_v37, 0.0 }
 0x5a5   :  { %v5666_v52 = vadd.f32 %v5665_v32, %v5664_v29  ;;  %v9072_v32 = vld [vmem:[#allocation2 + $0x678] sm:$0xff] }
 0x5a6   :  { %15737 = vst [vmem:[#allocation170_spill] sm:$0xff] %v12524_v18  ;;  %v12530_v56 = vsub.f32 %v9072_v32, %v11293_v9  ;;  %v5216_v39 = vmul.f32 %v12524_v18, %v12524_v18  ;;  %v5675_v0 = vsel %vm17_vm3, %v5215_v20, 0.0 }
 0x5a7   :  { %v5668_v5 = vadd.f32 %v5667_v48, %v5666_v52  ;;  %v9073_v48 = vld [vmem:[#allocation2 + $0x680] sm:$0xff] }
 0x5a8   :  { %15738 = vst [vmem:[#allocation171_spill] sm:$0xff] %v12530_v56  ;;  %v12536_v7 = vsub.f32 %v9073_v48, %v11293_v9  ;;  %v5217_v57 = vmul.f32 %v12530_v56, %v12530_v56  ;;  %v5677_v37 = vsel %vm17_vm3, %v5216_v39, 0.0 }
 0x5a9   :  { %v5670_v29 = vadd.f32 %v5669_v4, %v5668_v5  ;;  %v9074_v4 = vld [vmem:[#allocation2 + $0x688] sm:$0xff] }
 0x5aa   :  { %15739 = vst [vmem:[#allocation172_spill] sm:$0xff] %v12536_v7  ;;  %v12542_v32 = vsub.f32 %v9074_v4, %v11293_v9  ;;  %v5218_v18 = vmul.f32 %v12536_v7, %v12536_v7  ;;  %v5679_v20 = vsel %vm17_vm3, %v5217_v57, 0.0 }
 0x5ab   :  { %v5672_v52 = vadd.f32 %v5671_v23, %v5670_v29  ;;  %v9075_v23 = vld [vmem:[#allocation2 + $0x690] sm:$0xff] }
 0x5ac   :  { %15740 = vst [vmem:[#allocation173_spill] sm:$0xff] %v12542_v32  ;;  %v12548_v48 = vsub.f32 %v9075_v23, %v11293_v9  ;;  %v5219_v56 = vmul.f32 %v12542_v32, %v12542_v32  ;;  %v5681_v39 = vsel %vm17_vm3, %v5218_v18, 0.0 }
 0x5ad   :  { %v5674_v5 = vadd.f32 %v5673_v42, %v5672_v52  ;;  %v9076_v42 = vld [vmem:[#allocation2 + $0x698] sm:$0xff] }
 0x5ae   :  { %15741 = vst [vmem:[#allocation174_spill] sm:$0xff] %v12548_v48  ;;  %v12554_v4 = vsub.f32 %v9076_v42, %v11293_v9  ;;  %v5220_v7 = vmul.f32 %v12548_v48, %v12548_v48  ;;  %v5683_v57 = vsel %vm17_vm3, %v5219_v56, 0.0 }
 0x5af   :  { %v5676_v29 = vadd.f32 %v5675_v0, %v5674_v5  ;;  %v9077_v0 = vld [vmem:[#allocation2 + $0x6a0] sm:$0xff] }
 0x5b0   :  { %15742 = vst [vmem:[#allocation175_spill] sm:$0xff] %v12554_v4  ;;  %v12560_v23 = vsub.f32 %v9077_v0, %v11293_v9  ;;  %v5221_v32 = vmul.f32 %v12554_v4, %v12554_v4  ;;  %v5685_v18 = vsel %vm17_vm3, %v5220_v7, 0.0 }
 0x5b1   :  { %v5678_v52 = vadd.f32 %v5677_v37, %v5676_v29  ;;  %v9078_v37 = vld [vmem:[#allocation2 + $0x6a8] sm:$0xff] }
 0x5b2   :  { %15743 = vst [vmem:[#allocation176_spill] sm:$0xff] %v12560_v23  ;;  %v12566_v42 = vsub.f32 %v9078_v37, %v11293_v9  ;;  %v5222_v48 = vmul.f32 %v12560_v23, %v12560_v23  ;;  %v5687_v56 = vsel %vm17_vm3, %v5221_v32, 0.0 }
 0x5b3   :  { %v5680_v5 = vadd.f32 %v5679_v20, %v5678_v52  ;;  %v9079_v20 = vld [vmem:[#allocation2 + $0x6b0] sm:$0xff] }
 0x5b4   :  { %15744 = vst [vmem:[#allocation177_spill] sm:$0xff] %v12566_v42  ;;  %v12572_v0 = vsub.f32 %v9079_v20, %v11293_v9  ;;  %v5223_v4 = vmul.f32 %v12566_v42, %v12566_v42  ;;  %v5689_v7 = vsel %vm17_vm3, %v5222_v48, 0.0 }
 0x5b5   :  { %v5682_v29 = vadd.f32 %v5681_v39, %v5680_v5  ;;  %v9080_v39 = vld [vmem:[#allocation2 + $0x6b8] sm:$0xff] }
 0x5b6   :  { %15745 = vst [vmem:[#allocation178_spill] sm:$0xff] %v12572_v0  ;;  %v12578_v37 = vsub.f32 %v9080_v39, %v11293_v9  ;;  %v5224_v23 = vmul.f32 %v12572_v0, %v12572_v0  ;;  %v5691_v32 = vsel %vm17_vm3, %v5223_v4, 0.0 }
 0x5b7   :  { %v5684_v52 = vadd.f32 %v5683_v57, %v5682_v29  ;;  %v9081_v57 = vld [vmem:[#allocation2 + $0x6c0] sm:$0xff] }
 0x5b8   :  { %15746 = vst [vmem:[#allocation179_spill] sm:$0xff] %v12578_v37  ;;  %v12584_v20 = vsub.f32 %v9081_v57, %v11293_v9  ;;  %v5225_v42 = vmul.f32 %v12578_v37, %v12578_v37  ;;  %v5693_v48 = vsel %vm17_vm3, %v5224_v23, 0.0 }
 0x5b9   :  { %v5686_v5 = vadd.f32 %v5685_v18, %v5684_v52  ;;  %v9082_v18 = vld [vmem:[#allocation2 + $0x6c8] sm:$0xff] }
 0x5ba   :  { %15747 = vst [vmem:[#allocation180_spill] sm:$0xff] %v12584_v20  ;;  %v12590_v39 = vsub.f32 %v9082_v18, %v11293_v9  ;;  %v5226_v0 = vmul.f32 %v12584_v20, %v12584_v20  ;;  %v5695_v4 = vsel %vm17_vm3, %v5225_v42, 0.0 }
 0x5bb   :  { %v5688_v29 = vadd.f32 %v5687_v56, %v5686_v5  ;;  %v9083_v56 = vld [vmem:[#allocation2 + $0x6d0] sm:$0xff] }
 0x5bc   :  { %15748 = vst [vmem:[#allocation181_spill] sm:$0xff] %v12590_v39  ;;  %v12596_v57 = vsub.f32 %v9083_v56, %v11293_v9  ;;  %v5227_v37 = vmul.f32 %v12590_v39, %v12590_v39  ;;  %v5697_v23 = vsel %vm17_vm3, %v5226_v0, 0.0 }
 0x5bd   :  { %v5690_v52 = vadd.f32 %v5689_v7, %v5688_v29  ;;  %v9084_v7 = vld [vmem:[#allocation2 + $0x6d8] sm:$0xff] }
 0x5be   :  { %15749 = vst [vmem:[#allocation182_spill] sm:$0xff] %v12596_v57  ;;  %v12602_v18 = vsub.f32 %v9084_v7, %v11293_v9  ;;  %v5228_v20 = vmul.f32 %v12596_v57, %v12596_v57  ;;  %v5699_v42 = vsel %vm17_vm3, %v5227_v37, 0.0 }
 0x5bf   :  { %v5692_v5 = vadd.f32 %v5691_v32, %v5690_v52  ;;  %v9085_v32 = vld [vmem:[#allocation2 + $0x6e0] sm:$0xff] }
 0x5c0   :  { %15750 = vst [vmem:[#allocation183_spill] sm:$0xff] %v12602_v18  ;;  %v12608_v56 = vsub.f32 %v9085_v32, %v11293_v9  ;;  %v5229_v39 = vmul.f32 %v12602_v18, %v12602_v18  ;;  %v5701_v0 = vsel %vm17_vm3, %v5228_v20, 0.0 }
 0x5c1   :  { %v5694_v29 = vadd.f32 %v5693_v48, %v5692_v5  ;;  %v9086_v48 = vld [vmem:[#allocation2 + $0x6e8] sm:$0xff] }
 0x5c2   :  { %15751 = vst [vmem:[#allocation184_spill] sm:$0xff] %v12608_v56  ;;  %v12614_v7 = vsub.f32 %v9086_v48, %v11293_v9  ;;  %v5230_v57 = vmul.f32 %v12608_v56, %v12608_v56  ;;  %v5703_v37 = vsel %vm17_vm3, %v5229_v39, 0.0 }
 0x5c3   :  { %v5696_v52 = vadd.f32 %v5695_v4, %v5694_v29  ;;  %v9087_v4 = vld [vmem:[#allocation2 + $0x6f0] sm:$0xff] }
 0x5c4   :  { %15752 = vst [vmem:[#allocation185_spill] sm:$0xff] %v12614_v7  ;;  %v12620_v32 = vsub.f32 %v9087_v4, %v11293_v9  ;;  %v5231_v18 = vmul.f32 %v12614_v7, %v12614_v7  ;;  %v5705_v20 = vsel %vm17_vm3, %v5230_v57, 0.0 }
 0x5c5   :  { %v5698_v5 = vadd.f32 %v5697_v23, %v5696_v52  ;;  %v9088_v23 = vld [vmem:[#allocation2 + $0x6f8] sm:$0xff] }
 0x5c6   :  { %15753 = vst [vmem:[#allocation186_spill] sm:$0xff] %v12620_v32  ;;  %v12626_v48 = vsub.f32 %v9088_v23, %v11293_v9  ;;  %v5232_v56 = vmul.f32 %v12620_v32, %v12620_v32  ;;  %v5707_v39 = vsel %vm17_vm3, %v5231_v18, 0.0 }
 0x5c7   :  { %v5700_v29 = vadd.f32 %v5699_v42, %v5698_v5  ;;  %v9089_v42 = vld [vmem:[#allocation2 + $0x700] sm:$0xff] }
 0x5c8   :  { %15754 = vst [vmem:[#allocation187_spill] sm:$0xff] %v12626_v48  ;;  %v12632_v4 = vsub.f32 %v9089_v42, %v11293_v9  ;;  %v5233_v7 = vmul.f32 %v12626_v48, %v12626_v48  ;;  %v5709_v57 = vsel %vm17_vm3, %v5232_v56, 0.0 }
 0x5c9   :  { %v5702_v52 = vadd.f32 %v5701_v0, %v5700_v29  ;;  %v9090_v0 = vld [vmem:[#allocation2 + $0x708] sm:$0xff] }
 0x5ca   :  { %15755 = vst [vmem:[#allocation188_spill] sm:$0xff] %v12632_v4  ;;  %v12638_v23 = vsub.f32 %v9090_v0, %v11293_v9  ;;  %v5234_v32 = vmul.f32 %v12632_v4, %v12632_v4  ;;  %v5711_v18 = vsel %vm17_vm3, %v5233_v7, 0.0 }
 0x5cb   :  { %v5704_v5 = vadd.f32 %v5703_v37, %v5702_v52  ;;  %v9091_v37 = vld [vmem:[#allocation2 + $0x710] sm:$0xff] }
 0x5cc   :  { %15756 = vst [vmem:[#allocation189_spill] sm:$0xff] %v12638_v23  ;;  %v12644_v42 = vsub.f32 %v9091_v37, %v11293_v9  ;;  %v5235_v48 = vmul.f32 %v12638_v23, %v12638_v23  ;;  %v5713_v56 = vsel %vm17_vm3, %v5234_v32, 0.0 }
 0x5cd   :  { %v5706_v29 = vadd.f32 %v5705_v20, %v5704_v5  ;;  %v9092_v20 = vld [vmem:[#allocation2 + $0x718] sm:$0xff] }
 0x5ce   :  { %15757 = vst [vmem:[#allocation190_spill] sm:$0xff] %v12644_v42  ;;  %v12650_v0 = vsub.f32 %v9092_v20, %v11293_v9  ;;  %v5236_v4 = vmul.f32 %v12644_v42, %v12644_v42  ;;  %v5715_v7 = vsel %vm17_vm3, %v5235_v48, 0.0 }
 0x5cf   :  { %v5708_v52 = vadd.f32 %v5707_v39, %v5706_v29  ;;  %v9093_v39 = vld [vmem:[#allocation2 + $0x720] sm:$0xff] }
 0x5d0   :  { %15758 = vst [vmem:[#allocation191_spill] sm:$0xff] %v12650_v0  ;;  %v12656_v37 = vsub.f32 %v9093_v39, %v11293_v9  ;;  %v5237_v23 = vmul.f32 %v12650_v0, %v12650_v0  ;;  %v5717_v32 = vsel %vm17_vm3, %v5236_v4, 0.0 }
 0x5d1   :  { %v5710_v5 = vadd.f32 %v5709_v57, %v5708_v52  ;;  %v9094_v57 = vld [vmem:[#allocation2 + $0x728] sm:$0xff] }
 0x5d2   :  { %15759 = vst [vmem:[#allocation192_spill] sm:$0xff] %v12656_v37  ;;  %v12662_v20 = vsub.f32 %v9094_v57, %v11293_v9  ;;  %v5238_v42 = vmul.f32 %v12656_v37, %v12656_v37  ;;  %v5719_v48 = vsel %vm17_vm3, %v5237_v23, 0.0 }
 0x5d3   :  { %v5712_v29 = vadd.f32 %v5711_v18, %v5710_v5  ;;  %v9095_v18 = vld [vmem:[#allocation2 + $0x730] sm:$0xff] }
 0x5d4   :  { %15760 = vst [vmem:[#allocation193_spill] sm:$0xff] %v12662_v20  ;;  %v12668_v39 = vsub.f32 %v9095_v18, %v11293_v9  ;;  %v5239_v0 = vmul.f32 %v12662_v20, %v12662_v20  ;;  %v5721_v4 = vsel %vm17_vm3, %v5238_v42, 0.0 }
 0x5d5   :  { %v5714_v52 = vadd.f32 %v5713_v56, %v5712_v29  ;;  %v9096_v56 = vld [vmem:[#allocation2 + $0x738] sm:$0xff] }
 0x5d6   :  { %15761 = vst [vmem:[#allocation194_spill] sm:$0xff] %v12668_v39  ;;  %v12674_v57 = vsub.f32 %v9096_v56, %v11293_v9  ;;  %v5240_v37 = vmul.f32 %v12668_v39, %v12668_v39  ;;  %v5723_v23 = vsel %vm17_vm3, %v5239_v0, 0.0 }
 0x5d7   :  { %v5716_v5 = vadd.f32 %v5715_v7, %v5714_v52  ;;  %v9097_v7 = vld [vmem:[#allocation2 + $0x740] sm:$0xff] }
 0x5d8   :  { %15762 = vst [vmem:[#allocation195_spill] sm:$0xff] %v12674_v57  ;;  %v12680_v18 = vsub.f32 %v9097_v7, %v11293_v9  ;;  %v5241_v20 = vmul.f32 %v12674_v57, %v12674_v57  ;;  %v5725_v42 = vsel %vm17_vm3, %v5240_v37, 0.0 }
 0x5d9   :  { %v5718_v29 = vadd.f32 %v5717_v32, %v5716_v5  ;;  %v9098_v32 = vld [vmem:[#allocation2 + $0x748] sm:$0xff] }
 0x5da   :  { %15763 = vst [vmem:[#allocation196_spill] sm:$0xff] %v12680_v18  ;;  %v12686_v56 = vsub.f32 %v9098_v32, %v11293_v9  ;;  %v5242_v39 = vmul.f32 %v12680_v18, %v12680_v18  ;;  %v5727_v0 = vsel %vm17_vm3, %v5241_v20, 0.0 }
 0x5db   :  { %v5720_v52 = vadd.f32 %v5719_v48, %v5718_v29  ;;  %v9099_v48 = vld [vmem:[#allocation2 + $0x750] sm:$0xff] }
 0x5dc   :  { %15764 = vst [vmem:[#allocation197_spill] sm:$0xff] %v12686_v56  ;;  %v12692_v7 = vsub.f32 %v9099_v48, %v11293_v9  ;;  %v5243_v57 = vmul.f32 %v12686_v56, %v12686_v56  ;;  %v5729_v37 = vsel %vm17_vm3, %v5242_v39, 0.0 }
 0x5dd   :  { %v5722_v5 = vadd.f32 %v5721_v4, %v5720_v52  ;;  %v9100_v4 = vld [vmem:[#allocation2 + $0x758] sm:$0xff] }
 0x5de   :  { %15765 = vst [vmem:[#allocation198_spill] sm:$0xff] %v12692_v7  ;;  %v12698_v32 = vsub.f32 %v9100_v4, %v11293_v9  ;;  %v5244_v18 = vmul.f32 %v12692_v7, %v12692_v7  ;;  %v5731_v20 = vsel %vm17_vm3, %v5243_v57, 0.0 }
 0x5df   :  { %v5724_v29 = vadd.f32 %v5723_v23, %v5722_v5  ;;  %v9101_v23 = vld [vmem:[#allocation2 + $0x760] sm:$0xff] }
 0x5e0   :  { %15766 = vst [vmem:[#allocation199_spill] sm:$0xff] %v12698_v32  ;;  %v12704_v48 = vsub.f32 %v9101_v23, %v11293_v9  ;;  %v5245_v56 = vmul.f32 %v12698_v32, %v12698_v32  ;;  %v5733_v39 = vsel %vm17_vm3, %v5244_v18, 0.0 }
 0x5e1   :  { %v5726_v52 = vadd.f32 %v5725_v42, %v5724_v29  ;;  %v9102_v42 = vld [vmem:[#allocation2 + $0x768] sm:$0xff] }
 0x5e2   :  { %15767 = vst [vmem:[#allocation200_spill] sm:$0xff] %v12704_v48  ;;  %v12710_v4 = vsub.f32 %v9102_v42, %v11293_v9  ;;  %v5246_v7 = vmul.f32 %v12704_v48, %v12704_v48  ;;  %v5735_v57 = vsel %vm17_vm3, %v5245_v56, 0.0 }
 0x5e3   :  { %v5728_v5 = vadd.f32 %v5727_v0, %v5726_v52  ;;  %v9103_v0 = vld [vmem:[#allocation2 + $0x770] sm:$0xff] }
 0x5e4   :  { %15768 = vst [vmem:[#allocation201_spill] sm:$0xff] %v12710_v4  ;;  %v12716_v23 = vsub.f32 %v9103_v0, %v11293_v9  ;;  %v5247_v32 = vmul.f32 %v12710_v4, %v12710_v4  ;;  %v5737_v18 = vsel %vm17_vm3, %v5246_v7, 0.0 }
 0x5e5   :  { %v5730_v29 = vadd.f32 %v5729_v37, %v5728_v5  ;;  %v9104_v37 = vld [vmem:[#allocation2 + $0x778] sm:$0xff] }
 0x5e6   :  { %15769 = vst [vmem:[#allocation202_spill] sm:$0xff] %v12716_v23  ;;  %v12722_v42 = vsub.f32 %v9104_v37, %v11293_v9  ;;  %v5248_v48 = vmul.f32 %v12716_v23, %v12716_v23  ;;  %v5739_v56 = vsel %vm17_vm3, %v5247_v32, 0.0 }
 0x5e7   :  { %v5732_v52 = vadd.f32 %v5731_v20, %v5730_v29  ;;  %v9105_v20 = vld [vmem:[#allocation2 + $0x780] sm:$0xff] }
 0x5e8   :  { %15770 = vst [vmem:[#allocation203_spill] sm:$0xff] %v12722_v42  ;;  %v12728_v0 = vsub.f32 %v9105_v20, %v11293_v9  ;;  %v5249_v4 = vmul.f32 %v12722_v42, %v12722_v42  ;;  %v5741_v7 = vsel %vm17_vm3, %v5248_v48, 0.0 }
 0x5e9   :  { %v5734_v5 = vadd.f32 %v5733_v39, %v5732_v52  ;;  %v9106_v39 = vld [vmem:[#allocation2 + $0x788] sm:$0xff] }
 0x5ea   :  { %15771 = vst [vmem:[#allocation204_spill] sm:$0xff] %v12728_v0  ;;  %v12734_v37 = vsub.f32 %v9106_v39, %v11293_v9  ;;  %v5250_v23 = vmul.f32 %v12728_v0, %v12728_v0  ;;  %v5743_v32 = vsel %vm17_vm3, %v5249_v4, 0.0 }
 0x5eb   :  { %v5736_v29 = vadd.f32 %v5735_v57, %v5734_v5  ;;  %v9107_v57 = vld [vmem:[#allocation2 + $0x790] sm:$0xff] }
 0x5ec   :  { %15772 = vst [vmem:[#allocation205_spill] sm:$0xff] %v12734_v37  ;;  %v12740_v20 = vsub.f32 %v9107_v57, %v11293_v9  ;;  %v5251_v42 = vmul.f32 %v12734_v37, %v12734_v37  ;;  %v5745_v48 = vsel %vm17_vm3, %v5250_v23, 0.0 }
 0x5ed   :  { %v5738_v52 = vadd.f32 %v5737_v18, %v5736_v29  ;;  %v9108_v18 = vld [vmem:[#allocation2 + $0x798] sm:$0xff] }
 0x5ee   :  { %15773 = vst [vmem:[#allocation206_spill] sm:$0xff] %v12740_v20  ;;  %v12746_v39 = vsub.f32 %v9108_v18, %v11293_v9  ;;  %v5252_v0 = vmul.f32 %v12740_v20, %v12740_v20  ;;  %v5747_v4 = vsel %vm17_vm3, %v5251_v42, 0.0 }
 0x5ef   :  { %v5740_v5 = vadd.f32 %v5739_v56, %v5738_v52  ;;  %v9109_v56 = vld [vmem:[#allocation2 + $0x7a0] sm:$0xff] }
 0x5f0   :  { %15774 = vst [vmem:[#allocation207_spill] sm:$0xff] %v12746_v39  ;;  %v12752_v57 = vsub.f32 %v9109_v56, %v11293_v9  ;;  %v5253_v37 = vmul.f32 %v12746_v39, %v12746_v39  ;;  %v5749_v23 = vsel %vm17_vm3, %v5252_v0, 0.0 }
 0x5f1   :  { %v5742_v29 = vadd.f32 %v5741_v7, %v5740_v5  ;;  %v9110_v7 = vld [vmem:[#allocation2 + $0x7a8] sm:$0xff] }
 0x5f2   :  { %15775 = vst [vmem:[#allocation208_spill] sm:$0xff] %v12752_v57  ;;  %v12758_v18 = vsub.f32 %v9110_v7, %v11293_v9  ;;  %v5254_v20 = vmul.f32 %v12752_v57, %v12752_v57  ;;  %v5751_v42 = vsel %vm17_vm3, %v5253_v37, 0.0 }
 0x5f3   :  { %v5744_v52 = vadd.f32 %v5743_v32, %v5742_v29  ;;  %v9111_v32 = vld [vmem:[#allocation2 + $0x7b0] sm:$0xff] }
 0x5f4   :  { %15776 = vst [vmem:[#allocation209_spill] sm:$0xff] %v12758_v18  ;;  %v12764_v56 = vsub.f32 %v9111_v32, %v11293_v9  ;;  %v5255_v39 = vmul.f32 %v12758_v18, %v12758_v18  ;;  %v5753_v0 = vsel %vm17_vm3, %v5254_v20, 0.0 }
 0x5f5   :  { %v5746_v5 = vadd.f32 %v5745_v48, %v5744_v52  ;;  %v9112_v48 = vld [vmem:[#allocation2 + $0x7b8] sm:$0xff] }
 0x5f6   :  { %15777 = vst [vmem:[#allocation210_spill] sm:$0xff] %v12764_v56  ;;  %v12770_v7 = vsub.f32 %v9112_v48, %v11293_v9  ;;  %v5256_v57 = vmul.f32 %v12764_v56, %v12764_v56  ;;  %v5755_v37 = vsel %vm17_vm3, %v5255_v39, 0.0 }
 0x5f7   :  { %v5748_v29 = vadd.f32 %v5747_v4, %v5746_v5  ;;  %v9113_v4 = vld [vmem:[#allocation2 + $0x7c0] sm:$0xff] }
 0x5f8   :  { %15778 = vst [vmem:[#allocation211_spill] sm:$0xff] %v12770_v7  ;;  %v12776_v32 = vsub.f32 %v9113_v4, %v11293_v9  ;;  %v5257_v18 = vmul.f32 %v12770_v7, %v12770_v7  ;;  %v5757_v20 = vsel %vm17_vm3, %v5256_v57, 0.0 }
 0x5f9   :  { %v5750_v52 = vadd.f32 %v5749_v23, %v5748_v29  ;;  %v9114_v23 = vld [vmem:[#allocation2 + $0x7c8] sm:$0xff] }
 0x5fa   :  { %15779 = vst [vmem:[#allocation212_spill] sm:$0xff] %v12776_v32  ;;  %v12782_v48 = vsub.f32 %v9114_v23, %v11293_v9  ;;  %v5258_v56 = vmul.f32 %v12776_v32, %v12776_v32  ;;  %v5759_v39 = vsel %vm17_vm3, %v5257_v18, 0.0 }
 0x5fb   :  { %v5752_v5 = vadd.f32 %v5751_v42, %v5750_v52  ;;  %v9115_v42 = vld [vmem:[#allocation2 + $0x7d0] sm:$0xff] }
 0x5fc   :  { %15780 = vst [vmem:[#allocation213_spill] sm:$0xff] %v12782_v48  ;;  %v12788_v4 = vsub.f32 %v9115_v42, %v11293_v9  ;;  %v5259_v7 = vmul.f32 %v12782_v48, %v12782_v48  ;;  %v5761_v57 = vsel %vm17_vm3, %v5258_v56, 0.0 }
 0x5fd   :  { %v5754_v29 = vadd.f32 %v5753_v0, %v5752_v5  ;;  %v9116_v0 = vld [vmem:[#allocation2 + $0x7d8] sm:$0xff] }
 0x5fe   :  { %15781 = vst [vmem:[#allocation214_spill] sm:$0xff] %v12788_v4  ;;  %v12794_v23 = vsub.f32 %v9116_v0, %v11293_v9  ;;  %v5260_v32 = vmul.f32 %v12788_v4, %v12788_v4  ;;  %v5763_v18 = vsel %vm17_vm3, %v5259_v7, 0.0 }
 0x5ff   :  { %v5756_v52 = vadd.f32 %v5755_v37, %v5754_v29  ;;  %v9117_v37 = vld [vmem:[#allocation2 + $0x7e0] sm:$0xff] }
 0x600   :  { %15782 = vst [vmem:[#allocation215_spill] sm:$0xff] %v12794_v23  ;;  %v12800_v42 = vsub.f32 %v9117_v37, %v11293_v9  ;;  %v5261_v48 = vmul.f32 %v12794_v23, %v12794_v23  ;;  %v5765_v56 = vsel %vm17_vm3, %v5260_v32, 0.0 }
 0x601   :  { %v5758_v5 = vadd.f32 %v5757_v20, %v5756_v52  ;;  %v9118_v20 = vld [vmem:[#allocation2 + $0x7e8] sm:$0xff] }
 0x602   :  { %15783 = vst [vmem:[#allocation216_spill] sm:$0xff] %v12800_v42  ;;  %v12806_v0 = vsub.f32 %v9118_v20, %v11293_v9  ;;  %v5262_v4 = vmul.f32 %v12800_v42, %v12800_v42  ;;  %v5767_v23 = vsel %vm17_vm3, %v5261_v48, 0.0 }
 0x603   :  { %v5760_v29 = vadd.f32 %v5759_v39, %v5758_v5  ;;  %v9119_v39 = vld [vmem:[#allocation2 + $0x7f0] sm:$0xff] }
 0x604   :  { %15784 = vst [vmem:[#allocation217_spill] sm:$0xff] %v12806_v0  ;;  %v12812_v37 = vsub.f32 %v9119_v39, %v11293_v9  ;;  %v5263_v61 = vmul.f32 %v12806_v0, %v12806_v0 }
 0x605   :  { %v5762_v52 = vadd.f32 %v5761_v57, %v5760_v29  ;;  %v9120_v57 = vld [vmem:[#allocation2 + $0x7f8] sm:$0xff] }
 0x606   :  { %15785 = vst [vmem:[#allocation218_spill] sm:$0xff] %v12812_v37  ;;  %v5009_v20 = vsub.f32 %v9120_v57, %v11293_v9  ;;  %v5771_v42 = vsel %vm17_vm3, %v5263_v61, 0.0 }
 0x607   :  { %v5764_v5 = vadd.f32 %v5763_v18, %v5762_v52  ;;  %v5264_v52 = vmul.f32 %v12812_v37, %v12812_v37  ;;  %v5769_v18 = vsel %vm17_vm3, %v5262_v4, 0.0 }
 0x608   :  { %v5265_v46 = vmul.f32 %v5009_v20, %v5009_v20 }
 0x609   :  { %v5766_v29 = vadd.f32 %v5765_v56, %v5764_v5  ;;  %v5773_v5 = vsel %vm17_vm3, %v5264_v52, 0.0  ;;  %v15790_v52 = vld [vmem:[#allocation8_spill] sm:$0xff] }
 0x60a   :  { %v5775_v9 = vsel %vm17_vm3, %v5265_v46, 0.0 }
 0x60b   :  { %v5768_v7 = vadd.f32 %v5767_v23, %v5766_v29 }
 0x60d   :  { %v5770_v39 = vadd.f32 %v5769_v18, %v5768_v7  ;;  %v15788_v7 = vld [vmem:[#allocation7_spill] sm:$0xff]  ;;  %v15792_v18 = vld [vmem:[#allocation9_spill] sm:$0xff] }
 0x60f   :  { %v5772_v32 = vadd.f32 %v5771_v42, %v5770_v39  ;;  %v15794_v39 = vld [vmem:[#allocation10_spill] sm:$0xff] }
 0x611   :  { %v5774_v56 = vadd.f32 %v5773_v5, %v5772_v32  ;;  %v15796_v32 = vld [vmem:[#allocation11_spill] sm:$0xff] }
 0x613   :  { %v5776_v57 = vadd.f32 %v5775_v9, %v5774_v56  ;;  %v15798_v56 = vld [vmem:[#allocation12_spill] sm:$0xff] }
 0x615   :  { %v5777_v0 = vrot.slane %v5776_v57, 4 }
 0x617   :  { %v5778_v31 = vadd.f32 %v5777_v0, %v5776_v57  ;;  %v15800_v57 = vld [vmem:[#allocation13_spill] sm:$0xff] }
 0x619   :  { %v5779_v48 = vrot.slane %v5778_v31, 2 }
 0x61b   :  { %v5780_v23 = vadd.f32 %v5779_v48, %v5778_v31 }
 0x61d   :  { %v5781_v29 = vrot.slane %v5780_v23, 1 }
 0x61f   :  { %v5782_v16 = vadd.f32 %v5781_v29, %v5780_v23  ;;  %v15802_v23 = vld [vmem:[#allocation14_spill] sm:$0xff] }
 0x621   :  { %v5783_v37 = vmul.f32 0.00048828125, %v5782_v16 }
 0x623   :  { %v5784_v62 = vadd.f32 1e-05, %v5783_v37 }
 0x625   :  { %8863 = vrsqrt.f32 %v5784_v62 }
 0x62f   :  { %v12827_v4 = vpop.eup %8863 }
 0x630   :  { %v6041_v61 = vmul.f32 %v12827_v4, %v5009_v20  ;;  %v12832_v42 = vmul.f32 %v12827_v4, %v11296_v11  ;;  %v12836_v46 = vmul.f32 %v12827_v4, %v11299_v13  ;;  %v12840_v31 = vmul.f32 %v12827_v4, %v11302_v15  ;;  %v15786_v20 = vld [vmem:[#allocation6_spill] sm:$0xff] }
 0x631   :  { %v12844_v62 = vmul.f32 %v12827_v4, %v11305_v17  ;;  %v12848_v16 = vmul.f32 %v12827_v4, %v11312_v21  ;;  %v12852_v11 = vmul.f32 %v12827_v4, %v11317_v24  ;;  %v12856_v13 = vmul.f32 %v12827_v4, %v11324_v30 }
 0x632   :  { %v6297_v0 = vmax.f32 %v6041_v61, 0.0  ;;  %v12860_v15 = vmul.f32 %v12827_v4, %v11330_v35  ;;  %v12864_v17 = vmul.f32 %v12827_v4, %v11336_v40  ;;  %v12868_v21 = vmul.f32 %v12827_v4, %v11342_v45  ;;  %v15804_v61 = vld [vmem:[#allocation15_spill] sm:$0xff] }
 0x633   :  { %v12872_v24 = vmul.f32 %v12827_v4, %v11348_v50  ;;  %v12876_v30 = vmul.f32 %v12827_v4, %v11354_v55  ;;  %v12880_v35 = vmul.f32 %v12827_v4, %v11360_v60  ;;  %v12884_v40 = vmul.f32 %v12827_v4, %v11366_v1 }
 0x634   :  { %v8500_v37 = vpack.c.bf16 %v6297_v0, %v6297_v0  ;;  %v12888_v45 = vmul.f32 %v12827_v4, %v11372_v6  ;;  %v12892_v50 = vmul.f32 %v12827_v4, %v11378_v14  ;;  %v12896_v55 = vmul.f32 %v12827_v4, %v11384_v22 }
 0x635   :  { %v12900_v60 = vmul.f32 %v12827_v4, %v11390_v28  ;;  %v12904_v1 = vmul.f32 %v12827_v4, %v11396_v34  ;;  %v12908_v6 = vmul.f32 %v12827_v4, %v11402_v41  ;;  %v12912_v14 = vmul.f32 %v12827_v4, %v11408_v47 }
 0x636   :  { %7578 = vst.msk [vmem:[#allocation3 + $0x3fc] sm:$0xf] %vm7322_vm4, %v8500_v37  ;;  %v12917_v22 = vmul.f32 %v12827_v4, %v11414_v53  ;;  %v12921_v28 = vmul.f32 %v12827_v4, %v11420_v59  ;;  %v12925_v34 = vmul.f32 %v12827_v4, %v11426_v2  ;;  %v12929_v41 = vmul.f32 %v12827_v4, %v11432_v8  ;;  %v15806_v37 = vld [vmem:[#allocation16_spill] sm:$0xff] }
 0x637   :  { %v12933_v47 = vmul.f32 %v12827_v4, %v11438_v19  ;;  %v12937_v53 = vmul.f32 %v12827_v4, %v11444_v27  ;;  %v12941_v59 = vmul.f32 %v12827_v4, %v11450_v36  ;;  %v12945_v2 = vmul.f32 %v12827_v4, %v11456_v43 }
 0x638   :  { %v12949_v8 = vmul.f32 %v12827_v4, %v11462_v51  ;;  %v12953_v19 = vmul.f32 %v12827_v4, %v11468_v58  ;;  %v12957_v27 = vmul.f32 %v12827_v4, %v11474_v3  ;;  %v12961_v36 = vmul.f32 %v12827_v4, %v11480_v12 }
 0x639   :  { %v12965_v43 = vmul.f32 %v12827_v4, %v11486_v25  ;;  %v12969_v51 = vmul.f32 %v12827_v4, %v11492_v33  ;;  %v12973_v58 = vmul.f32 %v12827_v4, %v11498_v44  ;;  %v12977_v3 = vmul.f32 %v12827_v4, %v11504_v54 }
 0x63a   :  { %v12981_v12 = vmul.f32 %v12827_v4, %v11510_v63  ;;  %v12985_v25 = vmul.f32 %v12827_v4, %v11516_v10  ;;  %v12989_v33 = vmul.f32 %v12827_v4, %v11522_v26  ;;  %v12993_v44 = vmul.f32 %v12827_v4, %v11528_v38 }
 0x63b   :  { %v12997_v54 = vmul.f32 %v12827_v4, %v11534_v49  ;;  %v13001_v63 = vmul.f32 %v12827_v4, %v15786_v20  ;;  %v13005_v10 = vmul.f32 %v12827_v4, %v15788_v7  ;;  %v13009_v26 = vmul.f32 %v12827_v4, %v15790_v52  ;;  %v15808_v7 = vld [vmem:[#allocation17_spill] sm:$0xff] }
 0x63c   :  { %v13013_v38 = vmul.f32 %v12827_v4, %v15792_v18  ;;  %v13017_v49 = vmul.f32 %v12827_v4, %v15794_v39  ;;  %v13021_v5 = vmul.f32 %v12827_v4, %v15796_v32  ;;  %v13025_v9 = vmul.f32 %v12827_v4, %v15798_v56  ;;  %v15810_v18 = vld [vmem:[#allocation18_spill] sm:$0xff]  ;;  %v15812_v32 = vld [vmem:[#allocation19_spill] sm:$0xff] }
 0x63d   :  { %15787 = vst [vmem:[#allocation6_spill] sm:$0xff] %v13001_v63  ;;  %15789 = vst [vmem:[#allocation7_spill] sm:$0xff] %v13005_v10  ;;  %v13029_v48 = vmul.f32 %v12827_v4, %v15800_v57  ;;  %v13033_v29 = vmul.f32 %v12827_v4, %v15802_v23  ;;  %v13037_v0 = vmul.f32 %v12827_v4, %v15804_v61  ;;  %v15814_v57 = vld [vmem:[#allocation20_spill] sm:$0xff]  ;;  %v15816_v61 = vld [vmem:[#allocation21_spill] sm:$0xff] }
 0x63e   :  { %15791 = vst [vmem:[#allocation8_spill] sm:$0xff] %v13009_v26  ;;  %15793 = vst [vmem:[#allocation9_spill] sm:$0xff] %v13013_v38  ;;  %v13041_v20 = vmul.f32 %v12827_v4, %v15806_v37  ;;  %v13045_v52 = vmul.f32 %v12827_v4, %v15808_v7  ;;  %v13049_v39 = vmul.f32 %v12827_v4, %v15810_v18 }
 0x63f   :  { %15795 = vst [vmem:[#allocation10_spill] sm:$0xff] %v13017_v49  ;;  %15797 = vst [vmem:[#allocation11_spill] sm:$0xff] %v13021_v5  ;;  %v13053_v56 = vmul.f32 %v12827_v4, %v15812_v32  ;;  %v13057_v23 = vmul.f32 %v12827_v4, %v15814_v57  ;;  %v13061_v37 = vmul.f32 %v12827_v4, %v15816_v61 }
 0x640   :  { %15799 = vst [vmem:[#allocation12_spill] sm:$0xff] %v13025_v9  ;;  %15801 = vst [vmem:[#allocation13_spill] sm:$0xff] %v13029_v48 }
 0x641   :  { %15803 = vst [vmem:[#allocation14_spill] sm:$0xff] %v13033_v29  ;;  %15805 = vst [vmem:[#allocation15_spill] sm:$0xff] %v13037_v0 }
 0x642   :  { %15807 = vst [vmem:[#allocation16_spill] sm:$0xff] %v13041_v20  ;;  %15809 = vst [vmem:[#allocation17_spill] sm:$0xff] %v13045_v52  ;;  %v15818_v20 = vld [vmem:[#allocation22_spill] sm:$0xff]  ;;  %v15820_v52 = vld [vmem:[#allocation23_spill] sm:$0xff] }
 0x643   :  { %15811 = vst [vmem:[#allocation18_spill] sm:$0xff] %v13049_v39  ;;  %15813 = vst [vmem:[#allocation19_spill] sm:$0xff] %v13053_v56  ;;  %v13065_v7 = vmul.f32 %v12827_v4, %v15818_v20  ;;  %v13069_v18 = vmul.f32 %v12827_v4, %v15820_v52  ;;  %v15822_v39 = vld [vmem:[#allocation24_spill] sm:$0xff]  ;;  %v15824_v56 = vld [vmem:[#allocation25_spill] sm:$0xff] }
 0x644   :  { %15815 = vst [vmem:[#allocation20_spill] sm:$0xff] %v13057_v23  ;;  %15817 = vst [vmem:[#allocation21_spill] sm:$0xff] %v13061_v37  ;;  %v13073_v32 = vmul.f32 %v12827_v4, %v15822_v39  ;;  %v13077_v57 = vmul.f32 %v12827_v4, %v15824_v56  ;;  %v15826_v23 = vld [vmem:[#allocation26_spill] sm:$0xff]  ;;  %v15828_v37 = vld [vmem:[#allocation27_spill] sm:$0xff] }
 0x645   :  { %15819 = vst [vmem:[#allocation22_spill] sm:$0xff] %v13065_v7  ;;  %15821 = vst [vmem:[#allocation23_spill] sm:$0xff] %v13069_v18  ;;  %v13081_v61 = vmul.f32 %v12827_v4, %v15826_v23  ;;  %v13085_v20 = vmul.f32 %v12827_v4, %v15828_v37  ;;  %v15830_v7 = vld [vmem:[#allocation28_spill] sm:$0xff]  ;;  %v15832_v18 = vld [vmem:[#allocation29_spill] sm:$0xff] }
 0x646   :  { %15823 = vst [vmem:[#allocation24_spill] sm:$0xff] %v13073_v32  ;;  %15825 = vst [vmem:[#allocation25_spill] sm:$0xff] %v13077_v57  ;;  %v13089_v52 = vmul.f32 %v12827_v4, %v15830_v7  ;;  %v13093_v39 = vmul.f32 %v12827_v4, %v15832_v18  ;;  %v15834_v32 = vld [vmem:[#allocation30_spill] sm:$0xff]  ;;  %v15836_v57 = vld [vmem:[#allocation31_spill] sm:$0xff] }
 0x647   :  { %15827 = vst [vmem:[#allocation26_spill] sm:$0xff] %v13081_v61  ;;  %15829 = vst [vmem:[#allocation27_spill] sm:$0xff] %v13085_v20  ;;  %v13097_v56 = vmul.f32 %v12827_v4, %v15834_v32  ;;  %v13101_v23 = vmul.f32 %v12827_v4, %v15836_v57  ;;  %v15838_v61 = vld [vmem:[#allocation32_spill] sm:$0xff]  ;;  %v15840_v20 = vld [vmem:[#allocation33_spill] sm:$0xff] }
 0x648   :  { %15831 = vst [vmem:[#allocation28_spill] sm:$0xff] %v13089_v52  ;;  %15833 = vst [vmem:[#allocation29_spill] sm:$0xff] %v13093_v39  ;;  %v13105_v37 = vmul.f32 %v12827_v4, %v15838_v61  ;;  %v13109_v7 = vmul.f32 %v12827_v4, %v15840_v20  ;;  %v15842_v52 = vld [vmem:[#allocation34_spill] sm:$0xff]  ;;  %v15844_v39 = vld [vmem:[#allocation35_spill] sm:$0xff] }
 0x649   :  { %15835 = vst [vmem:[#allocation30_spill] sm:$0xff] %v13097_v56  ;;  %15837 = vst [vmem:[#allocation31_spill] sm:$0xff] %v13101_v23  ;;  %v13113_v18 = vmul.f32 %v12827_v4, %v15842_v52  ;;  %v13117_v32 = vmul.f32 %v12827_v4, %v15844_v39  ;;  %v15846_v56 = vld [vmem:[#allocation36_spill] sm:$0xff]  ;;  %v15848_v23 = vld [vmem:[#allocation37_spill] sm:$0xff] }
 0x64a   :  { %15839 = vst [vmem:[#allocation32_spill] sm:$0xff] %v13105_v37  ;;  %15841 = vst [vmem:[#allocation33_spill] sm:$0xff] %v13109_v7  ;;  %v13121_v57 = vmul.f32 %v12827_v4, %v15846_v56  ;;  %v13125_v61 = vmul.f32 %v12827_v4, %v15848_v23  ;;  %v15850_v37 = vld [vmem:[#allocation38_spill] sm:$0xff]  ;;  %v15852_v7 = vld [vmem:[#allocation39_spill] sm:$0xff] }
 0x64b   :  { %15843 = vst [vmem:[#allocation34_spill] sm:$0xff] %v13113_v18  ;;  %15845 = vst [vmem:[#allocation35_spill] sm:$0xff] %v13117_v32  ;;  %v13129_v20 = vmul.f32 %v12827_v4, %v15850_v37  ;;  %v13133_v52 = vmul.f32 %v12827_v4, %v15852_v7  ;;  %v15854_v18 = vld [vmem:[#allocation40_spill] sm:$0xff]  ;;  %v15856_v32 = vld [vmem:[#allocation41_spill] sm:$0xff] }
 0x64c   :  { %15847 = vst [vmem:[#allocation36_spill] sm:$0xff] %v13121_v57  ;;  %15849 = vst [vmem:[#allocation37_spill] sm:$0xff] %v13125_v61  ;;  %v13137_v39 = vmul.f32 %v12827_v4, %v15854_v18  ;;  %v13141_v56 = vmul.f32 %v12827_v4, %v15856_v32  ;;  %v15858_v57 = vld [vmem:[#allocation42_spill] sm:$0xff]  ;;  %v15860_v61 = vld [vmem:[#allocation43_spill] sm:$0xff] }
 0x64d   :  { %15851 = vst [vmem:[#allocation38_spill] sm:$0xff] %v13129_v20  ;;  %15853 = vst [vmem:[#allocation39_spill] sm:$0xff] %v13133_v52  ;;  %v13145_v23 = vmul.f32 %v12827_v4, %v15858_v57  ;;  %v13149_v37 = vmul.f32 %v12827_v4, %v15860_v61  ;;  %v15862_v20 = vld [vmem:[#allocation44_spill] sm:$0xff]  ;;  %v15864_v52 = vld [vmem:[#allocation45_spill] sm:$0xff] }
 0x64e   :  { %15855 = vst [vmem:[#allocation40_spill] sm:$0xff] %v13137_v39  ;;  %15857 = vst [vmem:[#allocation41_spill] sm:$0xff] %v13141_v56  ;;  %v13153_v7 = vmul.f32 %v12827_v4, %v15862_v20  ;;  %v13157_v18 = vmul.f32 %v12827_v4, %v15864_v52  ;;  %v15866_v39 = vld [vmem:[#allocation46_spill] sm:$0xff]  ;;  %v15868_v56 = vld [vmem:[#allocation47_spill] sm:$0xff] }
 0x64f   :  { %15859 = vst [vmem:[#allocation42_spill] sm:$0xff] %v13145_v23  ;;  %15861 = vst [vmem:[#allocation43_spill] sm:$0xff] %v13149_v37  ;;  %v13161_v32 = vmul.f32 %v12827_v4, %v15866_v39  ;;  %v13165_v57 = vmul.f32 %v12827_v4, %v15868_v56  ;;  %v15870_v23 = vld [vmem:[#allocation48_spill] sm:$0xff]  ;;  %v15872_v37 = vld [vmem:[#allocation49_spill] sm:$0xff] }
 0x650   :  { %15863 = vst [vmem:[#allocation44_spill] sm:$0xff] %v13153_v7  ;;  %15865 = vst [vmem:[#allocation45_spill] sm:$0xff] %v13157_v18  ;;  %v13169_v61 = vmul.f32 %v12827_v4, %v15870_v23  ;;  %v13173_v20 = vmul.f32 %v12827_v4, %v15872_v37  ;;  %v15874_v7 = vld [vmem:[#allocation50_spill] sm:$0xff]  ;;  %v15876_v18 = vld [vmem:[#allocation51_spill] sm:$0xff] }
 0x651   :  { %15867 = vst [vmem:[#allocation46_spill] sm:$0xff] %v13161_v32  ;;  %15869 = vst [vmem:[#allocation47_spill] sm:$0xff] %v13165_v57  ;;  %v13177_v52 = vmul.f32 %v12827_v4, %v15874_v7  ;;  %v13181_v39 = vmul.f32 %v12827_v4, %v15876_v18  ;;  %v15878_v32 = vld [vmem:[#allocation52_spill] sm:$0xff]  ;;  %v15880_v57 = vld [vmem:[#allocation53_spill] sm:$0xff] }
 0x652   :  { %15871 = vst [vmem:[#allocation48_spill] sm:$0xff] %v13169_v61  ;;  %15873 = vst [vmem:[#allocation49_spill] sm:$0xff] %v13173_v20  ;;  %v13185_v56 = vmul.f32 %v12827_v4, %v15878_v32  ;;  %v13189_v23 = vmul.f32 %v12827_v4, %v15880_v57  ;;  %v15882_v61 = vld [vmem:[#allocation54_spill] sm:$0xff]  ;;  %v15884_v20 = vld [vmem:[#allocation55_spill] sm:$0xff] }
 0x653   :  { %15875 = vst [vmem:[#allocation50_spill] sm:$0xff] %v13177_v52  ;;  %15877 = vst [vmem:[#allocation51_spill] sm:$0xff] %v13181_v39  ;;  %v13193_v37 = vmul.f32 %v12827_v4, %v15882_v61  ;;  %v13197_v7 = vmul.f32 %v12827_v4, %v15884_v20  ;;  %v15886_v52 = vld [vmem:[#allocation56_spill] sm:$0xff]  ;;  %v15888_v39 = vld [vmem:[#allocation57_spill] sm:$0xff] }
 0x654   :  { %15879 = vst [vmem:[#allocation52_spill] sm:$0xff] %v13185_v56  ;;  %15881 = vst [vmem:[#allocation53_spill] sm:$0xff] %v13189_v23  ;;  %v13201_v18 = vmul.f32 %v12827_v4, %v15886_v52  ;;  %v13205_v32 = vmul.f32 %v12827_v4, %v15888_v39  ;;  %v15890_v56 = vld [vmem:[#allocation58_spill] sm:$0xff]  ;;  %v15892_v23 = vld [vmem:[#allocation59_spill] sm:$0xff] }
 0x655   :  { %15883 = vst [vmem:[#allocation54_spill] sm:$0xff] %v13193_v37  ;;  %15885 = vst [vmem:[#allocation55_spill] sm:$0xff] %v13197_v7  ;;  %v13209_v57 = vmul.f32 %v12827_v4, %v15890_v56  ;;  %v13213_v61 = vmul.f32 %v12827_v4, %v15892_v23  ;;  %v15894_v37 = vld [vmem:[#allocation60_spill] sm:$0xff]  ;;  %v15896_v7 = vld [vmem:[#allocation61_spill] sm:$0xff] }
 0x656   :  { %15887 = vst [vmem:[#allocation56_spill] sm:$0xff] %v13201_v18  ;;  %15889 = vst [vmem:[#allocation57_spill] sm:$0xff] %v13205_v32  ;;  %v13217_v20 = vmul.f32 %v12827_v4, %v15894_v37  ;;  %v13221_v52 = vmul.f32 %v12827_v4, %v15896_v7  ;;  %v15898_v18 = vld [vmem:[#allocation62_spill] sm:$0xff]  ;;  %v15900_v32 = vld [vmem:[#allocation63_spill] sm:$0xff] }
 0x657   :  { %15891 = vst [vmem:[#allocation58_spill] sm:$0xff] %v13209_v57  ;;  %15893 = vst [vmem:[#allocation59_spill] sm:$0xff] %v13213_v61  ;;  %v13225_v39 = vmul.f32 %v12827_v4, %v15898_v18  ;;  %v13229_v56 = vmul.f32 %v12827_v4, %v15900_v32  ;;  %v15902_v57 = vld [vmem:[#allocation64_spill] sm:$0xff]  ;;  %v15904_v61 = vld [vmem:[#allocation65_spill] sm:$0xff] }
 0x658   :  { %15895 = vst [vmem:[#allocation60_spill] sm:$0xff] %v13217_v20  ;;  %15897 = vst [vmem:[#allocation61_spill] sm:$0xff] %v13221_v52  ;;  %v13233_v23 = vmul.f32 %v12827_v4, %v15902_v57  ;;  %v13237_v37 = vmul.f32 %v12827_v4, %v15904_v61  ;;  %v15906_v20 = vld [vmem:[#allocation66_spill] sm:$0xff]  ;;  %v15908_v52 = vld [vmem:[#allocation67_spill] sm:$0xff] }
 0x659   :  { %15899 = vst [vmem:[#allocation62_spill] sm:$0xff] %v13225_v39  ;;  %15901 = vst [vmem:[#allocation63_spill] sm:$0xff] %v13229_v56  ;;  %v13241_v7 = vmul.f32 %v12827_v4, %v15906_v20  ;;  %v13245_v18 = vmul.f32 %v12827_v4, %v15908_v52  ;;  %v15910_v39 = vld [vmem:[#allocation68_spill] sm:$0xff]  ;;  %v15912_v56 = vld [vmem:[#allocation69_spill] sm:$0xff] }
 0x65a   :  { %15903 = vst [vmem:[#allocation64_spill] sm:$0xff] %v13233_v23  ;;  %15905 = vst [vmem:[#allocation65_spill] sm:$0xff] %v13237_v37  ;;  %v13249_v32 = vmul.f32 %v12827_v4, %v15910_v39  ;;  %v13253_v57 = vmul.f32 %v12827_v4, %v15912_v56  ;;  %v15914_v23 = vld [vmem:[#allocation70_spill] sm:$0xff]  ;;  %v15916_v37 = vld [vmem:[#allocation71_spill] sm:$0xff] }
 0x65b   :  { %15907 = vst [vmem:[#allocation66_spill] sm:$0xff] %v13241_v7  ;;  %15909 = vst [vmem:[#allocation67_spill] sm:$0xff] %v13245_v18  ;;  %v13257_v61 = vmul.f32 %v12827_v4, %v15914_v23  ;;  %v13261_v20 = vmul.f32 %v12827_v4, %v15916_v37  ;;  %v15918_v7 = vld [vmem:[#allocation72_spill] sm:$0xff]  ;;  %v15920_v18 = vld [vmem:[#allocation73_spill] sm:$0xff] }
 0x65c   :  { %15911 = vst [vmem:[#allocation68_spill] sm:$0xff] %v13249_v32  ;;  %15913 = vst [vmem:[#allocation69_spill] sm:$0xff] %v13253_v57  ;;  %v13265_v52 = vmul.f32 %v12827_v4, %v15918_v7  ;;  %v13269_v39 = vmul.f32 %v12827_v4, %v15920_v18  ;;  %v15922_v32 = vld [vmem:[#allocation74_spill] sm:$0xff]  ;;  %v15924_v57 = vld [vmem:[#allocation75_spill] sm:$0xff] }
 0x65d   :  { %15915 = vst [vmem:[#allocation70_spill] sm:$0xff] %v13257_v61  ;;  %15917 = vst [vmem:[#allocation71_spill] sm:$0xff] %v13261_v20  ;;  %v13273_v56 = vmul.f32 %v12827_v4, %v15922_v32  ;;  %v13277_v23 = vmul.f32 %v12827_v4, %v15924_v57  ;;  %v15926_v61 = vld [vmem:[#allocation76_spill] sm:$0xff]  ;;  %v15928_v20 = vld [vmem:[#allocation77_spill] sm:$0xff] }
 0x65e   :  { %15919 = vst [vmem:[#allocation72_spill] sm:$0xff] %v13265_v52  ;;  %15921 = vst [vmem:[#allocation73_spill] sm:$0xff] %v13269_v39  ;;  %v13281_v37 = vmul.f32 %v12827_v4, %v15926_v61  ;;  %v13285_v7 = vmul.f32 %v12827_v4, %v15928_v20  ;;  %v15930_v52 = vld [vmem:[#allocation78_spill] sm:$0xff]  ;;  %v15932_v39 = vld [vmem:[#allocation79_spill] sm:$0xff] }
 0x65f   :  { %15923 = vst [vmem:[#allocation74_spill] sm:$0xff] %v13273_v56  ;;  %15925 = vst [vmem:[#allocation75_spill] sm:$0xff] %v13277_v23  ;;  %v13289_v18 = vmul.f32 %v12827_v4, %v15930_v52  ;;  %v13293_v32 = vmul.f32 %v12827_v4, %v15932_v39  ;;  %v15934_v56 = vld [vmem:[#allocation80_spill] sm:$0xff]  ;;  %v15936_v23 = vld [vmem:[#allocation81_spill] sm:$0xff] }
 0x660   :  { %15927 = vst [vmem:[#allocation76_spill] sm:$0xff] %v13281_v37  ;;  %15929 = vst [vmem:[#allocation77_spill] sm:$0xff] %v13285_v7  ;;  %v13297_v57 = vmul.f32 %v12827_v4, %v15934_v56  ;;  %v13301_v61 = vmul.f32 %v12827_v4, %v15936_v23  ;;  %v15938_v37 = vld [vmem:[#allocation82_spill] sm:$0xff]  ;;  %v15940_v7 = vld [vmem:[#allocation83_spill] sm:$0xff] }
 0x661   :  { %15931 = vst [vmem:[#allocation78_spill] sm:$0xff] %v13289_v18  ;;  %15933 = vst [vmem:[#allocation79_spill] sm:$0xff] %v13293_v32  ;;  %v13305_v20 = vmul.f32 %v12827_v4, %v15938_v37  ;;  %v13309_v52 = vmul.f32 %v12827_v4, %v15940_v7  ;;  %v15942_v18 = vld [vmem:[#allocation84_spill] sm:$0xff]  ;;  %v15944_v32 = vld [vmem:[#allocation85_spill] sm:$0xff] }
 0x662   :  { %15935 = vst [vmem:[#allocation80_spill] sm:$0xff] %v13297_v57  ;;  %15937 = vst [vmem:[#allocation81_spill] sm:$0xff] %v13301_v61  ;;  %v13313_v39 = vmul.f32 %v12827_v4, %v15942_v18  ;;  %v13317_v56 = vmul.f32 %v12827_v4, %v15944_v32  ;;  %v15946_v57 = vld [vmem:[#allocation86_spill] sm:$0xff]  ;;  %v15948_v61 = vld [vmem:[#allocation87_spill] sm:$0xff] }
 0x663   :  { %15939 = vst [vmem:[#allocation82_spill] sm:$0xff] %v13305_v20  ;;  %15941 = vst [vmem:[#allocation83_spill] sm:$0xff] %v13309_v52  ;;  %v13321_v23 = vmul.f32 %v12827_v4, %v15946_v57  ;;  %v13325_v37 = vmul.f32 %v12827_v4, %v15948_v61  ;;  %v15950_v20 = vld [vmem:[#allocation88_spill] sm:$0xff]  ;;  %v15952_v52 = vld [vmem:[#allocation89_spill] sm:$0xff] }
 0x664   :  { %15943 = vst [vmem:[#allocation84_spill] sm:$0xff] %v13313_v39  ;;  %15945 = vst [vmem:[#allocation85_spill] sm:$0xff] %v13317_v56  ;;  %v13329_v7 = vmul.f32 %v12827_v4, %v15950_v20  ;;  %v13333_v18 = vmul.f32 %v12827_v4, %v15952_v52  ;;  %v15954_v39 = vld [vmem:[#allocation90_spill] sm:$0xff]  ;;  %v15956_v56 = vld [vmem:[#allocation91_spill] sm:$0xff] }
 0x665   :  { %15947 = vst [vmem:[#allocation86_spill] sm:$0xff] %v13321_v23  ;;  %15949 = vst [vmem:[#allocation87_spill] sm:$0xff] %v13325_v37  ;;  %v13337_v32 = vmul.f32 %v12827_v4, %v15954_v39  ;;  %v13341_v57 = vmul.f32 %v12827_v4, %v15956_v56  ;;  %v15958_v23 = vld [vmem:[#allocation92_spill] sm:$0xff]  ;;  %v15960_v37 = vld [vmem:[#allocation93_spill] sm:$0xff] }
 0x666   :  { %15951 = vst [vmem:[#allocation88_spill] sm:$0xff] %v13329_v7  ;;  %15953 = vst [vmem:[#allocation89_spill] sm:$0xff] %v13333_v18  ;;  %v13345_v61 = vmul.f32 %v12827_v4, %v15958_v23  ;;  %v13349_v20 = vmul.f32 %v12827_v4, %v15960_v37  ;;  %v15962_v7 = vld [vmem:[#allocation94_spill] sm:$0xff]  ;;  %v15964_v18 = vld [vmem:[#allocation95_spill] sm:$0xff] }
 0x667   :  { %15955 = vst [vmem:[#allocation90_spill] sm:$0xff] %v13337_v32  ;;  %15957 = vst [vmem:[#allocation91_spill] sm:$0xff] %v13341_v57  ;;  %v13353_v52 = vmul.f32 %v12827_v4, %v15962_v7  ;;  %v13357_v39 = vmul.f32 %v12827_v4, %v15964_v18  ;;  %v15966_v32 = vld [vmem:[#allocation96_spill] sm:$0xff]  ;;  %v15968_v57 = vld [vmem:[#allocation97_spill] sm:$0xff] }
 0x668   :  { %15959 = vst [vmem:[#allocation92_spill] sm:$0xff] %v13345_v61  ;;  %15961 = vst [vmem:[#allocation93_spill] sm:$0xff] %v13349_v20  ;;  %v13361_v56 = vmul.f32 %v12827_v4, %v15966_v32  ;;  %v13365_v23 = vmul.f32 %v12827_v4, %v15968_v57  ;;  %v15970_v61 = vld [vmem:[#allocation98_spill] sm:$0xff]  ;;  %v15972_v20 = vld [vmem:[#allocation99_spill] sm:$0xff] }
 0x669   :  { %15963 = vst [vmem:[#allocation94_spill] sm:$0xff] %v13353_v52  ;;  %15965 = vst [vmem:[#allocation95_spill] sm:$0xff] %v13357_v39  ;;  %v13369_v37 = vmul.f32 %v12827_v4, %v15970_v61  ;;  %v13373_v7 = vmul.f32 %v12827_v4, %v15972_v20  ;;  %v15974_v52 = vld [vmem:[#allocation100_spill] sm:$0xff]  ;;  %v15976_v39 = vld [vmem:[#allocation101_spill] sm:$0xff] }
 0x66a   :  { %15967 = vst [vmem:[#allocation96_spill] sm:$0xff] %v13361_v56  ;;  %15969 = vst [vmem:[#allocation97_spill] sm:$0xff] %v13365_v23  ;;  %v13377_v18 = vmul.f32 %v12827_v4, %v15974_v52  ;;  %v13381_v32 = vmul.f32 %v12827_v4, %v15976_v39  ;;  %v15978_v56 = vld [vmem:[#allocation102_spill] sm:$0xff]  ;;  %v15980_v23 = vld [vmem:[#allocation103_spill] sm:$0xff] }
 0x66b   :  { %15971 = vst [vmem:[#allocation98_spill] sm:$0xff] %v13369_v37  ;;  %15973 = vst [vmem:[#allocation99_spill] sm:$0xff] %v13373_v7  ;;  %v13385_v57 = vmul.f32 %v12827_v4, %v15978_v56  ;;  %v13389_v61 = vmul.f32 %v12827_v4, %v15980_v23  ;;  %v15982_v37 = vld [vmem:[#allocation104_spill] sm:$0xff]  ;;  %v15984_v7 = vld [vmem:[#allocation105_spill] sm:$0xff] }
 0x66c   :  { %15975 = vst [vmem:[#allocation100_spill] sm:$0xff] %v13377_v18  ;;  %15977 = vst [vmem:[#allocation101_spill] sm:$0xff] %v13381_v32  ;;  %v13393_v20 = vmul.f32 %v12827_v4, %v15982_v37  ;;  %v13397_v52 = vmul.f32 %v12827_v4, %v15984_v7  ;;  %v15986_v18 = vld [vmem:[#allocation106_spill] sm:$0xff]  ;;  %v15988_v32 = vld [vmem:[#allocation107_spill] sm:$0xff] }
 0x66d   :  { %15979 = vst [vmem:[#allocation102_spill] sm:$0xff] %v13385_v57  ;;  %15981 = vst [vmem:[#allocation103_spill] sm:$0xff] %v13389_v61  ;;  %v13401_v39 = vmul.f32 %v12827_v4, %v15986_v18  ;;  %v13405_v56 = vmul.f32 %v12827_v4, %v15988_v32  ;;  %v15990_v57 = vld [vmem:[#allocation108_spill] sm:$0xff]  ;;  %v15992_v61 = vld [vmem:[#allocation109_spill] sm:$0xff] }
 0x66e   :  { %15983 = vst [vmem:[#allocation104_spill] sm:$0xff] %v13393_v20  ;;  %15985 = vst [vmem:[#allocation105_spill] sm:$0xff] %v13397_v52  ;;  %v13409_v23 = vmul.f32 %v12827_v4, %v15990_v57  ;;  %v13413_v37 = vmul.f32 %v12827_v4, %v15992_v61  ;;  %v15994_v20 = vld [vmem:[#allocation110_spill] sm:$0xff]  ;;  %v15996_v52 = vld [vmem:[#allocation111_spill] sm:$0xff] }
 0x66f   :  { %15987 = vst [vmem:[#allocation106_spill] sm:$0xff] %v13401_v39  ;;  %15989 = vst [vmem:[#allocation107_spill] sm:$0xff] %v13405_v56  ;;  %v13417_v7 = vmul.f32 %v12827_v4, %v15994_v20  ;;  %v13421_v18 = vmul.f32 %v12827_v4, %v15996_v52  ;;  %v15998_v39 = vld [vmem:[#allocation112_spill] sm:$0xff]  ;;  %v16000_v56 = vld [vmem:[#allocation113_spill] sm:$0xff] }
 0x670   :  { %15991 = vst [vmem:[#allocation108_spill] sm:$0xff] %v13409_v23  ;;  %15993 = vst [vmem:[#allocation109_spill] sm:$0xff] %v13413_v37  ;;  %v13425_v32 = vmul.f32 %v12827_v4, %v15998_v39  ;;  %v13429_v57 = vmul.f32 %v12827_v4, %v16000_v56  ;;  %v16002_v23 = vld [vmem:[#allocation114_spill] sm:$0xff]  ;;  %v16004_v37 = vld [vmem:[#allocation115_spill] sm:$0xff] }
 0x671   :  { %15995 = vst [vmem:[#allocation110_spill] sm:$0xff] %v13417_v7  ;;  %15997 = vst [vmem:[#allocation111_spill] sm:$0xff] %v13421_v18  ;;  %v13433_v61 = vmul.f32 %v12827_v4, %v16002_v23  ;;  %v13437_v20 = vmul.f32 %v12827_v4, %v16004_v37  ;;  %v16006_v7 = vld [vmem:[#allocation116_spill] sm:$0xff]  ;;  %v16008_v18 = vld [vmem:[#allocation117_spill] sm:$0xff] }
 0x672   :  { %15999 = vst [vmem:[#allocation112_spill] sm:$0xff] %v13425_v32  ;;  %16001 = vst [vmem:[#allocation113_spill] sm:$0xff] %v13429_v57  ;;  %v13441_v52 = vmul.f32 %v12827_v4, %v16006_v7  ;;  %v13445_v39 = vmul.f32 %v12827_v4, %v16008_v18  ;;  %v16010_v32 = vld [vmem:[#allocation118_spill] sm:$0xff]  ;;  %v16012_v57 = vld [vmem:[#allocation119_spill] sm:$0xff] }
 0x673   :  { %16003 = vst [vmem:[#allocation114_spill] sm:$0xff] %v13433_v61  ;;  %16005 = vst [vmem:[#allocation115_spill] sm:$0xff] %v13437_v20  ;;  %v13449_v56 = vmul.f32 %v12827_v4, %v16010_v32  ;;  %v13453_v23 = vmul.f32 %v12827_v4, %v16012_v57  ;;  %v16014_v61 = vld [vmem:[#allocation120_spill] sm:$0xff]  ;;  %v16016_v20 = vld [vmem:[#allocation121_spill] sm:$0xff] }
 0x674   :  { %16007 = vst [vmem:[#allocation116_spill] sm:$0xff] %v13441_v52  ;;  %16009 = vst [vmem:[#allocation117_spill] sm:$0xff] %v13445_v39  ;;  %v13457_v37 = vmul.f32 %v12827_v4, %v16014_v61  ;;  %v13461_v7 = vmul.f32 %v12827_v4, %v16016_v20  ;;  %v16018_v52 = vld [vmem:[#allocation122_spill] sm:$0xff]  ;;  %v16020_v39 = vld [vmem:[#allocation123_spill] sm:$0xff] }
 0x675   :  { %16011 = vst [vmem:[#allocation118_spill] sm:$0xff] %v13449_v56  ;;  %16013 = vst [vmem:[#allocation119_spill] sm:$0xff] %v13453_v23  ;;  %v13465_v18 = vmul.f32 %v12827_v4, %v16018_v52  ;;  %v13469_v32 = vmul.f32 %v12827_v4, %v16020_v39  ;;  %v16022_v56 = vld [vmem:[#allocation124_spill] sm:$0xff]  ;;  %v16024_v23 = vld [vmem:[#allocation125_spill] sm:$0xff] }
 0x676   :  { %16015 = vst [vmem:[#allocation120_spill] sm:$0xff] %v13457_v37  ;;  %16017 = vst [vmem:[#allocation121_spill] sm:$0xff] %v13461_v7  ;;  %v13473_v57 = vmul.f32 %v12827_v4, %v16022_v56  ;;  %v13477_v61 = vmul.f32 %v12827_v4, %v16024_v23  ;;  %v16026_v37 = vld [vmem:[#allocation126_spill] sm:$0xff]  ;;  %v16028_v7 = vld [vmem:[#allocation127_spill] sm:$0xff] }
 0x677   :  { %16019 = vst [vmem:[#allocation122_spill] sm:$0xff] %v13465_v18  ;;  %16021 = vst [vmem:[#allocation123_spill] sm:$0xff] %v13469_v32  ;;  %v13481_v20 = vmul.f32 %v12827_v4, %v16026_v37  ;;  %v13485_v52 = vmul.f32 %v12827_v4, %v16028_v7  ;;  %v16030_v18 = vld [vmem:[#allocation128_spill] sm:$0xff]  ;;  %v16032_v32 = vld [vmem:[#allocation129_spill] sm:$0xff] }
 0x678   :  { %16023 = vst [vmem:[#allocation124_spill] sm:$0xff] %v13473_v57  ;;  %16025 = vst [vmem:[#allocation125_spill] sm:$0xff] %v13477_v61  ;;  %v13489_v39 = vmul.f32 %v12827_v4, %v16030_v18  ;;  %v13493_v56 = vmul.f32 %v12827_v4, %v16032_v32  ;;  %v16034_v57 = vld [vmem:[#allocation130_spill] sm:$0xff]  ;;  %v16036_v61 = vld [vmem:[#allocation131_spill] sm:$0xff] }
 0x679   :  { %16027 = vst [vmem:[#allocation126_spill] sm:$0xff] %v13481_v20  ;;  %16029 = vst [vmem:[#allocation127_spill] sm:$0xff] %v13485_v52  ;;  %v13497_v23 = vmul.f32 %v12827_v4, %v16034_v57  ;;  %v13501_v37 = vmul.f32 %v12827_v4, %v16036_v61  ;;  %v16038_v20 = vld [vmem:[#allocation132_spill] sm:$0xff]  ;;  %v16040_v52 = vld [vmem:[#allocation133_spill] sm:$0xff] }
 0x67a   :  { %16031 = vst [vmem:[#allocation128_spill] sm:$0xff] %v13489_v39  ;;  %16033 = vst [vmem:[#allocation129_spill] sm:$0xff] %v13493_v56  ;;  %v13505_v7 = vmul.f32 %v12827_v4, %v16038_v20  ;;  %v13509_v18 = vmul.f32 %v12827_v4, %v16040_v52  ;;  %v16042_v39 = vld [vmem:[#allocation134_spill] sm:$0xff]  ;;  %v16044_v56 = vld [vmem:[#allocation135_spill] sm:$0xff] }
 0x67b   :  { %16035 = vst [vmem:[#allocation130_spill] sm:$0xff] %v13497_v23  ;;  %16037 = vst [vmem:[#allocation131_spill] sm:$0xff] %v13501_v37  ;;  %v13513_v32 = vmul.f32 %v12827_v4, %v16042_v39  ;;  %v13517_v57 = vmul.f32 %v12827_v4, %v16044_v56  ;;  %v16046_v23 = vld [vmem:[#allocation136_spill] sm:$0xff]  ;;  %v16048_v37 = vld [vmem:[#allocation137_spill] sm:$0xff] }
 0x67c   :  { %16039 = vst [vmem:[#allocation132_spill] sm:$0xff] %v13505_v7  ;;  %16041 = vst [vmem:[#allocation133_spill] sm:$0xff] %v13509_v18  ;;  %v13521_v61 = vmul.f32 %v12827_v4, %v16046_v23  ;;  %v13525_v20 = vmul.f32 %v12827_v4, %v16048_v37  ;;  %v16050_v7 = vld [vmem:[#allocation138_spill] sm:$0xff]  ;;  %v16052_v18 = vld [vmem:[#allocation139_spill] sm:$0xff] }
 0x67d   :  { %16043 = vst [vmem:[#allocation134_spill] sm:$0xff] %v13513_v32  ;;  %16045 = vst [vmem:[#allocation135_spill] sm:$0xff] %v13517_v57  ;;  %v13529_v52 = vmul.f32 %v12827_v4, %v16050_v7  ;;  %v13533_v39 = vmul.f32 %v12827_v4, %v16052_v18  ;;  %v16054_v32 = vld [vmem:[#allocation140_spill] sm:$0xff]  ;;  %v16056_v57 = vld [vmem:[#allocation141_spill] sm:$0xff] }
 0x67e   :  { %16047 = vst [vmem:[#allocation136_spill] sm:$0xff] %v13521_v61  ;;  %16049 = vst [vmem:[#allocation137_spill] sm:$0xff] %v13525_v20  ;;  %v13537_v56 = vmul.f32 %v12827_v4, %v16054_v32  ;;  %v13541_v23 = vmul.f32 %v12827_v4, %v16056_v57  ;;  %v16058_v61 = vld [vmem:[#allocation142_spill] sm:$0xff]  ;;  %v16060_v20 = vld [vmem:[#allocation143_spill] sm:$0xff] }
 0x67f   :  { %16051 = vst [vmem:[#allocation138_spill] sm:$0xff] %v13529_v52  ;;  %16053 = vst [vmem:[#allocation139_spill] sm:$0xff] %v13533_v39  ;;  %v13545_v37 = vmul.f32 %v12827_v4, %v16058_v61  ;;  %v13549_v7 = vmul.f32 %v12827_v4, %v16060_v20  ;;  %v16062_v52 = vld [vmem:[#allocation144_spill] sm:$0xff]  ;;  %v16064_v39 = vld [vmem:[#allocation145_spill] sm:$0xff] }
 0x680   :  { %16055 = vst [vmem:[#allocation140_spill] sm:$0xff] %v13537_v56  ;;  %16057 = vst [vmem:[#allocation141_spill] sm:$0xff] %v13541_v23  ;;  %v13553_v18 = vmul.f32 %v12827_v4, %v16062_v52  ;;  %v13557_v32 = vmul.f32 %v12827_v4, %v16064_v39  ;;  %v16066_v56 = vld [vmem:[#allocation146_spill] sm:$0xff]  ;;  %v16068_v23 = vld [vmem:[#allocation147_spill] sm:$0xff] }
 0x681   :  { %16059 = vst [vmem:[#allocation142_spill] sm:$0xff] %v13545_v37  ;;  %16061 = vst [vmem:[#allocation143_spill] sm:$0xff] %v13549_v7  ;;  %v13561_v57 = vmul.f32 %v12827_v4, %v16066_v56  ;;  %v13565_v61 = vmul.f32 %v12827_v4, %v16068_v23  ;;  %v16070_v37 = vld [vmem:[#allocation148_spill] sm:$0xff]  ;;  %v16072_v7 = vld [vmem:[#allocation149_spill] sm:$0xff] }
 0x682   :  { %16063 = vst [vmem:[#allocation144_spill] sm:$0xff] %v13553_v18  ;;  %16065 = vst [vmem:[#allocation145_spill] sm:$0xff] %v13557_v32  ;;  %v13569_v20 = vmul.f32 %v12827_v4, %v16070_v37  ;;  %v13573_v52 = vmul.f32 %v12827_v4, %v16072_v7  ;;  %v16074_v18 = vld [vmem:[#allocation150_spill] sm:$0xff]  ;;  %v16076_v32 = vld [vmem:[#allocation151_spill] sm:$0xff] }
 0x683   :  { %16067 = vst [vmem:[#allocation146_spill] sm:$0xff] %v13561_v57  ;;  %16069 = vst [vmem:[#allocation147_spill] sm:$0xff] %v13565_v61  ;;  %v13577_v39 = vmul.f32 %v12827_v4, %v16074_v18  ;;  %v13581_v56 = vmul.f32 %v12827_v4, %v16076_v32  ;;  %v16078_v57 = vld [vmem:[#allocation152_spill] sm:$0xff]  ;;  %v16080_v61 = vld [vmem:[#allocation153_spill] sm:$0xff] }
 0x684   :  { %16071 = vst [vmem:[#allocation148_spill] sm:$0xff] %v13569_v20  ;;  %16073 = vst [vmem:[#allocation149_spill] sm:$0xff] %v13573_v52  ;;  %v13585_v23 = vmul.f32 %v12827_v4, %v16078_v57  ;;  %v13589_v37 = vmul.f32 %v12827_v4, %v16080_v61  ;;  %v16082_v20 = vld [vmem:[#allocation154_spill] sm:$0xff]  ;;  %v16084_v52 = vld [vmem:[#allocation155_spill] sm:$0xff] }
 0x685   :  { %16075 = vst [vmem:[#allocation150_spill] sm:$0xff] %v13577_v39  ;;  %16077 = vst [vmem:[#allocation151_spill] sm:$0xff] %v13581_v56  ;;  %v13593_v7 = vmul.f32 %v12827_v4, %v16082_v20  ;;  %v13597_v18 = vmul.f32 %v12827_v4, %v16084_v52  ;;  %v16086_v39 = vld [vmem:[#allocation156_spill] sm:$0xff]  ;;  %v16088_v56 = vld [vmem:[#allocation157_spill] sm:$0xff] }
 0x686   :  { %16079 = vst [vmem:[#allocation152_spill] sm:$0xff] %v13585_v23  ;;  %16081 = vst [vmem:[#allocation153_spill] sm:$0xff] %v13589_v37  ;;  %v13601_v32 = vmul.f32 %v12827_v4, %v16086_v39  ;;  %v13605_v57 = vmul.f32 %v12827_v4, %v16088_v56  ;;  %v16090_v23 = vld [vmem:[#allocation158_spill] sm:$0xff]  ;;  %v16092_v37 = vld [vmem:[#allocation159_spill] sm:$0xff] }
 0x687   :  { %16083 = vst [vmem:[#allocation154_spill] sm:$0xff] %v13593_v7  ;;  %16085 = vst [vmem:[#allocation155_spill] sm:$0xff] %v13597_v18  ;;  %v13609_v61 = vmul.f32 %v12827_v4, %v16090_v23  ;;  %v13613_v20 = vmul.f32 %v12827_v4, %v16092_v37  ;;  %v16094_v7 = vld [vmem:[#allocation160_spill] sm:$0xff]  ;;  %v16096_v18 = vld [vmem:[#allocation161_spill] sm:$0xff] }
 0x688   :  { %16087 = vst [vmem:[#allocation156_spill] sm:$0xff] %v13601_v32  ;;  %16089 = vst [vmem:[#allocation157_spill] sm:$0xff] %v13605_v57  ;;  %v13617_v52 = vmul.f32 %v12827_v4, %v16094_v7  ;;  %v13621_v39 = vmul.f32 %v12827_v4, %v16096_v18  ;;  %v16098_v32 = vld [vmem:[#allocation162_spill] sm:$0xff]  ;;  %v16100_v57 = vld [vmem:[#allocation163_spill] sm:$0xff] }
 0x689   :  { %16091 = vst [vmem:[#allocation158_spill] sm:$0xff] %v13609_v61  ;;  %16093 = vst [vmem:[#allocation159_spill] sm:$0xff] %v13613_v20  ;;  %v13625_v56 = vmul.f32 %v12827_v4, %v16098_v32  ;;  %v13629_v23 = vmul.f32 %v12827_v4, %v16100_v57  ;;  %v16102_v61 = vld [vmem:[#allocation164_spill] sm:$0xff]  ;;  %v16104_v20 = vld [vmem:[#allocation165_spill] sm:$0xff] }
 0x68a   :  { %16095 = vst [vmem:[#allocation160_spill] sm:$0xff] %v13617_v52  ;;  %16097 = vst [vmem:[#allocation161_spill] sm:$0xff] %v13621_v39  ;;  %v13633_v37 = vmul.f32 %v12827_v4, %v16102_v61  ;;  %v13637_v7 = vmul.f32 %v12827_v4, %v16104_v20  ;;  %v16106_v52 = vld [vmem:[#allocation166_spill] sm:$0xff]  ;;  %v16108_v39 = vld [vmem:[#allocation167_spill] sm:$0xff] }
 0x68b   :  { %16099 = vst [vmem:[#allocation162_spill] sm:$0xff] %v13625_v56  ;;  %16101 = vst [vmem:[#allocation163_spill] sm:$0xff] %v13629_v23  ;;  %v13641_v18 = vmul.f32 %v12827_v4, %v16106_v52  ;;  %v13645_v32 = vmul.f32 %v12827_v4, %v16108_v39  ;;  %v16110_v56 = vld [vmem:[#allocation168_spill] sm:$0xff]  ;;  %v16112_v23 = vld [vmem:[#allocation169_spill] sm:$0xff] }
 0x68c   :  { %16103 = vst [vmem:[#allocation164_spill] sm:$0xff] %v13633_v37  ;;  %16105 = vst [vmem:[#allocation165_spill] sm:$0xff] %v13637_v7  ;;  %v13649_v57 = vmul.f32 %v12827_v4, %v16110_v56  ;;  %v13653_v61 = vmul.f32 %v12827_v4, %v16112_v23  ;;  %v16114_v37 = vld [vmem:[#allocation170_spill] sm:$0xff]  ;;  %v16116_v7 = vld [vmem:[#allocation171_spill] sm:$0xff] }
 0x68d   :  { %16107 = vst [vmem:[#allocation166_spill] sm:$0xff] %v13641_v18  ;;  %16109 = vst [vmem:[#allocation167_spill] sm:$0xff] %v13645_v32  ;;  %v13657_v20 = vmul.f32 %v12827_v4, %v16114_v37  ;;  %v13661_v52 = vmul.f32 %v12827_v4, %v16116_v7  ;;  %v16118_v18 = vld [vmem:[#allocation172_spill] sm:$0xff]  ;;  %v16120_v32 = vld [vmem:[#allocation173_spill] sm:$0xff] }
 0x68e   :  { %16111 = vst [vmem:[#allocation168_spill] sm:$0xff] %v13649_v57  ;;  %16113 = vst [vmem:[#allocation169_spill] sm:$0xff] %v13653_v61  ;;  %v13665_v39 = vmul.f32 %v12827_v4, %v16118_v18  ;;  %v13669_v56 = vmul.f32 %v12827_v4, %v16120_v32  ;;  %v16122_v57 = vld [vmem:[#allocation174_spill] sm:$0xff]  ;;  %v16124_v61 = vld [vmem:[#allocation175_spill] sm:$0xff] }
 0x68f   :  { %16115 = vst [vmem:[#allocation170_spill] sm:$0xff] %v13657_v20  ;;  %16117 = vst [vmem:[#allocation171_spill] sm:$0xff] %v13661_v52  ;;  %v13673_v23 = vmul.f32 %v12827_v4, %v16122_v57  ;;  %v13677_v37 = vmul.f32 %v12827_v4, %v16124_v61  ;;  %v16126_v20 = vld [vmem:[#allocation176_spill] sm:$0xff]  ;;  %v16128_v52 = vld [vmem:[#allocation177_spill] sm:$0xff] }
 0x690   :  { %16119 = vst [vmem:[#allocation172_spill] sm:$0xff] %v13665_v39  ;;  %16121 = vst [vmem:[#allocation173_spill] sm:$0xff] %v13669_v56  ;;  %v13681_v7 = vmul.f32 %v12827_v4, %v16126_v20  ;;  %v13685_v18 = vmul.f32 %v12827_v4, %v16128_v52  ;;  %v16130_v39 = vld [vmem:[#allocation178_spill] sm:$0xff]  ;;  %v16132_v56 = vld [vmem:[#allocation179_spill] sm:$0xff] }
 0x691   :  { %16123 = vst [vmem:[#allocation174_spill] sm:$0xff] %v13673_v23  ;;  %16125 = vst [vmem:[#allocation175_spill] sm:$0xff] %v13677_v37  ;;  %v13689_v32 = vmul.f32 %v12827_v4, %v16130_v39  ;;  %v13693_v57 = vmul.f32 %v12827_v4, %v16132_v56  ;;  %v16134_v23 = vld [vmem:[#allocation180_spill] sm:$0xff]  ;;  %v16136_v37 = vld [vmem:[#allocation181_spill] sm:$0xff] }
 0x692   :  { %16127 = vst [vmem:[#allocation176_spill] sm:$0xff] %v13681_v7  ;;  %16129 = vst [vmem:[#allocation177_spill] sm:$0xff] %v13685_v18  ;;  %v13697_v61 = vmul.f32 %v12827_v4, %v16134_v23  ;;  %v13701_v20 = vmul.f32 %v12827_v4, %v16136_v37  ;;  %v16138_v7 = vld [vmem:[#allocation182_spill] sm:$0xff]  ;;  %v16140_v18 = vld [vmem:[#allocation183_spill] sm:$0xff] }
 0x693   :  { %16131 = vst [vmem:[#allocation178_spill] sm:$0xff] %v13689_v32  ;;  %16133 = vst [vmem:[#allocation179_spill] sm:$0xff] %v13693_v57  ;;  %v13705_v52 = vmul.f32 %v12827_v4, %v16138_v7  ;;  %v13709_v39 = vmul.f32 %v12827_v4, %v16140_v18  ;;  %v16142_v32 = vld [vmem:[#allocation184_spill] sm:$0xff]  ;;  %v16144_v57 = vld [vmem:[#allocation185_spill] sm:$0xff] }
 0x694   :  { %16135 = vst [vmem:[#allocation180_spill] sm:$0xff] %v13697_v61  ;;  %16137 = vst [vmem:[#allocation181_spill] sm:$0xff] %v13701_v20  ;;  %v13713_v56 = vmul.f32 %v12827_v4, %v16142_v32  ;;  %v13717_v23 = vmul.f32 %v12827_v4, %v16144_v57  ;;  %v16146_v61 = vld [vmem:[#allocation186_spill] sm:$0xff]  ;;  %v16148_v20 = vld [vmem:[#allocation187_spill] sm:$0xff] }
 0x695   :  { %16139 = vst [vmem:[#allocation182_spill] sm:$0xff] %v13705_v52  ;;  %16141 = vst [vmem:[#allocation183_spill] sm:$0xff] %v13709_v39  ;;  %v13721_v37 = vmul.f32 %v12827_v4, %v16146_v61  ;;  %v13725_v7 = vmul.f32 %v12827_v4, %v16148_v20  ;;  %v16150_v52 = vld [vmem:[#allocation188_spill] sm:$0xff]  ;;  %v16152_v39 = vld [vmem:[#allocation189_spill] sm:$0xff] }
 0x696   :  { %16143 = vst [vmem:[#allocation184_spill] sm:$0xff] %v13713_v56  ;;  %16145 = vst [vmem:[#allocation185_spill] sm:$0xff] %v13717_v23  ;;  %v13729_v18 = vmul.f32 %v12827_v4, %v16150_v52  ;;  %v13733_v32 = vmul.f32 %v12827_v4, %v16152_v39  ;;  %v16154_v56 = vld [vmem:[#allocation190_spill] sm:$0xff]  ;;  %v16156_v23 = vld [vmem:[#allocation191_spill] sm:$0xff] }
 0x697   :  { %16147 = vst [vmem:[#allocation186_spill] sm:$0xff] %v13721_v37  ;;  %16149 = vst [vmem:[#allocation187_spill] sm:$0xff] %v13725_v7  ;;  %v13737_v57 = vmul.f32 %v12827_v4, %v16154_v56  ;;  %v13741_v61 = vmul.f32 %v12827_v4, %v16156_v23  ;;  %v16158_v37 = vld [vmem:[#allocation192_spill] sm:$0xff]  ;;  %v16160_v7 = vld [vmem:[#allocation193_spill] sm:$0xff] }
 0x698   :  { %16151 = vst [vmem:[#allocation188_spill] sm:$0xff] %v13729_v18  ;;  %16153 = vst [vmem:[#allocation189_spill] sm:$0xff] %v13733_v32  ;;  %v13745_v20 = vmul.f32 %v12827_v4, %v16158_v37  ;;  %v13749_v52 = vmul.f32 %v12827_v4, %v16160_v7  ;;  %v16162_v18 = vld [vmem:[#allocation194_spill] sm:$0xff]  ;;  %v16164_v32 = vld [vmem:[#allocation195_spill] sm:$0xff] }
 0x699   :  { %16155 = vst [vmem:[#allocation190_spill] sm:$0xff] %v13737_v57  ;;  %16157 = vst [vmem:[#allocation191_spill] sm:$0xff] %v13741_v61  ;;  %v13753_v39 = vmul.f32 %v12827_v4, %v16162_v18  ;;  %v13757_v56 = vmul.f32 %v12827_v4, %v16164_v32  ;;  %v16166_v57 = vld [vmem:[#allocation196_spill] sm:$0xff]  ;;  %v16168_v61 = vld [vmem:[#allocation197_spill] sm:$0xff] }
 0x69a   :  { %16159 = vst [vmem:[#allocation192_spill] sm:$0xff] %v13745_v20  ;;  %16161 = vst [vmem:[#allocation193_spill] sm:$0xff] %v13749_v52  ;;  %v13761_v23 = vmul.f32 %v12827_v4, %v16166_v57  ;;  %v13765_v37 = vmul.f32 %v12827_v4, %v16168_v61  ;;  %v16170_v20 = vld [vmem:[#allocation198_spill] sm:$0xff]  ;;  %v16172_v52 = vld [vmem:[#allocation199_spill] sm:$0xff] }
 0x69b   :  { %16163 = vst [vmem:[#allocation194_spill] sm:$0xff] %v13753_v39  ;;  %16165 = vst [vmem:[#allocation195_spill] sm:$0xff] %v13757_v56  ;;  %v13769_v7 = vmul.f32 %v12827_v4, %v16170_v20  ;;  %v13773_v18 = vmul.f32 %v12827_v4, %v16172_v52  ;;  %v16174_v39 = vld [vmem:[#allocation200_spill] sm:$0xff]  ;;  %v16176_v56 = vld [vmem:[#allocation201_spill] sm:$0xff] }
 0x69c   :  { %16167 = vst [vmem:[#allocation196_spill] sm:$0xff] %v13761_v23  ;;  %16169 = vst [vmem:[#allocation197_spill] sm:$0xff] %v13765_v37  ;;  %v13777_v32 = vmul.f32 %v12827_v4, %v16174_v39  ;;  %v13781_v57 = vmul.f32 %v12827_v4, %v16176_v56  ;;  %v16178_v23 = vld [vmem:[#allocation202_spill] sm:$0xff]  ;;  %v16180_v37 = vld [vmem:[#allocation203_spill] sm:$0xff] }
 0x69d   :  { %16171 = vst [vmem:[#allocation198_spill] sm:$0xff] %v13769_v7  ;;  %16173 = vst [vmem:[#allocation199_spill] sm:$0xff] %v13773_v18  ;;  %v13785_v61 = vmul.f32 %v12827_v4, %v16178_v23  ;;  %v13789_v20 = vmul.f32 %v12827_v4, %v16180_v37  ;;  %v16182_v7 = vld [vmem:[#allocation204_spill] sm:$0xff]  ;;  %v16184_v18 = vld [vmem:[#allocation205_spill] sm:$0xff] }
 0x69e   :  { %16175 = vst [vmem:[#allocation200_spill] sm:$0xff] %v13777_v32  ;;  %16177 = vst [vmem:[#allocation201_spill] sm:$0xff] %v13781_v57  ;;  %v13793_v52 = vmul.f32 %v12827_v4, %v16182_v7  ;;  %v13797_v39 = vmul.f32 %v12827_v4, %v16184_v18  ;;  %v16186_v32 = vld [vmem:[#allocation206_spill] sm:$0xff]  ;;  %v16188_v57 = vld [vmem:[#allocation207_spill] sm:$0xff] }
 0x69f   :  { %16179 = vst [vmem:[#allocation202_spill] sm:$0xff] %v13785_v61  ;;  %16181 = vst [vmem:[#allocation203_spill] sm:$0xff] %v13789_v20  ;;  %v13801_v56 = vmul.f32 %v12827_v4, %v16186_v32  ;;  %v13805_v23 = vmul.f32 %v12827_v4, %v16188_v57  ;;  %v16190_v61 = vld [vmem:[#allocation208_spill] sm:$0xff]  ;;  %v16192_v20 = vld [vmem:[#allocation209_spill] sm:$0xff] }
 0x6a0   :  { %16183 = vst [vmem:[#allocation204_spill] sm:$0xff] %v13793_v52  ;;  %16185 = vst [vmem:[#allocation205_spill] sm:$0xff] %v13797_v39  ;;  %v13809_v37 = vmul.f32 %v12827_v4, %v16190_v61  ;;  %v13813_v7 = vmul.f32 %v12827_v4, %v16192_v20  ;;  %v16194_v52 = vld [vmem:[#allocation210_spill] sm:$0xff]  ;;  %v16196_v39 = vld [vmem:[#allocation211_spill] sm:$0xff] }
 0x6a1   :  { %16187 = vst [vmem:[#allocation206_spill] sm:$0xff] %v13801_v56  ;;  %16189 = vst [vmem:[#allocation207_spill] sm:$0xff] %v13805_v23  ;;  %v13817_v18 = vmul.f32 %v12827_v4, %v16194_v52  ;;  %v13821_v32 = vmul.f32 %v12827_v4, %v16196_v39  ;;  %v16198_v56 = vld [vmem:[#allocation212_spill] sm:$0xff]  ;;  %v16200_v23 = vld [vmem:[#allocation213_spill] sm:$0xff] }
 0x6a2   :  { %16191 = vst [vmem:[#allocation208_spill] sm:$0xff] %v13809_v37  ;;  %16193 = vst [vmem:[#allocation209_spill] sm:$0xff] %v13813_v7  ;;  %v13825_v57 = vmul.f32 %v12827_v4, %v16198_v56  ;;  %v13829_v61 = vmul.f32 %v12827_v4, %v16200_v23  ;;  %v16202_v37 = vld [vmem:[#allocation214_spill] sm:$0xff]  ;;  %v16204_v7 = vld [vmem:[#allocation215_spill] sm:$0xff] }
 0x6a3   :  { %16195 = vst [vmem:[#allocation210_spill] sm:$0xff] %v13817_v18  ;;  %16197 = vst [vmem:[#allocation211_spill] sm:$0xff] %v13821_v32  ;;  %v13833_v20 = vmul.f32 %v12827_v4, %v16202_v37  ;;  %v13837_v52 = vmul.f32 %v12827_v4, %v16204_v7  ;;  %v16206_v18 = vld [vmem:[#allocation216_spill] sm:$0xff]  ;;  %v16208_v32 = vld [vmem:[#allocation217_spill] sm:$0xff]  ;;  %v16416_v37 = vmax.f32 %v12844_v62, 0.0  ;;  %v16417_v7 = vmax.f32 %v12848_v16, 0.0 }
 0x6a4   :  { %16199 = vst [vmem:[#allocation212_spill] sm:$0xff] %v13825_v57  ;;  %16201 = vst [vmem:[#allocation213_spill] sm:$0xff] %v13829_v61  ;;  %v13841_v39 = vmul.f32 %v12827_v4, %v16206_v18  ;;  %v13845_v56 = vmul.f32 %v12827_v4, %v16208_v32  ;;  %v16210_v57 = vld [vmem:[#allocation218_spill] sm:$0xff]  ;;  %v16413_v18 = vmax.f32 %v12832_v42, 0.0  ;;  %v16414_v32 = vmax.f32 %v12836_v46, 0.0 }
 0x6a5   :  { %16203 = vst [vmem:[#allocation214_spill] sm:$0xff] %v13833_v20  ;;  %16205 = vst [vmem:[#allocation215_spill] sm:$0xff] %v13837_v52  ;;  %v13849_v23 = vmul.f32 %v12827_v4, %v16210_v57  ;;  %v16409_v61 = vmov %v13833_v20  ;;  %v16410_v63 = vmov %v13837_v52  ;;  %v16415_v4 = vmax.f32 %v12840_v31, 0.0 }
 0x6a6   :  { %16207 = vst [vmem:[#allocation216_spill] sm:$0xff] %v13841_v39  ;;  %16209 = vst [vmem:[#allocation217_spill] sm:$0xff] %v13845_v56  ;;  %v16411_v10 = vmov %v13841_v39  ;;  %v16412_v26 = vmov %v13845_v56  ;;  %v8245_v39 = vpack.c.bf16 %v16413_v18, %v16413_v18  ;;  %v8246_v56 = vpack.c.bf16 %v16414_v32, %v16414_v32 }
 0x6a7   :  { %v8247_v57 = vpack.c.bf16 %v16415_v4, %v16415_v4  ;;  %v8248_v20 = vpack.c.bf16 %v16416_v37, %v16416_v37  ;;  %v8249_v52 = vpack.c.bf16 %v16417_v7, %v16417_v7  ;;  %v16418_v42 = vmax.f32 %v12852_v11, 0.0 }
 0x6a8   :  { %v16402_v38 = vld [vmem:[#allocation207_spill] sm:$0xff]  ;;  %v16419_v46 = vmax.f32 %v12856_v13, 0.0  ;;  %v16420_v31 = vmax.f32 %v12860_v15, 0.0  ;;  %v16421_v62 = vmax.f32 %v12864_v17, 0.0  ;;  %v16422_v16 = vmax.f32 %v12868_v21, 0.0 }
 0x6a9   :  { %v16403_v49 = vld [vmem:[#allocation208_spill] sm:$0xff]  ;;  %v16404_v5 = vld [vmem:[#allocation209_spill] sm:$0xff]  ;;  %v8250_v18 = vpack.c.bf16 %v16418_v42, %v16418_v42  ;;  %v16423_v11 = vmax.f32 %v12872_v24, 0.0  ;;  %7323 = vst.msk [vmem:[#allocation3] sm:$0xf] %vm7322_vm4, %v8245_v39  ;;  %v16424_v13 = vmax.f32 %v12876_v30, 0.0 }
 0x6aa   :  { %v16405_v9 = vld [vmem:[#allocation210_spill] sm:$0xff]  ;;  %v16406_v48 = vld [vmem:[#allocation211_spill] sm:$0xff]  ;;  %v8251_v32 = vpack.c.bf16 %v16419_v46, %v16419_v46  ;;  %v8252_v4 = vpack.c.bf16 %v16420_v31, %v16420_v31  ;;  %v8253_v37 = vpack.c.bf16 %v16421_v62, %v16421_v62  ;;  %v8254_v7 = vpack.c.bf16 %v16422_v16, %v16422_v16  ;;  %7324 = vst.msk [vmem:[#allocation3 + $0x4] sm:$0xf] %vm7322_vm4, %v8246_v56 }
 0x6ab   :  { %v16407_v29 = vld [vmem:[#allocation212_spill] sm:$0xff]  ;;  %v16408_v0 = vld [vmem:[#allocation213_spill] sm:$0xff]  ;;  %v8255_v42 = vpack.c.bf16 %v16423_v11, %v16423_v11  ;;  %7325 = vst.msk [vmem:[#allocation3 + $0x8] sm:$0xf] %vm7322_vm4, %v8247_v57  ;;  %v8256_v15 = vpack.c.bf16 %v16424_v13, %v16424_v13  ;;  %v16425_v17 = vmax.f32 %v12880_v35, 0.0  ;;  %v16426_v46 = vmax.f32 %v12884_v40, 0.0 }
 0x6ac   :  { %v16427_v31 = vmax.f32 %v12888_v45, 0.0  ;;  %7326 = vst.msk [vmem:[#allocation3 + $0xc] sm:$0xf] %vm7322_vm4, %v8248_v20  ;;  %7327 = vst.msk [vmem:[#allocation3 + $0x10] sm:$0xf] %vm7322_vm4, %v8249_v52  ;;  %v16428_v30 = vmax.f32 %v12892_v50, 0.0 }
 0x6ad   :  { %v8257_v21 = vpack.c.bf16 %v16425_v17, %v16425_v17  ;;  %v8258_v24 = vpack.c.bf16 %v16426_v46, %v16426_v46  ;;  %7328 = vst.msk [vmem:[#allocation3 + $0x14] sm:$0xf] %vm7322_vm4, %v8250_v18  ;;  %7329 = vst.msk [vmem:[#allocation3 + $0x18] sm:$0xf] %vm7322_vm4, %v8251_v32  ;;  %v16429_v40 = vmax.f32 %v12896_v55, 0.0  ;;  %v16430_v45 = vmax.f32 %v12900_v60, 0.0 }
 0x6ae   :  { %v8259_v39 = vpack.c.bf16 %v16427_v31, %v16427_v31  ;;  %v8260_v35 = vpack.c.bf16 %v16428_v30, %v16428_v30  ;;  %v16431_v20 = vmax.f32 %v12904_v1, 0.0  ;;  %7330 = vst.msk [vmem:[#allocation3 + $0x1c] sm:$0xf] %vm7322_vm4, %v8252_v4  ;;  %7331 = vst.msk [vmem:[#allocation3 + $0x20] sm:$0xf] %vm7322_vm4, %v8253_v37  ;;  %v16432_v50 = vmax.f32 %v12908_v6, 0.0 }
 0x6af   :  { %v8261_v56 = vpack.c.bf16 %v16429_v40, %v16429_v40  ;;  %v8262_v57 = vpack.c.bf16 %v16430_v45, %v16430_v45  ;;  %7332 = vst.msk [vmem:[#allocation3 + $0x24] sm:$0xf] %vm7322_vm4, %v8254_v7  ;;  %7333 = vst.msk [vmem:[#allocation3 + $0x28] sm:$0xf] %vm7322_vm4, %v8255_v42  ;;  %v16433_v60 = vmax.f32 %v12912_v14, 0.0  ;;  %v16434_v1 = vmax.f32 %v12917_v22, 0.0 }
 0x6b0   :  { %v8263_v52 = vpack.c.bf16 %v16431_v20, %v16431_v20  ;;  %v8264_v55 = vpack.c.bf16 %v16432_v50, %v16432_v50  ;;  %v16435_v4 = vmax.f32 %v12921_v28, 0.0  ;;  %7334 = vst.msk [vmem:[#allocation3 + $0x2c] sm:$0xf] %vm7322_vm4, %v8256_v15  ;;  %7335 = vst.msk [vmem:[#allocation3 + $0x30] sm:$0xf] %vm7322_vm4, %v8257_v21  ;;  %v16436_v6 = vmax.f32 %v12925_v34, 0.0 }
 0x6b1   :  { %v8265_v18 = vpack.c.bf16 %v16433_v60, %v16433_v60  ;;  %v8266_v32 = vpack.c.bf16 %v16434_v1, %v16434_v1  ;;  %7336 = vst.msk [vmem:[#allocation3 + $0x34] sm:$0xf] %vm7322_vm4, %v8258_v24  ;;  %7337 = vst.msk [vmem:[#allocation3 + $0x38] sm:$0xf] %vm7322_vm4, %v8259_v39  ;;  %v16437_v22 = vmax.f32 %v12929_v41, 0.0  ;;  %v16438_v28 = vmax.f32 %v12933_v47, 0.0 }
 0x6b2   :  { %v8267_v62 = vpack.c.bf16 %v16435_v4, %v16435_v4  ;;  %v8268_v14 = vpack.c.bf16 %v16436_v6, %v16436_v6  ;;  %v16439_v7 = vmax.f32 %v12937_v53, 0.0  ;;  %7338 = vst.msk [vmem:[#allocation3 + $0x3c] sm:$0xf] %vm7322_vm4, %v8260_v35  ;;  %7339 = vst.msk [vmem:[#allocation3 + $0x40] sm:$0xf] %vm7322_vm4, %v8261_v56  ;;  %v16440_v34 = vmax.f32 %v12941_v59, 0.0 }
 0x6b3   :  { %v8269_v37 = vpack.c.bf16 %v16437_v22, %v16437_v22  ;;  %v8270_v16 = vpack.c.bf16 %v16438_v28, %v16438_v28  ;;  %7340 = vst.msk [vmem:[#allocation3 + $0x44] sm:$0xf] %vm7322_vm4, %v8262_v57  ;;  %7341 = vst.msk [vmem:[#allocation3 + $0x48] sm:$0xf] %vm7322_vm4, %v8263_v52  ;;  %v16441_v47 = vmax.f32 %v12945_v2, 0.0  ;;  %v16442_v53 = vmax.f32 %v12949_v8, 0.0 }
 0x6b4   :  { %v8271_v11 = vpack.c.bf16 %v16439_v7, %v16439_v7  ;;  %v8272_v41 = vpack.c.bf16 %v16440_v34, %v16440_v34  ;;  %v16443_v15 = vmax.f32 %v12953_v19, 0.0  ;;  %7342 = vst.msk [vmem:[#allocation3 + $0x4c] sm:$0xf] %vm7322_vm4, %v8264_v55  ;;  %7343 = vst.msk [vmem:[#allocation3 + $0x50] sm:$0xf] %vm7322_vm4, %v8265_v18  ;;  %v16444_v59 = vmax.f32 %v12957_v27, 0.0 }
 0x6b5   :  { %v8273_v42 = vpack.c.bf16 %v16441_v47, %v16441_v47  ;;  %v8274_v13 = vpack.c.bf16 %v16442_v53, %v16442_v53  ;;  %7344 = vst.msk [vmem:[#allocation3 + $0x54] sm:$0xf] %vm7322_vm4, %v8266_v32  ;;  %7345 = vst.msk [vmem:[#allocation3 + $0x58] sm:$0xf] %vm7322_vm4, %v8267_v62  ;;  %v16445_v8 = vmax.f32 %v12961_v36, 0.0  ;;  %v16446_v19 = vmax.f32 %v12965_v43, 0.0 }
 0x6b6   :  { %v8275_v17 = vpack.c.bf16 %v16443_v15, %v16443_v15  ;;  %v8276_v2 = vpack.c.bf16 %v16444_v59, %v16444_v59  ;;  %v16447_v24 = vmax.f32 %v12969_v51, 0.0  ;;  %7346 = vst.msk [vmem:[#allocation3 + $0x5c] sm:$0xf] %vm7322_vm4, %v8268_v14  ;;  %7347 = vst.msk [vmem:[#allocation3 + $0x60] sm:$0xf] %vm7322_vm4, %v8269_v37  ;;  %v16448_v27 = vmax.f32 %v12973_v58, 0.0 }
 0x6b7   :  { %v8277_v21 = vpack.c.bf16 %v16445_v8, %v16445_v8  ;;  %v8278_v46 = vpack.c.bf16 %v16446_v19, %v16446_v19  ;;  %7348 = vst.msk [vmem:[#allocation3 + $0x64] sm:$0xf] %vm7322_vm4, %v8270_v16  ;;  %7349 = vst.msk [vmem:[#allocation3 + $0x68] sm:$0xf] %vm7322_vm4, %v8271_v11  ;;  %v16449_v43 = vmax.f32 %v12977_v3, 0.0  ;;  %v16450_v51 = vmax.f32 %v12981_v12, 0.0 }
 0x6b8   :  { %v8279_v31 = vpack.c.bf16 %v16447_v24, %v16447_v24  ;;  %v8280_v36 = vpack.c.bf16 %v16448_v27, %v16448_v27  ;;  %v16451_v35 = vmax.f32 %v12985_v25, 0.0  ;;  %7350 = vst.msk [vmem:[#allocation3 + $0x6c] sm:$0xf] %vm7322_vm4, %v8272_v41  ;;  %7351 = vst.msk [vmem:[#allocation3 + $0x70] sm:$0xf] %vm7322_vm4, %v8273_v42  ;;  %v16452_v58 = vmax.f32 %v12989_v33, 0.0 }
 0x6b9   :  { %v8281_v39 = vpack.c.bf16 %v16449_v43, %v16449_v43  ;;  %v8282_v30 = vpack.c.bf16 %v16450_v51, %v16450_v51  ;;  %7352 = vst.msk [vmem:[#allocation3 + $0x74] sm:$0xf] %vm7322_vm4, %v8274_v13  ;;  %7353 = vst.msk [vmem:[#allocation3 + $0x78] sm:$0xf] %vm7322_vm4, %v8275_v17  ;;  %v16453_v12 = vmax.f32 %v12993_v44, 0.0  ;;  %v16454_v25 = vmax.f32 %v12997_v54, 0.0 }
 0x6ba   :  { %v8283_v40 = vpack.c.bf16 %v16451_v35, %v16451_v35  ;;  %v8284_v3 = vpack.c.bf16 %v16452_v58, %v16452_v58  ;;  %v16455_v57 = vld [vmem:[#allocation6_spill] sm:$0xff]  ;;  %7354 = vst.msk [vmem:[#allocation3 + $0x7c] sm:$0xf] %vm7322_vm4, %v8276_v2  ;;  %7355 = vst.msk [vmem:[#allocation3 + $0x80] sm:$0xf] %vm7322_vm4, %v8277_v21  ;;  %v16457_v33 = vld [vmem:[#allocation7_spill] sm:$0xff] }
 0x6bb   :  { %v8285_v56 = vpack.c.bf16 %v16453_v12, %v16453_v12  ;;  %v8286_v45 = vpack.c.bf16 %v16454_v25, %v16454_v25  ;;  %v16456_v20 = vmax.f32 %v16455_v57, 0.0  ;;  %7356 = vst.msk [vmem:[#allocation3 + $0x84] sm:$0xf] %vm7322_vm4, %v8278_v46  ;;  %7357 = vst.msk [vmem:[#allocation3 + $0x88] sm:$0xf] %vm7322_vm4, %v8279_v31  ;;  %v16458_v44 = vmax.f32 %v16457_v33, 0.0 }
 0x6bc   :  { %v16459_v55 = vld [vmem:[#allocation8_spill] sm:$0xff]  ;;  %v16461_v18 = vld [vmem:[#allocation9_spill] sm:$0xff]  ;;  %v16463_v4 = vld [vmem:[#allocation10_spill] sm:$0xff]  ;;  %7358 = vst.msk [vmem:[#allocation3 + $0x8c] sm:$0xf] %vm7322_vm4, %v8280_v36 }
 0x6bd   :  { %v8287_v52 = vpack.c.bf16 %v16456_v20, %v16456_v20  ;;  %v8288_v50 = vpack.c.bf16 %v16458_v44, %v16458_v44  ;;  %v16460_v54 = vmax.f32 %v16459_v55, 0.0  ;;  %v16462_v1 = vmax.f32 %v16461_v18, 0.0  ;;  %7359 = vst.msk [vmem:[#allocation3 + $0x90] sm:$0xf] %vm7322_vm4, %v8281_v39  ;;  %7360 = vst.msk [vmem:[#allocation3 + $0x94] sm:$0xf] %vm7322_vm4, %v8282_v30 }
 0x6be   :  { %v16464_v62 = vmax.f32 %v16463_v4, 0.0  ;;  %7361 = vst.msk [vmem:[#allocation3 + $0x98] sm:$0xf] %vm7322_vm4, %v8283_v40  ;;  %v16465_v14 = vld [vmem:[#allocation11_spill] sm:$0xff]  ;;  %v16467_v28 = vld [vmem:[#allocation12_spill] sm:$0xff]  ;;  %v16469_v11 = vld [vmem:[#allocation13_spill] sm:$0xff] }
 0x6bf   :  { %v8289_v60 = vpack.c.bf16 %v16460_v54, %v16460_v54  ;;  %v8290_v32 = vpack.c.bf16 %v16462_v1, %v16462_v1  ;;  %v16466_v22 = vmax.f32 %v16465_v14, 0.0  ;;  %v16468_v16 = vmax.f32 %v16467_v28, 0.0  ;;  %v16471_v47 = vld [vmem:[#allocation14_spill] sm:$0xff]  ;;  %7362 = vst.msk [vmem:[#allocation3 + $0x9c] sm:$0xf] %vm7322_vm4, %v8284_v3  ;;  %v16473_v13 = vld [vmem:[#allocation15_spill] sm:$0xff] }
 0x6c0   :  { %v8291_v6 = vpack.c.bf16 %v16464_v62, %v16464_v62  ;;  %v16470_v34 = vmax.f32 %v16469_v11, 0.0  ;;  %v16472_v42 = vmax.f32 %v16471_v47, 0.0  ;;  %7363 = vst.msk [vmem:[#allocation3 + $0xa0] sm:$0xf] %vm7322_vm4, %v8285_v56  ;;  %7364 = vst.msk [vmem:[#allocation3 + $0xa4] sm:$0xf] %vm7322_vm4, %v8286_v45 }
 0x6c1   :  { %v8292_v37 = vpack.c.bf16 %v16466_v22, %v16466_v22  ;;  %v8293_v7 = vpack.c.bf16 %v16468_v16, %v16468_v16  ;;  %7365 = vst.msk [vmem:[#allocation3 + $0xa8] sm:$0xf] %vm7322_vm4, %v8287_v52  ;;  %v16474_v15 = vmax.f32 %v16473_v13, 0.0  ;;  %v16475_v59 = vld [vmem:[#allocation16_spill] sm:$0xff]  ;;  %v16477_v21 = vld [vmem:[#allocation17_spill] sm:$0xff]  ;;  %v16479_v24 = vld [vmem:[#allocation18_spill] sm:$0xff] }
 0x6c2   :  { %v8294_v41 = vpack.c.bf16 %v16470_v34, %v16470_v34  ;;  %v8295_v53 = vpack.c.bf16 %v16472_v42, %v16472_v42  ;;  %v16476_v2 = vmax.f32 %v16475_v59, 0.0  ;;  %v16478_v19 = vmax.f32 %v16477_v21, 0.0  ;;  %7366 = vst.msk [vmem:[#allocation3 + $0xac] sm:$0xf] %vm7322_vm4, %v8288_v50  ;;  %7367 = vst.msk [vmem:[#allocation3 + $0xb0] sm:$0xf] %vm7322_vm4, %v8289_v60 }
 0x6c3   :  { %v8296_v17 = vpack.c.bf16 %v16474_v15, %v16474_v15  ;;  %v16480_v31 = vmax.f32 %v16479_v24, 0.0  ;;  %7368 = vst.msk [vmem:[#allocation3 + $0xb4] sm:$0xf] %vm7322_vm4, %v8290_v32  ;;  %7369 = vst.msk [vmem:[#allocation3 + $0xb8] sm:$0xf] %vm7322_vm4, %v8291_v6  ;;  %v16481_v36 = vld [vmem:[#allocation19_spill] sm:$0xff] }
 0x6c4   :  { %v8297_v8 = vpack.c.bf16 %v16476_v2, %v16476_v2  ;;  %v8298_v46 = vpack.c.bf16 %v16478_v19, %v16478_v19  ;;  %v16482_v43 = vmax.f32 %v16481_v36, 0.0  ;;  %v16483_v51 = vld [vmem:[#allocation20_spill] sm:$0xff]  ;;  %v16485_v40 = vld [vmem:[#allocation21_spill] sm:$0xff]  ;;  %v16487_v12 = vld [vmem:[#allocation22_spill] sm:$0xff]  ;;  %7370 = vst.msk [vmem:[#allocation3 + $0xbc] sm:$0xf] %vm7322_vm4, %v8292_v37 }
 0x6c5   :  { %v8299_v27 = vpack.c.bf16 %v16480_v31, %v16480_v31  ;;  %v16484_v30 = vmax.f32 %v16483_v51, 0.0  ;;  %v16486_v58 = vmax.f32 %v16485_v40, 0.0  ;;  %v16488_v56 = vmax.f32 %v16487_v12, 0.0  ;;  %7371 = vst.msk [vmem:[#allocation3 + $0xc0] sm:$0xf] %vm7322_vm4, %v8293_v7  ;;  %v16489_v45 = vld [vmem:[#allocation23_spill] sm:$0xff] }
 0x6c6   :  { %v8300_v39 = vpack.c.bf16 %v16482_v43, %v16482_v43  ;;  %7372 = vst.msk [vmem:[#allocation3 + $0xc4] sm:$0xf] %vm7322_vm4, %v8294_v41  ;;  %7373 = vst.msk [vmem:[#allocation3 + $0xc8] sm:$0xf] %vm7322_vm4, %v8295_v53  ;;  %v16490_v57 = vmax.f32 %v16489_v45, 0.0  ;;  %v16491_v52 = vld [vmem:[#allocation24_spill] sm:$0xff] }
 0x6c7   :  { %v8301_v35 = vpack.c.bf16 %v16484_v30, %v16484_v30  ;;  %v8302_v3 = vpack.c.bf16 %v16486_v58, %v16486_v58  ;;  %v8303_v25 = vpack.c.bf16 %v16488_v56, %v16488_v56  ;;  %v16492_v33 = vmax.f32 %v16491_v52, 0.0  ;;  %v16493_v50 = vld [vmem:[#allocation25_spill] sm:$0xff]  ;;  %v16495_v60 = vld [vmem:[#allocation26_spill] sm:$0xff]  ;;  %7374 = vst.msk [vmem:[#allocation3 + $0xcc] sm:$0xf] %vm7322_vm4, %v8296_v17  ;;  %v16497_v32 = vld [vmem:[#allocation27_spill] sm:$0xff] }
 0x6c8   :  { %v8304_v20 = vpack.c.bf16 %v16490_v57, %v16490_v57  ;;  %v16494_v55 = vmax.f32 %v16493_v50, 0.0  ;;  %v16496_v18 = vmax.f32 %v16495_v60, 0.0  ;;  %7375 = vst.msk [vmem:[#allocation3 + $0xd0] sm:$0xf] %vm7322_vm4, %v8297_v8  ;;  %7376 = vst.msk [vmem:[#allocation3 + $0xd4] sm:$0xf] %vm7322_vm4, %v8298_v46 }
 0x6c9   :  { %v8305_v44 = vpack.c.bf16 %v16492_v33, %v16492_v33  ;;  %7377 = vst.msk [vmem:[#allocation3 + $0xd8] sm:$0xf] %vm7322_vm4, %v8299_v27  ;;  %v16498_v4 = vmax.f32 %v16497_v32, 0.0  ;;  %v16499_v6 = vld [vmem:[#allocation28_spill] sm:$0xff]  ;;  %v16501_v37 = vld [vmem:[#allocation29_spill] sm:$0xff]  ;;  %v16503_v7 = vld [vmem:[#allocation30_spill] sm:$0xff] }
 0x6ca   :  { %v8306_v54 = vpack.c.bf16 %v16494_v55, %v16494_v55  ;;  %v8307_v1 = vpack.c.bf16 %v16496_v18, %v16496_v18  ;;  %v16500_v14 = vmax.f32 %v16499_v6, 0.0  ;;  %v16502_v28 = vmax.f32 %v16501_v37, 0.0  ;;  %7378 = vst.msk [vmem:[#allocation3 + $0xdc] sm:$0xf] %vm7322_vm4, %v8300_v39  ;;  %7379 = vst.msk [vmem:[#allocation3 + $0xe0] sm:$0xf] %vm7322_vm4, %v8301_v35 }
 0x6cb   :  { %v8308_v62 = vpack.c.bf16 %v16498_v4, %v16498_v4  ;;  %v16504_v11 = vmax.f32 %v16503_v7, 0.0  ;;  %7380 = vst.msk [vmem:[#allocation3 + $0xe4] sm:$0xf] %vm7322_vm4, %v8302_v3  ;;  %7381 = vst.msk [vmem:[#allocation3 + $0xe8] sm:$0xf] %vm7322_vm4, %v8303_v25  ;;  %v16505_v41 = vld [vmem:[#allocation31_spill] sm:$0xff] }
 0x6cc   :  { %v8309_v22 = vpack.c.bf16 %v16500_v14, %v16500_v14  ;;  %v8310_v16 = vpack.c.bf16 %v16502_v28, %v16502_v28  ;;  %v16506_v47 = vmax.f32 %v16505_v41, 0.0  ;;  %v16507_v53 = vld [vmem:[#allocation32_spill] sm:$0xff]  ;;  %v16509_v17 = vld [vmem:[#allocation33_spill] sm:$0xff]  ;;  %v16511_v8 = vld [vmem:[#allocation34_spill] sm:$0xff]  ;;  %7382 = vst.msk [vmem:[#allocation3 + $0xec] sm:$0xf] %vm7322_vm4, %v8304_v20 }
 0x6cd   :  { %v8311_v34 = vpack.c.bf16 %v16504_v11, %v16504_v11  ;;  %v16508_v13 = vmax.f32 %v16507_v53, 0.0  ;;  %v16510_v59 = vmax.f32 %v16509_v17, 0.0  ;;  %v16512_v21 = vmax.f32 %v16511_v8, 0.0  ;;  %7383 = vst.msk [vmem:[#allocation3 + $0xf0] sm:$0xf] %vm7322_vm4, %v8305_v44  ;;  %v16513_v46 = vld [vmem:[#allocation35_spill] sm:$0xff] }
 0x6ce   :  { %v8312_v42 = vpack.c.bf16 %v16506_v47, %v16506_v47  ;;  %7384 = vst.msk [vmem:[#allocation3 + $0xf4] sm:$0xf] %vm7322_vm4, %v8306_v54  ;;  %7385 = vst.msk [vmem:[#allocation3 + $0xf8] sm:$0xf] %vm7322_vm4, %v8307_v1  ;;  %v16514_v24 = vmax.f32 %v16513_v46, 0.0  ;;  %v16515_v27 = vld [vmem:[#allocation36_spill] sm:$0xff] }
 0x6cf   :  { %v8313_v15 = vpack.c.bf16 %v16508_v13, %v16508_v13  ;;  %v8314_v2 = vpack.c.bf16 %v16510_v59, %v16510_v59  ;;  %v8315_v19 = vpack.c.bf16 %v16512_v21, %v16512_v21  ;;  %v16516_v36 = vmax.f32 %v16515_v27, 0.0  ;;  %v16517_v39 = vld [vmem:[#allocation37_spill] sm:$0xff]  ;;  %v16519_v35 = vld [vmem:[#allocation38_spill] sm:$0xff]  ;;  %7386 = vst.msk [vmem:[#allocation3 + $0xfc] sm:$0xf] %vm7322_vm4, %v8308_v62  ;;  %v16521_v3 = vld [vmem:[#allocation39_spill] sm:$0xff] }
 0x6d0   :  { %v8316_v31 = vpack.c.bf16 %v16514_v24, %v16514_v24  ;;  %v16518_v51 = vmax.f32 %v16517_v39, 0.0  ;;  %v16520_v40 = vmax.f32 %v16519_v35, 0.0  ;;  %7387 = vst.msk [vmem:[#allocation3 + $0x100] sm:$0xf] %vm7322_vm4, %v8309_v22  ;;  %7388 = vst.msk [vmem:[#allocation3 + $0x104] sm:$0xf] %vm7322_vm4, %v8310_v16 }
 0x6d1   :  { %v8317_v43 = vpack.c.bf16 %v16516_v36, %v16516_v36  ;;  %7389 = vst.msk [vmem:[#allocation3 + $0x108] sm:$0xf] %vm7322_vm4, %v8311_v34  ;;  %v16522_v12 = vmax.f32 %v16521_v3, 0.0  ;;  %v16523_v25 = vld [vmem:[#allocation40_spill] sm:$0xff]  ;;  %v16525_v20 = vld [vmem:[#allocation41_spill] sm:$0xff]  ;;  %v16527_v44 = vld [vmem:[#allocation42_spill] sm:$0xff] }
 0x6d2   :  { %v8318_v30 = vpack.c.bf16 %v16518_v51, %v16518_v51  ;;  %v8319_v58 = vpack.c.bf16 %v16520_v40, %v16520_v40  ;;  %v16524_v45 = vmax.f32 %v16523_v25, 0.0  ;;  %v16526_v52 = vmax.f32 %v16525_v20, 0.0  ;;  %7390 = vst.msk [vmem:[#allocation3 + $0x10c] sm:$0xf] %vm7322_vm4, %v8312_v42  ;;  %7391 = vst.msk [vmem:[#allocation3 + $0x110] sm:$0xf] %vm7322_vm4, %v8313_v15 }
 0x6d3   :  { %v8320_v56 = vpack.c.bf16 %v16522_v12, %v16522_v12  ;;  %v16528_v50 = vmax.f32 %v16527_v44, 0.0  ;;  %7392 = vst.msk [vmem:[#allocation3 + $0x114] sm:$0xf] %vm7322_vm4, %v8314_v2  ;;  %7393 = vst.msk [vmem:[#allocation3 + $0x118] sm:$0xf] %vm7322_vm4, %v8315_v19  ;;  %v16529_v54 = vld [vmem:[#allocation43_spill] sm:$0xff] }
 0x6d4   :  { %v8321_v57 = vpack.c.bf16 %v16524_v45, %v16524_v45  ;;  %v8322_v33 = vpack.c.bf16 %v16526_v52, %v16526_v52  ;;  %v16530_v60 = vmax.f32 %v16529_v54, 0.0  ;;  %v16531_v1 = vld [vmem:[#allocation44_spill] sm:$0xff]  ;;  %v16533_v62 = vld [vmem:[#allocation45_spill] sm:$0xff]  ;;  %v16535_v22 = vld [vmem:[#allocation46_spill] sm:$0xff]  ;;  %7394 = vst.msk [vmem:[#allocation3 + $0x11c] sm:$0xf] %vm7322_vm4, %v8316_v31 }
 0x6d5   :  { %v8323_v55 = vpack.c.bf16 %v16528_v50, %v16528_v50  ;;  %v16532_v32 = vmax.f32 %v16531_v1, 0.0  ;;  %v16534_v6 = vmax.f32 %v16533_v62, 0.0  ;;  %v16536_v37 = vmax.f32 %v16535_v22, 0.0  ;;  %7395 = vst.msk [vmem:[#allocation3 + $0x120] sm:$0xf] %vm7322_vm4, %v8317_v43  ;;  %v16537_v16 = vld [vmem:[#allocation47_spill] sm:$0xff] }
 0x6d6   :  { %v8324_v18 = vpack.c.bf16 %v16530_v60, %v16530_v60  ;;  %7396 = vst.msk [vmem:[#allocation3 + $0x124] sm:$0xf] %vm7322_vm4, %v8318_v30  ;;  %7397 = vst.msk [vmem:[#allocation3 + $0x128] sm:$0xf] %vm7322_vm4, %v8319_v58  ;;  %v16538_v7 = vmax.f32 %v16537_v16, 0.0  ;;  %v16539_v34 = vld [vmem:[#allocation48_spill] sm:$0xff] }
 0x6d7   :  { %v8325_v4 = vpack.c.bf16 %v16532_v32, %v16532_v32  ;;  %v8326_v14 = vpack.c.bf16 %v16534_v6, %v16534_v6  ;;  %v8327_v28 = vpack.c.bf16 %v16536_v37, %v16536_v37  ;;  %v16540_v41 = vmax.f32 %v16539_v34, 0.0  ;;  %v16541_v42 = vld [vmem:[#allocation49_spill] sm:$0xff]  ;;  %v16543_v15 = vld [vmem:[#allocation50_spill] sm:$0xff]  ;;  %7398 = vst.msk [vmem:[#allocation3 + $0x12c] sm:$0xf] %vm7322_vm4, %v8320_v56  ;;  %v16545_v2 = vld [vmem:[#allocation51_spill] sm:$0xff] }
 0x6d8   :  { %v8328_v11 = vpack.c.bf16 %v16538_v7, %v16538_v7  ;;  %v16542_v53 = vmax.f32 %v16541_v42, 0.0  ;;  %v16544_v17 = vmax.f32 %v16543_v15, 0.0  ;;  %7399 = vst.msk [vmem:[#allocation3 + $0x130] sm:$0xf] %vm7322_vm4, %v8321_v57  ;;  %7400 = vst.msk [vmem:[#allocation3 + $0x134] sm:$0xf] %vm7322_vm4, %v8322_v33 }
 0x6d9   :  { %v8329_v47 = vpack.c.bf16 %v16540_v41, %v16540_v41  ;;  %7401 = vst.msk [vmem:[#allocation3 + $0x138] sm:$0xf] %vm7322_vm4, %v8323_v55  ;;  %v16546_v8 = vmax.f32 %v16545_v2, 0.0  ;;  %v16547_v19 = vld [vmem:[#allocation52_spill] sm:$0xff]  ;;  %v16549_v31 = vld [vmem:[#allocation53_spill] sm:$0xff]  ;;  %v16551_v43 = vld [vmem:[#allocation54_spill] sm:$0xff] }
 0x6da   :  { %v8330_v13 = vpack.c.bf16 %v16542_v53, %v16542_v53  ;;  %v8331_v59 = vpack.c.bf16 %v16544_v17, %v16544_v17  ;;  %v16548_v46 = vmax.f32 %v16547_v19, 0.0  ;;  %v16550_v27 = vmax.f32 %v16549_v31, 0.0  ;;  %7402 = vst.msk [vmem:[#allocation3 + $0x13c] sm:$0xf] %vm7322_vm4, %v8324_v18  ;;  %7403 = vst.msk [vmem:[#allocation3 + $0x140] sm:$0xf] %vm7322_vm4, %v8325_v4 }
 0x6db   :  { %v8332_v21 = vpack.c.bf16 %v16546_v8, %v16546_v8  ;;  %v16552_v39 = vmax.f32 %v16551_v43, 0.0  ;;  %7404 = vst.msk [vmem:[#allocation3 + $0x144] sm:$0xf] %vm7322_vm4, %v8326_v14  ;;  %7405 = vst.msk [vmem:[#allocation3 + $0x148] sm:$0xf] %vm7322_vm4, %v8327_v28  ;;  %v16553_v30 = vld [vmem:[#allocation55_spill] sm:$0xff] }
 0x6dc   :  { %v8333_v24 = vpack.c.bf16 %v16548_v46, %v16548_v46  ;;  %v8334_v36 = vpack.c.bf16 %v16550_v27, %v16550_v27  ;;  %v16554_v35 = vmax.f32 %v16553_v30, 0.0  ;;  %v16555_v58 = vld [vmem:[#allocation56_spill] sm:$0xff]  ;;  %v16557_v56 = vld [vmem:[#allocation57_spill] sm:$0xff]  ;;  %v16559_v57 = vld [vmem:[#allocation58_spill] sm:$0xff]  ;;  %7406 = vst.msk [vmem:[#allocation3 + $0x14c] sm:$0xf] %vm7322_vm4, %v8328_v11 }
 0x6dd   :  { %v8335_v51 = vpack.c.bf16 %v16552_v39, %v16552_v39  ;;  %v16556_v3 = vmax.f32 %v16555_v58, 0.0  ;;  %v16558_v25 = vmax.f32 %v16557_v56, 0.0  ;;  %v16560_v20 = vmax.f32 %v16559_v57, 0.0  ;;  %7407 = vst.msk [vmem:[#allocation3 + $0x150] sm:$0xf] %vm7322_vm4, %v8329_v47  ;;  %v16561_v33 = vld [vmem:[#allocation59_spill] sm:$0xff] }
 0x6de   :  { %v8336_v40 = vpack.c.bf16 %v16554_v35, %v16554_v35  ;;  %7408 = vst.msk [vmem:[#allocation3 + $0x154] sm:$0xf] %vm7322_vm4, %v8330_v13  ;;  %7409 = vst.msk [vmem:[#allocation3 + $0x158] sm:$0xf] %vm7322_vm4, %v8331_v59  ;;  %v16562_v44 = vmax.f32 %v16561_v33, 0.0  ;;  %v16563_v55 = vld [vmem:[#allocation60_spill] sm:$0xff] }
 0x6df   :  { %v8337_v12 = vpack.c.bf16 %v16556_v3, %v16556_v3  ;;  %v8338_v45 = vpack.c.bf16 %v16558_v25, %v16558_v25  ;;  %v8339_v52 = vpack.c.bf16 %v16560_v20, %v16560_v20  ;;  %v16564_v54 = vmax.f32 %v16563_v55, 0.0  ;;  %v16565_v18 = vld [vmem:[#allocation61_spill] sm:$0xff]  ;;  %v16567_v4 = vld [vmem:[#allocation62_spill] sm:$0xff]  ;;  %7410 = vst.msk [vmem:[#allocation3 + $0x15c] sm:$0xf] %vm7322_vm4, %v8332_v21  ;;  %v16569_v14 = vld [vmem:[#allocation63_spill] sm:$0xff] }
 0x6e0   :  { %v8340_v50 = vpack.c.bf16 %v16562_v44, %v16562_v44  ;;  %v16566_v1 = vmax.f32 %v16565_v18, 0.0  ;;  %v16568_v62 = vmax.f32 %v16567_v4, 0.0  ;;  %7411 = vst.msk [vmem:[#allocation3 + $0x160] sm:$0xf] %vm7322_vm4, %v8333_v24  ;;  %7412 = vst.msk [vmem:[#allocation3 + $0x164] sm:$0xf] %vm7322_vm4, %v8334_v36 }
 0x6e1   :  { %v8341_v60 = vpack.c.bf16 %v16564_v54, %v16564_v54  ;;  %7413 = vst.msk [vmem:[#allocation3 + $0x168] sm:$0xf] %vm7322_vm4, %v8335_v51  ;;  %v16570_v22 = vmax.f32 %v16569_v14, 0.0  ;;  %v16571_v28 = vld [vmem:[#allocation64_spill] sm:$0xff]  ;;  %v16573_v11 = vld [vmem:[#allocation65_spill] sm:$0xff]  ;;  %v16575_v47 = vld [vmem:[#allocation66_spill] sm:$0xff] }
 0x6e2   :  { %v8342_v32 = vpack.c.bf16 %v16566_v1, %v16566_v1  ;;  %v8343_v6 = vpack.c.bf16 %v16568_v62, %v16568_v62  ;;  %v16572_v16 = vmax.f32 %v16571_v28, 0.0  ;;  %v16574_v34 = vmax.f32 %v16573_v11, 0.0  ;;  %7414 = vst.msk [vmem:[#allocation3 + $0x16c] sm:$0xf] %vm7322_vm4, %v8336_v40  ;;  %7415 = vst.msk [vmem:[#allocation3 + $0x170] sm:$0xf] %vm7322_vm4, %v8337_v12 }
 0x6e3   :  { %v8344_v37 = vpack.c.bf16 %v16570_v22, %v16570_v22  ;;  %v16576_v42 = vmax.f32 %v16575_v47, 0.0  ;;  %7416 = vst.msk [vmem:[#allocation3 + $0x174] sm:$0xf] %vm7322_vm4, %v8338_v45  ;;  %7417 = vst.msk [vmem:[#allocation3 + $0x178] sm:$0xf] %vm7322_vm4, %v8339_v52  ;;  %v16577_v13 = vld [vmem:[#allocation67_spill] sm:$0xff] }
 0x6e4   :  { %v8345_v7 = vpack.c.bf16 %v16572_v16, %v16572_v16  ;;  %v8346_v41 = vpack.c.bf16 %v16574_v34, %v16574_v34  ;;  %v16578_v15 = vmax.f32 %v16577_v13, 0.0  ;;  %v16579_v59 = vld [vmem:[#allocation68_spill] sm:$0xff]  ;;  %v16581_v21 = vld [vmem:[#allocation69_spill] sm:$0xff]  ;;  %v16583_v24 = vld [vmem:[#allocation70_spill] sm:$0xff]  ;;  %7418 = vst.msk [vmem:[#allocation3 + $0x17c] sm:$0xf] %vm7322_vm4, %v8340_v50 }
 0x6e5   :  { %v8347_v53 = vpack.c.bf16 %v16576_v42, %v16576_v42  ;;  %v16580_v2 = vmax.f32 %v16579_v59, 0.0  ;;  %v16582_v19 = vmax.f32 %v16581_v21, 0.0  ;;  %v16584_v31 = vmax.f32 %v16583_v24, 0.0  ;;  %7419 = vst.msk [vmem:[#allocation3 + $0x180] sm:$0xf] %vm7322_vm4, %v8341_v60  ;;  %v16585_v36 = vld [vmem:[#allocation71_spill] sm:$0xff] }
 0x6e6   :  { %v8348_v17 = vpack.c.bf16 %v16578_v15, %v16578_v15  ;;  %7420 = vst.msk [vmem:[#allocation3 + $0x184] sm:$0xf] %vm7322_vm4, %v8342_v32  ;;  %7421 = vst.msk [vmem:[#allocation3 + $0x188] sm:$0xf] %vm7322_vm4, %v8343_v6  ;;  %v16586_v43 = vmax.f32 %v16585_v36, 0.0  ;;  %v16587_v51 = vld [vmem:[#allocation72_spill] sm:$0xff] }
 0x6e7   :  { %v8349_v8 = vpack.c.bf16 %v16580_v2, %v16580_v2  ;;  %v8350_v46 = vpack.c.bf16 %v16582_v19, %v16582_v19  ;;  %v8351_v27 = vpack.c.bf16 %v16584_v31, %v16584_v31  ;;  %v16588_v30 = vmax.f32 %v16587_v51, 0.0  ;;  %v16589_v40 = vld [vmem:[#allocation73_spill] sm:$0xff]  ;;  %v16591_v12 = vld [vmem:[#allocation74_spill] sm:$0xff]  ;;  %7422 = vst.msk [vmem:[#allocation3 + $0x18c] sm:$0xf] %vm7322_vm4, %v8344_v37  ;;  %v16593_v45 = vld [vmem:[#allocation75_spill] sm:$0xff] }
 0x6e8   :  { %v8352_v39 = vpack.c.bf16 %v16586_v43, %v16586_v43  ;;  %v16590_v58 = vmax.f32 %v16589_v40, 0.0  ;;  %v16592_v56 = vmax.f32 %v16591_v12, 0.0  ;;  %7423 = vst.msk [vmem:[#allocation3 + $0x190] sm:$0xf] %vm7322_vm4, %v8345_v7  ;;  %7424 = vst.msk [vmem:[#allocation3 + $0x194] sm:$0xf] %vm7322_vm4, %v8346_v41 }
 0x6e9   :  { %v8353_v35 = vpack.c.bf16 %v16588_v30, %v16588_v30  ;;  %7425 = vst.msk [vmem:[#allocation3 + $0x198] sm:$0xf] %vm7322_vm4, %v8347_v53  ;;  %v16594_v57 = vmax.f32 %v16593_v45, 0.0  ;;  %v16595_v52 = vld [vmem:[#allocation76_spill] sm:$0xff]  ;;  %v16597_v50 = vld [vmem:[#allocation77_spill] sm:$0xff]  ;;  %v16599_v60 = vld [vmem:[#allocation78_spill] sm:$0xff] }
 0x6ea   :  { %v8354_v3 = vpack.c.bf16 %v16590_v58, %v16590_v58  ;;  %v8355_v25 = vpack.c.bf16 %v16592_v56, %v16592_v56  ;;  %v16596_v33 = vmax.f32 %v16595_v52, 0.0  ;;  %v16598_v55 = vmax.f32 %v16597_v50, 0.0  ;;  %7426 = vst.msk [vmem:[#allocation3 + $0x19c] sm:$0xf] %vm7322_vm4, %v8348_v17  ;;  %7427 = vst.msk [vmem:[#allocation3 + $0x1a0] sm:$0xf] %vm7322_vm4, %v8349_v8 }
 0x6eb   :  { %v8356_v20 = vpack.c.bf16 %v16594_v57, %v16594_v57  ;;  %v16600_v18 = vmax.f32 %v16599_v60, 0.0  ;;  %7428 = vst.msk [vmem:[#allocation3 + $0x1a4] sm:$0xf] %vm7322_vm4, %v8350_v46  ;;  %7429 = vst.msk [vmem:[#allocation3 + $0x1a8] sm:$0xf] %vm7322_vm4, %v8351_v27  ;;  %v16601_v32 = vld [vmem:[#allocation79_spill] sm:$0xff] }
 0x6ec   :  { %v8357_v44 = vpack.c.bf16 %v16596_v33, %v16596_v33  ;;  %v8358_v54 = vpack.c.bf16 %v16598_v55, %v16598_v55  ;;  %v16602_v4 = vmax.f32 %v16601_v32, 0.0  ;;  %v16603_v6 = vld [vmem:[#allocation80_spill] sm:$0xff]  ;;  %v16605_v37 = vld [vmem:[#allocation81_spill] sm:$0xff]  ;;  %v16607_v7 = vld [vmem:[#allocation82_spill] sm:$0xff]  ;;  %7430 = vst.msk [vmem:[#allocation3 + $0x1ac] sm:$0xf] %vm7322_vm4, %v8352_v39 }
 0x6ed   :  { %v8359_v1 = vpack.c.bf16 %v16600_v18, %v16600_v18  ;;  %v16604_v14 = vmax.f32 %v16603_v6, 0.0  ;;  %v16606_v28 = vmax.f32 %v16605_v37, 0.0  ;;  %v16608_v11 = vmax.f32 %v16607_v7, 0.0  ;;  %7431 = vst.msk [vmem:[#allocation3 + $0x1b0] sm:$0xf] %vm7322_vm4, %v8353_v35  ;;  %v16609_v41 = vld [vmem:[#allocation83_spill] sm:$0xff] }
 0x6ee   :  { %v8360_v62 = vpack.c.bf16 %v16602_v4, %v16602_v4  ;;  %7432 = vst.msk [vmem:[#allocation3 + $0x1b4] sm:$0xf] %vm7322_vm4, %v8354_v3  ;;  %7433 = vst.msk [vmem:[#allocation3 + $0x1b8] sm:$0xf] %vm7322_vm4, %v8355_v25  ;;  %v16610_v47 = vmax.f32 %v16609_v41, 0.0  ;;  %v16611_v53 = vld [vmem:[#allocation84_spill] sm:$0xff] }
 0x6ef   :  { %v8361_v22 = vpack.c.bf16 %v16604_v14, %v16604_v14  ;;  %v8362_v16 = vpack.c.bf16 %v16606_v28, %v16606_v28  ;;  %v8363_v34 = vpack.c.bf16 %v16608_v11, %v16608_v11  ;;  %v16612_v13 = vmax.f32 %v16611_v53, 0.0  ;;  %v16613_v17 = vld [vmem:[#allocation85_spill] sm:$0xff]  ;;  %v16615_v8 = vld [vmem:[#allocation86_spill] sm:$0xff]  ;;  %7434 = vst.msk [vmem:[#allocation3 + $0x1bc] sm:$0xf] %vm7322_vm4, %v8356_v20  ;;  %v16617_v46 = vld [vmem:[#allocation87_spill] sm:$0xff] }
 0x6f0   :  { %v8364_v42 = vpack.c.bf16 %v16610_v47, %v16610_v47  ;;  %v16614_v59 = vmax.f32 %v16613_v17, 0.0  ;;  %v16616_v21 = vmax.f32 %v16615_v8, 0.0  ;;  %7435 = vst.msk [vmem:[#allocation3 + $0x1c0] sm:$0xf] %vm7322_vm4, %v8357_v44  ;;  %7436 = vst.msk [vmem:[#allocation3 + $0x1c4] sm:$0xf] %vm7322_vm4, %v8358_v54 }
 0x6f1   :  { %v8365_v15 = vpack.c.bf16 %v16612_v13, %v16612_v13  ;;  %7437 = vst.msk [vmem:[#allocation3 + $0x1c8] sm:$0xf] %vm7322_vm4, %v8359_v1  ;;  %v16618_v24 = vmax.f32 %v16617_v46, 0.0  ;;  %v16619_v27 = vld [vmem:[#allocation88_spill] sm:$0xff]  ;;  %v16621_v39 = vld [vmem:[#allocation89_spill] sm:$0xff]  ;;  %v16623_v35 = vld [vmem:[#allocation90_spill] sm:$0xff] }
 0x6f2   :  { %v8366_v2 = vpack.c.bf16 %v16614_v59, %v16614_v59  ;;  %v8367_v19 = vpack.c.bf16 %v16616_v21, %v16616_v21  ;;  %v16620_v36 = vmax.f32 %v16619_v27, 0.0  ;;  %v16622_v51 = vmax.f32 %v16621_v39, 0.0  ;;  %7438 = vst.msk [vmem:[#allocation3 + $0x1cc] sm:$0xf] %vm7322_vm4, %v8360_v62  ;;  %7439 = vst.msk [vmem:[#allocation3 + $0x1d0] sm:$0xf] %vm7322_vm4, %v8361_v22 }
 0x6f3   :  { %v8368_v31 = vpack.c.bf16 %v16618_v24, %v16618_v24  ;;  %v16624_v40 = vmax.f32 %v16623_v35, 0.0  ;;  %7440 = vst.msk [vmem:[#allocation3 + $0x1d4] sm:$0xf] %vm7322_vm4, %v8362_v16  ;;  %7441 = vst.msk [vmem:[#allocation3 + $0x1d8] sm:$0xf] %vm7322_vm4, %v8363_v34  ;;  %v16625_v3 = vld [vmem:[#allocation91_spill] sm:$0xff] }
 0x6f4   :  { %v8369_v43 = vpack.c.bf16 %v16620_v36, %v16620_v36  ;;  %v8370_v30 = vpack.c.bf16 %v16622_v51, %v16622_v51  ;;  %v16626_v12 = vmax.f32 %v16625_v3, 0.0  ;;  %v16627_v25 = vld [vmem:[#allocation92_spill] sm:$0xff]  ;;  %v16629_v20 = vld [vmem:[#allocation93_spill] sm:$0xff]  ;;  %v16631_v44 = vld [vmem:[#allocation94_spill] sm:$0xff]  ;;  %7442 = vst.msk [vmem:[#allocation3 + $0x1dc] sm:$0xf] %vm7322_vm4, %v8364_v42 }
 0x6f5   :  { %v8371_v58 = vpack.c.bf16 %v16624_v40, %v16624_v40  ;;  %v16628_v45 = vmax.f32 %v16627_v25, 0.0  ;;  %v16630_v52 = vmax.f32 %v16629_v20, 0.0  ;;  %v16632_v50 = vmax.f32 %v16631_v44, 0.0  ;;  %7443 = vst.msk [vmem:[#allocation3 + $0x1e0] sm:$0xf] %vm7322_vm4, %v8365_v15  ;;  %v16633_v54 = vld [vmem:[#allocation95_spill] sm:$0xff] }
 0x6f6   :  { %v8372_v56 = vpack.c.bf16 %v16626_v12, %v16626_v12  ;;  %7444 = vst.msk [vmem:[#allocation3 + $0x1e4] sm:$0xf] %vm7322_vm4, %v8366_v2  ;;  %7445 = vst.msk [vmem:[#allocation3 + $0x1e8] sm:$0xf] %vm7322_vm4, %v8367_v19  ;;  %v16634_v60 = vmax.f32 %v16633_v54, 0.0  ;;  %v16635_v1 = vld [vmem:[#allocation96_spill] sm:$0xff] }
 0x6f7   :  { %v8373_v57 = vpack.c.bf16 %v16628_v45, %v16628_v45  ;;  %v8374_v33 = vpack.c.bf16 %v16630_v52, %v16630_v52  ;;  %v8375_v55 = vpack.c.bf16 %v16632_v50, %v16632_v50  ;;  %v16636_v32 = vmax.f32 %v16635_v1, 0.0  ;;  %v16637_v62 = vld [vmem:[#allocation97_spill] sm:$0xff]  ;;  %v16639_v22 = vld [vmem:[#allocation98_spill] sm:$0xff]  ;;  %7446 = vst.msk [vmem:[#allocation3 + $0x1ec] sm:$0xf] %vm7322_vm4, %v8368_v31  ;;  %v16641_v16 = vld [vmem:[#allocation99_spill] sm:$0xff] }
 0x6f8   :  { %v8376_v18 = vpack.c.bf16 %v16634_v60, %v16634_v60  ;;  %v16638_v6 = vmax.f32 %v16637_v62, 0.0  ;;  %v16640_v37 = vmax.f32 %v16639_v22, 0.0  ;;  %7447 = vst.msk [vmem:[#allocation3 + $0x1f0] sm:$0xf] %vm7322_vm4, %v8369_v43  ;;  %7448 = vst.msk [vmem:[#allocation3 + $0x1f4] sm:$0xf] %vm7322_vm4, %v8370_v30 }
 0x6f9   :  { %v8377_v4 = vpack.c.bf16 %v16636_v32, %v16636_v32  ;;  %7449 = vst.msk [vmem:[#allocation3 + $0x1f8] sm:$0xf] %vm7322_vm4, %v8371_v58  ;;  %v16642_v7 = vmax.f32 %v16641_v16, 0.0  ;;  %v16643_v34 = vld [vmem:[#allocation100_spill] sm:$0xff]  ;;  %v16645_v42 = vld [vmem:[#allocation101_spill] sm:$0xff]  ;;  %v16647_v15 = vld [vmem:[#allocation102_spill] sm:$0xff] }
 0x6fa   :  { %v8378_v14 = vpack.c.bf16 %v16638_v6, %v16638_v6  ;;  %v8379_v28 = vpack.c.bf16 %v16640_v37, %v16640_v37  ;;  %v16644_v41 = vmax.f32 %v16643_v34, 0.0  ;;  %v16646_v53 = vmax.f32 %v16645_v42, 0.0  ;;  %7450 = vst.msk [vmem:[#allocation3 + $0x1fc] sm:$0xf] %vm7322_vm4, %v8372_v56  ;;  %7451 = vst.msk [vmem:[#allocation3 + $0x200] sm:$0xf] %vm7322_vm4, %v8373_v57 }
 0x6fb   :  { %v8380_v11 = vpack.c.bf16 %v16642_v7, %v16642_v7  ;;  %v16648_v17 = vmax.f32 %v16647_v15, 0.0  ;;  %7452 = vst.msk [vmem:[#allocation3 + $0x204] sm:$0xf] %vm7322_vm4, %v8374_v33  ;;  %7453 = vst.msk [vmem:[#allocation3 + $0x208] sm:$0xf] %vm7322_vm4, %v8375_v55  ;;  %v16649_v2 = vld [vmem:[#allocation103_spill] sm:$0xff] }
 0x6fc   :  { %v8381_v47 = vpack.c.bf16 %v16644_v41, %v16644_v41  ;;  %v8382_v13 = vpack.c.bf16 %v16646_v53, %v16646_v53  ;;  %v16650_v8 = vmax.f32 %v16649_v2, 0.0  ;;  %v16651_v19 = vld [vmem:[#allocation104_spill] sm:$0xff]  ;;  %v16653_v31 = vld [vmem:[#allocation105_spill] sm:$0xff]  ;;  %v16655_v43 = vld [vmem:[#allocation106_spill] sm:$0xff]  ;;  %7454 = vst.msk [vmem:[#allocation3 + $0x20c] sm:$0xf] %vm7322_vm4, %v8376_v18 }
 0x6fd   :  { %v8383_v59 = vpack.c.bf16 %v16648_v17, %v16648_v17  ;;  %v16652_v46 = vmax.f32 %v16651_v19, 0.0  ;;  %v16654_v27 = vmax.f32 %v16653_v31, 0.0  ;;  %v16656_v39 = vmax.f32 %v16655_v43, 0.0  ;;  %7455 = vst.msk [vmem:[#allocation3 + $0x210] sm:$0xf] %vm7322_vm4, %v8377_v4  ;;  %v16657_v30 = vld [vmem:[#allocation107_spill] sm:$0xff] }
 0x6fe   :  { %v8384_v21 = vpack.c.bf16 %v16650_v8, %v16650_v8  ;;  %7456 = vst.msk [vmem:[#allocation3 + $0x214] sm:$0xf] %vm7322_vm4, %v8378_v14  ;;  %7457 = vst.msk [vmem:[#allocation3 + $0x218] sm:$0xf] %vm7322_vm4, %v8379_v28  ;;  %v16658_v35 = vmax.f32 %v16657_v30, 0.0  ;;  %v16659_v58 = vld [vmem:[#allocation108_spill] sm:$0xff] }
 0x6ff   :  { %v8385_v24 = vpack.c.bf16 %v16652_v46, %v16652_v46  ;;  %v8386_v36 = vpack.c.bf16 %v16654_v27, %v16654_v27  ;;  %v8387_v51 = vpack.c.bf16 %v16656_v39, %v16656_v39  ;;  %v16660_v3 = vmax.f32 %v16659_v58, 0.0  ;;  %v16661_v56 = vld [vmem:[#allocation109_spill] sm:$0xff]  ;;  %v16663_v57 = vld [vmem:[#allocation110_spill] sm:$0xff]  ;;  %7458 = vst.msk [vmem:[#allocation3 + $0x21c] sm:$0xf] %vm7322_vm4, %v8380_v11  ;;  %v16665_v33 = vld [vmem:[#allocation111_spill] sm:$0xff] }
 0x700   :  { %v8388_v40 = vpack.c.bf16 %v16658_v35, %v16658_v35  ;;  %v16662_v25 = vmax.f32 %v16661_v56, 0.0  ;;  %v16664_v20 = vmax.f32 %v16663_v57, 0.0  ;;  %7459 = vst.msk [vmem:[#allocation3 + $0x220] sm:$0xf] %vm7322_vm4, %v8381_v47  ;;  %7460 = vst.msk [vmem:[#allocation3 + $0x224] sm:$0xf] %vm7322_vm4, %v8382_v13 }
 0x701   :  { %v8389_v12 = vpack.c.bf16 %v16660_v3, %v16660_v3  ;;  %7461 = vst.msk [vmem:[#allocation3 + $0x228] sm:$0xf] %vm7322_vm4, %v8383_v59  ;;  %v16666_v44 = vmax.f32 %v16665_v33, 0.0  ;;  %v16667_v55 = vld [vmem:[#allocation112_spill] sm:$0xff]  ;;  %v16669_v18 = vld [vmem:[#allocation113_spill] sm:$0xff]  ;;  %v16671_v4 = vld [vmem:[#allocation114_spill] sm:$0xff] }
 0x702   :  { %v8390_v45 = vpack.c.bf16 %v16662_v25, %v16662_v25  ;;  %v8391_v52 = vpack.c.bf16 %v16664_v20, %v16664_v20  ;;  %v16668_v54 = vmax.f32 %v16667_v55, 0.0  ;;  %v16670_v1 = vmax.f32 %v16669_v18, 0.0  ;;  %7462 = vst.msk [vmem:[#allocation3 + $0x22c] sm:$0xf] %vm7322_vm4, %v8384_v21  ;;  %7463 = vst.msk [vmem:[#allocation3 + $0x230] sm:$0xf] %vm7322_vm4, %v8385_v24 }
 0x703   :  { %v8392_v50 = vpack.c.bf16 %v16666_v44, %v16666_v44  ;;  %v16672_v62 = vmax.f32 %v16671_v4, 0.0  ;;  %7464 = vst.msk [vmem:[#allocation3 + $0x234] sm:$0xf] %vm7322_vm4, %v8386_v36  ;;  %7465 = vst.msk [vmem:[#allocation3 + $0x238] sm:$0xf] %vm7322_vm4, %v8387_v51  ;;  %v16673_v14 = vld [vmem:[#allocation115_spill] sm:$0xff] }
 0x704   :  { %v8393_v60 = vpack.c.bf16 %v16668_v54, %v16668_v54  ;;  %v8394_v32 = vpack.c.bf16 %v16670_v1, %v16670_v1  ;;  %v16674_v22 = vmax.f32 %v16673_v14, 0.0  ;;  %v16675_v28 = vld [vmem:[#allocation116_spill] sm:$0xff]  ;;  %v16677_v11 = vld [vmem:[#allocation117_spill] sm:$0xff]  ;;  %v16679_v47 = vld [vmem:[#allocation118_spill] sm:$0xff]  ;;  %7466 = vst.msk [vmem:[#allocation3 + $0x23c] sm:$0xf] %vm7322_vm4, %v8388_v40 }
 0x705   :  { %v8395_v6 = vpack.c.bf16 %v16672_v62, %v16672_v62  ;;  %v16676_v16 = vmax.f32 %v16675_v28, 0.0  ;;  %v16678_v34 = vmax.f32 %v16677_v11, 0.0  ;;  %v16680_v42 = vmax.f32 %v16679_v47, 0.0  ;;  %7467 = vst.msk [vmem:[#allocation3 + $0x240] sm:$0xf] %vm7322_vm4, %v8389_v12  ;;  %v16681_v13 = vld [vmem:[#allocation119_spill] sm:$0xff] }
 0x706   :  { %v8396_v37 = vpack.c.bf16 %v16674_v22, %v16674_v22  ;;  %7468 = vst.msk [vmem:[#allocation3 + $0x244] sm:$0xf] %vm7322_vm4, %v8390_v45  ;;  %7469 = vst.msk [vmem:[#allocation3 + $0x248] sm:$0xf] %vm7322_vm4, %v8391_v52  ;;  %v16682_v15 = vmax.f32 %v16681_v13, 0.0  ;;  %v16683_v59 = vld [vmem:[#allocation120_spill] sm:$0xff] }
 0x707   :  { %v8397_v7 = vpack.c.bf16 %v16676_v16, %v16676_v16  ;;  %v8398_v41 = vpack.c.bf16 %v16678_v34, %v16678_v34  ;;  %v8399_v53 = vpack.c.bf16 %v16680_v42, %v16680_v42  ;;  %v16684_v2 = vmax.f32 %v16683_v59, 0.0  ;;  %v16685_v21 = vld [vmem:[#allocation121_spill] sm:$0xff]  ;;  %v16687_v24 = vld [vmem:[#allocation122_spill] sm:$0xff]  ;;  %7470 = vst.msk [vmem:[#allocation3 + $0x24c] sm:$0xf] %vm7322_vm4, %v8392_v50  ;;  %v16689_v36 = vld [vmem:[#allocation123_spill] sm:$0xff] }
 0x708   :  { %v8400_v17 = vpack.c.bf16 %v16682_v15, %v16682_v15  ;;  %v16686_v19 = vmax.f32 %v16685_v21, 0.0  ;;  %v16688_v31 = vmax.f32 %v16687_v24, 0.0  ;;  %7471 = vst.msk [vmem:[#allocation3 + $0x250] sm:$0xf] %vm7322_vm4, %v8393_v60  ;;  %7472 = vst.msk [vmem:[#allocation3 + $0x254] sm:$0xf] %vm7322_vm4, %v8394_v32 }
 0x709   :  { %v8401_v8 = vpack.c.bf16 %v16684_v2, %v16684_v2  ;;  %7473 = vst.msk [vmem:[#allocation3 + $0x258] sm:$0xf] %vm7322_vm4, %v8395_v6  ;;  %v16690_v43 = vmax.f32 %v16689_v36, 0.0  ;;  %v16691_v51 = vld [vmem:[#allocation124_spill] sm:$0xff]  ;;  %v16693_v40 = vld [vmem:[#allocation125_spill] sm:$0xff]  ;;  %v16695_v12 = vld [vmem:[#allocation126_spill] sm:$0xff] }
 0x70a   :  { %v8402_v46 = vpack.c.bf16 %v16686_v19, %v16686_v19  ;;  %v8403_v27 = vpack.c.bf16 %v16688_v31, %v16688_v31  ;;  %v16692_v30 = vmax.f32 %v16691_v51, 0.0  ;;  %v16694_v58 = vmax.f32 %v16693_v40, 0.0  ;;  %7474 = vst.msk [vmem:[#allocation3 + $0x25c] sm:$0xf] %vm7322_vm4, %v8396_v37  ;;  %7475 = vst.msk [vmem:[#allocation3 + $0x260] sm:$0xf] %vm7322_vm4, %v8397_v7 }
 0x70b   :  { %v8404_v39 = vpack.c.bf16 %v16690_v43, %v16690_v43  ;;  %v16696_v56 = vmax.f32 %v16695_v12, 0.0  ;;  %7476 = vst.msk [vmem:[#allocation3 + $0x264] sm:$0xf] %vm7322_vm4, %v8398_v41  ;;  %7477 = vst.msk [vmem:[#allocation3 + $0x268] sm:$0xf] %vm7322_vm4, %v8399_v53  ;;  %v16697_v45 = vld [vmem:[#allocation127_spill] sm:$0xff] }
 0x70c   :  { %v8405_v35 = vpack.c.bf16 %v16692_v30, %v16692_v30  ;;  %v8406_v3 = vpack.c.bf16 %v16694_v58, %v16694_v58  ;;  %v16698_v57 = vmax.f32 %v16697_v45, 0.0  ;;  %v16699_v52 = vld [vmem:[#allocation128_spill] sm:$0xff]  ;;  %v16701_v50 = vld [vmem:[#allocation129_spill] sm:$0xff]  ;;  %v16703_v60 = vld [vmem:[#allocation130_spill] sm:$0xff]  ;;  %7478 = vst.msk [vmem:[#allocation3 + $0x26c] sm:$0xf] %vm7322_vm4, %v8400_v17 }
 0x70d   :  { %v8407_v25 = vpack.c.bf16 %v16696_v56, %v16696_v56  ;;  %v16700_v33 = vmax.f32 %v16699_v52, 0.0  ;;  %v16702_v55 = vmax.f32 %v16701_v50, 0.0  ;;  %v16704_v18 = vmax.f32 %v16703_v60, 0.0  ;;  %7479 = vst.msk [vmem:[#allocation3 + $0x270] sm:$0xf] %vm7322_vm4, %v8401_v8  ;;  %v16705_v32 = vld [vmem:[#allocation131_spill] sm:$0xff] }
 0x70e   :  { %v8408_v20 = vpack.c.bf16 %v16698_v57, %v16698_v57  ;;  %7480 = vst.msk [vmem:[#allocation3 + $0x274] sm:$0xf] %vm7322_vm4, %v8402_v46  ;;  %7481 = vst.msk [vmem:[#allocation3 + $0x278] sm:$0xf] %vm7322_vm4, %v8403_v27  ;;  %v16706_v4 = vmax.f32 %v16705_v32, 0.0  ;;  %v16707_v6 = vld [vmem:[#allocation132_spill] sm:$0xff] }
 0x70f   :  { %v8409_v44 = vpack.c.bf16 %v16700_v33, %v16700_v33  ;;  %v8410_v54 = vpack.c.bf16 %v16702_v55, %v16702_v55  ;;  %v8411_v1 = vpack.c.bf16 %v16704_v18, %v16704_v18  ;;  %v16708_v14 = vmax.f32 %v16707_v6, 0.0  ;;  %v16709_v37 = vld [vmem:[#allocation133_spill] sm:$0xff]  ;;  %v16711_v7 = vld [vmem:[#allocation134_spill] sm:$0xff]  ;;  %7482 = vst.msk [vmem:[#allocation3 + $0x27c] sm:$0xf] %vm7322_vm4, %v8404_v39  ;;  %v16713_v41 = vld [vmem:[#allocation135_spill] sm:$0xff] }
 0x710   :  { %v8412_v62 = vpack.c.bf16 %v16706_v4, %v16706_v4  ;;  %v16710_v28 = vmax.f32 %v16709_v37, 0.0  ;;  %v16712_v11 = vmax.f32 %v16711_v7, 0.0  ;;  %7483 = vst.msk [vmem:[#allocation3 + $0x280] sm:$0xf] %vm7322_vm4, %v8405_v35  ;;  %7484 = vst.msk [vmem:[#allocation3 + $0x284] sm:$0xf] %vm7322_vm4, %v8406_v3 }
 0x711   :  { %v8413_v22 = vpack.c.bf16 %v16708_v14, %v16708_v14  ;;  %7485 = vst.msk [vmem:[#allocation3 + $0x288] sm:$0xf] %vm7322_vm4, %v8407_v25  ;;  %v16714_v47 = vmax.f32 %v16713_v41, 0.0  ;;  %v16715_v53 = vld [vmem:[#allocation136_spill] sm:$0xff]  ;;  %v16717_v17 = vld [vmem:[#allocation137_spill] sm:$0xff]  ;;  %v16719_v8 = vld [vmem:[#allocation138_spill] sm:$0xff] }
 0x712   :  { %v8414_v16 = vpack.c.bf16 %v16710_v28, %v16710_v28  ;;  %v8415_v34 = vpack.c.bf16 %v16712_v11, %v16712_v11  ;;  %v16716_v13 = vmax.f32 %v16715_v53, 0.0  ;;  %v16718_v59 = vmax.f32 %v16717_v17, 0.0  ;;  %7486 = vst.msk [vmem:[#allocation3 + $0x28c] sm:$0xf] %vm7322_vm4, %v8408_v20  ;;  %7487 = vst.msk [vmem:[#allocation3 + $0x290] sm:$0xf] %vm7322_vm4, %v8409_v44 }
 0x713   :  { %v8416_v42 = vpack.c.bf16 %v16714_v47, %v16714_v47  ;;  %v16720_v21 = vmax.f32 %v16719_v8, 0.0  ;;  %7488 = vst.msk [vmem:[#allocation3 + $0x294] sm:$0xf] %vm7322_vm4, %v8410_v54  ;;  %7489 = vst.msk [vmem:[#allocation3 + $0x298] sm:$0xf] %vm7322_vm4, %v8411_v1  ;;  %v16721_v46 = vld [vmem:[#allocation139_spill] sm:$0xff] }
 0x714   :  { %v8417_v15 = vpack.c.bf16 %v16716_v13, %v16716_v13  ;;  %v8418_v2 = vpack.c.bf16 %v16718_v59, %v16718_v59  ;;  %v16722_v24 = vmax.f32 %v16721_v46, 0.0  ;;  %v16723_v27 = vld [vmem:[#allocation140_spill] sm:$0xff]  ;;  %v16725_v39 = vld [vmem:[#allocation141_spill] sm:$0xff]  ;;  %v16727_v35 = vld [vmem:[#allocation142_spill] sm:$0xff]  ;;  %7490 = vst.msk [vmem:[#allocation3 + $0x29c] sm:$0xf] %vm7322_vm4, %v8412_v62 }
 0x715   :  { %v8419_v19 = vpack.c.bf16 %v16720_v21, %v16720_v21  ;;  %v16724_v36 = vmax.f32 %v16723_v27, 0.0  ;;  %v16726_v51 = vmax.f32 %v16725_v39, 0.0  ;;  %v16728_v40 = vmax.f32 %v16727_v35, 0.0  ;;  %7491 = vst.msk [vmem:[#allocation3 + $0x2a0] sm:$0xf] %vm7322_vm4, %v8413_v22  ;;  %v16729_v3 = vld [vmem:[#allocation143_spill] sm:$0xff] }
 0x716   :  { %v8420_v31 = vpack.c.bf16 %v16722_v24, %v16722_v24  ;;  %7492 = vst.msk [vmem:[#allocation3 + $0x2a4] sm:$0xf] %vm7322_vm4, %v8414_v16  ;;  %7493 = vst.msk [vmem:[#allocation3 + $0x2a8] sm:$0xf] %vm7322_vm4, %v8415_v34  ;;  %v16730_v12 = vmax.f32 %v16729_v3, 0.0  ;;  %v16731_v25 = vld [vmem:[#allocation144_spill] sm:$0xff] }
 0x717   :  { %v8421_v43 = vpack.c.bf16 %v16724_v36, %v16724_v36  ;;  %v8422_v30 = vpack.c.bf16 %v16726_v51, %v16726_v51  ;;  %v8423_v58 = vpack.c.bf16 %v16728_v40, %v16728_v40  ;;  %v16732_v45 = vmax.f32 %v16731_v25, 0.0  ;;  %v16733_v20 = vld [vmem:[#allocation145_spill] sm:$0xff]  ;;  %v16735_v44 = vld [vmem:[#allocation146_spill] sm:$0xff]  ;;  %7494 = vst.msk [vmem:[#allocation3 + $0x2ac] sm:$0xf] %vm7322_vm4, %v8416_v42  ;;  %v16737_v54 = vld [vmem:[#allocation147_spill] sm:$0xff] }
 0x718   :  { %v8424_v56 = vpack.c.bf16 %v16730_v12, %v16730_v12  ;;  %v16734_v52 = vmax.f32 %v16733_v20, 0.0  ;;  %v16736_v50 = vmax.f32 %v16735_v44, 0.0  ;;  %7495 = vst.msk [vmem:[#allocation3 + $0x2b0] sm:$0xf] %vm7322_vm4, %v8417_v15  ;;  %7496 = vst.msk [vmem:[#allocation3 + $0x2b4] sm:$0xf] %vm7322_vm4, %v8418_v2 }
 0x719   :  { %v8425_v57 = vpack.c.bf16 %v16732_v45, %v16732_v45  ;;  %7497 = vst.msk [vmem:[#allocation3 + $0x2b8] sm:$0xf] %vm7322_vm4, %v8419_v19  ;;  %v16738_v60 = vmax.f32 %v16737_v54, 0.0  ;;  %v16739_v1 = vld [vmem:[#allocation148_spill] sm:$0xff]  ;;  %v16741_v62 = vld [vmem:[#allocation149_spill] sm:$0xff]  ;;  %v16743_v22 = vld [vmem:[#allocation150_spill] sm:$0xff] }
 0x71a   :  { %v8426_v33 = vpack.c.bf16 %v16734_v52, %v16734_v52  ;;  %v8427_v55 = vpack.c.bf16 %v16736_v50, %v16736_v50  ;;  %v16740_v32 = vmax.f32 %v16739_v1, 0.0  ;;  %v16742_v6 = vmax.f32 %v16741_v62, 0.0  ;;  %7498 = vst.msk [vmem:[#allocation3 + $0x2bc] sm:$0xf] %vm7322_vm4, %v8420_v31  ;;  %7499 = vst.msk [vmem:[#allocation3 + $0x2c0] sm:$0xf] %vm7322_vm4, %v8421_v43 }
 0x71b   :  { %v8428_v18 = vpack.c.bf16 %v16738_v60, %v16738_v60  ;;  %v16744_v37 = vmax.f32 %v16743_v22, 0.0  ;;  %7500 = vst.msk [vmem:[#allocation3 + $0x2c4] sm:$0xf] %vm7322_vm4, %v8422_v30  ;;  %7501 = vst.msk [vmem:[#allocation3 + $0x2c8] sm:$0xf] %vm7322_vm4, %v8423_v58  ;;  %v16745_v16 = vld [vmem:[#allocation151_spill] sm:$0xff] }
 0x71c   :  { %v8429_v4 = vpack.c.bf16 %v16740_v32, %v16740_v32  ;;  %v8430_v14 = vpack.c.bf16 %v16742_v6, %v16742_v6  ;;  %v16746_v7 = vmax.f32 %v16745_v16, 0.0  ;;  %v16747_v34 = vld [vmem:[#allocation152_spill] sm:$0xff]  ;;  %v16749_v42 = vld [vmem:[#allocation153_spill] sm:$0xff]  ;;  %v16751_v15 = vld [vmem:[#allocation154_spill] sm:$0xff]  ;;  %7502 = vst.msk [vmem:[#allocation3 + $0x2cc] sm:$0xf] %vm7322_vm4, %v8424_v56 }
 0x71d   :  { %v8431_v28 = vpack.c.bf16 %v16744_v37, %v16744_v37  ;;  %v16748_v41 = vmax.f32 %v16747_v34, 0.0  ;;  %v16750_v53 = vmax.f32 %v16749_v42, 0.0  ;;  %v16752_v17 = vmax.f32 %v16751_v15, 0.0  ;;  %7503 = vst.msk [vmem:[#allocation3 + $0x2d0] sm:$0xf] %vm7322_vm4, %v8425_v57  ;;  %v16753_v2 = vld [vmem:[#allocation155_spill] sm:$0xff] }
 0x71e   :  { %v8432_v11 = vpack.c.bf16 %v16746_v7, %v16746_v7  ;;  %7504 = vst.msk [vmem:[#allocation3 + $0x2d4] sm:$0xf] %vm7322_vm4, %v8426_v33  ;;  %7505 = vst.msk [vmem:[#allocation3 + $0x2d8] sm:$0xf] %vm7322_vm4, %v8427_v55  ;;  %v16754_v8 = vmax.f32 %v16753_v2, 0.0  ;;  %v16755_v19 = vld [vmem:[#allocation156_spill] sm:$0xff] }
 0x71f   :  { %v8433_v47 = vpack.c.bf16 %v16748_v41, %v16748_v41  ;;  %v8434_v13 = vpack.c.bf16 %v16750_v53, %v16750_v53  ;;  %v8435_v59 = vpack.c.bf16 %v16752_v17, %v16752_v17  ;;  %v16756_v46 = vmax.f32 %v16755_v19, 0.0  ;;  %v16757_v31 = vld [vmem:[#allocation157_spill] sm:$0xff]  ;;  %v16759_v43 = vld [vmem:[#allocation158_spill] sm:$0xff]  ;;  %7506 = vst.msk [vmem:[#allocation3 + $0x2dc] sm:$0xf] %vm7322_vm4, %v8428_v18  ;;  %v16761_v30 = vld [vmem:[#allocation159_spill] sm:$0xff] }
 0x720   :  { %v8436_v21 = vpack.c.bf16 %v16754_v8, %v16754_v8  ;;  %v16758_v27 = vmax.f32 %v16757_v31, 0.0  ;;  %v16760_v39 = vmax.f32 %v16759_v43, 0.0  ;;  %7507 = vst.msk [vmem:[#allocation3 + $0x2e0] sm:$0xf] %vm7322_vm4, %v8429_v4  ;;  %7508 = vst.msk [vmem:[#allocation3 + $0x2e4] sm:$0xf] %vm7322_vm4, %v8430_v14 }
 0x721   :  { %v8437_v24 = vpack.c.bf16 %v16756_v46, %v16756_v46  ;;  %7509 = vst.msk [vmem:[#allocation3 + $0x2e8] sm:$0xf] %vm7322_vm4, %v8431_v28  ;;  %v16762_v35 = vmax.f32 %v16761_v30, 0.0  ;;  %v16763_v58 = vld [vmem:[#allocation160_spill] sm:$0xff]  ;;  %v16765_v56 = vld [vmem:[#allocation161_spill] sm:$0xff]  ;;  %v16767_v57 = vld [vmem:[#allocation162_spill] sm:$0xff] }
 0x722   :  { %v8438_v36 = vpack.c.bf16 %v16758_v27, %v16758_v27  ;;  %v8439_v51 = vpack.c.bf16 %v16760_v39, %v16760_v39  ;;  %v16764_v3 = vmax.f32 %v16763_v58, 0.0  ;;  %v16766_v25 = vmax.f32 %v16765_v56, 0.0  ;;  %7510 = vst.msk [vmem:[#allocation3 + $0x2ec] sm:$0xf] %vm7322_vm4, %v8432_v11  ;;  %7511 = vst.msk [vmem:[#allocation3 + $0x2f0] sm:$0xf] %vm7322_vm4, %v8433_v47 }
 0x723   :  { %v8440_v40 = vpack.c.bf16 %v16762_v35, %v16762_v35  ;;  %v16768_v20 = vmax.f32 %v16767_v57, 0.0  ;;  %7512 = vst.msk [vmem:[#allocation3 + $0x2f4] sm:$0xf] %vm7322_vm4, %v8434_v13  ;;  %7513 = vst.msk [vmem:[#allocation3 + $0x2f8] sm:$0xf] %vm7322_vm4, %v8435_v59  ;;  %v16769_v33 = vld [vmem:[#allocation163_spill] sm:$0xff] }
 0x724   :  { %v8441_v12 = vpack.c.bf16 %v16764_v3, %v16764_v3  ;;  %v8442_v45 = vpack.c.bf16 %v16766_v25, %v16766_v25  ;;  %v16770_v44 = vmax.f32 %v16769_v33, 0.0  ;;  %v16771_v55 = vld [vmem:[#allocation164_spill] sm:$0xff]  ;;  %v16773_v18 = vld [vmem:[#allocation165_spill] sm:$0xff]  ;;  %v16775_v4 = vld [vmem:[#allocation166_spill] sm:$0xff]  ;;  %7514 = vst.msk [vmem:[#allocation3 + $0x2fc] sm:$0xf] %vm7322_vm4, %v8436_v21 }
 0x725   :  { %v8443_v52 = vpack.c.bf16 %v16768_v20, %v16768_v20  ;;  %v16772_v54 = vmax.f32 %v16771_v55, 0.0  ;;  %v16774_v1 = vmax.f32 %v16773_v18, 0.0  ;;  %v16776_v62 = vmax.f32 %v16775_v4, 0.0  ;;  %7515 = vst.msk [vmem:[#allocation3 + $0x300] sm:$0xf] %vm7322_vm4, %v8437_v24  ;;  %v16777_v14 = vld [vmem:[#allocation167_spill] sm:$0xff] }
 0x726   :  { %v8444_v50 = vpack.c.bf16 %v16770_v44, %v16770_v44  ;;  %7516 = vst.msk [vmem:[#allocation3 + $0x304] sm:$0xf] %vm7322_vm4, %v8438_v36  ;;  %7517 = vst.msk [vmem:[#allocation3 + $0x308] sm:$0xf] %vm7322_vm4, %v8439_v51  ;;  %v16778_v22 = vmax.f32 %v16777_v14, 0.0  ;;  %v16779_v28 = vld [vmem:[#allocation168_spill] sm:$0xff] }
 0x727   :  { %v8445_v60 = vpack.c.bf16 %v16772_v54, %v16772_v54  ;;  %v8446_v32 = vpack.c.bf16 %v16774_v1, %v16774_v1  ;;  %v8447_v6 = vpack.c.bf16 %v16776_v62, %v16776_v62  ;;  %v16780_v16 = vmax.f32 %v16779_v28, 0.0  ;;  %v16781_v11 = vld [vmem:[#allocation169_spill] sm:$0xff]  ;;  %v16783_v47 = vld [vmem:[#allocation170_spill] sm:$0xff]  ;;  %7518 = vst.msk [vmem:[#allocation3 + $0x30c] sm:$0xf] %vm7322_vm4, %v8440_v40  ;;  %v16785_v13 = vld [vmem:[#allocation171_spill] sm:$0xff] }
 0x728   :  { %v8448_v37 = vpack.c.bf16 %v16778_v22, %v16778_v22  ;;  %v16782_v34 = vmax.f32 %v16781_v11, 0.0  ;;  %v16784_v42 = vmax.f32 %v16783_v47, 0.0  ;;  %7519 = vst.msk [vmem:[#allocation3 + $0x310] sm:$0xf] %vm7322_vm4, %v8441_v12  ;;  %7520 = vst.msk [vmem:[#allocation3 + $0x314] sm:$0xf] %vm7322_vm4, %v8442_v45 }
 0x729   :  { %v8449_v7 = vpack.c.bf16 %v16780_v16, %v16780_v16  ;;  %7521 = vst.msk [vmem:[#allocation3 + $0x318] sm:$0xf] %vm7322_vm4, %v8443_v52  ;;  %v16786_v15 = vmax.f32 %v16785_v13, 0.0  ;;  %v16787_v59 = vld [vmem:[#allocation172_spill] sm:$0xff]  ;;  %v16789_v21 = vld [vmem:[#allocation173_spill] sm:$0xff]  ;;  %v16791_v24 = vld [vmem:[#allocation174_spill] sm:$0xff] }
 0x72a   :  { %v8450_v41 = vpack.c.bf16 %v16782_v34, %v16782_v34  ;;  %v8451_v53 = vpack.c.bf16 %v16784_v42, %v16784_v42  ;;  %v16788_v2 = vmax.f32 %v16787_v59, 0.0  ;;  %v16790_v19 = vmax.f32 %v16789_v21, 0.0  ;;  %7522 = vst.msk [vmem:[#allocation3 + $0x31c] sm:$0xf] %vm7322_vm4, %v8444_v50  ;;  %7523 = vst.msk [vmem:[#allocation3 + $0x320] sm:$0xf] %vm7322_vm4, %v8445_v60 }
 0x72b   :  { %v8452_v17 = vpack.c.bf16 %v16786_v15, %v16786_v15  ;;  %v16792_v31 = vmax.f32 %v16791_v24, 0.0  ;;  %7524 = vst.msk [vmem:[#allocation3 + $0x324] sm:$0xf] %vm7322_vm4, %v8446_v32  ;;  %7525 = vst.msk [vmem:[#allocation3 + $0x328] sm:$0xf] %vm7322_vm4, %v8447_v6  ;;  %v16793_v36 = vld [vmem:[#allocation175_spill] sm:$0xff] }
 0x72c   :  { %v8453_v8 = vpack.c.bf16 %v16788_v2, %v16788_v2  ;;  %v8454_v46 = vpack.c.bf16 %v16790_v19, %v16790_v19  ;;  %v16794_v43 = vmax.f32 %v16793_v36, 0.0  ;;  %v16795_v51 = vld [vmem:[#allocation176_spill] sm:$0xff]  ;;  %v16797_v40 = vld [vmem:[#allocation177_spill] sm:$0xff]  ;;  %v16799_v12 = vld [vmem:[#allocation178_spill] sm:$0xff]  ;;  %7526 = vst.msk [vmem:[#allocation3 + $0x32c] sm:$0xf] %vm7322_vm4, %v8448_v37 }
 0x72d   :  { %v8455_v27 = vpack.c.bf16 %v16792_v31, %v16792_v31  ;;  %v16796_v30 = vmax.f32 %v16795_v51, 0.0  ;;  %v16798_v58 = vmax.f32 %v16797_v40, 0.0  ;;  %v16800_v56 = vmax.f32 %v16799_v12, 0.0  ;;  %7527 = vst.msk [vmem:[#allocation3 + $0x330] sm:$0xf] %vm7322_vm4, %v8449_v7  ;;  %v16801_v45 = vld [vmem:[#allocation179_spill] sm:$0xff] }
 0x72e   :  { %v8456_v39 = vpack.c.bf16 %v16794_v43, %v16794_v43  ;;  %7528 = vst.msk [vmem:[#allocation3 + $0x334] sm:$0xf] %vm7322_vm4, %v8450_v41  ;;  %7529 = vst.msk [vmem:[#allocation3 + $0x338] sm:$0xf] %vm7322_vm4, %v8451_v53  ;;  %v16802_v57 = vmax.f32 %v16801_v45, 0.0  ;;  %v16803_v52 = vld [vmem:[#allocation180_spill] sm:$0xff] }
 0x72f   :  { %v8457_v35 = vpack.c.bf16 %v16796_v30, %v16796_v30  ;;  %v8458_v3 = vpack.c.bf16 %v16798_v58, %v16798_v58  ;;  %v8459_v25 = vpack.c.bf16 %v16800_v56, %v16800_v56  ;;  %v16804_v33 = vmax.f32 %v16803_v52, 0.0  ;;  %v16805_v50 = vld [vmem:[#allocation181_spill] sm:$0xff]  ;;  %v16807_v60 = vld [vmem:[#allocation182_spill] sm:$0xff]  ;;  %7530 = vst.msk [vmem:[#allocation3 + $0x33c] sm:$0xf] %vm7322_vm4, %v8452_v17  ;;  %v16809_v32 = vld [vmem:[#allocation183_spill] sm:$0xff] }
 0x730   :  { %v8460_v20 = vpack.c.bf16 %v16802_v57, %v16802_v57  ;;  %v16806_v55 = vmax.f32 %v16805_v50, 0.0  ;;  %v16808_v18 = vmax.f32 %v16807_v60, 0.0  ;;  %7531 = vst.msk [vmem:[#allocation3 + $0x340] sm:$0xf] %vm7322_vm4, %v8453_v8  ;;  %7532 = vst.msk [vmem:[#allocation3 + $0x344] sm:$0xf] %vm7322_vm4, %v8454_v46 }
 0x731   :  { %v8461_v44 = vpack.c.bf16 %v16804_v33, %v16804_v33  ;;  %7533 = vst.msk [vmem:[#allocation3 + $0x348] sm:$0xf] %vm7322_vm4, %v8455_v27  ;;  %v16810_v4 = vmax.f32 %v16809_v32, 0.0  ;;  %v16811_v6 = vld [vmem:[#allocation184_spill] sm:$0xff]  ;;  %v16813_v37 = vld [vmem:[#allocation185_spill] sm:$0xff]  ;;  %v16815_v7 = vld [vmem:[#allocation186_spill] sm:$0xff] }
 0x732   :  { %v8462_v54 = vpack.c.bf16 %v16806_v55, %v16806_v55  ;;  %v8463_v1 = vpack.c.bf16 %v16808_v18, %v16808_v18  ;;  %v16812_v14 = vmax.f32 %v16811_v6, 0.0  ;;  %v16814_v28 = vmax.f32 %v16813_v37, 0.0  ;;  %7534 = vst.msk [vmem:[#allocation3 + $0x34c] sm:$0xf] %vm7322_vm4, %v8456_v39  ;;  %7535 = vst.msk [vmem:[#allocation3 + $0x350] sm:$0xf] %vm7322_vm4, %v8457_v35 }
 0x733   :  { %v8464_v62 = vpack.c.bf16 %v16810_v4, %v16810_v4  ;;  %v16816_v11 = vmax.f32 %v16815_v7, 0.0  ;;  %7536 = vst.msk [vmem:[#allocation3 + $0x354] sm:$0xf] %vm7322_vm4, %v8458_v3  ;;  %7537 = vst.msk [vmem:[#allocation3 + $0x358] sm:$0xf] %vm7322_vm4, %v8459_v25  ;;  %v16817_v41 = vld [vmem:[#allocation187_spill] sm:$0xff] }
 0x734   :  { %v8465_v22 = vpack.c.bf16 %v16812_v14, %v16812_v14  ;;  %v8466_v16 = vpack.c.bf16 %v16814_v28, %v16814_v28  ;;  %v16818_v47 = vmax.f32 %v16817_v41, 0.0  ;;  %v16819_v53 = vld [vmem:[#allocation188_spill] sm:$0xff]  ;;  %v16821_v17 = vld [vmem:[#allocation189_spill] sm:$0xff]  ;;  %v16823_v8 = vld [vmem:[#allocation190_spill] sm:$0xff]  ;;  %7538 = vst.msk [vmem:[#allocation3 + $0x35c] sm:$0xf] %vm7322_vm4, %v8460_v20 }
 0x735   :  { %v8467_v34 = vpack.c.bf16 %v16816_v11, %v16816_v11  ;;  %v16820_v13 = vmax.f32 %v16819_v53, 0.0  ;;  %v16822_v59 = vmax.f32 %v16821_v17, 0.0  ;;  %v16824_v21 = vmax.f32 %v16823_v8, 0.0  ;;  %7539 = vst.msk [vmem:[#allocation3 + $0x360] sm:$0xf] %vm7322_vm4, %v8461_v44  ;;  %v16825_v46 = vld [vmem:[#allocation191_spill] sm:$0xff] }
 0x736   :  { %v8468_v42 = vpack.c.bf16 %v16818_v47, %v16818_v47  ;;  %7540 = vst.msk [vmem:[#allocation3 + $0x364] sm:$0xf] %vm7322_vm4, %v8462_v54  ;;  %7541 = vst.msk [vmem:[#allocation3 + $0x368] sm:$0xf] %vm7322_vm4, %v8463_v1  ;;  %v16826_v24 = vmax.f32 %v16825_v46, 0.0  ;;  %v16827_v27 = vld [vmem:[#allocation192_spill] sm:$0xff] }
 0x737   :  { %v8469_v15 = vpack.c.bf16 %v16820_v13, %v16820_v13  ;;  %v8470_v2 = vpack.c.bf16 %v16822_v59, %v16822_v59  ;;  %v8471_v19 = vpack.c.bf16 %v16824_v21, %v16824_v21  ;;  %v16828_v36 = vmax.f32 %v16827_v27, 0.0  ;;  %v16829_v39 = vld [vmem:[#allocation193_spill] sm:$0xff]  ;;  %v16831_v35 = vld [vmem:[#allocation194_spill] sm:$0xff]  ;;  %7542 = vst.msk [vmem:[#allocation3 + $0x36c] sm:$0xf] %vm7322_vm4, %v8464_v62  ;;  %v16833_v3 = vld [vmem:[#allocation195_spill] sm:$0xff] }
 0x738   :  { %v8472_v31 = vpack.c.bf16 %v16826_v24, %v16826_v24  ;;  %v16830_v51 = vmax.f32 %v16829_v39, 0.0  ;;  %v16832_v40 = vmax.f32 %v16831_v35, 0.0  ;;  %7543 = vst.msk [vmem:[#allocation3 + $0x370] sm:$0xf] %vm7322_vm4, %v8465_v22  ;;  %7544 = vst.msk [vmem:[#allocation3 + $0x374] sm:$0xf] %vm7322_vm4, %v8466_v16 }
 0x739   :  { %v8473_v43 = vpack.c.bf16 %v16828_v36, %v16828_v36  ;;  %7545 = vst.msk [vmem:[#allocation3 + $0x378] sm:$0xf] %vm7322_vm4, %v8467_v34  ;;  %v16834_v12 = vmax.f32 %v16833_v3, 0.0  ;;  %v16835_v25 = vld [vmem:[#allocation196_spill] sm:$0xff]  ;;  %v16837_v20 = vld [vmem:[#allocation197_spill] sm:$0xff]  ;;  %v16839_v44 = vld [vmem:[#allocation198_spill] sm:$0xff] }
 0x73a   :  { %v8474_v30 = vpack.c.bf16 %v16830_v51, %v16830_v51  ;;  %v8475_v58 = vpack.c.bf16 %v16832_v40, %v16832_v40  ;;  %v16836_v45 = vmax.f32 %v16835_v25, 0.0  ;;  %v16838_v52 = vmax.f32 %v16837_v20, 0.0  ;;  %7546 = vst.msk [vmem:[#allocation3 + $0x37c] sm:$0xf] %vm7322_vm4, %v8468_v42  ;;  %7547 = vst.msk [vmem:[#allocation3 + $0x380] sm:$0xf] %vm7322_vm4, %v8469_v15 }
 0x73b   :  { %v8476_v56 = vpack.c.bf16 %v16834_v12, %v16834_v12  ;;  %v16840_v50 = vmax.f32 %v16839_v44, 0.0  ;;  %7548 = vst.msk [vmem:[#allocation3 + $0x384] sm:$0xf] %vm7322_vm4, %v8470_v2  ;;  %7549 = vst.msk [vmem:[#allocation3 + $0x388] sm:$0xf] %vm7322_vm4, %v8471_v19  ;;  %v16841_v54 = vld [vmem:[#allocation199_spill] sm:$0xff] }
 0x73c   :  { %v8477_v57 = vpack.c.bf16 %v16836_v45, %v16836_v45  ;;  %v8478_v33 = vpack.c.bf16 %v16838_v52, %v16838_v52  ;;  %v16842_v60 = vmax.f32 %v16841_v54, 0.0  ;;  %v16843_v1 = vld [vmem:[#allocation200_spill] sm:$0xff]  ;;  %v16845_v62 = vld [vmem:[#allocation201_spill] sm:$0xff]  ;;  %v16847_v22 = vld [vmem:[#allocation202_spill] sm:$0xff]  ;;  %7550 = vst.msk [vmem:[#allocation3 + $0x38c] sm:$0xf] %vm7322_vm4, %v8472_v31 }
 0x73d   :  { %v8479_v55 = vpack.c.bf16 %v16840_v50, %v16840_v50  ;;  %v16844_v32 = vmax.f32 %v16843_v1, 0.0  ;;  %v16846_v6 = vmax.f32 %v16845_v62, 0.0  ;;  %v16848_v37 = vmax.f32 %v16847_v22, 0.0  ;;  %7551 = vst.msk [vmem:[#allocation3 + $0x390] sm:$0xf] %vm7322_vm4, %v8473_v43  ;;  %v16849_v16 = vld [vmem:[#allocation203_spill] sm:$0xff] }
 0x73e   :  { %v8480_v18 = vpack.c.bf16 %v16842_v60, %v16842_v60  ;;  %7552 = vst.msk [vmem:[#allocation3 + $0x394] sm:$0xf] %vm7322_vm4, %v8474_v30  ;;  %7553 = vst.msk [vmem:[#allocation3 + $0x398] sm:$0xf] %vm7322_vm4, %v8475_v58  ;;  %v16850_v7 = vmax.f32 %v16849_v16, 0.0  ;;  %v16851_v34 = vld [vmem:[#allocation204_spill] sm:$0xff] }
 0x73f   :  { %v8481_v4 = vpack.c.bf16 %v16844_v32, %v16844_v32  ;;  %v8482_v14 = vpack.c.bf16 %v16846_v6, %v16846_v6  ;;  %v8483_v28 = vpack.c.bf16 %v16848_v37, %v16848_v37  ;;  %v16852_v41 = vmax.f32 %v16851_v34, 0.0  ;;  %v16853_v42 = vld [vmem:[#allocation205_spill] sm:$0xff]  ;;  %v16855_v15 = vld [vmem:[#allocation206_spill] sm:$0xff]  ;;  %7554 = vst.msk [vmem:[#allocation3 + $0x39c] sm:$0xf] %vm7322_vm4, %v8476_v56 }
 0x740   :  { %v8484_v11 = vpack.c.bf16 %v16850_v7, %v16850_v7  ;;  %v16854_v53 = vmax.f32 %v16853_v42, 0.0  ;;  %v16856_v17 = vmax.f32 %v16855_v15, 0.0  ;;  %7555 = vst.msk [vmem:[#allocation3 + $0x3a0] sm:$0xf] %vm7322_vm4, %v8477_v57  ;;  %7556 = vst.msk [vmem:[#allocation3 + $0x3a4] sm:$0xf] %vm7322_vm4, %v8478_v33 }
 0x741   :  { %v8485_v47 = vpack.c.bf16 %v16852_v41, %v16852_v41  ;;  %7557 = vst.msk [vmem:[#allocation3 + $0x3a8] sm:$0xf] %vm7322_vm4, %v8479_v55  ;;  %v16857_v2 = vmax.f32 %v16402_v38, 0.0  ;;  %v16858_v21 = vmax.f32 %v16403_v49, 0.0  ;;  %v16859_v46 = vmax.f32 %v16404_v5, 0.0 }
 0x742   :  { %v8486_v13 = vpack.c.bf16 %v16854_v53, %v16854_v53  ;;  %v8487_v59 = vpack.c.bf16 %v16856_v17, %v16856_v17  ;;  %v16860_v31 = vmax.f32 %v16405_v9, 0.0  ;;  %7558 = vst.msk [vmem:[#allocation3 + $0x3ac] sm:$0xf] %vm7322_vm4, %v8480_v18  ;;  %7559 = vst.msk [vmem:[#allocation3 + $0x3b0] sm:$0xf] %vm7322_vm4, %v8481_v4  ;;  %v16861_v38 = vmax.f32 %v16406_v48, 0.0 }
 0x743   :  { %v8488_v8 = vpack.c.bf16 %v16857_v2, %v16857_v2  ;;  %v8489_v19 = vpack.c.bf16 %v16858_v21, %v16858_v21  ;;  %v8490_v24 = vpack.c.bf16 %v16859_v46, %v16859_v46  ;;  %7560 = vst.msk [vmem:[#allocation3 + $0x3b4] sm:$0xf] %vm7322_vm4, %v8482_v14  ;;  %7561 = vst.msk [vmem:[#allocation3 + $0x3b8] sm:$0xf] %vm7322_vm4, %v8483_v28  ;;  %v16862_v5 = vmax.f32 %v16407_v29, 0.0 }
 0x744   :  { %v8491_v27 = vpack.c.bf16 %v16860_v31, %v16860_v31  ;;  %v8492_v49 = vpack.c.bf16 %v16861_v38, %v16861_v38  ;;  %v16863_v9 = vmax.f32 %v16408_v0, 0.0  ;;  %v16864_v39 = vmax.f32 %v16409_v61, 0.0  ;;  %7562 = vst.msk [vmem:[#allocation3 + $0x3bc] sm:$0xf] %vm7322_vm4, %v8484_v11  ;;  %7563 = vst.msk [vmem:[#allocation3 + $0x3c0] sm:$0xf] %vm7322_vm4, %v8485_v47 }
 0x745   :  { %v8493_v36 = vpack.c.bf16 %v16862_v5, %v16862_v5  ;;  %7564 = vst.msk [vmem:[#allocation3 + $0x3c4] sm:$0xf] %vm7322_vm4, %v8486_v13  ;;  %7565 = vst.msk [vmem:[#allocation3 + $0x3c8] sm:$0xf] %vm7322_vm4, %v8487_v59  ;;  %v16865_v48 = vmax.f32 %v16410_v63, 0.0  ;;  %v16866_v0 = vmax.f32 %v16411_v10, 0.0 }
 0x746   :  { %v8494_v43 = vpack.c.bf16 %v16863_v9, %v16863_v9  ;;  %v8495_v51 = vpack.c.bf16 %v16864_v39, %v16864_v39  ;;  %v16867_v30 = vmax.f32 %v16412_v26, 0.0  ;;  %v16868_v40 = vmax.f32 %v13849_v23, 0.0  ;;  %7566 = vst.msk [vmem:[#allocation3 + $0x3cc] sm:$0xf] %vm7322_vm4, %v8488_v8  ;;  %7567 = vst.msk [vmem:[#allocation3 + $0x3d0] sm:$0xf] %vm7322_vm4, %v8489_v19 }
 0x747   :  { %v8496_v29 = vpack.c.bf16 %v16865_v48, %v16865_v48  ;;  %v8497_v61 = vpack.c.bf16 %v16866_v0, %v16866_v0  ;;  %7568 = vst.msk [vmem:[#allocation3 + $0x3d4] sm:$0xf] %vm7322_vm4, %v8490_v24  ;;  %7569 = vst.msk [vmem:[#allocation3 + $0x3d8] sm:$0xf] %vm7322_vm4, %v8491_v27 }
 0x748   :  { %v8498_v35 = vpack.c.bf16 %v16867_v30, %v16867_v30  ;;  %v8499_v58 = vpack.c.bf16 %v16868_v40, %v16868_v40  ;;  %7570 = vst.msk [vmem:[#allocation3 + $0x3dc] sm:$0xf] %vm7322_vm4, %v8492_v49  ;;  %7571 = vst.msk [vmem:[#allocation3 + $0x3e0] sm:$0xf] %vm7322_vm4, %v8493_v36 }
 0x749   :  { %7572 = vst.msk [vmem:[#allocation3 + $0x3e4] sm:$0xf] %vm7322_vm4, %v8494_v43  ;;  %7573 = vst.msk [vmem:[#allocation3 + $0x3e8] sm:$0xf] %vm7322_vm4, %v8495_v51 }
 0x74a   :  { %7574 = vst.msk [vmem:[#allocation3 + $0x3ec] sm:$0xf] %vm7322_vm4, %v8496_v29  ;;  %7575 = vst.msk [vmem:[#allocation3 + $0x3f0] sm:$0xf] %vm7322_vm4, %v8497_v61 }
 0x74b   :  { %7576 = vst.msk [vmem:[#allocation3 + $0x3f4] sm:$0xf] %vm7322_vm4, %v8498_v35  ;;  %7577 = vst.msk [vmem:[#allocation3 + $0x3f8] sm:$0xf] %vm7322_vm4, %v8499_v58 }
 0x74c   :  { %9132 = shalt.err (!%p9129_p4)
}
 0x74d   :  { %s9133_s23 = scalar_lea.hbm %s15147_s2, 16384 }
 0x74e   :  { %p9134_p5 = scmp.ne.s32.totalorder %s15147_s2, %s9133_s23  ;;  %p9137_p6 = scmp.lt.u32.totalorder %s9133_s23, %s15147_s2 }
 0x750   :  { %p9139_p7 = pnand %p9137_p6, %p9134_p5 }
 0x752   :  { %9142 = shalt.err (!%p9139_p7)
}
 0x753   :  { %s9149_s28 = smov 64   ;;  %s9150_s29 = smov 4  }
 0x754   :  { %7590 = dma.vmem_to_hbm [thread:$0]  %s15102_s19, 16384, %s15147_s2, [#allocation4], %s9149_s28, %s9149_s28, %s9150_s29  }
 0x755   :  { %9143 = dma.done.wait [#allocation4], 16384  }
 0x756   :  { %9144 = vsyncadd [#allocation4], 4294950912 }
 0x757   :  { %7594 = vsyncpa [#allocation4], 1 }

</bundles_post_ra>
